<compile_context>
chip_gen: v6e
topology: v6e:2x2x1
jax: 0.10.0
libtpu: 0.0.40
codegen_flags: <defaults>
</compile_context>

<pallas_src>
import math
from functools import partial

import numpy as np
import jax
import jax.numpy as jnp
from jax.experimental import pallas as pl
from jax.experimental.pallas import tpu as pltpu

PAD = 2  # universal halo: covers the 3x3 convs (need 1) and the 5x5 LSA (needs 2)


def _gelu(x):
    return 0.5 * x * (1.0 + jax.lax.erf(x * (1.0 / math.sqrt(2.0))))


# ---------------------------------------------------------------------------
# fused RDAB kernel (one image per grid step)
# ---------------------------------------------------------------------------
def _rdab_kernel(*refs, H, W, G0, G, n_layers):
    Wp = W + 2 * PAD
    P = (H + 2 * PAD) * Wp
    base = PAD * Wp + PAD                     # flat index of interior pixel (0,0)
    R = (H - 1) * Wp + W                      # contiguous run covering all interior pixels
    taps3 = [(di - 1) * Wp + (dj - 1) for di in range(3) for dj in range(3)]
    taps5 = [(di - 2) * Wp + (dj - 2) for di in range(5) for dj in range(5)]
    ctot = G0 + n_layers * G

    # ---- parse refs ----
    x_ref, mrun_ref, mfull_ref = refs[0:3]
    pos = 3
    conv_p = []
    for _ in range(n_layers):
        conv_p.append(refs[pos:pos + 4])      # (fused_conv_w, conv_b, pa_w, pa_b)
        pos += 4
    lffw_ref, lffb_ref = refs[pos:pos + 2]; pos += 2
    qkvw_ref, qkvb_ref = refs[pos:pos + 2]; pos += 2
    wbal_ref = refs[pos]; pos += 1
    out_ref = refs[pos]; pos += 1
    h_ref, im_ref, kv_ref = refs[pos:pos + 3]

    mrun = mrun_ref[...]                      # (1, R) 1.0 at interior run columns
    mfull = mfull_ref[...]                    # (1, P) 1.0 at interior flat positions

    def mm(a, b):
        # MXU in bf16 (weights already bf16), accumulate in f32.
        return jnp.dot(a.astype(jnp.bfloat16), b.astype(jnp.bfloat16),
                       preferred_element_type=jnp.float32)

    # ---- zero just the halo ring bands of the dense-block scratch (cheap,
    #      per step; safe even if the batch axis is split across cores) ----
    h_ref[:, 0:base] = jnp.zeros((ctot, base), jnp.float32)
    h_ref[:, base + R:P] = jnp.zeros((ctot, P - base - R), jnp.float32)

    # ---- block 0 = x: write the run + its 9 shifted im2col windows ----
    h_ref[0:G0, base:base + R] = x_ref[0, :, base:base + R].astype(jnp.float32)

    def slab_append(row0, ch0, nch):
        # append 9 shifted windows of channels [ch0, ch0+nch) to the im2col slab
        for t, off in enumerate(taps3):
            s = base + off
            im_ref[row0 + t * nch: row0 + (t + 1) * nch, :] = \
                h_ref[ch0:ch0 + nch, s:s + R]

    slab_append(0, 0, G0)

    # ---- dense chain: C x [conv3x3 -> GELU -> PixelAttention -> concat] ----
    for c in range(n_layers):
        cw_ref, cb_ref, paw_ref, pab_ref = conv_p[c]
        cin = G0 + c * G
        # single big-K MXU dot: (G, 9*cin) @ (9*cin, R)
        acc = mm(cw_ref[...], im_ref[0:9 * cin, :])
        y = _gelu(acc + cb_ref[...])                              # (G, R)
        gate = jax.nn.sigmoid(mm(paw_ref[...], y) + pab_ref[...])
        pa = y * gate * mrun                                      # zero at seam cols
        h_ref[cin:cin + G, base:base + R] = pa
        if c < n_layers - 1:
            slab_append(9 * cin, cin, G)

    # ---- LocalSelfAttention(G0 -> G0, k=5, pad=2) on the block input x ----
    qkv = mm(qkvw_ref[...], x_ref[0]) + qkvb_ref[...]             # (3*G0, P)
    kv_ref[0:G0, :] = qkv[G0:2 * G0, :] * mfull                   # k map, ring = 0
    kv_ref[G0:2 * G0, :] = qkv[2 * G0:3 * G0, :] * mfull          # v map, ring = 0
    qs = qkv[0:G0, base:base + R] * (1.0 / math.sqrt(G0))         # fold 1/sqrt(d)

    scores = []
    for off in taps5:
        s = base + off
        prod = qs * kv_ref[0:G0, s:s + R]
        scores.append(jnp.sum(prod, axis=0, keepdims=True))       # (1, R) lane-dense
    sarr = jnp.concatenate(scores, axis=0)                        # (25, R)
    sarr = sarr - jnp.max(sarr, axis=0, keepdims=True)
    e = jnp.exp(sarr)
    a = e * pl.reciprocal(jnp.sum(e, axis=0, keepdims=True), approx=True)
    attn = jnp.zeros((G0, R), jnp.float32)
    for t, off in enumerate(taps5):
        s = base + off
        attn = attn + a[t:t + 1, :] * kv_ref[G0:2 * G0, s:s + R]

    # ---- LFF (1x1 conv to G0) + Balance(LFF(h), LSA(x)) ----
    lff = mm(lffw_ref[...], h_ref[0:ctot, base:base + R]) + lffb_ref[...]
    w = wbal_ref[0, 0]                                            # scalar from SMEM
    out_ref[0, :, :] = w * lff + (1.0 - w) * attn                 # run-only, lane-dense


# ---------------------------------------------------------------------------
# wrapper: NCHW in, NCHW out (matches the PyTorch module)
# ---------------------------------------------------------------------------
def rdab_forward(params, x_nchw):
    x = x_nchw.astype(jnp.float32)
    N, G0, H, W = x.shape
    G = params["conv"][0]["pa_w"].shape[0]
    C = len(params["conv"])
    ctot = G0 + C * G
    cin_last = G0 + (C - 1) * G

    Hp, Wp = H + 2 * PAD, W + 2 * PAD
    P = Hp * Wp
    base = PAD * Wp + PAD
    R = (H - 1) * Wp + W

    # one cheap pad + flatten in glue (bf16 halves the input DMA; matmuls run in
    # bf16 anyway); everything else happens in the kernel.
    xp = jnp.pad(x, ((0, 0), (0, 0), (PAD, PAD), (PAD, PAD))).reshape(N, G0, P)
    xp = xp.astype(jnp.bfloat16)

    idx = np.arange(P)
    row, col = idx // Wp, idx % Wp
    interior = ((row >= PAD) & (row < PAD + H) & (col >= PAD) & (col < PAD + W))
    mfull = jnp.asarray(interior.astype(np.float32)).reshape(1, P)
    mrun = jnp.asarray(interior[base:base + R].astype(np.float32)).reshape(1, R)

    bf = jnp.bfloat16

    def fuse_conv_w(w9, layer_idx):
        # (9, G, cin) tap-major -> (G, 9*cin) matching the per-block tap-major
        # im2col slab row order (block 0 = x, block j = layer j-1 output).
        Gout = w9.shape[1]
        blocks = [(0, G0)] + [(G0 + j * G, G) for j in range(layer_idx)]
        pieces = [jnp.transpose(w9[:, :, c0:c0 + n], (1, 0, 2)).reshape(Gout, 9 * n)
                  for (c0, n) in blocks]
        return jnp.concatenate(pieces, axis=1).astype(bf)

    def wspec(shape):                       # whole-array (broadcast) BlockSpec
        nd = len(shape)
        return pl.BlockSpec(shape, lambda i, _nd=nd: (0,) * _nd)

    args = [xp, mrun, mfull]
    in_specs = [pl.BlockSpec((1, G0, P), lambda i: (i, 0, 0)),
                wspec((1, R)), wspec((1, P))]
    for li, cp in enumerate(params["conv"]):
        for arr in (fuse_conv_w(cp["w"], li), cp["b"],
                    cp["pa_w"].astype(bf), cp["pa_b"]):
            args.append(arr)
            in_specs.append(wspec(arr.shape))
    qkv_w = jnp.concatenate([params["q_w"], params["k_w"], params["v_w"]],
                            axis=0).astype(bf)
    qkv_b = jnp.concatenate([params["q_b"], params["k_b"], params["v_b"]], axis=0)
    for arr in (params["lff_w"].astype(bf), params["lff_b"], qkv_w, qkv_b):
        args.append(arr)
        in_specs.append(wspec(arr.shape))
    args.append(params["balance"])
    in_specs.append(pl.BlockSpec(memory_space=pltpu.MemorySpace.SMEM))  # scalar

    out_run = pl.pallas_call(
        partial(_rdab_kernel, H=H, W=W, G0=G0, G=G, n_layers=C),
        out_shape=jax.ShapeDtypeStruct((N, G0, R), jnp.float32),
        grid=(N,),
        in_specs=in_specs,
        out_specs=pl.BlockSpec((1, G0, R), lambda i: (i, 0, 0)),
        scratch_shapes=[pltpu.VMEM((ctot, P), jnp.float32),        # dense block (padded-flat)
                        pltpu.VMEM((9 * cin_last, R), jnp.float32),  # incremental im2col slab
                        pltpu.VMEM((2 * G0, P), jnp.float32)],     # LSA k/v maps
        compiler_params=pltpu.CompilerParams(
            dimension_semantics=("parallel",),
            vmem_limit_bytes=64 * 1024 * 1024),
    )(*args)

    # run layout (offset from first interior pixel, stride Wp per image row) ->
    # NCHW via one cheap pad + reshape + slice.
    out_full = jnp.pad(out_run, ((0, 0), (0, 0), (0, Wp - W)))     # (N, G0, H*Wp)
    return out_full.reshape(N, G0, H, Wp)[:, :, :, :W]


# ---------------------------------------------------------------------------
# pure-JAX reference (independent NCHW formulation) for validation
# ---------------------------------------------------------------------------
def rdab_reference(params, x):
    N, G0, H, W = x.shape
    hi = "highest"

    def conv3x3(h, w9, b):
        hp = jnp.pad(h, ((0, 0), (0, 0), (1, 1), (1, 1)))
        out = 0.0
        for t in range(9):
            di, dj = t // 3, t % 3
            out = out + jnp.einsum("gc,nchw->nghw", w9[t],
                                   hp[:, :, di:di + H, dj:dj + W], precision=hi)
        return out + b.reshape(1, -1, 1, 1)

    def conv1x1(h, w, b):
        return jnp.einsum("oc,nchw->nohw", w, h, precision=hi) + b.reshape(1, -1, 1, 1)

    h = x
    for cp in params["conv"]:
        y = _gelu(conv3x3(h, cp["w"], cp["b"]))
        pa = y * jax.nn.sigmoid(conv1x1(y, cp["pa_w"], cp["pa_b"]))
        h = jnp.concatenate([h, pa], axis=1)
    lff = conv1x1(h, params["lff_w"], params["lff_b"])

    q = conv1x1(x, params["q_w"], params["q_b"])
    k = conv1x1(x, params["k_w"], params["k_b"])
    v = conv1x1(x, params["v_w"], params["v_b"])
    kp = jnp.pad(k, ((0, 0), (0, 0), (2, 2), (2, 2)))
    vp = jnp.pad(v, ((0, 0), (0, 0), (2, 2), (2, 2)))
    scores = []
    for di in range(5):
        for dj in range(5):
            scores.append(jnp.sum(q * kp[:, :, di:di + H, dj:dj + W], axis=1))
    s = jnp.stack(scores, axis=-1) / math.sqrt(G0)
    a = jax.nn.softmax(s, axis=-1)
    attn = 0.0
    t = 0
    for di in range(5):
        for dj in range(5):
            attn = attn + a[..., t][:, None, :, :] * vp[:, :, di:di + H, dj:dj + W]
            t += 1
    wb = params["balance"][0, 0]
    return wb * lff + (1.0 - wb) * attn


# ---------------------------------------------------------------------------
# deterministic parameter construction (PyTorch-style uniform init)
# ---------------------------------------------------------------------------
def build_params(key, *, G0, G, C, kernel=3):
    cnt = [0]

    def nk():
        cnt[0] += 1
        return jax.random.fold_in(key, cnt[0])

    def uni(shape, bound):
        return jax.random.uniform(nk(), shape, jnp.float32, -bound, bound)

    convs = []
    for c in range(C):
        cin = G0 + c * G
        bnd = 1.0 / math.sqrt(cin * kernel * kernel)
        w = uni((kernel * kernel, G, cin), bnd)   # tap-major: t = di*3 + dj
        b = uni((G, 1), bnd)
        pbnd = 1.0 / math.sqrt(G)
        convs.append({"w": w, "b": b,
                      "pa_w": uni((G, G), pbnd), "pa_b": uni((G, 1), pbnd)})
    ctot = G0 + C * G
    lbnd = 1.0 / math.sqrt(ctot)
    abnd = 1.0 / math.sqrt(G0)
    return {
        "conv": convs,
        "lff_w": uni((G0, ctot), lbnd), "lff_b": uni((G0, 1), lbnd),
        "q_w": uni((G0, G0), abnd), "q_b": uni((G0, 1), abnd),
        "k_w": uni((G0, G0), abnd), "k_b": uni((G0, 1), abnd),
        "v_w": uni((G0, G0), abnd), "v_b": uni((G0, 1), abnd),
        "balance": jnp.full((1, 1), 0.5, jnp.float32),
    }


# ---------------------------------------------------------------------------
if __name__ == "__main__":
    key = jax.random.PRNGKey(0)
    pkey, xkey = jax.random.split(key)
    N, G0, G, C, H, W = 2, 16, 8, 2, 16, 16
    params = build_params(pkey, G0=G0, G=G, C=C)
    x = jax.random.normal(xkey, (N, G0, H, W), jnp.float32)   # NCHW, like PyTorch

    out = jax.block_until_ready(jax.jit(rdab_forward)(params, x))
    assert out.shape == (N, G0, H, W), out.shape
    assert bool(jnp.all(jnp.isfinite(out)))

    ref = jax.block_until_ready(jax.jit(rdab_reference)(params, x))
    err = float(jnp.max(jnp.abs(out - ref)) / (jnp.max(jnp.abs(ref)) + 1e-6))
    assert err < 5e-2, f"mismatch vs reference: {err}"

    print("KERNEL_OK")
</pallas_src>

<mosaic_0001>
module attributes {stable_mosaic.version = 11 : i64} {
  func.func @_rdab_kernel(%arg0: i32, %arg1: memref<1x16x400xbf16, #tpu.memory_space<vmem>>, %arg2: memref<1x316xf32, #tpu.memory_space<vmem>>, %arg3: memref<1x400xf32, #tpu.memory_space<vmem>>, %arg4: memref<8x144xbf16, #tpu.memory_space<vmem>>, %arg5: memref<8x1xf32, #tpu.memory_space<vmem>>, %arg6: memref<8x8xbf16, #tpu.memory_space<vmem>>, %arg7: memref<8x1xf32, #tpu.memory_space<vmem>>, %arg8: memref<8x216xbf16, #tpu.memory_space<vmem>>, %arg9: memref<8x1xf32, #tpu.memory_space<vmem>>, %arg10: memref<8x8xbf16, #tpu.memory_space<vmem>>, %arg11: memref<8x1xf32, #tpu.memory_space<vmem>>, %arg12: memref<16x32xbf16, #tpu.memory_space<vmem>>, %arg13: memref<16x1xf32, #tpu.memory_space<vmem>>, %arg14: memref<48x16xbf16, #tpu.memory_space<vmem>>, %arg15: memref<48x1xf32, #tpu.memory_space<vmem>>, %arg16: memref<1x1xf32, #tpu.memory_space<smem>>, %arg17: memref<1x16x316xf32, #tpu.memory_space<vmem>>, %arg18: memref<32x400xf32, #tpu.memory_space<vmem>>, %arg19: memref<216x316xf32, #tpu.memory_space<vmem>>, %arg20: memref<32x400xf32, #tpu.memory_space<vmem>>) attributes {dimension_semantics = [#tpu.dimension_semantics<parallel>], iteration_bounds = array<i64: 2>, scalar_prefetch = 0 : i64, scratch_operands = 3 : i64, tpu.core_type = #tpu.core_type<tc>, window_params = [{transform_indices = @transform_0, window_bounds = array<i64: 1, 16, 400>}, {pipeline_mode = #tpu.pipeline_mode<synchronous>, transform_indices = @transform_1, window_bounds = array<i64: 1, 316>}, {pipeline_mode = #tpu.pipeline_mode<synchronous>, transform_indices = @transform_2, window_bounds = array<i64: 1, 400>}, {pipeline_mode = #tpu.pipeline_mode<synchronous>, transform_indices = @transform_3, window_bounds = array<i64: 8, 144>}, {pipeline_mode = #tpu.pipeline_mode<synchronous>, transform_indices = @transform_4, window_bounds = array<i64: 8, 1>}, {pipeline_mode = #tpu.pipeline_mode<synchronous>, transform_indices = @transform_5, window_bounds = array<i64: 8, 8>}, {pipeline_mode = #tpu.pipeline_mode<synchronous>, transform_indices = @transform_6, window_bounds = array<i64: 8, 1>}, {pipeline_mode = #tpu.pipeline_mode<synchronous>, transform_indices = @transform_7, window_bounds = array<i64: 8, 216>}, {pipeline_mode = #tpu.pipeline_mode<synchronous>, transform_indices = @transform_8, window_bounds = array<i64: 8, 1>}, {pipeline_mode = #tpu.pipeline_mode<synchronous>, transform_indices = @transform_9, window_bounds = array<i64: 8, 8>}, {pipeline_mode = #tpu.pipeline_mode<synchronous>, transform_indices = @transform_10, window_bounds = array<i64: 8, 1>}, {pipeline_mode = #tpu.pipeline_mode<synchronous>, transform_indices = @transform_11, window_bounds = array<i64: 16, 32>}, {pipeline_mode = #tpu.pipeline_mode<synchronous>, transform_indices = @transform_12, window_bounds = array<i64: 16, 1>}, {pipeline_mode = #tpu.pipeline_mode<synchronous>, transform_indices = @transform_13, window_bounds = array<i64: 48, 16>}, {pipeline_mode = #tpu.pipeline_mode<synchronous>, transform_indices = @transform_14, window_bounds = array<i64: 48, 1>}, {transform_indices = @transform_15, window_bounds = array<i64: 1, 1>}, {transform_indices = @transform_16, window_bounds = array<i64: 1, 16, 316>}]} {
    %c0 = arith.constant 0 : index
    %c0_0 = arith.constant 0 : index
    %0 = vector.load %arg2[%c0, %c0_0] : memref<1x316xf32, #tpu.memory_space<vmem>>, vector<1x316xf32>
    %c0_1 = arith.constant 0 : index
    %c0_2 = arith.constant 0 : index
    %1 = vector.load %arg3[%c0_1, %c0_2] : memref<1x400xf32, #tpu.memory_space<vmem>>, vector<1x400xf32>
    %cst = arith.constant 0.000000e+00 : f32
    %2 = vector.broadcast %cst : f32 to vector<32x42xf32>
    %c0_3 = arith.constant 0 : index
    %c0_4 = arith.constant 0 : index
    %3 = vector.load %arg18[%c0_3, %c0_4] : memref<32x400xf32, #tpu.memory_space<vmem>>, vector<32x42xf32>
    tpu.vector_store %arg18[%c0_3, %c0_4], %2 {strides = array<i32>} : memref<32x400xf32, #tpu.memory_space<vmem>>, vector<32x42xf32>,
    %cst_5 = arith.constant 0.000000e+00 : f32
    %4 = vector.broadcast %cst_5 : f32 to vector<32x42xf32>
    %c0_6 = arith.constant 0 : index
    %c358 = arith.constant 358 : index
    %5 = vector.load %arg18[%c0_6, %c358] : memref<32x400xf32, #tpu.memory_space<vmem>>, vector<32x42xf32>
    tpu.vector_store %arg18[%c0_6, %c358], %4 {strides = array<i32>} : memref<32x400xf32, #tpu.memory_space<vmem>>, vector<32x42xf32>,
    %c0_7 = arith.constant 0 : index
    %c0_8 = arith.constant 0 : index
    %c42 = arith.constant 42 : index
    %6 = vector.load %arg1[%c0_7, %c0_8, %c42] : memref<1x16x400xbf16, #tpu.memory_space<vmem>>, vector<1x16x316xbf16>
    %7 = vector.shape_cast %6 : vector<1x16x316xbf16> to vector<16x316xbf16>
    %8 = arith.extf %7 : vector<16x316xbf16> to vector<16x316xf32>
    %c0_9 = arith.constant 0 : index
    %c42_10 = arith.constant 42 : index
    %9 = vector.load %arg18[%c0_9, %c42_10] : memref<32x400xf32, #tpu.memory_space<vmem>>, vector<16x316xf32>
    tpu.vector_store %arg18[%c0_9, %c42_10], %8 {strides = array<i32>} : memref<32x400xf32, #tpu.memory_space<vmem>>, vector<16x316xf32>,
    %c0_11 = arith.constant 0 : index
    %c21 = arith.constant 21 : index
    %10 = vector.load %arg18[%c0_11, %c21] : memref<32x400xf32, #tpu.memory_space<vmem>>, vector<16x316xf32>
    %c0_12 = arith.constant 0 : index
    %c0_13 = arith.constant 0 : index
    %11 = vector.load %arg19[%c0_12, %c0_13] : memref<216x316xf32, #tpu.memory_space<vmem>>, vector<16x316xf32>
    tpu.vector_store %arg19[%c0_12, %c0_13], %10 {strides = array<i32>} : memref<216x316xf32, #tpu.memory_space<vmem>>, vector<16x316xf32>,
    %c0_14 = arith.constant 0 : index
    %c22 = arith.constant 22 : index
    %12 = vector.load %arg18[%c0_14, %c22] : memref<32x400xf32, #tpu.memory_space<vmem>>, vector<16x316xf32>
    %c16 = arith.constant 16 : index
    %c0_15 = arith.constant 0 : index
    %13 = vector.load %arg19[%c16, %c0_15] : memref<216x316xf32, #tpu.memory_space<vmem>>, vector<16x316xf32>
    tpu.vector_store %arg19[%c16, %c0_15], %12 {strides = array<i32>} : memref<216x316xf32, #tpu.memory_space<vmem>>, vector<16x316xf32>,
    %c0_16 = arith.constant 0 : index
    %c23 = arith.constant 23 : index
    %14 = vector.load %arg18[%c0_16, %c23] : memref<32x400xf32, #tpu.memory_space<vmem>>, vector<16x316xf32>
    %c32 = arith.constant 32 : index
    %c0_17 = arith.constant 0 : index
    %15 = vector.load %arg19[%c32, %c0_17] : memref<216x316xf32, #tpu.memory_space<vmem>>, vector<16x316xf32>
    tpu.vector_store %arg19[%c32, %c0_17], %14 {strides = array<i32>} : memref<216x316xf32, #tpu.memory_space<vmem>>, vector<16x316xf32>,
    %c0_18 = arith.constant 0 : index
    %c41 = arith.constant 41 : index
    %16 = vector.load %arg18[%c0_18, %c41] : memref<32x400xf32, #tpu.memory_space<vmem>>, vector<16x316xf32>
    %c48 = arith.constant 48 : index
    %c0_19 = arith.constant 0 : index
    %17 = vector.load %arg19[%c48, %c0_19] : memref<216x316xf32, #tpu.memory_space<vmem>>, vector<16x316xf32>
    tpu.vector_store %arg19[%c48, %c0_19], %16 {strides = array<i32>} : memref<216x316xf32, #tpu.memory_space<vmem>>, vector<16x316xf32>,
    %c0_20 = arith.constant 0 : index
    %c42_21 = arith.constant 42 : index
    %18 = vector.load %arg18[%c0_20, %c42_21] : memref<32x400xf32, #tpu.memory_space<vmem>>, vector<16x316xf32>
    %c64 = arith.constant 64 : index
    %c0_22 = arith.constant 0 : index
    %19 = vector.load %arg19[%c64, %c0_22] : memref<216x316xf32, #tpu.memory_space<vmem>>, vector<16x316xf32>
    tpu.vector_store %arg19[%c64, %c0_22], %18 {strides = array<i32>} : memref<216x316xf32, #tpu.memory_space<vmem>>, vector<16x316xf32>,
    %c0_23 = arith.constant 0 : index
    %c43 = arith.constant 43 : index
    %20 = vector.load %arg18[%c0_23, %c43] : memref<32x400xf32, #tpu.memory_space<vmem>>, vector<16x316xf32>
    %c80 = arith.constant 80 : index
    %c0_24 = arith.constant 0 : index
    %21 = vector.load %arg19[%c80, %c0_24] : memref<216x316xf32, #tpu.memory_space<vmem>>, vector<16x316xf32>
    tpu.vector_store %arg19[%c80, %c0_24], %20 {strides = array<i32>} : memref<216x316xf32, #tpu.memory_space<vmem>>, vector<16x316xf32>,
    %c0_25 = arith.constant 0 : index
    %c61 = arith.constant 61 : index
    %22 = vector.load %arg18[%c0_25, %c61] : memref<32x400xf32, #tpu.memory_space<vmem>>, vector<16x316xf32>
    %c96 = arith.constant 96 : index
    %c0_26 = arith.constant 0 : index
    %23 = vector.load %arg19[%c96, %c0_26] : memref<216x316xf32, #tpu.memory_space<vmem>>, vector<16x316xf32>
    tpu.vector_store %arg19[%c96, %c0_26], %22 {strides = array<i32>} : memref<216x316xf32, #tpu.memory_space<vmem>>, vector<16x316xf32>,
    %c0_27 = arith.constant 0 : index
    %c62 = arith.constant 62 : index
    %24 = vector.load %arg18[%c0_27, %c62] : memref<32x400xf32, #tpu.memory_space<vmem>>, vector<16x316xf32>
    %c112 = arith.constant 112 : index
    %c0_28 = arith.constant 0 : index
    %25 = vector.load %arg19[%c112, %c0_28] : memref<216x316xf32, #tpu.memory_space<vmem>>, vector<16x316xf32>
    tpu.vector_store %arg19[%c112, %c0_28], %24 {strides = array<i32>} : memref<216x316xf32, #tpu.memory_space<vmem>>, vector<16x316xf32>,
    %c0_29 = arith.constant 0 : index
    %c63 = arith.constant 63 : index
    %26 = vector.load %arg18[%c0_29, %c63] : memref<32x400xf32, #tpu.memory_space<vmem>>, vector<16x316xf32>
    %c128 = arith.constant 128 : index
    %c0_30 = arith.constant 0 : index
    %27 = vector.load %arg19[%c128, %c0_30] : memref<216x316xf32, #tpu.memory_space<vmem>>, vector<16x316xf32>
    tpu.vector_store %arg19[%c128, %c0_30], %26 {strides = array<i32>} : memref<216x316xf32, #tpu.memory_space<vmem>>, vector<16x316xf32>,
    %c0_31 = arith.constant 0 : index
    %c0_32 = arith.constant 0 : index
    %28 = vector.load %arg4[%c0_31, %c0_32] : memref<8x144xbf16, #tpu.memory_space<vmem>>, vector<8x144xbf16>
    %c0_33 = arith.constant 0 : index
    %c0_34 = arith.constant 0 : index
    %29 = vector.load %arg19[%c0_33, %c0_34] : memref<216x316xf32, #tpu.memory_space<vmem>>, vector<144x316xf32>
    %30 = arith.truncf %29 : vector<144x316xf32> to vector<144x316xbf16>
    %cst_35 = arith.constant dense<0.000000e+00> : vector<8x316xf32>
    %31 = tpu.matmul %28, %30, %cst_35 {dimension_numbers = #tpu.dot_dimension_numbers<[1], [0], [0], [1], [0, 0, 1, 1], [], []>} : vector<8x144xbf16>, vector<144x316xbf16>, vector<8x316xf32> -> vector<8x316xf32>
    %c0_36 = arith.constant 0 : index
    %c0_37 = arith.constant 0 : index
    %32 = vector.load %arg5[%c0_36, %c0_37] : memref<8x1xf32, #tpu.memory_space<vmem>>, vector<8x1xf32>
    %33 = vector.broadcast %32 : vector<8x1xf32> to vector<8x316xf32>
    %34 = arith.addf %31, %33 : vector<8x316xf32>
    %cst_38 = arith.constant 5.000000e-01 : f32
    %35 = vector.broadcast %cst_38 : f32 to vector<8x316xf32>
    %36 = arith.mulf %35, %34 : vector<8x316xf32>
    %cst_39 = arith.constant 0.707106769 : f32
    %37 = vector.broadcast %cst_39 : f32 to vector<8x316xf32>
    %38 = arith.mulf %34, %37 : vector<8x316xf32>
    %39 = math.erf %38 : vector<8x316xf32>
    %cst_40 = arith.constant 1.000000e+00 : f32
    %40 = vector.broadcast %cst_40 : f32 to vector<8x316xf32>
    %41 = arith.addf %40, %39 : vector<8x316xf32>
    %42 = arith.mulf %36, %41 : vector<8x316xf32>
    %c0_41 = arith.constant 0 : index
    %c0_42 = arith.constant 0 : index
    %43 = vector.load %arg6[%c0_41, %c0_42] : memref<8x8xbf16, #tpu.memory_space<vmem>>, vector<8x8xbf16>
    %44 = arith.truncf %42 : vector<8x316xf32> to vector<8x316xbf16>
    %cst_43 = arith.constant dense<0.000000e+00> : vector<8x316xf32>
    %45 = tpu.matmul %43, %44, %cst_43 {dimension_numbers = #tpu.dot_dimension_numbers<[1], [0], [0], [1], [0, 0, 1, 1], [], []>} : vector<8x8xbf16>, vector<8x316xbf16>, vector<8x316xf32> -> vector<8x316xf32>
    %c0_44 = arith.constant 0 : index
    %c0_45 = arith.constant 0 : index
    %46 = vector.load %arg7[%c0_44, %c0_45] : memref<8x1xf32, #tpu.memory_space<vmem>>, vector<8x1xf32>
    %47 = vector.broadcast %46 : vector<8x1xf32> to vector<8x316xf32>
    %48 = arith.addf %45, %47 : vector<8x316xf32>
    %49 = arith.negf %48 : vector<8x316xf32>
    %50 = math.exp %49 : vector<8x316xf32>
    %cst_46 = arith.constant 1.000000e+00 : f32
    %51 = vector.broadcast %cst_46 : f32 to vector<8x316xf32>
    %52 = arith.addf %51, %50 : vector<8x316xf32>
    %53 = arith.divf %51, %52 : vector<8x316xf32>
    %54 = arith.mulf %42, %53 : vector<8x316xf32>
    %55 = vector.broadcast %0 : vector<1x316xf32> to vector<8x316xf32>
    %56 = arith.mulf %54, %55 : vector<8x316xf32>
    %c16_47 = arith.constant 16 : index
    %c42_48 = arith.constant 42 : index
    %57 = vector.load %arg18[%c16_47, %c42_48] : memref<32x400xf32, #tpu.memory_space<vmem>>, vector<8x316xf32>
    tpu.vector_store %arg18[%c16_47, %c42_48], %56 {strides = array<i32>} : memref<32x400xf32, #tpu.memory_space<vmem>>, vector<8x316xf32>,
    %c16_49 = arith.constant 16 : index
    %c21_50 = arith.constant 21 : index
    %58 = vector.load %arg18[%c16_49, %c21_50] : memref<32x400xf32, #tpu.memory_space<vmem>>, vector<8x316xf32>
    %c144 = arith.constant 144 : index
    %c0_51 = arith.constant 0 : index
    %59 = vector.load %arg19[%c144, %c0_51] : memref<216x316xf32, #tpu.memory_space<vmem>>, vector<8x316xf32>
    tpu.vector_store %arg19[%c144, %c0_51], %58 {strides = array<i32>} : memref<216x316xf32, #tpu.memory_space<vmem>>, vector<8x316xf32>,
    %c16_52 = arith.constant 16 : index
    %c22_53 = arith.constant 22 : index
    %60 = vector.load %arg18[%c16_52, %c22_53] : memref<32x400xf32, #tpu.memory_space<vmem>>, vector<8x316xf32>
    %c152 = arith.constant 152 : index
    %c0_54 = arith.constant 0 : index
    %61 = vector.load %arg19[%c152, %c0_54] : memref<216x316xf32, #tpu.memory_space<vmem>>, vector<8x316xf32>
    tpu.vector_store %arg19[%c152, %c0_54], %60 {strides = array<i32>} : memref<216x316xf32, #tpu.memory_space<vmem>>, vector<8x316xf32>,
    %c16_55 = arith.constant 16 : index
    %c23_56 = arith.constant 23 : index
    %62 = vector.load %arg18[%c16_55, %c23_56] : memref<32x400xf32, #tpu.memory_space<vmem>>, vector<8x316xf32>
    %c160 = arith.constant 160 : index
    %c0_57 = arith.constant 0 : index
    %63 = vector.load %arg19[%c160, %c0_57] : memref<216x316xf32, #tpu.memory_space<vmem>>, vector<8x316xf32>
    tpu.vector_store %arg19[%c160, %c0_57], %62 {strides = array<i32>} : memref<216x316xf32, #tpu.memory_space<vmem>>, vector<8x316xf32>,
    %c16_58 = arith.constant 16 : index
    %c41_59 = arith.constant 41 : index
    %64 = vector.load %arg18[%c16_58, %c41_59] : memref<32x400xf32, #tpu.memory_space<vmem>>, vector<8x316xf32>
    %c168 = arith.constant 168 : index
    %c0_60 = arith.constant 0 : index
    %65 = vector.load %arg19[%c168, %c0_60] : memref<216x316xf32, #tpu.memory_space<vmem>>, vector<8x316xf32>
    tpu.vector_store %arg19[%c168, %c0_60], %64 {strides = array<i32>} : memref<216x316xf32, #tpu.memory_space<vmem>>, vector<8x316xf32>,
    %c16_61 = arith.constant 16 : index
    %c42_62 = arith.constant 42 : index
    %66 = vector.load %arg18[%c16_61, %c42_62] : memref<32x400xf32, #tpu.memory_space<vmem>>, vector<8x316xf32>
    %c176 = arith.constant 176 : index
    %c0_63 = arith.constant 0 : index
    %67 = vector.load %arg19[%c176, %c0_63] : memref<216x316xf32, #tpu.memory_space<vmem>>, vector<8x316xf32>
    tpu.vector_store %arg19[%c176, %c0_63], %66 {strides = array<i32>} : memref<216x316xf32, #tpu.memory_space<vmem>>, vector<8x316xf32>,
    %c16_64 = arith.constant 16 : index
    %c43_65 = arith.constant 43 : index
    %68 = vector.load %arg18[%c16_64, %c43_65] : memref<32x400xf32, #tpu.memory_space<vmem>>, vector<8x316xf32>
    %c184 = arith.constant 184 : index
    %c0_66 = arith.constant 0 : index
    %69 = vector.load %arg19[%c184, %c0_66] : memref<216x316xf32, #tpu.memory_space<vmem>>, vector<8x316xf32>
    tpu.vector_store %arg19[%c184, %c0_66], %68 {strides = array<i32>} : memref<216x316xf32, #tpu.memory_space<vmem>>, vector<8x316xf32>,
    %c16_67 = arith.constant 16 : index
    %c61_68 = arith.constant 61 : index
    %70 = vector.load %arg18[%c16_67, %c61_68] : memref<32x400xf32, #tpu.memory_space<vmem>>, vector<8x316xf32>
    %c192 = arith.constant 192 : index
    %c0_69 = arith.constant 0 : index
    %71 = vector.load %arg19[%c192, %c0_69] : memref<216x316xf32, #tpu.memory_space<vmem>>, vector<8x316xf32>
    tpu.vector_store %arg19[%c192, %c0_69], %70 {strides = array<i32>} : memref<216x316xf32, #tpu.memory_space<vmem>>, vector<8x316xf32>,
    %c16_70 = arith.constant 16 : index
    %c62_71 = arith.constant 62 : index
    %72 = vector.load %arg18[%c16_70, %c62_71] : memref<32x400xf32, #tpu.memory_space<vmem>>, vector<8x316xf32>
    %c200 = arith.constant 200 : index
    %c0_72 = arith.constant 0 : index
    %73 = vector.load %arg19[%c200, %c0_72] : memref<216x316xf32, #tpu.memory_space<vmem>>, vector<8x316xf32>
    tpu.vector_store %arg19[%c200, %c0_72], %72 {strides = array<i32>} : memref<216x316xf32, #tpu.memory_space<vmem>>, vector<8x316xf32>,
    %c16_73 = arith.constant 16 : index
    %c63_74 = arith.constant 63 : index
    %74 = vector.load %arg18[%c16_73, %c63_74] : memref<32x400xf32, #tpu.memory_space<vmem>>, vector<8x316xf32>
    %c208 = arith.constant 208 : index
    %c0_75 = arith.constant 0 : index
    %75 = vector.load %arg19[%c208, %c0_75] : memref<216x316xf32, #tpu.memory_space<vmem>>, vector<8x316xf32>
    tpu.vector_store %arg19[%c208, %c0_75], %74 {strides = array<i32>} : memref<216x316xf32, #tpu.memory_space<vmem>>, vector<8x316xf32>,
    %c0_76 = arith.constant 0 : index
    %c0_77 = arith.constant 0 : index
    %76 = vector.load %arg8[%c0_76, %c0_77] : memref<8x216xbf16, #tpu.memory_space<vmem>>, vector<8x216xbf16>
    %c0_78 = arith.constant 0 : index
    %c0_79 = arith.constant 0 : index
    %77 = vector.load %arg19[%c0_78, %c0_79] : memref<216x316xf32, #tpu.memory_space<vmem>>, vector<216x316xf32>
    %78 = arith.truncf %77 : vector<216x316xf32> to vector<216x316xbf16>
    %cst_80 = arith.constant dense<0.000000e+00> : vector<8x316xf32>
    %79 = tpu.matmul %76, %78, %cst_80 {dimension_numbers = #tpu.dot_dimension_numbers<[1], [0], [0], [1], [0, 0, 1, 1], [], []>} : vector<8x216xbf16>, vector<216x316xbf16>, vector<8x316xf32> -> vector<8x316xf32>
    %c0_81 = arith.constant 0 : index
    %c0_82 = arith.constant 0 : index
    %80 = vector.load %arg9[%c0_81, %c0_82] : memref<8x1xf32, #tpu.memory_space<vmem>>, vector<8x1xf32>
    %81 = vector.broadcast %80 : vector<8x1xf32> to vector<8x316xf32>
    %82 = arith.addf %79, %81 : vector<8x316xf32>
    %cst_83 = arith.constant 5.000000e-01 : f32
    %83 = vector.broadcast %cst_83 : f32 to vector<8x316xf32>
    %84 = arith.mulf %83, %82 : vector<8x316xf32>
    %cst_84 = arith.constant 0.707106769 : f32
    %85 = vector.broadcast %cst_84 : f32 to vector<8x316xf32>
    %86 = arith.mulf %82, %85 : vector<8x316xf32>
    %87 = math.erf %86 : vector<8x316xf32>
    %cst_85 = arith.constant 1.000000e+00 : f32
    %88 = vector.broadcast %cst_85 : f32 to vector<8x316xf32>
    %89 = arith.addf %88, %87 : vector<8x316xf32>
    %90 = arith.mulf %84, %89 : vector<8x316xf32>
    %c0_86 = arith.constant 0 : index
    %c0_87 = arith.constant 0 : index
    %91 = vector.load %arg10[%c0_86, %c0_87] : memref<8x8xbf16, #tpu.memory_space<vmem>>, vector<8x8xbf16>
    %92 = arith.truncf %90 : vector<8x316xf32> to vector<8x316xbf16>
    %cst_88 = arith.constant dense<0.000000e+00> : vector<8x316xf32>
    %93 = tpu.matmul %91, %92, %cst_88 {dimension_numbers = #tpu.dot_dimension_numbers<[1], [0], [0], [1], [0, 0, 1, 1], [], []>} : vector<8x8xbf16>, vector<8x316xbf16>, vector<8x316xf32> -> vector<8x316xf32>
    %c0_89 = arith.constant 0 : index
    %c0_90 = arith.constant 0 : index
    %94 = vector.load %arg11[%c0_89, %c0_90] : memref<8x1xf32, #tpu.memory_space<vmem>>, vector<8x1xf32>
    %95 = vector.broadcast %94 : vector<8x1xf32> to vector<8x316xf32>
    %96 = arith.addf %93, %95 : vector<8x316xf32>
    %97 = arith.negf %96 : vector<8x316xf32>
    %98 = math.exp %97 : vector<8x316xf32>
    %cst_91 = arith.constant 1.000000e+00 : f32
    %99 = vector.broadcast %cst_91 : f32 to vector<8x316xf32>
    %100 = arith.addf %99, %98 : vector<8x316xf32>
    %101 = arith.divf %99, %100 : vector<8x316xf32>
    %102 = arith.mulf %90, %101 : vector<8x316xf32>
    %103 = vector.broadcast %0 : vector<1x316xf32> to vector<8x316xf32>
    %104 = arith.mulf %102, %103 : vector<8x316xf32>
    %c24 = arith.constant 24 : index
    %c42_92 = arith.constant 42 : index
    %105 = vector.load %arg18[%c24, %c42_92] : memref<32x400xf32, #tpu.memory_space<vmem>>, vector<8x316xf32>
    tpu.vector_store %arg18[%c24, %c42_92], %104 {strides = array<i32>} : memref<32x400xf32, #tpu.memory_space<vmem>>, vector<8x316xf32>,
    %c0_93 = arith.constant 0 : index
    %c0_94 = arith.constant 0 : index
    %106 = vector.load %arg14[%c0_93, %c0_94] : memref<48x16xbf16, #tpu.memory_space<vmem>>, vector<48x16xbf16>
    %c0_95 = arith.constant 0 : index
    %c0_96 = arith.constant 0 : index
    %c0_97 = arith.constant 0 : index
    %107 = vector.load %arg1[%c0_95, %c0_96, %c0_97] : memref<1x16x400xbf16, #tpu.memory_space<vmem>>, vector<1x16x400xbf16>
    %108 = vector.shape_cast %107 : vector<1x16x400xbf16> to vector<16x400xbf16>
    %cst_98 = arith.constant dense<0.000000e+00> : vector<48x400xf32>
    %109 = tpu.matmul %106, %108, %cst_98 {dimension_numbers = #tpu.dot_dimension_numbers<[1], [0], [0], [1], [0, 0, 1, 1], [], []>} : vector<48x16xbf16>, vector<16x400xbf16>, vector<48x400xf32> -> vector<48x400xf32>
    %c0_99 = arith.constant 0 : index
    %c0_100 = arith.constant 0 : index
    %110 = vector.load %arg15[%c0_99, %c0_100] : memref<48x1xf32, #tpu.memory_space<vmem>>, vector<48x1xf32>
    %111 = vector.broadcast %110 : vector<48x1xf32> to vector<48x400xf32>
    %112 = arith.addf %109, %111 : vector<48x400xf32>
    %113 = vector.extract_strided_slice %112 {offsets = [16, 0], sizes = [16, 400], strides = [1, 1]} : vector<48x400xf32> to vector<16x400xf32>
    %114 = vector.broadcast %1 : vector<1x400xf32> to vector<16x400xf32>
    %115 = arith.mulf %113, %114 : vector<16x400xf32>
    %c0_101 = arith.constant 0 : index
    %c0_102 = arith.constant 0 : index
    %116 = vector.load %arg20[%c0_101, %c0_102] : memref<32x400xf32, #tpu.memory_space<vmem>>, vector<16x400xf32>
    tpu.vector_store %arg20[%c0_101, %c0_102], %115 {strides = array<i32>} : memref<32x400xf32, #tpu.memory_space<vmem>>, vector<16x400xf32>,
    %117 = vector.extract_strided_slice %112 {offsets = [32, 0], sizes = [16, 400], strides = [1, 1]} : vector<48x400xf32> to vector<16x400xf32>
    %118 = vector.broadcast %1 : vector<1x400xf32> to vector<16x400xf32>
    %119 = arith.mulf %117, %118 : vector<16x400xf32>
    %c16_103 = arith.constant 16 : index
    %c0_104 = arith.constant 0 : index
    %120 = vector.load %arg20[%c16_103, %c0_104] : memref<32x400xf32, #tpu.memory_space<vmem>>, vector<16x400xf32>
    tpu.vector_store %arg20[%c16_103, %c0_104], %119 {strides = array<i32>} : memref<32x400xf32, #tpu.memory_space<vmem>>, vector<16x400xf32>,
    %121 = vector.extract_strided_slice %112 {offsets = [0, 42], sizes = [16, 316], strides = [1, 1]} : vector<48x400xf32> to vector<16x316xf32>
    %cst_105 = arith.constant 2.500000e-01 : f32
    %122 = vector.broadcast %cst_105 : f32 to vector<16x316xf32>
    %123 = arith.mulf %121, %122 : vector<16x316xf32>
    %c0_106 = arith.constant 0 : index
    %c0_107 = arith.constant 0 : index
    %124 = vector.load %arg20[%c0_106, %c0_107] : memref<32x400xf32, #tpu.memory_space<vmem>>, vector<16x316xf32>
    %125 = arith.mulf %123, %124 : vector<16x316xf32>
    %cst_108 = arith.constant dense<0.000000e+00> : vector<316xf32>
    %126 = vector.multi_reduction <add>, %125, %cst_108 [0] : vector<16x316xf32> to vector<316xf32>
    %127 = vector.shape_cast %126 : vector<316xf32> to vector<1x316xf32>
    %c0_109 = arith.constant 0 : index
    %c1 = arith.constant 1 : index
    %128 = vector.load %arg20[%c0_109, %c1] : memref<32x400xf32, #tpu.memory_space<vmem>>, vector<16x316xf32>
    %129 = arith.mulf %123, %128 : vector<16x316xf32>
    %cst_110 = arith.constant dense<0.000000e+00> : vector<316xf32>
    %130 = vector.multi_reduction <add>, %129, %cst_110 [0] : vector<16x316xf32> to vector<316xf32>
    %131 = vector.shape_cast %130 : vector<316xf32> to vector<1x316xf32>
    %c0_111 = arith.constant 0 : index
    %c2 = arith.constant 2 : index
    %132 = vector.load %arg20[%c0_111, %c2] : memref<32x400xf32, #tpu.memory_space<vmem>>, vector<16x316xf32>
    %133 = arith.mulf %123, %132 : vector<16x316xf32>
    %cst_112 = arith.constant dense<0.000000e+00> : vector<316xf32>
    %134 = vector.multi_reduction <add>, %133, %cst_112 [0] : vector<16x316xf32> to vector<316xf32>
    %135 = vector.shape_cast %134 : vector<316xf32> to vector<1x316xf32>
    %c0_113 = arith.constant 0 : index
    %c3 = arith.constant 3 : index
    %136 = vector.load %arg20[%c0_113, %c3] : memref<32x400xf32, #tpu.memory_space<vmem>>, vector<16x316xf32>
    %137 = arith.mulf %123, %136 : vector<16x316xf32>
    %cst_114 = arith.constant dense<0.000000e+00> : vector<316xf32>
    %138 = vector.multi_reduction <add>, %137, %cst_114 [0] : vector<16x316xf32> to vector<316xf32>
    %139 = vector.shape_cast %138 : vector<316xf32> to vector<1x316xf32>
    %c0_115 = arith.constant 0 : index
    %c4 = arith.constant 4 : index
    %140 = vector.load %arg20[%c0_115, %c4] : memref<32x400xf32, #tpu.memory_space<vmem>>, vector<16x316xf32>
    %141 = arith.mulf %123, %140 : vector<16x316xf32>
    %cst_116 = arith.constant dense<0.000000e+00> : vector<316xf32>
    %142 = vector.multi_reduction <add>, %141, %cst_116 [0] : vector<16x316xf32> to vector<316xf32>
    %143 = vector.shape_cast %142 : vector<316xf32> to vector<1x316xf32>
    %c0_117 = arith.constant 0 : index
    %c20 = arith.constant 20 : index
    %144 = vector.load %arg20[%c0_117, %c20] : memref<32x400xf32, #tpu.memory_space<vmem>>, vector<16x316xf32>
    %145 = arith.mulf %123, %144 : vector<16x316xf32>
    %cst_118 = arith.constant dense<0.000000e+00> : vector<316xf32>
    %146 = vector.multi_reduction <add>, %145, %cst_118 [0] : vector<16x316xf32> to vector<316xf32>
    %147 = vector.shape_cast %146 : vector<316xf32> to vector<1x316xf32>
    %c0_119 = arith.constant 0 : index
    %c21_120 = arith.constant 21 : index
    %148 = vector.load %arg20[%c0_119, %c21_120] : memref<32x400xf32, #tpu.memory_space<vmem>>, vector<16x316xf32>
    %149 = arith.mulf %123, %148 : vector<16x316xf32>
    %cst_121 = arith.constant dense<0.000000e+00> : vector<316xf32>
    %150 = vector.multi_reduction <add>, %149, %cst_121 [0] : vector<16x316xf32> to vector<316xf32>
    %151 = vector.shape_cast %150 : vector<316xf32> to vector<1x316xf32>
    %c0_122 = arith.constant 0 : index
    %c22_123 = arith.constant 22 : index
    %152 = vector.load %arg20[%c0_122, %c22_123] : memref<32x400xf32, #tpu.memory_space<vmem>>, vector<16x316xf32>
    %153 = arith.mulf %123, %152 : vector<16x316xf32>
    %cst_124 = arith.constant dense<0.000000e+00> : vector<316xf32>
    %154 = vector.multi_reduction <add>, %153, %cst_124 [0] : vector<16x316xf32> to vector<316xf32>
    %155 = vector.shape_cast %154 : vector<316xf32> to vector<1x316xf32>
    %c0_125 = arith.constant 0 : index
    %c23_126 = arith.constant 23 : index
    %156 = vector.load %arg20[%c0_125, %c23_126] : memref<32x400xf32, #tpu.memory_space<vmem>>, vector<16x316xf32>
    %157 = arith.mulf %123, %156 : vector<16x316xf32>
    %cst_127 = arith.constant dense<0.000000e+00> : vector<316xf32>
    %158 = vector.multi_reduction <add>, %157, %cst_127 [0] : vector<16x316xf32> to vector<316xf32>
    %159 = vector.shape_cast %158 : vector<316xf32> to vector<1x316xf32>
    %c0_128 = arith.constant 0 : index
    %c24_129 = arith.constant 24 : index
    %160 = vector.load %arg20[%c0_128, %c24_129] : memref<32x400xf32, #tpu.memory_space<vmem>>, vector<16x316xf32>
    %161 = arith.mulf %123, %160 : vector<16x316xf32>
    %cst_130 = arith.constant dense<0.000000e+00> : vector<316xf32>
    %162 = vector.multi_reduction <add>, %161, %cst_130 [0] : vector<16x316xf32> to vector<316xf32>
    %163 = vector.shape_cast %162 : vector<316xf32> to vector<1x316xf32>
    %c0_131 = arith.constant 0 : index
    %c40 = arith.constant 40 : index
    %164 = vector.load %arg20[%c0_131, %c40] : memref<32x400xf32, #tpu.memory_space<vmem>>, vector<16x316xf32>
    %165 = arith.mulf %123, %164 : vector<16x316xf32>
    %cst_132 = arith.constant dense<0.000000e+00> : vector<316xf32>
    %166 = vector.multi_reduction <add>, %165, %cst_132 [0] : vector<16x316xf32> to vector<316xf32>
    %167 = vector.shape_cast %166 : vector<316xf32> to vector<1x316xf32>
    %c0_133 = arith.constant 0 : index
    %c41_134 = arith.constant 41 : index
    %168 = vector.load %arg20[%c0_133, %c41_134] : memref<32x400xf32, #tpu.memory_space<vmem>>, vector<16x316xf32>
    %169 = arith.mulf %123, %168 : vector<16x316xf32>
    %cst_135 = arith.constant dense<0.000000e+00> : vector<316xf32>
    %170 = vector.multi_reduction <add>, %169, %cst_135 [0] : vector<16x316xf32> to vector<316xf32>
    %171 = vector.shape_cast %170 : vector<316xf32> to vector<1x316xf32>
    %c0_136 = arith.constant 0 : index
    %c42_137 = arith.constant 42 : index
    %172 = vector.load %arg20[%c0_136, %c42_137] : memref<32x400xf32, #tpu.memory_space<vmem>>, vector<16x316xf32>
    %173 = arith.mulf %123, %172 : vector<16x316xf32>
    %cst_138 = arith.constant dense<0.000000e+00> : vector<316xf32>
    %174 = vector.multi_reduction <add>, %173, %cst_138 [0] : vector<16x316xf32> to vector<316xf32>
    %175 = vector.shape_cast %174 : vector<316xf32> to vector<1x316xf32>
    %c0_139 = arith.constant 0 : index
    %c43_140 = arith.constant 43 : index
    %176 = vector.load %arg20[%c0_139, %c43_140] : memref<32x400xf32, #tpu.memory_space<vmem>>, vector<16x316xf32>
    %177 = arith.mulf %123, %176 : vector<16x316xf32>
    %cst_141 = arith.constant dense<0.000000e+00> : vector<316xf32>
    %178 = vector.multi_reduction <add>, %177, %cst_141 [0] : vector<16x316xf32> to vector<316xf32>
    %179 = vector.shape_cast %178 : vector<316xf32> to vector<1x316xf32>
    %c0_142 = arith.constant 0 : index
    %c44 = arith.constant 44 : index
    %180 = vector.load %arg20[%c0_142, %c44] : memref<32x400xf32, #tpu.memory_space<vmem>>, vector<16x316xf32>
    %181 = arith.mulf %123, %180 : vector<16x316xf32>
    %cst_143 = arith.constant dense<0.000000e+00> : vector<316xf32>
    %182 = vector.multi_reduction <add>, %181, %cst_143 [0] : vector<16x316xf32> to vector<316xf32>
    %183 = vector.shape_cast %182 : vector<316xf32> to vector<1x316xf32>
    %c0_144 = arith.constant 0 : index
    %c60 = arith.constant 60 : index
    %184 = vector.load %arg20[%c0_144, %c60] : memref<32x400xf32, #tpu.memory_space<vmem>>, vector<16x316xf32>
    %185 = arith.mulf %123, %184 : vector<16x316xf32>
    %cst_145 = arith.constant dense<0.000000e+00> : vector<316xf32>
    %186 = vector.multi_reduction <add>, %185, %cst_145 [0] : vector<16x316xf32> to vector<316xf32>
    %187 = vector.shape_cast %186 : vector<316xf32> to vector<1x316xf32>
    %c0_146 = arith.constant 0 : index
    %c61_147 = arith.constant 61 : index
    %188 = vector.load %arg20[%c0_146, %c61_147] : memref<32x400xf32, #tpu.memory_space<vmem>>, vector<16x316xf32>
    %189 = arith.mulf %123, %188 : vector<16x316xf32>
    %cst_148 = arith.constant dense<0.000000e+00> : vector<316xf32>
    %190 = vector.multi_reduction <add>, %189, %cst_148 [0] : vector<16x316xf32> to vector<316xf32>
    %191 = vector.shape_cast %190 : vector<316xf32> to vector<1x316xf32>
    %c0_149 = arith.constant 0 : index
    %c62_150 = arith.constant 62 : index
    %192 = vector.load %arg20[%c0_149, %c62_150] : memref<32x400xf32, #tpu.memory_space<vmem>>, vector<16x316xf32>
    %193 = arith.mulf %123, %192 : vector<16x316xf32>
    %cst_151 = arith.constant dense<0.000000e+00> : vector<316xf32>
    %194 = vector.multi_reduction <add>, %193, %cst_151 [0] : vector<16x316xf32> to vector<316xf32>
    %195 = vector.shape_cast %194 : vector<316xf32> to vector<1x316xf32>
    %c0_152 = arith.constant 0 : index
    %c63_153 = arith.constant 63 : index
    %196 = vector.load %arg20[%c0_152, %c63_153] : memref<32x400xf32, #tpu.memory_space<vmem>>, vector<16x316xf32>
    %197 = arith.mulf %123, %196 : vector<16x316xf32>
    %cst_154 = arith.constant dense<0.000000e+00> : vector<316xf32>
    %198 = vector.multi_reduction <add>, %197, %cst_154 [0] : vector<16x316xf32> to vector<316xf32>
    %199 = vector.shape_cast %198 : vector<316xf32> to vector<1x316xf32>
    %c0_155 = arith.constant 0 : index
    %c64_156 = arith.constant 64 : index
    %200 = vector.load %arg20[%c0_155, %c64_156] : memref<32x400xf32, #tpu.memory_space<vmem>>, vector<16x316xf32>
    %201 = arith.mulf %123, %200 : vector<16x316xf32>
    %cst_157 = arith.constant dense<0.000000e+00> : vector<316xf32>
    %202 = vector.multi_reduction <add>, %201, %cst_157 [0] : vector<16x316xf32> to vector<316xf32>
    %203 = vector.shape_cast %202 : vector<316xf32> to vector<1x316xf32>
    %c0_158 = arith.constant 0 : index
    %c80_159 = arith.constant 80 : index
    %204 = vector.load %arg20[%c0_158, %c80_159] : memref<32x400xf32, #tpu.memory_space<vmem>>, vector<16x316xf32>
    %205 = arith.mulf %123, %204 : vector<16x316xf32>
    %cst_160 = arith.constant dense<0.000000e+00> : vector<316xf32>
    %206 = vector.multi_reduction <add>, %205, %cst_160 [0] : vector<16x316xf32> to vector<316xf32>
    %207 = vector.shape_cast %206 : vector<316xf32> to vector<1x316xf32>
    %c0_161 = arith.constant 0 : index
    %c81 = arith.constant 81 : index
    %208 = vector.load %arg20[%c0_161, %c81] : memref<32x400xf32, #tpu.memory_space<vmem>>, vector<16x316xf32>
    %209 = arith.mulf %123, %208 : vector<16x316xf32>
    %cst_162 = arith.constant dense<0.000000e+00> : vector<316xf32>
    %210 = vector.multi_reduction <add>, %209, %cst_162 [0] : vector<16x316xf32> to vector<316xf32>
    %211 = vector.shape_cast %210 : vector<316xf32> to vector<1x316xf32>
    %c0_163 = arith.constant 0 : index
    %c82 = arith.constant 82 : index
    %212 = vector.load %arg20[%c0_163, %c82] : memref<32x400xf32, #tpu.memory_space<vmem>>, vector<16x316xf32>
    %213 = arith.mulf %123, %212 : vector<16x316xf32>
    %cst_164 = arith.constant dense<0.000000e+00> : vector<316xf32>
    %214 = vector.multi_reduction <add>, %213, %cst_164 [0] : vector<16x316xf32> to vector<316xf32>
    %215 = vector.shape_cast %214 : vector<316xf32> to vector<1x316xf32>
    %c0_165 = arith.constant 0 : index
    %c83 = arith.constant 83 : index
    %216 = vector.load %arg20[%c0_165, %c83] : memref<32x400xf32, #tpu.memory_space<vmem>>, vector<16x316xf32>
    %217 = arith.mulf %123, %216 : vector<16x316xf32>
    %cst_166 = arith.constant dense<0.000000e+00> : vector<316xf32>
    %218 = vector.multi_reduction <add>, %217, %cst_166 [0] : vector<16x316xf32> to vector<316xf32>
    %219 = vector.shape_cast %218 : vector<316xf32> to vector<1x316xf32>
    %c0_167 = arith.constant 0 : index
    %c84 = arith.constant 84 : index
    %220 = vector.load %arg20[%c0_167, %c84] : memref<32x400xf32, #tpu.memory_space<vmem>>, vector<16x316xf32>
    %221 = arith.mulf %123, %220 : vector<16x316xf32>
    %cst_168 = arith.constant dense<0.000000e+00> : vector<316xf32>
    %222 = vector.multi_reduction <add>, %221, %cst_168 [0] : vector<16x316xf32> to vector<316xf32>
    %223 = vector.shape_cast %222 : vector<316xf32> to vector<1x316xf32>
    %224 = tpu.concatenate %127, %131, %135, %139, %143, %147, %151, %155, %159, %163, %167, %171, %175, %179, %183, %187 in 0 : vector<1x316xf32>, vector<1x316xf32>, vector<1x316xf32>, vector<1x316xf32>, vector<1x316xf32>, vector<1x316xf32>, vector<1x316xf32>, vector<1x316xf32>, vector<1x316xf32>, vector<1x316xf32>, vector<1x316xf32>, vector<1x316xf32>, vector<1x316xf32>, vector<1x316xf32>, vector<1x316xf32>, vector<1x316xf32> -> vector<16x316xf32>
    %225 = tpu.concatenate %191, %195, %199, %203, %207, %211, %215, %219, %223 in 0 : vector<1x316xf32>, vector<1x316xf32>, vector<1x316xf32>, vector<1x316xf32>, vector<1x316xf32>, vector<1x316xf32>, vector<1x316xf32>, vector<1x316xf32>, vector<1x316xf32> -> vector<9x316xf32>
    %226 = tpu.concatenate %224, %225 in 0 : vector<16x316xf32>, vector<9x316xf32> -> vector<25x316xf32>
    %cst_169 = arith.constant dense<0xFF800000> : vector<316xf32>
    %227 = vector.multi_reduction <maximumf>, %226, %cst_169 [0] : vector<25x316xf32> to vector<316xf32>
    %228 = vector.shape_cast %227 : vector<316xf32> to vector<1x316xf32>
    %229 = vector.broadcast %228 : vector<1x316xf32> to vector<25x316xf32>
    %230 = arith.subf %226, %229 : vector<25x316xf32>
    %231 = math.exp %230 : vector<25x316xf32>
    %cst_170 = arith.constant dense<0.000000e+00> : vector<316xf32>
    %232 = vector.multi_reduction <add>, %231, %cst_170 [0] : vector<25x316xf32> to vector<316xf32>
    %233 = vector.shape_cast %232 : vector<316xf32> to vector<1x316xf32>
    %234 = tpu.reciprocal %233 {approx = true} : vector<1x316xf32> -> vector<1x316xf32>
    %235 = vector.broadcast %234 : vector<1x316xf32> to vector<25x316xf32>
    %236 = arith.mulf %231, %235 : vector<25x316xf32>
    %cst_171 = arith.constant 0.000000e+00 : f32
    %237 = vector.broadcast %cst_171 : f32 to vector<16x316xf32>
    %238 = vector.extract_strided_slice %236 {offsets = [0, 0], sizes = [1, 316], strides = [1, 1]} : vector<25x316xf32> to vector<1x316xf32>
    %c16_172 = arith.constant 16 : index
    %c0_173 = arith.constant 0 : index
    %239 = vector.load %arg20[%c16_172, %c0_173] : memref<32x400xf32, #tpu.memory_space<vmem>>, vector<16x316xf32>
    %240 = vector.broadcast %238 : vector<1x316xf32> to vector<16x316xf32>
    %241 = arith.mulf %240, %239 : vector<16x316xf32>
    %242 = arith.addf %237, %241 : vector<16x316xf32>
    %243 = vector.extract_strided_slice %236 {offsets = [1, 0], sizes = [1, 316], strides = [1, 1]} : vector<25x316xf32> to vector<1x316xf32>
    %c16_174 = arith.constant 16 : index
    %c1_175 = arith.constant 1 : index
    %244 = vector.load %arg20[%c16_174, %c1_175] : memref<32x400xf32, #tpu.memory_space<vmem>>, vector<16x316xf32>
    %245 = vector.broadcast %243 : vector<1x316xf32> to vector<16x316xf32>
    %246 = arith.mulf %245, %244 : vector<16x316xf32>
    %247 = arith.addf %242, %246 : vector<16x316xf32>
    %248 = vector.extract_strided_slice %236 {offsets = [2, 0], sizes = [1, 316], strides = [1, 1]} : vector<25x316xf32> to vector<1x316xf32>
    %c16_176 = arith.constant 16 : index
    %c2_177 = arith.constant 2 : index
    %249 = vector.load %arg20[%c16_176, %c2_177] : memref<32x400xf32, #tpu.memory_space<vmem>>, vector<16x316xf32>
    %250 = vector.broadcast %248 : vector<1x316xf32> to vector<16x316xf32>
    %251 = arith.mulf %250, %249 : vector<16x316xf32>
    %252 = arith.addf %247, %251 : vector<16x316xf32>
    %253 = vector.extract_strided_slice %236 {offsets = [3, 0], sizes = [1, 316], strides = [1, 1]} : vector<25x316xf32> to vector<1x316xf32>
    %c16_178 = arith.constant 16 : index
    %c3_179 = arith.constant 3 : index
    %254 = vector.load %arg20[%c16_178, %c3_179] : memref<32x400xf32, #tpu.memory_space<vmem>>, vector<16x316xf32>
    %255 = vector.broadcast %253 : vector<1x316xf32> to vector<16x316xf32>
    %256 = arith.mulf %255, %254 : vector<16x316xf32>
    %257 = arith.addf %252, %256 : vector<16x316xf32>
    %258 = vector.extract_strided_slice %236 {offsets = [4, 0], sizes = [1, 316], strides = [1, 1]} : vector<25x316xf32> to vector<1x316xf32>
    %c16_180 = arith.constant 16 : index
    %c4_181 = arith.constant 4 : index
    %259 = vector.load %arg20[%c16_180, %c4_181] : memref<32x400xf32, #tpu.memory_space<vmem>>, vector<16x316xf32>
    %260 = vector.broadcast %258 : vector<1x316xf32> to vector<16x316xf32>
    %261 = arith.mulf %260, %259 : vector<16x316xf32>
    %262 = arith.addf %257, %261 : vector<16x316xf32>
    %263 = vector.extract_strided_slice %236 {offsets = [5, 0], sizes = [1, 316], strides = [1, 1]} : vector<25x316xf32> to vector<1x316xf32>
    %c16_182 = arith.constant 16 : index
    %c20_183 = arith.constant 20 : index
    %264 = vector.load %arg20[%c16_182, %c20_183] : memref<32x400xf32, #tpu.memory_space<vmem>>, vector<16x316xf32>
    %265 = vector.broadcast %263 : vector<1x316xf32> to vector<16x316xf32>
    %266 = arith.mulf %265, %264 : vector<16x316xf32>
    %267 = arith.addf %262, %266 : vector<16x316xf32>
    %268 = vector.extract_strided_slice %236 {offsets = [6, 0], sizes = [1, 316], strides = [1, 1]} : vector<25x316xf32> to vector<1x316xf32>
    %c16_184 = arith.constant 16 : index
    %c21_185 = arith.constant 21 : index
    %269 = vector.load %arg20[%c16_184, %c21_185] : memref<32x400xf32, #tpu.memory_space<vmem>>, vector<16x316xf32>
    %270 = vector.broadcast %268 : vector<1x316xf32> to vector<16x316xf32>
    %271 = arith.mulf %270, %269 : vector<16x316xf32>
    %272 = arith.addf %267, %271 : vector<16x316xf32>
    %273 = vector.extract_strided_slice %236 {offsets = [7, 0], sizes = [1, 316], strides = [1, 1]} : vector<25x316xf32> to vector<1x316xf32>
    %c16_186 = arith.constant 16 : index
    %c22_187 = arith.constant 22 : index
    %274 = vector.load %arg20[%c16_186, %c22_187] : memref<32x400xf32, #tpu.memory_space<vmem>>, vector<16x316xf32>
    %275 = vector.broadcast %273 : vector<1x316xf32> to vector<16x316xf32>
    %276 = arith.mulf %275, %274 : vector<16x316xf32>
    %277 = arith.addf %272, %276 : vector<16x316xf32>
    %278 = vector.extract_strided_slice %236 {offsets = [8, 0], sizes = [1, 316], strides = [1, 1]} : vector<25x316xf32> to vector<1x316xf32>
    %c16_188 = arith.constant 16 : index
    %c23_189 = arith.constant 23 : index
    %279 = vector.load %arg20[%c16_188, %c23_189] : memref<32x400xf32, #tpu.memory_space<vmem>>, vector<16x316xf32>
    %280 = vector.broadcast %278 : vector<1x316xf32> to vector<16x316xf32>
    %281 = arith.mulf %280, %279 : vector<16x316xf32>
    %282 = arith.addf %277, %281 : vector<16x316xf32>
    %283 = vector.extract_strided_slice %236 {offsets = [9, 0], sizes = [1, 316], strides = [1, 1]} : vector<25x316xf32> to vector<1x316xf32>
    %c16_190 = arith.constant 16 : index
    %c24_191 = arith.constant 24 : index
    %284 = vector.load %arg20[%c16_190, %c24_191] : memref<32x400xf32, #tpu.memory_space<vmem>>, vector<16x316xf32>
    %285 = vector.broadcast %283 : vector<1x316xf32> to vector<16x316xf32>
    %286 = arith.mulf %285, %284 : vector<16x316xf32>
    %287 = arith.addf %282, %286 : vector<16x316xf32>
    %288 = vector.extract_strided_slice %236 {offsets = [10, 0], sizes = [1, 316], strides = [1, 1]} : vector<25x316xf32> to vector<1x316xf32>
    %c16_192 = arith.constant 16 : index
    %c40_193 = arith.constant 40 : index
    %289 = vector.load %arg20[%c16_192, %c40_193] : memref<32x400xf32, #tpu.memory_space<vmem>>, vector<16x316xf32>
    %290 = vector.broadcast %288 : vector<1x316xf32> to vector<16x316xf32>
    %291 = arith.mulf %290, %289 : vector<16x316xf32>
    %292 = arith.addf %287, %291 : vector<16x316xf32>
    %293 = vector.extract_strided_slice %236 {offsets = [11, 0], sizes = [1, 316], strides = [1, 1]} : vector<25x316xf32> to vector<1x316xf32>
    %c16_194 = arith.constant 16 : index
    %c41_195 = arith.constant 41 : index
    %294 = vector.load %arg20[%c16_194, %c41_195] : memref<32x400xf32, #tpu.memory_space<vmem>>, vector<16x316xf32>
    %295 = vector.broadcast %293 : vector<1x316xf32> to vector<16x316xf32>
    %296 = arith.mulf %295, %294 : vector<16x316xf32>
    %297 = arith.addf %292, %296 : vector<16x316xf32>
    %298 = vector.extract_strided_slice %236 {offsets = [12, 0], sizes = [1, 316], strides = [1, 1]} : vector<25x316xf32> to vector<1x316xf32>
    %c16_196 = arith.constant 16 : index
    %c42_197 = arith.constant 42 : index
    %299 = vector.load %arg20[%c16_196, %c42_197] : memref<32x400xf32, #tpu.memory_space<vmem>>, vector<16x316xf32>
    %300 = vector.broadcast %298 : vector<1x316xf32> to vector<16x316xf32>
    %301 = arith.mulf %300, %299 : vector<16x316xf32>
    %302 = arith.addf %297, %301 : vector<16x316xf32>
    %303 = vector.extract_strided_slice %236 {offsets = [13, 0], sizes = [1, 316], strides = [1, 1]} : vector<25x316xf32> to vector<1x316xf32>
    %c16_198 = arith.constant 16 : index
    %c43_199 = arith.constant 43 : index
    %304 = vector.load %arg20[%c16_198, %c43_199] : memref<32x400xf32, #tpu.memory_space<vmem>>, vector<16x316xf32>
    %305 = vector.broadcast %303 : vector<1x316xf32> to vector<16x316xf32>
    %306 = arith.mulf %305, %304 : vector<16x316xf32>
    %307 = arith.addf %302, %306 : vector<16x316xf32>
    %308 = vector.extract_strided_slice %236 {offsets = [14, 0], sizes = [1, 316], strides = [1, 1]} : vector<25x316xf32> to vector<1x316xf32>
    %c16_200 = arith.constant 16 : index
    %c44_201 = arith.constant 44 : index
    %309 = vector.load %arg20[%c16_200, %c44_201] : memref<32x400xf32, #tpu.memory_space<vmem>>, vector<16x316xf32>
    %310 = vector.broadcast %308 : vector<1x316xf32> to vector<16x316xf32>
    %311 = arith.mulf %310, %309 : vector<16x316xf32>
    %312 = arith.addf %307, %311 : vector<16x316xf32>
    %313 = vector.extract_strided_slice %236 {offsets = [15, 0], sizes = [1, 316], strides = [1, 1]} : vector<25x316xf32> to vector<1x316xf32>
    %c16_202 = arith.constant 16 : index
    %c60_203 = arith.constant 60 : index
    %314 = vector.load %arg20[%c16_202, %c60_203] : memref<32x400xf32, #tpu.memory_space<vmem>>, vector<16x316xf32>
    %315 = vector.broadcast %313 : vector<1x316xf32> to vector<16x316xf32>
    %316 = arith.mulf %315, %314 : vector<16x316xf32>
    %317 = arith.addf %312, %316 : vector<16x316xf32>
    %318 = vector.extract_strided_slice %236 {offsets = [16, 0], sizes = [1, 316], strides = [1, 1]} : vector<25x316xf32> to vector<1x316xf32>
    %c16_204 = arith.constant 16 : index
    %c61_205 = arith.constant 61 : index
    %319 = vector.load %arg20[%c16_204, %c61_205] : memref<32x400xf32, #tpu.memory_space<vmem>>, vector<16x316xf32>
    %320 = vector.broadcast %318 : vector<1x316xf32> to vector<16x316xf32>
    %321 = arith.mulf %320, %319 : vector<16x316xf32>
    %322 = arith.addf %317, %321 : vector<16x316xf32>
    %323 = vector.extract_strided_slice %236 {offsets = [17, 0], sizes = [1, 316], strides = [1, 1]} : vector<25x316xf32> to vector<1x316xf32>
    %c16_206 = arith.constant 16 : index
    %c62_207 = arith.constant 62 : index
    %324 = vector.load %arg20[%c16_206, %c62_207] : memref<32x400xf32, #tpu.memory_space<vmem>>, vector<16x316xf32>
    %325 = vector.broadcast %323 : vector<1x316xf32> to vector<16x316xf32>
    %326 = arith.mulf %325, %324 : vector<16x316xf32>
    %327 = arith.addf %322, %326 : vector<16x316xf32>
    %328 = vector.extract_strided_slice %236 {offsets = [18, 0], sizes = [1, 316], strides = [1, 1]} : vector<25x316xf32> to vector<1x316xf32>
    %c16_208 = arith.constant 16 : index
    %c63_209 = arith.constant 63 : index
    %329 = vector.load %arg20[%c16_208, %c63_209] : memref<32x400xf32, #tpu.memory_space<vmem>>, vector<16x316xf32>
    %330 = vector.broadcast %328 : vector<1x316xf32> to vector<16x316xf32>
    %331 = arith.mulf %330, %329 : vector<16x316xf32>
    %332 = arith.addf %327, %331 : vector<16x316xf32>
    %333 = vector.extract_strided_slice %236 {offsets = [19, 0], sizes = [1, 316], strides = [1, 1]} : vector<25x316xf32> to vector<1x316xf32>
    %c16_210 = arith.constant 16 : index
    %c64_211 = arith.constant 64 : index
    %334 = vector.load %arg20[%c16_210, %c64_211] : memref<32x400xf32, #tpu.memory_space<vmem>>, vector<16x316xf32>
    %335 = vector.broadcast %333 : vector<1x316xf32> to vector<16x316xf32>
    %336 = arith.mulf %335, %334 : vector<16x316xf32>
    %337 = arith.addf %332, %336 : vector<16x316xf32>
    %338 = vector.extract_strided_slice %236 {offsets = [20, 0], sizes = [1, 316], strides = [1, 1]} : vector<25x316xf32> to vector<1x316xf32>
    %c16_212 = arith.constant 16 : index
    %c80_213 = arith.constant 80 : index
    %339 = vector.load %arg20[%c16_212, %c80_213] : memref<32x400xf32, #tpu.memory_space<vmem>>, vector<16x316xf32>
    %340 = vector.broadcast %338 : vector<1x316xf32> to vector<16x316xf32>
    %341 = arith.mulf %340, %339 : vector<16x316xf32>
    %342 = arith.addf %337, %341 : vector<16x316xf32>
    %343 = vector.extract_strided_slice %236 {offsets = [21, 0], sizes = [1, 316], strides = [1, 1]} : vector<25x316xf32> to vector<1x316xf32>
    %c16_214 = arith.constant 16 : index
    %c81_215 = arith.constant 81 : index
    %344 = vector.load %arg20[%c16_214, %c81_215] : memref<32x400xf32, #tpu.memory_space<vmem>>, vector<16x316xf32>
    %345 = vector.broadcast %343 : vector<1x316xf32> to vector<16x316xf32>
    %346 = arith.mulf %345, %344 : vector<16x316xf32>
    %347 = arith.addf %342, %346 : vector<16x316xf32>
    %348 = vector.extract_strided_slice %236 {offsets = [22, 0], sizes = [1, 316], strides = [1, 1]} : vector<25x316xf32> to vector<1x316xf32>
    %c16_216 = arith.constant 16 : index
    %c82_217 = arith.constant 82 : index
    %349 = vector.load %arg20[%c16_216, %c82_217] : memref<32x400xf32, #tpu.memory_space<vmem>>, vector<16x316xf32>
    %350 = vector.broadcast %348 : vector<1x316xf32> to vector<16x316xf32>
    %351 = arith.mulf %350, %349 : vector<16x316xf32>
    %352 = arith.addf %347, %351 : vector<16x316xf32>
    %353 = vector.extract_strided_slice %236 {offsets = [23, 0], sizes = [1, 316], strides = [1, 1]} : vector<25x316xf32> to vector<1x316xf32>
    %c16_218 = arith.constant 16 : index
    %c83_219 = arith.constant 83 : index
    %354 = vector.load %arg20[%c16_218, %c83_219] : memref<32x400xf32, #tpu.memory_space<vmem>>, vector<16x316xf32>
    %355 = vector.broadcast %353 : vector<1x316xf32> to vector<16x316xf32>
    %356 = arith.mulf %355, %354 : vector<16x316xf32>
    %357 = arith.addf %352, %356 : vector<16x316xf32>
    %358 = vector.extract_strided_slice %236 {offsets = [24, 0], sizes = [1, 316], strides = [1, 1]} : vector<25x316xf32> to vector<1x316xf32>
    %c16_220 = arith.constant 16 : index
    %c84_221 = arith.constant 84 : index
    %359 = vector.load %arg20[%c16_220, %c84_221] : memref<32x400xf32, #tpu.memory_space<vmem>>, vector<16x316xf32>
    %360 = vector.broadcast %358 : vector<1x316xf32> to vector<16x316xf32>
    %361 = arith.mulf %360, %359 : vector<16x316xf32>
    %362 = arith.addf %357, %361 : vector<16x316xf32>
    %c0_222 = arith.constant 0 : index
    %c0_223 = arith.constant 0 : index
    %363 = vector.load %arg12[%c0_222, %c0_223] : memref<16x32xbf16, #tpu.memory_space<vmem>>, vector<16x32xbf16>
    %c0_224 = arith.constant 0 : index
    %c42_225 = arith.constant 42 : index
    %364 = vector.load %arg18[%c0_224, %c42_225] : memref<32x400xf32, #tpu.memory_space<vmem>>, vector<32x316xf32>
    %365 = arith.truncf %364 : vector<32x316xf32> to vector<32x316xbf16>
    %cst_226 = arith.constant dense<0.000000e+00> : vector<16x316xf32>
    %366 = tpu.matmul %363, %365, %cst_226 {dimension_numbers = #tpu.dot_dimension_numbers<[1], [0], [0], [1], [0, 0, 1, 1], [], []>} : vector<16x32xbf16>, vector<32x316xbf16>, vector<16x316xf32> -> vector<16x316xf32>
    %c0_227 = arith.constant 0 : index
    %c0_228 = arith.constant 0 : index
    %367 = vector.load %arg13[%c0_227, %c0_228] : memref<16x1xf32, #tpu.memory_space<vmem>>, vector<16x1xf32>
    %368 = vector.broadcast %367 : vector<16x1xf32> to vector<16x316xf32>
    %369 = arith.addf %366, %368 : vector<16x316xf32>
    %c0_229 = arith.constant 0 : index
    %c0_230 = arith.constant 0 : index
    %370 = memref.load %arg16[%c0_229, %c0_230] : memref<1x1xf32, #tpu.memory_space<smem>>
    %371 = vector.broadcast %370 : f32 to vector<16x316xf32>
    %372 = arith.mulf %371, %369 : vector<16x316xf32>
    %cst_231 = arith.constant 1.000000e+00 : f32
    %373 = arith.subf %cst_231, %370 : f32
    %374 = vector.broadcast %373 : f32 to vector<16x316xf32>
    %375 = arith.mulf %374, %362 : vector<16x316xf32>
    %376 = arith.addf %372, %375 : vector<16x316xf32>
    %c0_232 = arith.constant 0 : index
    %c0_233 = arith.constant 0 : index
    %c0_234 = arith.constant 0 : index
    %377 = vector.load %arg17[%c0_232, %c0_233, %c0_234] : memref<1x16x316xf32, #tpu.memory_space<vmem>>, vector<1x16x316xf32>
    %378 = vector.shape_cast %377 : vector<1x16x316xf32> to vector<16x316xf32>
    %379 = vector.shape_cast %376 : vector<16x316xf32> to vector<1x16x316xf32>
    tpu.vector_store %arg17[%c0_232, %c0_233, %c0_234], %379 {strides = array<i32>} : memref<1x16x316xf32, #tpu.memory_space<vmem>>, vector<1x16x316xf32>,
    return
  }
  func.func @transform_0(%arg0: i32) -> (i32, i32, i32) {
    %c0_i32 = arith.constant 0 : i32
    %c0_i32_0 = arith.constant 0 : i32
    %c0_i32_1 = arith.constant 0 : i32
    return %arg0, %c0_i32, %c0_i32_0 : i32, i32, i32
  }
  func.func @transform_1(%arg0: i32) -> (i32, i32) {
    %c0_i32 = arith.constant 0 : i32
    %c0_i32_0 = arith.constant 0 : i32
    %c0_i32_1 = arith.constant 0 : i32
    return %c0_i32, %c0_i32_0 : i32, i32
  }
  func.func @transform_2(%arg0: i32) -> (i32, i32) {
    %c0_i32 = arith.constant 0 : i32
    %c0_i32_0 = arith.constant 0 : i32
    %c0_i32_1 = arith.constant 0 : i32
    return %c0_i32, %c0_i32_0 : i32, i32
  }
  func.func @transform_3(%arg0: i32) -> (i32, i32) {
    %c0_i32 = arith.constant 0 : i32
    %c0_i32_0 = arith.constant 0 : i32
    %c0_i32_1 = arith.constant 0 : i32
    return %c0_i32, %c0_i32_0 : i32, i32
  }
  func.func @transform_4(%arg0: i32) -> (i32, i32) {
    %c0_i32 = arith.constant 0 : i32
    %c0_i32_0 = arith.constant 0 : i32
    %c0_i32_1 = arith.constant 0 : i32
    return %c0_i32, %c0_i32_0 : i32, i32
  }
  func.func @transform_5(%arg0: i32) -> (i32, i32) {
    %c0_i32 = arith.constant 0 : i32
    %c0_i32_0 = arith.constant 0 : i32
    %c0_i32_1 = arith.constant 0 : i32
    return %c0_i32, %c0_i32_0 : i32, i32
  }
  func.func @transform_6(%arg0: i32) -> (i32, i32) {
    %c0_i32 = arith.constant 0 : i32
    %c0_i32_0 = arith.constant 0 : i32
    %c0_i32_1 = arith.constant 0 : i32
    return %c0_i32, %c0_i32_0 : i32, i32
  }
  func.func @transform_7(%arg0: i32) -> (i32, i32) {
    %c0_i32 = arith.constant 0 : i32
    %c0_i32_0 = arith.constant 0 : i32
    %c0_i32_1 = arith.constant 0 : i32
    return %c0_i32, %c0_i32_0 : i32, i32
  }
  func.func @transform_8(%arg0: i32) -> (i32, i32) {
    %c0_i32 = arith.constant 0 : i32
    %c0_i32_0 = arith.constant 0 : i32
    %c0_i32_1 = arith.constant 0 : i32
    return %c0_i32, %c0_i32_0 : i32, i32
  }
  func.func @transform_9(%arg0: i32) -> (i32, i32) {
    %c0_i32 = arith.constant 0 : i32
    %c0_i32_0 = arith.constant 0 : i32
    %c0_i32_1 = arith.constant 0 : i32
    return %c0_i32, %c0_i32_0 : i32, i32
  }
  func.func @transform_10(%arg0: i32) -> (i32, i32) {
    %c0_i32 = arith.constant 0 : i32
    %c0_i32_0 = arith.constant 0 : i32
    %c0_i32_1 = arith.constant 0 : i32
    return %c0_i32, %c0_i32_0 : i32, i32
  }
  func.func @transform_11(%arg0: i32) -> (i32, i32) {
    %c0_i32 = arith.constant 0 : i32
    %c0_i32_0 = arith.constant 0 : i32
    %c0_i32_1 = arith.constant 0 : i32
    return %c0_i32, %c0_i32_0 : i32, i32
  }
  func.func @transform_12(%arg0: i32) -> (i32, i32) {
    %c0_i32 = arith.constant 0 : i32
    %c0_i32_0 = arith.constant 0 : i32
    %c0_i32_1 = arith.constant 0 : i32
    return %c0_i32, %c0_i32_0 : i32, i32
  }
  func.func @transform_13(%arg0: i32) -> (i32, i32) {
    %c0_i32 = arith.constant 0 : i32
    %c0_i32_0 = arith.constant 0 : i32
    %c0_i32_1 = arith.constant 0 : i32
    return %c0_i32, %c0_i32_0 : i32, i32
  }
  func.func @transform_14(%arg0: i32) -> (i32, i32) {
    %c0_i32 = arith.constant 0 : i32
    %c0_i32_0 = arith.constant 0 : i32
    %c0_i32_1 = arith.constant 0 : i32
    return %c0_i32, %c0_i32_0 : i32, i32
  }
  func.func @transform_15(%arg0: i32) -> (i32, i32) {
    %c0_i32 = arith.constant 0 : i32
    %c0_i32_0 = arith.constant 0 : i32
    %c0_i32_1 = arith.constant 0 : i32
    return %c0_i32, %c0_i32_0 : i32, i32
  }
  func.func @transform_16(%arg0: i32) -> (i32, i32, i32) {
    %c0_i32 = arith.constant 0 : i32
    %c0_i32_0 = arith.constant 0 : i32
    %c0_i32_1 = arith.constant 0 : i32
    return %arg0, %c0_i32, %c0_i32_0 : i32, i32, i32
  }
}

</mosaic_0001>

<bundles_post_ra>
// kernel: rdab_forward.1
= control target key start
LH: loop header
LB: loop body
LE: loop exit
PB: predicated region body
PF: predicated region fallthrough
CT: control target
= control target key end

     0   :  { %s5511_s23 = smov 0   ;;  %s8928_s0 = inlined_call_operand.vmem [shape: bf16[2,16,400], index: 0, kind: input, shape index: {}]   ;;  %s8929_s1 = inlined_call_operand.vmem [shape: f32[1,316], index: 1, kind: input, shape index: {}]   ;;  %s8930_s2 = inlined_call_operand.vmem [shape: f32[1,400], index: 2, kind: input, shape index: {}]   ;;  %s8931_s3 = inlined_call_operand.vmem [shape: bf16[8,144], index: 3, kind: input, shape index: {}]   ;;  %s8932_s4 = inlined_call_operand.vmem [shape: f32[8,1], index: 4, kind: input, shape index: {}]   ;;  %s8933_s5 = inlined_call_operand.vmem [shape: bf16[8,8], index: 5, kind: input, shape index: {}]   ;;  %s8934_s6 = inlined_call_operand.vmem [shape: f32[8,1], index: 6, kind: input, shape index: {}]   ;;  %s8935_s7 = inlined_call_operand.vmem [shape: bf16[8,216], index: 7, kind: input, shape index: {}]   ;;  %s8936_s8 = inlined_call_operand.vmem [shape: f32[8,1], index: 8, kind: input, shape index: {}]   ;;  %s8937_s9 = inlined_call_operand.vmem [shape: bf16[8,8], index: 9, kind: input, shape index: {}]   ;;  %s8938_s10 = inlined_call_operand.vmem [shape: f32[8,1], index: 10, kind: input, shape index: {}]   ;;  %s8939_s11 = inlined_call_operand.vmem [shape: bf16[16,32], index: 11, kind: input, shape index: {}]   ;;  %s8940_s12 = inlined_call_operand.vmem [shape: f32[16,1], index: 12, kind: input, shape index: {}]   ;;  %s8941_s13 = inlined_call_operand.vmem [shape: bf16[48,16], index: 13, kind: input, shape index: {}]   ;;  %s8942_s14 = inlined_call_operand.vmem [shape: f32[48,1], index: 14, kind: input, shape index: {}]   ;;  %s8943_s15 = inlined_call_operand.<no memory space> [shape: f32[1,1], index: 15, kind: input, shape index: {}]   ;;  %s8944_s16 = inlined_call_operand.vmem [shape: f32[2,16,316], index: 16, kind: output, shape index: {}]  }
   0x1   :  { %9158 = sst [smem:[#allocation102_spill]] %s8928_s0 }
   0x2   :  { %9159 = sst [smem:[#allocation103_spill]] %s8929_s1 }
   0x3   :  { %9160 = sst [smem:[#allocation104_spill]] %s8930_s2 }
   0x4   :  { %9161 = sst [smem:[#allocation105_spill]] %s8931_s3 }
   0x5   :  { %9162 = sst [smem:[#allocation106_spill]] %s8932_s4 }
   0x6   :  { %9163 = sst [smem:[#allocation107_spill]] %s8933_s5 }
   0x7   :  { %9164 = sst [smem:[#allocation108_spill]] %s8934_s6 }
   0x8   :  { %9165 = sst [smem:[#allocation109_spill]] %s8935_s7 }
   0x9   :  { %9166 = sst [smem:[#allocation110_spill]] %s8936_s8 }
   0xa   :  { %9167 = sst [smem:[#allocation111_spill]] %s8937_s9 }
   0xb   :  { %9168 = sst [smem:[#allocation112_spill]] %s8938_s10 }
   0xc   :  { %21 = sst [smem:[#allocation5]] %s8943_s15 }
   0xd LB: > { %s5126_s24 = sadd.s32 4294967295, %s5389_s23   ;;  %p5130_p0 = scmp.ge.s32.totalorder %s5389_s23, 1  ;;  %s5389_s23 = sphi %s5511_s23, %s27_s23  }
   0xe   : > { %p463_p1 = scmp.lt.s32.totalorder %s5389_s23, 3 }
  0x10   : > { %p464_p2 = pnand %p5130_p0, %p463_p1 }
  0x12   : > { %467 = sbr.rel (%p464_p2) target bundleno = 2388 (0x954), region = 84 }
  0x17   : > { %p513_p3 = scmp.lt.s32.totalorder %s5126_s24, 1  ;;  %vm531_vm0 = vcmask 1048368   ;;  %vm8946_vm1 = vcmask 343040   ;;  %v8995_v0 = vmov 0.0   ;;  %s9169_s27 = sld [smem:[#allocation102_spill]]  ;;  %vm554_vm2 = vcmask 834560  }
  0x18   : > { %535 = vst.msk [vmem:[#allocation2 + $0x30] sm:$0xff] %vm531_vm0, %v8995_v0  ;;  %532 = vst.msk [vmem:[#allocation2 + $0x10] sm:$0xff] %vm531_vm0, %v8995_v0  ;;  %vm551_vm3 = vcmask 1047888   ;;  %s5392_s29 = smov 66   ;;  %v5393_v11 = vmov 0   ;;  %s5394_s30 = smov 67  }
  0x19   : > { %537 = vst.msk [vmem:[#allocation2 + $0x50] sm:$0xff] %vm531_vm0, %v8995_v0  ;;  %539 = vst.msk [vmem:[#allocation2 + $0x70] sm:$0xff] %vm531_vm0, %v8995_v0  ;;  %s9842_s24 = smov (!%p513_p3, %s5126_s24), 1  ;;  %1067 = vmatprep.subr.bf16.mxu1 %v5393_v11  ;;  %5287 = vset.pattern.permute.xlu1 %v5393_v11  ;;  %s5395_s0 = smov 85   ;;  %vm8945_vm4 = vcmask 130048   ;;  %vm9050_vm5 = vcmask 490496  }
  0x1a   : > { %527 = vst.msk [vmem:[#allocation2] sm:$0xff] %vm8946_vm1, %v8995_v0  ;;  %528 = vst.msk [vmem:[#allocation2 + $0x20] sm:$0xff] %vm8946_vm1, %v8995_v0  ;;  %s5173_s15 = sshll.u32 %s9842_s24, 5  ;;  %5288 = vset.pattern.permute.xlu0 %v5393_v11  ;;  %s8953_s17 = smov 86   ;;  %vm871_vm6 = vcmask 539648   ;;  %vm830_vm7 = vcmask 547840  }
  0x1b   : > { %529 = vst.msk [vmem:[#allocation2 + $0x40] sm:$0xff] %vm8946_vm1, %v8995_v0  ;;  %530 = vst.msk [vmem:[#allocation2 + $0x60] sm:$0xff] %vm8946_vm1, %v8995_v0  ;;  %s8951_s18 = smov 87   ;;  %s5398_s19 = smov 105   ;;  %vm789_vm8 = vcmask 695296   ;;  %vm9054_vm9 = vcmask 703488  }
  0x1c   : > { %s8947_s20 = smov 106   ;;  %s8949_s21 = smov 107   ;;  %vm9051_vm10 = vcmask 711680   ;;  %vm666_vm11 = vcmask 859136   ;;  %vm9055_vm12 = vcmask 867328   ;;  %vm9079_vm13 = vcmask 875520  }
  0x1d   : > { %s5537_s28 = scalar_lea.vmem %s9169_s27, %s5173_s15  ;;  %s9170_s3 = sld [smem:[#allocation105_spill]]  ;;  %vm912_vm14 = vcmask 531456   ;;  %vm5402_vm15 = vmmov 0   ;;  %vm9072_vm0 = vcmask 1043456  }
  0x1e   : > { %v544_v1 = vld [vmem:[%s5537_s28 + $0x8] ss:$16 sps:$4 sm:$0xff]   ;;  %v541_v2 = vld [vmem:[%s5537_s28] sm:$0xff]  ;;  %v543_v3 = vld [vmem:[%s5537_s28 + $0x10] sm:$0xff]  ;;  %s5401_s25 = smov 65   ;;  %s9171_s4 = sld [smem:[#allocation106_spill]] }
  0x1f   : > { %v550_v4 = vunpack.c.h.bf16 %v544_v1  ;;  %v546_v5 = vunpack.c.h.bf16 %v541_v2  ;;  %v548_v6 = vunpack.c.l.bf16 %v543_v3  ;;  %v549_v7 = vunpack.c.h.bf16 %v543_v3  ;;  %s9172_s6 = sld [smem:[#allocation108_spill]]  ;;  %s8955_s26 = smov 42  }
  0x20   : > { %v545_v8 = vunpack.c.l.bf16 %v541_v2  ;;  %v547_v9 = vunpack.c.l.bf16 %v544_v1  ;;  %s9173_s5 = sld [smem:[#allocation107_spill]]  ;;  %s8957_s15 = smov 41  }
  0x21   : > { %558 = vst.msk [vmem:[#allocation2 + $0x30] sm:$0xff] %vm554_vm2, %v550_v4  ;;  %553 = vst [vmem:[#allocation2 + $0x8] sm:$0xff] %v546_v5  ;;  %v5543_v10 = vpack.i.bf16 %v549_v7, %v546_v5  ;;  %s9176_s1 = sld [smem:[#allocation103_spill]]  ;;  %s8969_s27 = smov 20  }
  0x22   : > { %557 = vst [vmem:[#allocation2 + $0x28] sm:$0xff] %v549_v7  ;;  %556 = vst.msk [vmem:[#allocation2 + $0x20] sm:$0xff] %vm551_vm3, %v548_v6  ;;  %s9179_s7 = sld [smem:[#allocation109_spill]]  ;;  %s8991_s22 = smov 19  }
  0x23   : > { %552 = vst.msk [vmem:[#allocation2] sm:$0xff] %vm551_vm3, %v545_v8  ;;  %5243 = vrot.lane.b32.xlu0 %v5543_v10, %s5392_s29  ;;  %v5601_v16 = vld [vmem:[%s9170_s3] sm:$0xff]  ;;  %s9180_s8 = sld [smem:[#allocation110_spill]]  ;;  %s9216_s3 = smov 127  }
  0x24   : > { %555 = vst.msk [vmem:[#allocation2 + $0x10] sm:$0xff] %vm554_vm2, %v547_v9  ;;  %v5135_v17 = vcombine.high %v5601_v16, %v5601_v16  ;;  %v1011_v18 = vld [vmem:[%s9171_s4] sm:$0xff]  ;;  %s9181_s10 = sld [smem:[#allocation112_spill]]  ;;  %s9225_s4 = smov 109  }
  0x25   : > { %s9182_s9 = sld [smem:[#allocation111_spill]] }
  0x26   : > { %5137 = vmatprep.mubr.msk.bf16.mxu1 %vm8945_vm4, %v5135_v17  ;;  %5136 = vmatprep.mubr.msk.bf16.mxu0 %vm8945_vm4, %v5135_v17  ;;  %vm1132_vm4 = vcmask 64512   ;;  %s9189_s2 = sld [smem:[#allocation104_spill]] }
  0x28   : > { %v852_v12 = vld [vmem:[#allocation2 + $0x30] sm:$0xff] }
  0x29   : > { %869 = vrot.lane.b32.xlu1 %v852_v12, %s5392_s29  ;;  %v850_v15 = vld [vmem:[#allocation2 + $0x20] sm:$0xff] }
  0x2a   : > { %v847_v14 = vld [vmem:[#allocation2] sm:$0xff] }
  0x2b   : > { %v849_v13 = vld [vmem:[#allocation2 + $0x10] sm:$0xff] }
  0x2c   : > { %863 = vrot.lane.b32.xlu0 %v849_v13, %s5392_s29 }
  0x2d   : > { %859 = vrot.lane.b32.xlu1 %v847_v14, %s5392_s29 }
  0x30   : > { %865 = vrot.lane.b32.xlu0 %v850_v15, %s5392_s29 }
  0x31   : > { %5248 = vrot.lane.b32.xlu1 %v5543_v10, %s5394_s30 }
  0x34   : > { %822 = vrot.lane.b32.xlu0 %v849_v13, %s5394_s30 }
  0x35   : > { %828 = vrot.lane.b32.xlu1 %v852_v12, %s5394_s30 }
  0x38   : > { %818 = vrot.lane.b32.xlu0 %v847_v14, %s5394_s30 }
  0x39   : > { %824 = vrot.lane.b32.xlu1 %v850_v15, %s5394_s30 }
  0x3c   : > { %5253 = vrot.lane.b32.xlu0 %v5543_v10, %s5395_s0 }
  0x3d   : > { %781 = vrot.lane.b32.xlu1 %v849_v13, %s5395_s0 }
  0x40   : > { %787 = vrot.lane.b32.xlu0 %v852_v12, %s5395_s0 }
  0x41   : > { %777 = vrot.lane.b32.xlu1 %v847_v14, %s5395_s0 }
  0x44   : > { %783 = vrot.lane.b32.xlu0 %v850_v15, %s5395_s0 }
  0x45   : > { %5258 = vrot.lane.b32.xlu1 %v5543_v10, %s8953_s17 }
  0x48   : > { %740 = vrot.lane.b32.xlu0 %v849_v13, %s8953_s17 }
  0x49   : > { %746 = vrot.lane.b32.xlu1 %v852_v12, %s8953_s17 }
  0x4c   : > { %736 = vrot.lane.b32.xlu0 %v847_v14, %s8953_s17 }
  0x4d   : > { %742 = vrot.lane.b32.xlu1 %v850_v15, %s8953_s17 }
  0x50   : > { %5263 = vrot.lane.b32.xlu0 %v5543_v10, %s8951_s18 }
  0x51   : > { %699 = vrot.lane.b32.xlu1 %v849_v13, %s8951_s18 }
  0x54   : > { %705 = vrot.lane.b32.xlu0 %v852_v12, %s8951_s18 }
  0x55   : > { %695 = vrot.lane.b32.xlu1 %v847_v14, %s8951_s18 }
  0x58   : > { %701 = vrot.lane.b32.xlu0 %v850_v15, %s8951_s18 }
  0x59   : > { %5268 = vrot.lane.b32.xlu1 %v5543_v10, %s5398_s19 }
  0x5c   : > { %658 = vrot.lane.b32.xlu0 %v849_v13, %s5398_s19 }
  0x5d   : > { %664 = vrot.lane.b32.xlu1 %v852_v12, %s5398_s19 }
  0x60   : > { %654 = vrot.lane.b32.xlu0 %v847_v14, %s5398_s19 }
  0x61   : > { %660 = vrot.lane.b32.xlu1 %v850_v15, %s5398_s19 }
  0x64   : > { %5273 = vrot.lane.b32.xlu0 %v5543_v10, %s8947_s20 }
  0x65   : > { %617 = vrot.lane.b32.xlu1 %v849_v13, %s8947_s20 }
  0x68   : > { %623 = vrot.lane.b32.xlu0 %v852_v12, %s8947_s20 }
  0x69   : > { %613 = vrot.lane.b32.xlu1 %v847_v14, %s8947_s20 }
  0x6c   : > { %619 = vrot.lane.b32.xlu0 %v850_v15, %s8947_s20 }
  0x6d   : > { %5278 = vrot.lane.b32.xlu1 %v5543_v10, %s8949_s21 }
  0x70   : > { %575 = vrot.lane.b32.xlu0 %v849_v13, %s8949_s21 }
  0x71   : > { %581 = vrot.lane.b32.xlu1 %v852_v12, %s8949_s21 }
  0x74   : > { %571 = vrot.lane.b32.xlu0 %v847_v14, %s8949_s21 }
  0x75   : > { %577 = vrot.lane.b32.xlu1 %v850_v15, %s8949_s21 }
  0x78   : > { %5283 = vrot.lane.b32.xlu0 %v5543_v10, %s5401_s25 }
  0x79   : > { %904 = vrot.lane.b32.xlu1 %v849_v13, %s5401_s25 }
  0x7c   : > { %910 = vrot.lane.b32.xlu0 %v852_v12, %s5401_s25 }
  0x7d   : > { %900 = vrot.lane.b32.xlu1 %v847_v14, %s5401_s25 }
  0x80   : > { %906 = vrot.lane.b32.xlu0 %v850_v15, %s5401_s25 }
  0x81   : > { %1014 = vperm.xlu1 %5287, %v1011_v18  }
  0x95   : > { %v5244_v19 = vpop.permute.xlu0 %5243 }
  0x96   : > { %v5246_v20 = vunpack.i.h.bf16 %v5244_v19  ;;  %v5245_v22 = vunpack.i.l.bf16 %v5244_v19 }
  0x9b   : > { %v870_v21 = vpop.permute.xlu1 %869 }
  0x9c   : > { %887 = vst.msk [vmem:[#allocation3 + $0x178] sm:$0xff] %vm9050_vm5, %v870_v21  ;;  %v875_v23 = vsel %vm871_vm6, %v5246_v20, %v870_v21 }
  0x9e   : > { %v864_v24 = vpop.permute.xlu0 %863 }
  0x9f   : > { %v873_v25 = vsel %vm871_vm6, %v5245_v22, %v864_v24  ;;  %884 = vst.msk [vmem:[#allocation3 + $0x160] sm:$0xff] %vm9050_vm5, %v864_v24  ;;  %v860_v27 = vpop.permute.xlu1 %859 }
  0xa0   : > { %v5621_v26 = vpack.c.bf16 %v875_v23, %v873_v25  ;;  %v872_v28 = vsel %vm871_vm6, %v860_v27, %v5245_v22 }
  0xa2   : > { %v866_v29 = vpop.permute.xlu0 %865  ;;  %1026 = vmatprep.subr.bf16.mxu0 %v5621_v26 }
  0xa3   : > { %v874_v30 = vsel %vm871_vm6, %v866_v29, %v5246_v20  ;;  %v5249_v32 = vpop.permute.xlu1 %5248  ;;  %v977_v33 = vld [vmem:[#allocation3 + $0x178] sm:$0xff] }
  0xa4   : > { %v5626_v31 = vpack.c.bf16 %v874_v30, %v872_v28  ;;  %v5250_v34 = vunpack.i.l.bf16 %v5249_v32  ;;  %v5251_v38 = vunpack.i.h.bf16 %v5249_v32 }
  0xa6   : > { %v823_v35 = vpop.permute.xlu0 %822  ;;  %v974_v36 = vld [vmem:[#allocation3 + $0x160] sm:$0xff]  ;;  %1027 = vmatpush1.bf16.msra.mxu0 %v5626_v31 }
  0xa7   : > { %843 = vst.msk [vmem:[#allocation3 + $0x130] sm:$0xff] %vm9050_vm5, %v823_v35  ;;  %v5630_v37 = vpack.c.bf16 %v977_v33, %v974_v36  ;;  %v832_v39 = vsel %vm830_vm7, %v5250_v34, %v823_v35  ;;  %v829_v40 = vpop.permute.xlu1 %828 }
  0xa8   : > { %v834_v41 = vsel %vm830_vm7, %v5251_v38, %v829_v40  ;;  %846 = vst.msk [vmem:[#allocation3 + $0x148] sm:$0xff] %vm9050_vm5, %v829_v40 }
  0xa9   : > { %1068 = vmatpush1.bf16.msra.mxu1 %v5630_v37  ;;  %v5638_v44 = vpack.c.bf16 %v834_v41, %v832_v39 }
  0xaa   : > { %v819_v42 = vpop.permute.xlu0 %818  ;;  %1069 = vmatprep.subr.bf16.mxu1 %v5393_v11 }
  0xab   : > { %v831_v43 = vsel %vm830_vm7, %v819_v42, %v5250_v34  ;;  %v825_v45 = vpop.permute.xlu1 %824  ;;  %1028 = vmatprep.subr.bf16.mxu0 %v5638_v44 }
  0xac   : > { %v833_v46 = vsel %vm830_vm7, %v825_v45, %v5251_v38 }
  0xad   : > { %v5642_v48 = vpack.c.bf16 %v833_v46, %v831_v43 }
  0xae   : > { %v5254_v47 = vpop.permute.xlu0 %5253  ;;  %v968_v52 = vld [vmem:[#allocation3 + $0x130] sm:$0xff] }
  0xaf   : > { %v5255_v49 = vunpack.i.l.bf16 %v5254_v47  ;;  %v782_v50 = vpop.permute.xlu1 %781  ;;  %v5256_v51 = vunpack.i.h.bf16 %v5254_v47  ;;  %v971_v53 = vld [vmem:[#allocation3 + $0x148] sm:$0xff]  ;;  %1029 = vmatpush1.bf16.msra.mxu0 %v5642_v48 }
  0xb0   : > { %802 = vst.msk [vmem:[#allocation3 + $0x100] sm:$0xff] %vm9050_vm5, %v782_v50  ;;  %v5647_v55 = vpack.c.bf16 %v971_v53, %v968_v52 }
  0xb1   : > { %v791_v54 = vsel %vm789_vm8, %v5255_v49, %v782_v50 }
  0xb2   : > { %v788_v56 = vpop.permute.xlu0 %787  ;;  %1070 = vmatpush1.bf16.msra.mxu1 %v5647_v55 }
  0xb3   : > { %v793_v57 = vsel %vm789_vm8, %v5256_v51, %v788_v56  ;;  %805 = vst.msk [vmem:[#allocation3 + $0x118] sm:$0xff] %vm9050_vm5, %v788_v56  ;;  %v778_v59 = vpop.permute.xlu1 %777  ;;  %1071 = vmatprep.subr.bf16.mxu1 %v5393_v11 }
  0xb4   : > { %v5652_v58 = vpack.c.bf16 %v793_v57, %v791_v54  ;;  %v790_v60 = vsel %vm789_vm8, %v778_v59, %v5255_v49 }
  0xb6   : > { %v784_v61 = vpop.permute.xlu0 %783  ;;  %1030 = vmatprep.subr.bf16.mxu0 %v5652_v58 }
  0xb7   : > { %v792_v62 = vsel %vm789_vm8, %v784_v61, %v5256_v51  ;;  %v5259_v1 = vpop.permute.xlu1 %5258  ;;  %v962_v2 = vld [vmem:[#allocation3 + $0x100] sm:$0xff] }
  0xb8   : > { %v5658_v63 = vpack.c.bf16 %v792_v62, %v790_v60  ;;  %v5260_v3 = vunpack.i.l.bf16 %v5259_v1  ;;  %v5261_v7 = vunpack.i.h.bf16 %v5259_v1 }
  0xba   : > { %v741_v4 = vpop.permute.xlu0 %740  ;;  %v965_v5 = vld [vmem:[#allocation3 + $0x118] sm:$0xff]  ;;  %1031 = vmatpush1.bf16.msra.mxu0 %v5658_v63 }
  0xbb   : > { %761 = vst.msk [vmem:[#allocation3 + $0xd0] sm:$0xff] %vm9050_vm5, %v741_v4  ;;  %v5662_v6 = vpack.c.bf16 %v965_v5, %v962_v2  ;;  %v750_v8 = vsel %vm9054_vm9, %v5260_v3, %v741_v4  ;;  %v747_v9 = vpop.permute.xlu1 %746 }
  0xbc   : > { %v752_v10 = vsel %vm9054_vm9, %v5261_v7, %v747_v9  ;;  %764 = vst.msk [vmem:[#allocation3 + $0xe8] sm:$0xff] %vm9050_vm5, %v747_v9 }
  0xbd   : > { %1072 = vmatpush1.bf16.msra.mxu1 %v5662_v6  ;;  %v5670_v14 = vpack.c.bf16 %v752_v10, %v750_v8 }
  0xbe   : > { %v737_v12 = vpop.permute.xlu0 %736  ;;  %1073 = vmatprep.subr.bf16.mxu1 %v5393_v11 }
  0xbf   : > { %v749_v13 = vsel %vm9054_vm9, %v737_v12, %v5260_v3  ;;  %v743_v15 = vpop.permute.xlu1 %742  ;;  %1032 = vmatprep.subr.bf16.mxu0 %v5670_v14 }
  0xc0   : > { %v751_v17 = vsel %vm9054_vm9, %v743_v15, %v5261_v7 }
  0xc1   : > { %v5674_v19 = vpack.c.bf16 %v751_v17, %v749_v13 }
  0xc2   : > { %v5264_v18 = vpop.permute.xlu0 %5263  ;;  %v956_v23 = vld [vmem:[#allocation3 + $0xd0] sm:$0xff] }
  0xc3   : > { %v5265_v20 = vunpack.i.l.bf16 %v5264_v18  ;;  %v700_v21 = vpop.permute.xlu1 %699  ;;  %v5266_v22 = vunpack.i.h.bf16 %v5264_v18  ;;  %v959_v24 = vld [vmem:[#allocation3 + $0xe8] sm:$0xff]  ;;  %1033 = vmatpush1.bf16.msra.mxu0 %v5674_v19 }
  0xc4   : > { %720 = vst.msk [vmem:[#allocation3 + $0xa0] sm:$0xff] %vm9050_vm5, %v700_v21  ;;  %v5679_v27 = vpack.c.bf16 %v959_v24, %v956_v23 }
  0xc5   : > { %v709_v25 = vsel %vm9051_vm10, %v5265_v20, %v700_v21 }
  0xc6   : > { %v706_v28 = vpop.permute.xlu0 %705  ;;  %1074 = vmatpush1.bf16.msra.mxu1 %v5679_v27 }
  0xc7   : > { %v711_v29 = vsel %vm9051_vm10, %v5266_v22, %v706_v28  ;;  %723 = vst.msk [vmem:[#allocation3 + $0xb8] sm:$0xff] %vm9050_vm5, %v706_v28  ;;  %v696_v32 = vpop.permute.xlu1 %695  ;;  %1075 = vmatprep.subr.bf16.mxu1 %v5393_v11 }
  0xc8   : > { %v5684_v30 = vpack.c.bf16 %v711_v29, %v709_v25  ;;  %v708_v33 = vsel %vm9051_vm10, %v696_v32, %v5265_v20 }
  0xca   : > { %v702_v34 = vpop.permute.xlu0 %701  ;;  %1034 = vmatprep.subr.bf16.mxu0 %v5684_v30 }
  0xcb   : > { %v710_v35 = vsel %vm9051_vm10, %v702_v34, %v5266_v22  ;;  %v5269_v38 = vpop.permute.xlu1 %5268  ;;  %v950_v39 = vld [vmem:[#allocation3 + $0xa0] sm:$0xff] }
  0xcc   : > { %v5690_v36 = vpack.c.bf16 %v710_v35, %v708_v33  ;;  %v5270_v40 = vunpack.i.l.bf16 %v5269_v38  ;;  %v5271_v45 = vunpack.i.h.bf16 %v5269_v38 }
  0xce   : > { %v659_v41 = vpop.permute.xlu0 %658  ;;  %v953_v42 = vld [vmem:[#allocation3 + $0xb8] sm:$0xff]  ;;  %1035 = vmatpush1.bf16.msra.mxu0 %v5690_v36 }
  0xcf   : > { %679 = vst.msk [vmem:[#allocation3 + $0x70] sm:$0xff] %vm9050_vm5, %v659_v41  ;;  %v5694_v43 = vpack.c.bf16 %v953_v42, %v950_v39  ;;  %v668_v46 = vsel %vm666_vm11, %v5270_v40, %v659_v41  ;;  %v665_v47 = vpop.permute.xlu1 %664 }
  0xd0   : > { %v670_v49 = vsel %vm666_vm11, %v5271_v45, %v665_v47  ;;  %682 = vst.msk [vmem:[#allocation3 + $0x88] sm:$0xff] %vm9050_vm5, %v665_v47 }
  0xd1   : > { %1076 = vmatpush1.bf16.msra.mxu1 %v5694_v43  ;;  %v5702_v52 = vpack.c.bf16 %v670_v49, %v668_v46 }
  0xd2   : > { %v655_v50 = vpop.permute.xlu0 %654  ;;  %1077 = vmatprep.subr.bf16.mxu1 %v5393_v11 }
  0xd3   : > { %v667_v51 = vsel %vm666_vm11, %v655_v50, %v5270_v40  ;;  %v661_v53 = vpop.permute.xlu1 %660  ;;  %1036 = vmatprep.subr.bf16.mxu0 %v5702_v52 }
  0xd4   : > { %v669_v54 = vsel %vm666_vm11, %v661_v53, %v5271_v45 }
  0xd5   : > { %v5706_v57 = vpack.c.bf16 %v669_v54, %v667_v51 }
  0xd6   : > { %v5274_v56 = vpop.permute.xlu0 %5273  ;;  %v944_v62 = vld [vmem:[#allocation3 + $0x70] sm:$0xff] }
  0xd7   : > { %v5275_v59 = vunpack.i.l.bf16 %v5274_v56  ;;  %v618_v60 = vpop.permute.xlu1 %617  ;;  %v5276_v61 = vunpack.i.h.bf16 %v5274_v56  ;;  %v947_v1 = vld [vmem:[#allocation3 + $0x88] sm:$0xff]  ;;  %1037 = vmatpush1.bf16.msra.mxu0 %v5706_v57 }
  0xd8   : > { %638 = vst.msk [vmem:[#allocation3 + $0x40] sm:$0xff] %vm9050_vm5, %v618_v60  ;;  %v5711_v3 = vpack.c.bf16 %v947_v1, %v944_v62  ;;  %v5134_v1 = vcombine.low %v5601_v16, %v5601_v16  ;;  %v1126_v16 = vld [vmem:[%s9172_s6] sm:$0xff]  ;;  %s9235_s6 = smov 90  }
  0xd9   : > { %v627_v2 = vsel %vm9055_vm12, %v5275_v59, %v618_v60  ;;  %1129 = vperm.xlu0 %5288, %v1126_v16  }
  0xda   : > { %v624_v4 = vpop.permute.xlu0 %623  ;;  %1078 = vmatpush1.bf16.msra.mxu1 %v5711_v3 }
  0xdb   : > { %v629_v5 = vsel %vm9055_vm12, %v5276_v61, %v624_v4  ;;  %641 = vst.msk [vmem:[#allocation3 + $0x58] sm:$0xff] %vm9050_vm5, %v624_v4  ;;  %v614_v8 = vpop.permute.xlu1 %613  ;;  %1079 = vmatprep.subr.bf16.mxu1 %v5393_v11 }
  0xdc   : > { %v5716_v7 = vpack.c.bf16 %v629_v5, %v627_v2  ;;  %v626_v9 = vsel %vm9055_vm12, %v614_v8, %v5275_v59 }
  0xde   : > { %v620_v10 = vpop.permute.xlu0 %619  ;;  %1038 = vmatprep.subr.bf16.mxu0 %v5716_v7 }
  0xdf   : > { %v628_v12 = vsel %vm9055_vm12, %v620_v10, %v5276_v61  ;;  %v5279_v15 = vpop.permute.xlu1 %5278  ;;  %v938_v17 = vld [vmem:[#allocation3 + $0x40] sm:$0xff] }
  0xe0   : > { %v5722_v13 = vpack.c.bf16 %v628_v12, %v626_v9  ;;  %v5280_v18 = vunpack.i.l.bf16 %v5279_v15  ;;  %v5281_v23 = vunpack.i.h.bf16 %v5279_v15 }
  0xe2   : > { %v576_v20 = vpop.permute.xlu0 %575  ;;  %v941_v21 = vld [vmem:[#allocation3 + $0x58] sm:$0xff]  ;;  %1039 = vmatpush1.bf16.msra.mxu0 %v5722_v13 }
  0xe3   : > { %597 = vst.msk [vmem:[#allocation3 + $0x10] sm:$0xff] %vm9050_vm5, %v576_v20  ;;  %v5726_v22 = vpack.c.bf16 %v941_v21, %v938_v17  ;;  %v585_v24 = vsel %vm9079_vm13, %v5280_v18, %v576_v20  ;;  %v582_v25 = vpop.permute.xlu1 %581 }
  0xe4   : > { %v587_v28 = vsel %vm9079_vm13, %v5281_v23, %v582_v25  ;;  %600 = vst.msk [vmem:[#allocation3 + $0x28] sm:$0xff] %vm9050_vm5, %v582_v25 }
  0xe5   : > { %1080 = vmatpush1.bf16.msra.mxu1 %v5726_v22  ;;  %v5734_v33 = vpack.c.bf16 %v587_v28, %v585_v24 }
  0xe6   : > { %v572_v29 = vpop.permute.xlu0 %571  ;;  %1081 = vmatprep.subr.bf16.mxu1 %v5393_v11 }
  0xe7   : > { %v584_v32 = vsel %vm9079_vm13, %v572_v29, %v5280_v18  ;;  %v578_v34 = vpop.permute.xlu1 %577  ;;  %1040 = vmatprep.subr.bf16.mxu0 %v5734_v33 }
  0xe8   : > { %v586_v35 = vsel %vm9079_vm13, %v578_v34, %v5281_v23 }
  0xe9   : > { %v5738_v39 = vpack.c.bf16 %v586_v35, %v584_v32 }
  0xea   : > { %v5284_v38 = vpop.permute.xlu0 %5283  ;;  %v932_v45 = vld [vmem:[#allocation3 + $0x10] sm:$0xff] }
  0xeb   : > { %v5285_v40 = vunpack.i.l.bf16 %v5284_v38  ;;  %v905_v41 = vpop.permute.xlu1 %904  ;;  %v5286_v42 = vunpack.i.h.bf16 %v5284_v38  ;;  %v935_v46 = vld [vmem:[#allocation3 + $0x28] sm:$0xff]  ;;  %1041 = vmatpush1.bf16.msra.mxu0 %v5738_v39 }
  0xec   : > { %925 = vst.msk [vmem:[#allocation3 + $0x190] sm:$0xff] %vm9050_vm5, %v905_v41  ;;  %v5743_v49 = vpack.c.bf16 %v935_v46, %v932_v45 }
  0xed   : > { %v914_v47 = vsel %vm912_vm14, %v5285_v40, %v905_v41 }
  0xee   : > { %v911_v50 = vpop.permute.xlu0 %910  ;;  %1082 = vmatpush1.bf16.msra.mxu1 %v5743_v49 }
  0xef   : > { %v916_v51 = vsel %vm912_vm14, %v5286_v42, %v911_v50  ;;  %928 = vst.msk [vmem:[#allocation3 + $0x1a8] sm:$0xff] %vm9050_vm5, %v911_v50  ;;  %v901_v54 = vpop.permute.xlu1 %900  ;;  %1097 = vmatprep.subr.bf16.mxu1 %v5393_v11 }
  0xf0   : > { %v5748_v53 = vpack.c.bf16 %v916_v51, %v914_v47  ;;  %v913_v56 = vsel %vm912_vm14, %v901_v54, %v5285_v40 }
  0xf2   : > { %v907_v59 = vpop.permute.xlu0 %906  ;;  %1056 = vmatprep.subr.bf16.mxu0 %v5748_v53 }
  0xf3   : > { %v915_v60 = vsel %vm912_vm14, %v907_v59, %v5286_v42  ;;  %v980_v62 = vld [vmem:[#allocation3 + $0x190] sm:$0xff] }
  0xf4   : > { %v5754_v61 = vpack.c.bf16 %v915_v60, %v913_v56 }
  0xf6   : > { %v983_v2 = vld [vmem:[#allocation3 + $0x1a8] sm:$0xff]  ;;  %1057 = vmatpush2.bf16.msra.mxu0 %v5754_v61 }
  0xf7   : > { %v5759_v4 = vpack.c.bf16 %v983_v2, %v980_v62  ;;  %v524_v2 = vld [vmem:[%s9176_s1] sm:$0x7]  ;;  %s9211_s1 = smov 2  }
  0xf9   : > { %1098 = vmatpush2.bf16.msra.mxu1 %v5759_v4  ;;  %1059 = vmatmul.mubr.bf16.vlgmr.msra.gmra.mxu0 %v5134_v1 }
  0xfa   : > { %5181 = vmatprep.subr.bf16.mxu1 %v8995_v0  ;;  %1178 = vmatprep.mubr.bf16.mxu0 %v5393_v11 }
  0xfc   : > { %1100 = vmatmul.mubr.bf16.vlgmr.msra.gmra.mxu1 %v5134_v1  ;;  %v1015_v5 = vpop.permute.xlu1 %1014  ;;  %v1122_v1 = vld [vmem:[%s9173_s5] sm:$0xf]  ;;  %s9228_s5 = smov 108  }
  0xfd   : > { %5183 = vmatprep.mubr.msk.bf16.mxu1 %vm5402_vm15, %v8995_v0 }
 0x1b9   : > { %v1060_v8 = vpop.f32.mrf.mxu0 }
 0x1ba   : > { %v1061_v9 = vadd.f32 %v1060_v8, %v1015_v5 }
 0x1bb   : > { %v1062_v10 = vpop.f32.mrf.mxu0 }
 0x1bc   : > { %v1101_v12 = vpop.f32.mrf.mxu1  ;;  %v1110_v15 = vmul.f32 0.70710677, %v1061_v9  ;;  %v1063_v17 = vadd.f32 %v1062_v10, %v1015_v5  ;;  %v1107_v34 = vmul.f32 0.5, %v1061_v9 }
 0x1bd   : > { %v1102_v18 = vadd.f32 %v1101_v12, %v1015_v5  ;;  %v1064_v20 = vpop.f32.mrf.mxu0 }
 0x1be   : > { %5303 = verf.f32 %v1110_v15  ;;  %v1111_v21 = vmul.f32 0.70710677, %v1063_v17  ;;  %v1103_v23 = vpop.f32.mrf.mxu1  ;;  %v1108_v42 = vmul.f32 0.5, %v1063_v17 }
 0x1bf   : > { %v1112_v24 = vmul.f32 0.70710677, %v1102_v18  ;;  %v1065_v25 = vpop.f32.mrf.mxu0  ;;  %v1109_v46 = vmul.f32 0.5, %v1102_v18 }
 0x1c0   : > { %5305 = verf.f32 %v1111_v21  ;;  %v1104_v28 = vpop.f32.mrf.mxu1 }
 0x1c1   : > { %5307 = verf.f32 %v1112_v24 }
 0x1c2   : > { %v1105_v29 = vpop.f32.mrf.mxu1 }
 0x1cb   : > { %v5304_v32 = vpop.eup %5303 }
 0x1cc   : > { %v1116_v35 = vadd.f32 1.0, %v5304_v32 }
 0x1cd   : > { %v5306_v38 = vpop.eup %5305 }
 0x1ce   : > { %v5308_v40 = vpop.eup %5307  ;;  %v5769_v41 = vmul.f32 %v1116_v35, %v1107_v34  ;;  %v1117_v45 = vadd.f32 1.0, %v5306_v38 }
 0x1cf   : > { %v1118_v47 = vadd.f32 1.0, %v5308_v40 }
 0x1d0   : > { %v5771_v50 = vmul.f32 %v1117_v45, %v1108_v42  ;;  %v1123_v51 = vpack.c.bf16 %v5769_v41, %v5769_v41  ;;  %v1588_v45 = vld [vmem:[%s9180_s8] sm:$0xff]  ;;  %s9241_s8 = smov 88  }
 0x1d1   : > { %v5775_v54 = vmul.f32 %v1118_v47, %v1109_v46  ;;  %v1713_v46 = vld [vmem:[%s9181_s10] sm:$0xff]  ;;  %v1864_v47 = vld [vmem:[%s8942_s14 + $0x8] sm:$0xff]  ;;  %s9267_s10 = smov 18  }
 0x1d2   : > { %v1124_v56 = vpack.c.bf16 %v5771_v50, %v5771_v50  ;;  %v1138_v60 = vsel %vm9072_vm0, %v1123_v51, 0  ;;  %v1866_v51 = vld [vmem:[%s8942_s14 + $0x18] sm:$0xff] }
 0x1d3   : > { %v1125_v59 = vpack.c.bf16 %v5775_v54, %v5775_v54 }
 0x1d4   : > { %5138 = vmatprep.subr.msk.bf16.mxu0 %vm9072_vm0, %v1124_v56  ;;  %v1868_v56 = vld [vmem:[%s8942_s14 + $0x28] sm:$0xff] }
 0x1d5   : > { %v1144_v62 = vsel %vm9072_vm0, %v1125_v59, 0  ;;  %1161 = vmatpush1.bf16.msra.mxu0 %v1138_v60  ;;  %v1867_v59 = vld [vmem:[%s8942_s14 + $0x20] sm:$0xff] }
 0x1d6   : > { %5182 = vmatpush3.bf16.msra.mxu1 %v1144_v62  ;;  %1613 = vmatprep.subr.bf16.mxu0 %v5621_v26  ;;  %v1130_v26 = vpop.permute.xlu0 %1129 }
 0x1d7   : > { %1654 = vmatprep.subr.bf16.mxu1 %v5393_v11 }
 0x1d8   : > { %5139 = vmatmul.mubr.msk.bf16.vlgmr.msra.gmra.mxu0 %vm1132_vm4, %v1122_v1 }
 0x1d9   : > { %5184 = vmatmul.mubr.msk.bf16.vlgmr.msra.gmra.mxu1 %vm1132_vm4, %v1122_v1  ;;  %1614 = vmatpush1.bf16.msra.mxu0 %v5626_v31 }
 0x1da   : > { %1655 = vmatpush1.bf16.msra.mxu1 %v5630_v37  ;;  %1615 = vmatprep.subr.bf16.mxu0 %v5638_v44 }
 0x1db   : > { %1656 = vmatprep.subr.bf16.mxu1 %v5393_v11 }
 0x1dd   : > { %1616 = vmatpush1.bf16.msra.mxu0 %v5642_v48 }
 0x1de   : > { %1657 = vmatpush1.bf16.msra.mxu1 %v5647_v55  ;;  %1617 = vmatprep.subr.bf16.mxu0 %v5652_v58 }
 0x1df   : > { %1658 = vmatprep.subr.bf16.mxu1 %v5393_v11 }
 0x1e1   : > { %1618 = vmatpush1.bf16.msra.mxu0 %v5658_v63 }
 0x1e2   : > { %1659 = vmatpush1.bf16.msra.mxu1 %v5662_v6  ;;  %1619 = vmatprep.subr.bf16.mxu0 %v5670_v14 }
 0x1e3   : > { %1660 = vmatprep.subr.bf16.mxu1 %v5393_v11 }
 0x1e5   : > { %1620 = vmatpush1.bf16.msra.mxu0 %v5674_v19 }
 0x1e6   : > { %1661 = vmatpush1.bf16.msra.mxu1 %v5679_v27  ;;  %1621 = vmatprep.subr.bf16.mxu0 %v5684_v30 }
 0x1e7   : > { %1662 = vmatprep.subr.bf16.mxu1 %v5393_v11 }
 0x1e9   : > { %1622 = vmatpush1.bf16.msra.mxu0 %v5690_v36 }
 0x1ea   : > { %1663 = vmatpush1.bf16.msra.mxu1 %v5694_v43  ;;  %1623 = vmatprep.subr.bf16.mxu0 %v5702_v52 }
 0x1eb   : > { %1664 = vmatprep.subr.bf16.mxu1 %v5393_v11 }
 0x1ed   : > { %1624 = vmatpush1.bf16.msra.mxu0 %v5706_v57 }
 0x1ee   : > { %1665 = vmatpush1.bf16.msra.mxu1 %v5711_v3  ;;  %1625 = vmatprep.subr.bf16.mxu0 %v5716_v7 }
 0x1ef   : > { %1666 = vmatprep.subr.bf16.mxu1 %v5393_v11 }
 0x1f1   : > { %1626 = vmatpush1.bf16.msra.mxu0 %v5722_v13 }
 0x1f2   : > { %1667 = vmatpush1.bf16.msra.mxu1 %v5726_v22  ;;  %1627 = vmatprep.subr.bf16.mxu0 %v5734_v33  ;;  %v1249_v33 = vlaneseq }
 0x1f3   : > { %1668 = vmatprep.subr.bf16.mxu1 %v5393_v11 }
 0x1f5   : > { %1628 = vmatpush1.bf16.msra.mxu0 %v5738_v39  ;;  %v5822_v39 = vshrl.u32 %v1249_v33, 7 }
 0x1f6   : > { %1669 = vmatpush1.bf16.msra.mxu1 %v5743_v49 }
 0x1f7   : > { %1674 = vmatprep.subr.bf16.mxu1 %v5393_v11  ;;  %9174 = vst [vmem:[#allocation6_spill] sm:$0xff] %v5822_v39  ;;  %v5825_v49 = vsub.s32 0, %v5822_v39  ;;  %v5831_v16 = vsub.s32 2, %v5822_v39  ;;  %v5837_v8 = vsub.s32 1, %v5822_v39 }
 0x1f9   : > { %9175 = vst [vmem:[#allocation7_spill] sm:$0xff] %v5825_v49  ;;  %9177 = vst [vmem:[#allocation8_spill] sm:$0xff] %v5831_v16  ;;  %v5834_v5 = vrot.slane %v524_v2, %v5825_v49  ;;  %v5840_v10 = vrot.slane %v524_v2, %v5831_v16  ;;  %v5847_v23 = vrot.slane %v524_v2, %v5837_v8 }
 0x1fa   : > { %9178 = vst [vmem:[#allocation9_spill] sm:$0xff] %v5837_v8 }
 0x298   : > { %v1180_v31 = vpop.f32.mrf.mxu0 }
 0x299   : > { %v1221_v37 = vpop.f32.mrf.mxu1  ;;  %v1181_v44 = vadd.f32 %v1180_v31, %v1130_v26 }
 0x29a   : > { %v1222_v48 = vadd.f32 %v1221_v37, %v1130_v26  ;;  %v1182_v55 = vpop.f32.mrf.mxu0 }
 0x29b   : > { %v5141_v58 = vmul.f32 -1.442695, %v1181_v44  ;;  %v1183_v63 = vadd.f32 %v1182_v55, %v1130_v26  ;;  %v5185_v6 = vpop.f32.mrf.mxu1 }
 0x29c   : > { %v5143_v14 = vmul.f32 -1.442695, %v1222_v48  ;;  %v1184_v19 = vpop.f32.mrf.mxu0 }
 0x29d   : > { %5309 = vpow2.f32 %v5141_v58  ;;  %v5142_v27 = vmul.f32 -1.442695, %v1183_v63  ;;  %v1224_v30 = vpop.f32.mrf.mxu1 }
 0x29e   : > { %5311 = vpow2.f32 %v5143_v14  ;;  %v1185_v36 = vpop.f32.mrf.mxu0 }
 0x29f   : > { %5313 = vpow2.f32 %v5142_v27  ;;  %v5186_v43 = vpop.f32.mrf.mxu1 }
 0x2aa   : > { %v5310_v52 = vpop.eup %5309 }
 0x2ab   : > { %v5312_v57 = vpop.eup %5311  ;;  %v1236_v3 = vadd.f32 1.0, %v5310_v52 }
 0x2ac   : > { %v5314_v7 = vpop.eup %5313  ;;  %v1238_v13 = vadd.f32 1.0, %v5312_v57 }
 0x2ad   : > { %5315 = vrcp.f32 %v1236_v3  ;;  %v1237_v22 = vadd.f32 1.0, %v5314_v7 }
 0x2ae   : > { %5317 = vrcp.f32 %v1238_v13 }
 0x2af   : > { %5319 = vrcp.f32 %v1237_v22 }
 0x2ba   : > { %v5316_v9 = vpop.eup %5315 }
 0x2bb   : > { %v5318_v12 = vpop.eup %5317  ;;  %v1245_v15 = vmul.f32 %v5316_v9, %v5769_v41  ;;  %v5885_v41 = vld [vmem:[%s9179_s7] sm:$0xff]  ;;  %s9238_s7 = smov 89  }
 0x2bc   : > { %v5320_v17 = vpop.eup %5319  ;;  %v1247_v18 = vmul.f32 %v5318_v12, %v5775_v54  ;;  %v5145_v42 = vcombine.high %v5885_v41, %v5885_v41  ;;  %v1865_v54 = vld [vmem:[%s8942_s14 + $0x10] sm:$0xff] }
 0x2bd   : > { %v1264_v20 = vmul.f32 %v5834_v5, %v1245_v15  ;;  %v1246_v21 = vmul.f32 %v5320_v17, %v5771_v50  ;;  %v1863_v50 = vld [vmem:[%s8942_s14] sm:$0xff] }
 0x2be   : > { %v1266_v24 = vmul.f32 %v5840_v10, %v1247_v18 }
 0x2bf   : > { %1270 = vrot.lane.b32.xlu1 %v1264_v20, %s8955_s26  ;;  %v1265_v25 = vmul.f32 %v5847_v23, %v1246_v21 }
 0x2c0   : > { %1274 = vrot.lane.b32.xlu0 %v1266_v24, %s8955_s26 }
 0x2c3   : > { %1272 = vrot.lane.b32.xlu1 %v1265_v25, %s8955_s26 }
 0x331   : > { %v1271_v28 = vpop.permute.xlu1 %1270 }
 0x332   : > { %1281 = vst.msk [vmem:[#allocation2 + $0x40] sm:$0xff] %vm551_vm3, %v1271_v28  ;;  %v1275_v29 = vpop.permute.xlu0 %1274 }
 0x335   : > { %v1273_v32 = vpop.permute.xlu1 %1272 }
 0x336   : > { %v1276_v34 = vsel %vm8946_vm1, %v1271_v28, %v1273_v32  ;;  %v1277_v35 = vsel %vm8946_vm1, %v1273_v32, %v1275_v29  ;;  %vm9052_vm1 = vcmask 719872  }
 0x337   : > { %1282 = vst [vmem:[#allocation2 + $0x48] sm:$0xff] %v1276_v34  ;;  %1283 = vst.msk [vmem:[#allocation2 + $0x50] sm:$0xff] %vm554_vm2, %v1277_v35  ;;  %5148 = vmatprep.mubr.msk.bf16.mxu1 %vm9052_vm1, %v5145_v42  ;;  %5147 = vmatprep.mubr.msk.bf16.mxu0 %vm9052_vm1, %v5145_v42 }
 0x339   : > { %v1444_v38 = vld [vmem:[#allocation2 + $0x40] sm:$0xff] }
 0x33a   : > { %1450 = vrot.lane.b32.xlu1 %v1444_v38, %s5401_s25  ;;  %1410 = vrot.lane.b32.xlu0 %v1444_v38, %s5394_s30 }
 0x33e   : > { %1430 = vrot.lane.b32.xlu1 %v1444_v38, %s5392_s29  ;;  %1370 = vrot.lane.b32.xlu0 %v1444_v38, %s8953_s17  ;;  %v1446_v40 = vld [vmem:[#allocation2 + $0x50] sm:$0xff] }
 0x342   : > { %1390 = vrot.lane.b32.xlu1 %v1444_v38, %s5395_s0  ;;  %1330 = vrot.lane.b32.xlu0 %v1444_v38, %s5398_s19 }
 0x346   : > { %1350 = vrot.lane.b32.xlu1 %v1444_v38, %s8951_s18  ;;  %1452 = vrot.lane.b32.xlu0 %v1276_v34, %s5401_s25 }
 0x34a   : > { %1454 = vrot.lane.b32.xlu1 %v1446_v40, %s5401_s25  ;;  %1412 = vrot.lane.b32.xlu0 %v1276_v34, %s5394_s30  ;;  %s8967_s25 = smov 21  }
 0x34e   : > { %1414 = vrot.lane.b32.xlu1 %v1446_v40, %s5394_s30  ;;  %1432 = vrot.lane.b32.xlu0 %v1276_v34, %s5392_s29  ;;  %s8975_s30 = smov 89  }
 0x352   : > { %1434 = vrot.lane.b32.xlu1 %v1446_v40, %s5392_s29  ;;  %1372 = vrot.lane.b32.xlu0 %v1276_v34, %s8953_s17  ;;  %s8961_s29 = smov 39  }
 0x356   : > { %1374 = vrot.lane.b32.xlu1 %v1446_v40, %s8953_s17  ;;  %1392 = vrot.lane.b32.xlu0 %v1276_v34, %s5395_s0 }
 0x35a   : > { %1394 = vrot.lane.b32.xlu1 %v1446_v40, %s5395_s0  ;;  %1332 = vrot.lane.b32.xlu0 %v1276_v34, %s5398_s19  ;;  %s8977_s0 = smov 88  }
 0x35e   : > { %1334 = vrot.lane.b32.xlu1 %v1446_v40, %s5398_s19  ;;  %1352 = vrot.lane.b32.xlu0 %v1276_v34, %s8951_s18  ;;  %s8965_s19 = smov 22  }
 0x362   : > { %1354 = vrot.lane.b32.xlu1 %v1446_v40, %s8951_s18  ;;  %1292 = vrot.lane.b32.xlu0 %v1276_v34, %s8949_s21 }
 0x366   : > { %1294 = vrot.lane.b32.xlu1 %v1446_v40, %s8949_s21  ;;  %1312 = vrot.lane.b32.xlu0 %v1276_v34, %s8947_s20 }
 0x36a   : > { %1314 = vrot.lane.b32.xlu1 %v1446_v40, %s8947_s20  ;;  %1290 = vrot.lane.b32.xlu0 %v1444_v38, %s8949_s21  ;;  %s8973_s21 = smov 90  }
 0x36e   : > { %1310 = vrot.lane.b32.xlu1 %v1444_v38, %s8947_s20  ;;  %1591 = vperm.xlu0 %5288, %v1588_v45   ;;  %s8959_s20 = smov 40  }
 0x372   : > { %1716 = vperm.xlu1 %5287, %v1713_v46   ;;  %1876 = vperm.xlu0 %5288, %v1864_v47  }
 0x376   : > { %1871 = vperm.xlu1 %5287, %v1863_v50   ;;  %1886 = vperm.xlu0 %5288, %v1866_v51  }
 0x37a   : > { %1881 = vperm.xlu1 %5287, %v1865_v54   ;;  %1896 = vperm.xlu0 %5288, %v1868_v56  }
 0x37e   : > { %1891 = vperm.xlu1 %5287, %v1867_v59  }
 0x3ac   : > { %v1411_v60 = vpop.permute.xlu0 %1410  ;;  %v1451_v62 = vpop.permute.xlu1 %1450 }
 0x3b0   : > { %v1371_v1 = vpop.permute.xlu0 %1370  ;;  %v1431_v26 = vpop.permute.xlu1 %1430 }
 0x3b4   : > { %v1331_v31 = vpop.permute.xlu0 %1330  ;;  %v1391_v37 = vpop.permute.xlu1 %1390 }
 0x3b8   : > { %v1453_v44 = vpop.permute.xlu0 %1452  ;;  %v1351_v48 = vpop.permute.xlu1 %1350 }
 0x3b9   : > { %v1456_v55 = vsel %vm912_vm14, %v1451_v62, %v1453_v44 }
 0x3ba   : > { %v1585_v6 = vpack.c.bf16 %v1456_v55, %v1456_v55 }
 0x3bc   : > { %v1413_v58 = vpop.permute.xlu0 %1412  ;;  %v1455_v63 = vpop.permute.xlu1 %1454  ;;  %v1605_v43 = vsel %vm9072_vm0, %v1585_v6, 0 }
 0x3bd   : > { %v1416_v14 = vsel %vm830_vm7, %v1411_v60, %v1413_v58  ;;  %v1457_v19 = vsel %vm912_vm14, %v1453_v44, %v1455_v63  ;;  %1463 = vst.msk [vmem:[#allocation3 + $0x280] sm:$0xff] %vm9050_vm5, %v1455_v63 }
 0x3be   : > { %v1586_v27 = vpack.c.bf16 %v1457_v19, %v1457_v19 }
 0x3c0   : > { %v1433_v30 = vpop.permute.xlu0 %1432  ;;  %v1415_v36 = vpop.permute.xlu1 %1414  ;;  %5146 = vmatprep.subr.msk.bf16.mxu0 %vm9072_vm0, %v1586_v27 }
 0x3c1   : > { %v1436_v52 = vsel %vm871_vm6, %v1431_v26, %v1433_v30  ;;  %v1417_v57 = vsel %vm830_vm7, %v1413_v58, %v1415_v36  ;;  %1423 = vst.msk [vmem:[#allocation3 + $0x250] sm:$0xff] %vm9050_vm5, %v1415_v36  ;;  %1634 = vmatpush2.bf16.msra.mxu0 %v1605_v43 }
 0x3c2   : > { %v1582_v15 = vpack.c.bf16 %v1436_v52, %v1416_v14 }
 0x3c4   : > { %v1373_v3 = vpop.permute.xlu0 %1372  ;;  %v1435_v7 = vpop.permute.xlu1 %1434  ;;  %v1545_v13 = vld [vmem:[#allocation3 + $0x280] sm:$0xff] }
 0x3c5   : > { %v1376_v22 = vsel %vm9054_vm9, %v1371_v1, %v1373_v3  ;;  %v1437_v33 = vsel %vm871_vm6, %v1433_v30, %v1435_v7  ;;  %1443 = vst.msk [vmem:[#allocation3 + $0x268] sm:$0xff] %vm9050_vm5, %v1435_v7  ;;  %v1587_v2 = vpack.c.bf16 %v1545_v13, %v1545_v13  ;;  %vm9183_vm6 = vcmask 130048  }
 0x3c6   : > { %v1583_v9 = vpack.c.bf16 %v1437_v33, %v1417_v57  ;;  %vm9184_vm7 = vmmov %vm9183_vm6 }
 0x3c7   : > { %v1611_v12 = vsel %vm9072_vm0, %v1587_v2, 0 }
 0x3c8   : > { %v1393_v17 = vpop.permute.xlu0 %1392  ;;  %1675 = vmatpush2.bf16.msra.mxu1 %v1611_v12  ;;  %v1375_v18 = vpop.permute.xlu1 %1374  ;;  %1635 = vmatprep.subr.bf16.mxu0 %v1583_v9  ;;  %v1539_v28 = vld [vmem:[#allocation3 + $0x250] sm:$0xff] }
 0x3c9   : > { %v1396_v20 = vsel %vm789_vm8, %v1391_v37, %v1393_v17  ;;  %v1377_v21 = vsel %vm9054_vm9, %v1373_v3, %v1375_v18  ;;  %1383 = vst.msk [vmem:[#allocation3 + $0x220] sm:$0xff] %vm9050_vm5, %v1375_v18  ;;  %1676 = vmatprep.subr.bf16.mxu1 %v5393_v11  ;;  %1636 = vmatpush2.bf16.msra.mxu0 %v1582_v15 }
 0x3ca   : > { %v1579_v40 = vpack.c.bf16 %v1396_v20, %v1376_v22  ;;  %v5144_v3 = vcombine.low %v5885_v41, %v5885_v41 }
 0x3cc   : > { %v1333_v24 = vpop.permute.xlu0 %1332  ;;  %v1395_v25 = vpop.permute.xlu1 %1394  ;;  %v1542_v29 = vld [vmem:[#allocation3 + $0x268] sm:$0xff] }
 0x3cd   : > { %v1336_v32 = vsel %vm666_vm11, %v1331_v31, %v1333_v24  ;;  %v1397_v34 = vsel %vm789_vm8, %v1393_v17, %v1395_v25  ;;  %1403 = vst.msk [vmem:[#allocation3 + $0x238] sm:$0xff] %vm9050_vm5, %v1395_v25  ;;  %v1584_v35 = vpack.c.bf16 %v1542_v29, %v1539_v28 }
 0x3ce   : > { %v1580_v38 = vpack.c.bf16 %v1397_v34, %v1377_v21 }
 0x3cf   : > { %1677 = vmatpush2.bf16.msra.mxu1 %v1584_v35 }
 0x3d0   : > { %v1353_v42 = vpop.permute.xlu0 %1352  ;;  %v1335_v45 = vpop.permute.xlu1 %1334  ;;  %1678 = vmatprep.subr.bf16.mxu1 %v5393_v11  ;;  %1637 = vmatprep.subr.bf16.mxu0 %v1580_v38  ;;  %v1533_v54 = vld [vmem:[#allocation3 + $0x220] sm:$0xff] }
 0x3d1   : > { %v1356_v46 = vsel %vm9051_vm10, %v1351_v48, %v1353_v42  ;;  %v1337_v47 = vsel %vm666_vm11, %v1333_v24, %v1335_v45  ;;  %1343 = vst.msk [vmem:[#allocation3 + $0x1f0] sm:$0xff] %vm9050_vm5, %v1335_v45  ;;  %1638 = vmatpush2.bf16.msra.mxu0 %v1579_v40 }
 0x3d2   : > { %v1576_v1 = vpack.c.bf16 %v1356_v46, %v1336_v32 }
 0x3d4   : > { %v1293_v50 = vpop.permute.xlu0 %1292  ;;  %v1355_v51 = vpop.permute.xlu1 %1354  ;;  %v1536_v56 = vld [vmem:[#allocation3 + $0x238] sm:$0xff] }
 0x3d5   : > { %v1357_v59 = vsel %vm9051_vm10, %v1353_v42, %v1355_v51  ;;  %1363 = vst.msk [vmem:[#allocation3 + $0x208] sm:$0xff] %vm9050_vm5, %v1355_v51  ;;  %v1581_v60 = vpack.c.bf16 %v1536_v56, %v1533_v54  ;;  %v5295_v54 = vld [vmem:[%s5537_s28 + $0xc] ss:$16 sps:$4 sm:$0xff]  }
 0x3d6   : > { %v1577_v62 = vpack.c.bf16 %v1357_v59, %v1337_v47 }
 0x3d7   : > { %1679 = vmatpush2.bf16.msra.mxu1 %v1581_v60  ;;  %v1709_v60 = vld [vmem:[%s9182_s9] sm:$0xf]  ;;  %s9264_s9 = smov 19  }
 0x3d8   : > { %v1313_v26 = vpop.permute.xlu0 %1312  ;;  %v1295_v31 = vpop.permute.xlu1 %1294  ;;  %1680 = vmatprep.subr.bf16.mxu1 %v5393_v11  ;;  %1639 = vmatprep.subr.bf16.mxu0 %v1577_v62  ;;  %v1527_v55 = vld [vmem:[#allocation3 + $0x1f0] sm:$0xff] }
 0x3d9   : > { %v1297_v37 = vsel %vm9079_vm13, %v1293_v50, %v1295_v31  ;;  %1303 = vst.msk [vmem:[#allocation3 + $0x1c0] sm:$0xff] %vm9050_vm5, %v1295_v31  ;;  %1640 = vmatpush2.bf16.msra.mxu0 %v1576_v1  ;;  %v5297_v62 = vld [vmem:[%s5537_s28] ss:$16 sps:$4 sm:$0xff]   ;;  %v5293_v1 = vld [vmem:[%s5537_s28 + $0x8] ss:$16 sps:$4 sm:$0xff]  }
 0x3da   : > { %v5300_v31 = vld [vmem:[%s8941_s13 + $0x8] sm:$0xff]  }
 0x3dc   : > { %v1291_v44 = vpop.permute.xlu0 %1290  ;;  %v1315_v48 = vpop.permute.xlu1 %1314  ;;  %v1530_v58 = vld [vmem:[#allocation3 + $0x208] sm:$0xff] }
 0x3dd   : > { %v1296_v63 = vsel %vm9079_vm13, %v1291_v44, %v1293_v50  ;;  %v1317_v6 = vsel %vm9055_vm12, %v1313_v26, %v1315_v48  ;;  %1323 = vst.msk [vmem:[#allocation3 + $0x1d8] sm:$0xff] %vm9050_vm5, %v1315_v48  ;;  %v1578_v14 = vpack.c.bf16 %v1530_v58, %v1527_v55  ;;  %v5299_v50 = vld [vmem:[%s5537_s28 + $0x4] ss:$16 sps:$4 sm:$0xff]   ;;  %v4864_v44 = vld [vmem:[#allocation2 + $0x8] sm:$0xff]  ;;  %s8963_s28 = smov 38   ;;  %vm9071_vm5 = vcmask 1044480  }
 0x3de   : > { %v1574_v19 = vpack.c.bf16 %v1317_v6, %v1297_v37  ;;  %v5301_v37 = vld [vmem:[%s8941_s13 + $0x10] sm:$0xff]   ;;  %v4867_v48 = vld [vmem:[#allocation2 + $0x28] sm:$0xff] }
 0x3df   : > { %1681 = vmatpush2.bf16.msra.mxu1 %v1578_v14  ;;  %v4865_v55 = vld [vmem:[#allocation2 + $0x10] sm:$0xff]  ;;  %v4876_v58 = vpack.c.bf16 %v4867_v48, %v4864_v44  ;;  %v4863_v14 = vld [vmem:[#allocation2] sm:$0xff] }
 0x3e0   : > { %v1311_v27 = vpop.permute.xlu1 %1310  ;;  %1682 = vmatprep.subr.bf16.mxu1 %v5393_v11  ;;  %1641 = vmatprep.subr.bf16.mxu0 %v1574_v19  ;;  %v1521_v43 = vld [vmem:[#allocation3 + $0x1c0] sm:$0xff] }
 0x3e1   : > { %v1316_v30 = vsel %vm9055_vm12, %v1311_v27, %v1313_v26  ;;  %v5296_v26 = vld [vmem:[%s8941_s13] sm:$0xff]   ;;  %4906 = vrot.lane.b32.xlu0 %v4876_v58, %s8953_s17  ;;  %vm3516_vm12 = vcmask 1046528  }
 0x3e2   : > { %v1573_v36 = vpack.c.bf16 %v1316_v30, %v1296_v63  ;;  %v4868_v63 = vld [vmem:[#allocation2 + $0x30] sm:$0xff]  ;;  %v4866_v19 = vld [vmem:[#allocation2 + $0x20] sm:$0xff] }
 0x3e3   : > { %v4877_v6 = vpack.c.bf16 %v4868_v63, %v4865_v55  ;;  %v4875_v27 = vpack.c.bf16 %v4866_v19, %v4863_v14 }
 0x3e4   : > { %v1524_v52 = vld [vmem:[#allocation3 + $0x1d8] sm:$0xff]  ;;  %1642 = vmatpush2.bf16.msra.mxu0 %v1573_v36 }
 0x3e5   : > { %v1575_v57 = vpack.c.bf16 %v1524_v52, %v1521_v43  ;;  %1643 = vmatprep.subr.bf16.mxu0 %v5748_v53  ;;  %4908 = vrot.lane.b32.xlu1 %v4877_v6, %s8953_s17 }
 0x3e6   : > { %4904 = vrot.lane.b32.xlu0 %v4875_v27, %s8953_s17 }
 0x3e7   : > { %1683 = vmatpush2.bf16.msra.mxu1 %v1575_v57 }
 0x3e8   : > { %1684 = vmatprep.subr.bf16.mxu1 %v5393_v11  ;;  %1644 = vmatpush2.bf16.msra.mxu0 %v5754_v61 }
 0x3e9   : > { %v1592_v53 = vpop.permute.xlu0 %1591 }
 0x3eb   : > { %1685 = vmatpush2.bf16.msra.mxu1 %v5759_v4  ;;  %1646 = vmatmul.mubr.bf16.vlgmr.msra.gmra.mxu0 %v5144_v3 }
 0x3ec   : > { %5187 = vmatprep.subr.bf16.mxu1 %v8995_v0  ;;  %1763 = vmatprep.mubr.bf16.mxu0 %v5393_v11 }
 0x3ed   : > { %v6020_v52 = vpop.permute.xlu1 %1716 }
 0x3ee   : > { %1687 = vmatmul.mubr.bf16.vlgmr.msra.gmra.mxu1 %v5144_v3 }
 0x3ef   : > { %5189 = vmatprep.mubr.msk.bf16.mxu1 %vm5402_vm15, %v8995_v0 }
 0x4ab   : > { %v1647_v7 = vpop.f32.mrf.mxu0 }
 0x4ac   : > { %v1648_v13 = vadd.f32 %v1647_v7, %v1592_v53 }
 0x4ad   : > { %v1649_v22 = vpop.f32.mrf.mxu0 }
 0x4ae   : > { %v1688_v41 = vpop.f32.mrf.mxu1  ;;  %v1697_v33 = vmul.f32 0.70710677, %v1648_v13  ;;  %v1650_v2 = vadd.f32 %v1649_v22, %v1592_v53  ;;  %v1694_v24 = vmul.f32 0.5, %v1648_v13 }
 0x4af   : > { %v1689_v9 = vadd.f32 %v1688_v41, %v1592_v53  ;;  %v1651_v61 = vpop.f32.mrf.mxu0  ;;  %v1872_v41 = vpop.permute.xlu1 %1871 }
 0x4b0   : > { %v1690_v12 = vpop.f32.mrf.mxu1  ;;  %5321 = verf.f32 %v1697_v33  ;;  %v1698_v4 = vmul.f32 0.70710677, %v1650_v2  ;;  %v1695_v34 = vmul.f32 0.5, %v1650_v2 }
 0x4b1   : > { %v1699_v15 = vmul.f32 0.70710677, %v1689_v9  ;;  %v1652_v17 = vpop.f32.mrf.mxu0  ;;  %v1696_v38 = vmul.f32 0.5, %v1689_v9  ;;  %v525_v9 = vld [vmem:[%s9189_s2] sm:$0xf]  ;;  %s9213_s2 = smov 1  }
 0x4b2   : > { %v1691_v18 = vpop.f32.mrf.mxu1  ;;  %5323 = verf.f32 %v1698_v4  ;;  %v1877_v4 = vpop.permute.xlu0 %1876 }
 0x4b3   : > { %5325 = verf.f32 %v1699_v15  ;;  %v6026_v15 = vsub.s32 3, %v5822_v39 }
 0x4b4   : > { %v1692_v20 = vpop.f32.mrf.mxu1 }
 0x4b5   : > { %9190 = vst [vmem:[#allocation10_spill] sm:$0xff] %v6026_v15  ;;  %v6029_v20 = vrot.slane %v525_v9, %v5825_v49 }
 0x4bd   : > { %v5322_v21 = vpop.eup %5321 }
 0x4be   : > { %v1703_v25 = vadd.f32 1.0, %v5322_v21  ;;  %v1882_v21 = vpop.permute.xlu1 %1881 }
 0x4bf   : > { %v5324_v28 = vpop.eup %5323 }
 0x4c0   : > { %v5326_v29 = vpop.eup %5325  ;;  %v5962_v32 = vmul.f32 %v1703_v25, %v1694_v24  ;;  %v1704_v35 = vadd.f32 1.0, %v5324_v28  ;;  %v6032_v25 = vrot.slane %v525_v9, %v5831_v16 }
 0x4c1   : > { %v1705_v40 = vadd.f32 1.0, %v5326_v29 }
 0x4c2   : > { %v5964_v42 = vmul.f32 %v1704_v35, %v1695_v34  ;;  %v1710_v45 = vpack.c.bf16 %v5962_v32, %v5962_v32 }
 0x4c3   : > { %v5968_v46 = vmul.f32 %v1705_v40, %v1696_v38  ;;  %v6035_v40 = vrot.slane %v525_v9, %v5837_v8 }
 0x4c4   : > { %v1711_v47 = vpack.c.bf16 %v5964_v42, %v5964_v42  ;;  %v1723_v56 = vsel %vm9072_vm0, %v1710_v45, 0 }
 0x4c5   : > { %v1712_v51 = vpack.c.bf16 %v5968_v46, %v5968_v46 }
 0x4c6   : > { %5149 = vmatprep.subr.msk.bf16.mxu0 %vm9072_vm0, %v1711_v47  ;;  %v6038_v47 = vrot.slane %v525_v9, %v6026_v15 }
 0x4c7   : > { %v1729_v59 = vsel %vm9072_vm0, %v1712_v51, 0  ;;  %1746 = vmatpush1.bf16.msra.mxu0 %v1723_v56 }
 0x4c8   : > { %5188 = vmatpush3.bf16.msra.mxu1 %v1729_v59  ;;  %1957 = vmatprep.subr.bf16.mxu0 %v5299_v50 }
 0x4c9   : > { %2020 = vmatprep.subr.bf16.mxu1 %v5295_v54 }
 0x4ca   : > { %5150 = vmatmul.mubr.msk.bf16.vlgmr.msra.gmra.mxu0 %vm1132_vm4, %v1709_v60 }
 0x4cb   : > { %5190 = vmatmul.mubr.msk.bf16.vlgmr.msra.gmra.mxu1 %vm1132_vm4, %v1709_v60  ;;  %1958 = vmatpush1.bf16.msra.mxu0 %v5297_v62  ;;  %vm9185_vm4 = vmmov %vm9183_vm6  ;;  %v1887_v62 = vpop.permute.xlu0 %1886 }
 0x4cc   : > { %2021 = vmatpush1.bf16.msra.mxu1 %v5293_v1  ;;  %2038 = vmatprep.mubr.bf16.mxu1 %v5393_v11  ;;  %vm9186_vm8 = vmmov %vm9185_vm4 }
 0x4cd   : > { %1975 = vmatprep.mubr.bf16.mxu0 %v5393_v11  ;;  %5193 = vmatprep.subr.bf16.mxu1 %v8995_v0  ;;  %vm9187_vm11 = vmmov %vm9185_vm4 }
 0x4ce   : > { %vm9188_vm14 = vmmov %vm9185_vm4 }
 0x4d2   : > { %5162 = vmatmul.mubr.msk.bf16.vlgmr.msra.gmra.mxu0 %vm9183_vm6, %v5296_v26  ;;  %vm9193_vm6 = vmmov %vm9185_vm4 }
 0x4d3   : > { %5165 = vmatmul.mubr.msk.bf16.vlgmr.msra.gmra.mxu1 %vm9184_vm7, %v5296_v26  ;;  %1985 = vmatprep.mubr.bf16.mxu0 %v5393_v11  ;;  %vm9194_vm7 = vmmov %vm9185_vm4 }
 0x4d4   : > { %2046 = vmatprep.mubr.bf16.mxu1 %v5393_v11 }
 0x4da   : > { %5163 = vmatmul.mubr.msk.bf16.gmra.mxu0 %vm9185_vm4, %v5300_v31 }
 0x4db   : > { %5166 = vmatmul.mubr.msk.bf16.gmra.mxu1 %vm9186_vm8, %v5300_v31  ;;  %1995 = vmatprep.mubr.bf16.mxu0 %v5393_v11  ;;  %vm3493_vm8 = vcmask 1040384  }
 0x4dc   : > { %2056 = vmatprep.mubr.bf16.mxu1 %v5393_v11 }
 0x4e2   : > { %5164 = vmatmul.mubr.msk.bf16.gmra.mxu0 %vm9187_vm11, %v5301_v37  ;;  %vm3497_vm11 = vcmask 1041408  }
 0x4e3   : > { %5167 = vmatmul.mubr.msk.bf16.gmra.mxu1 %vm9188_vm14, %v5301_v37  ;;  %4963 = vmatprep.mubr.bf16.mxu0 %v5393_v11  ;;  %vm3501_vm14 = vcmask 1042432  }
 0x4e4   : > { %5197 = vmatprep.mubr.msk.bf16.mxu1 %vm5402_vm15, %v8995_v0  ;;  %vm9191_vm15 = vmmov %vm9185_vm4 }
 0x58a   : > { %v6014_v30 = vpop.f32.mrf.mxu0 }
 0x58b   : > { %v6016_v11 = vpop.f32.mrf.mxu1 }
 0x58c   : > { %v6018_v36 = vpop.f32.mrf.mxu0 }
 0x58d   : > { %v5191_v43 = vpop.f32.mrf.mxu1 }
 0x58e   : > { %v1769_v57 = vpop.f32.mrf.mxu0 }
 0x58f   : > { %v1809_v3 = vpop.f32.mrf.mxu1 }
 0x590   : > { %v1770_v53 = vpop.f32.mrf.mxu0 }
 0x591   : > { %v5192_v7 = vpop.f32.mrf.mxu1 }
 0x592   : > { %v1977_v13 = vpop.f32.mrf.mxu0 }
 0x593   : > { %v2040_v22 = vpop.f32.mrf.mxu1  ;;  %v1978_v24 = vadd.f32 %v1977_v13, %v1872_v41 }
 0x594   : > { %v1979_v33 = vpop.f32.mrf.mxu0  ;;  %v2041_v29 = vadd.f32 %v2040_v22, %v1872_v41 }
 0x595   : > { %v2042_v2 = vpop.f32.mrf.mxu1  ;;  %v1980_v35 = vadd.f32 %v1979_v33, %v1872_v41  ;;  %v6043_v1 = vmul.f32 0.25, %v1978_v24  ;;  %v1892_v41 = vpop.permute.xlu1 %1891 }
 0x596   : > { %v1981_v61 = vpop.f32.mrf.mxu0  ;;  %v6048_v48 = vmul.f32 0.25, %v2041_v29 }
 0x597   : > { %v2043_v12 = vpop.f32.mrf.mxu1  ;;  %v1982_v50 = vadd.f32 %v1981_v61, %v1877_v4  ;;  %v6050_v55 = vmul.f32 0.25, %v1980_v35 }
 0x598   : > { %v1983_v17 = vpop.f32.mrf.mxu0  ;;  %v2044_v54 = vadd.f32 %v2043_v12, %v1877_v4 }
 0x599   : > { %v2045_v18 = vpop.f32.mrf.mxu1  ;;  %v1984_v37 = vadd.f32 %v1983_v17, %v1877_v4  ;;  %v6056_v19 = vmul.f32 0.25, %v1982_v50 }
 0x59a   : > { %v1987_v28 = vpop.f32.mrf.mxu0  ;;  %v6062_v3 = vmul.f32 0.25, %v2044_v54 }
 0x59b   : > { %v2048_v34 = vpop.f32.mrf.mxu1  ;;  %v1988_v38 = vadd.f32 %v1987_v28, %v1882_v21  ;;  %v6073_v2 = vmul.f32 0.25, %v1984_v37 }
 0x59c   : > { %v2049_v45 = vadd.f32 %v2048_v34, %v1882_v21  ;;  %v1989_v51 = vpop.f32.mrf.mxu0 }
 0x59d   : > { %v2050_v56 = vpop.f32.mrf.mxu1  ;;  %v6041_v59 = vmul.f32 %v6029_v20, %v1988_v38  ;;  %v1990_v60 = vadd.f32 %v1989_v51, %v1882_v21  ;;  %9192 = vst [vmem:[#allocation11_spill] sm:$0xff] %v6073_v2 }
 0x59e   : > { %v6046_v26 = vmul.f32 %v6032_v25, %v2049_v45  ;;  %v2051_v31 = vadd.f32 %v2050_v56, %v1882_v21  ;;  %v1991_v44 = vpop.f32.mrf.mxu0 }
 0x59f   : > { %v2052_v58 = vpop.f32.mrf.mxu1  ;;  %v6053_v63 = vmul.f32 %v6035_v40, %v1990_v60  ;;  %v1992_v6 = vadd.f32 %v1991_v44, %v1887_v62  ;;  %v2785_v57 = vmul.f32 %v6043_v1, %v6041_v59  ;;  %v1897_v60 = vpop.permute.xlu0 %1896 }
 0x5a0   : > { %v2091_v14 = vmul.f32 %v6038_v47, %v2051_v31  ;;  %v2053_v27 = vadd.f32 %v2052_v58, %v1887_v62  ;;  %v1993_v43 = vpop.f32.mrf.mxu0  ;;  %2142 = vrot.lane.b32.xlu1 %v6046_v26, %s8955_s26  ;;  %v2787_v22 = vmul.f32 %v6048_v48, %v6046_v26 }
 0x5a1   : > { %v2054_v53 = vpop.f32.mrf.mxu1  ;;  %v6065_v7 = vmul.f32 %v6029_v20, %v1992_v6  ;;  %v1994_v13 = vadd.f32 %v1993_v43, %v1887_v62  ;;  %v2791_v12 = vsel %vm551_vm3, %v2785_v57, 0.0  ;;  %v2786_v24 = vmul.f32 %v6050_v55, %v6053_v63 }
 0x5a2   : > { %2099 = vst.msk [vmem:[#allocation4 + $0x18] sm:$0xff] %vm9191_vm15, %v2091_v14  ;;  %v6071_v33 = vmul.f32 %v6032_v25, %v2053_v27  ;;  %v2055_v9 = vadd.f32 %v2054_v53, %v1887_v62  ;;  %v1997_v61 = vpop.f32.mrf.mxu0  ;;  %v2807_v38 = vsel %vm554_vm2, %v2787_v22, 0.0  ;;  %vm9085_vm15 = vcmask 736256  }
 0x5a3   : > { %v2058_v4 = vpop.f32.mrf.mxu1  ;;  %v6077_v17 = vmul.f32 %v6035_v40, %v1994_v13  ;;  %v1998_v18 = vadd.f32 %v1997_v61, %v1892_v41  ;;  %v2788_v21 = vmul.f32 %v6056_v19, %v6065_v7 }
 0x5a4   : > { %v2095_v28 = vmul.f32 %v6038_v47, %v2055_v9  ;;  %v2059_v29 = vadd.f32 %v2058_v4, %v1892_v41  ;;  %v1999_v34 = vpop.f32.mrf.mxu0  ;;  %2195 = vrot.lane.b32.xlu1 %v6046_v26, %s8957_s15  ;;  %v2790_v35 = vmul.f32 %v6062_v3, %v6071_v33 }
 0x5a5   : > { %v2060_v45 = vpop.f32.mrf.mxu1  ;;  %2101 = vst [vmem:[#allocation4 + $0x28] sm:$0xff] %v6077_v17  ;;  %v2104_v50 = vmul.f32 %v6029_v20, %v1998_v18  ;;  %v2000_v51 = vadd.f32 %v1999_v34, %v1892_v41  ;;  %v2792_v54 = vsel %vm551_vm3, %v2788_v21, 0.0  ;;  %v2789_v56 = vmul.f32 %v6073_v2, %v6077_v17 }
 0x5a6   : > { %2103 = vst.msk [vmem:[#allocation4 + $0x38] sm:$0xff] %vm9193_vm6, %v2095_v28  ;;  %v6096_v62 = vmul.f32 %v6032_v25, %v2059_v29  ;;  %v2061_v31 = vadd.f32 %v2060_v45, %v1892_v41  ;;  %v2001_v37 = vpop.f32.mrf.mxu0  ;;  %v6098_v44 = vadd.f32 %v2792_v54, %v2791_v12  ;;  %v2808_v58 = vsel %vm554_vm2, %v2790_v35, 0.0 }
 0x5a7   : > { %v2062_v6 = vpop.f32.mrf.mxu1  ;;  %2112 = vst [vmem:[#allocation4 + $0x40] sm:$0xff] %v2104_v50  ;;  %v2105_v14 = vmul.f32 %v6035_v40, %v2000_v51  ;;  %v2002_v27 = vadd.f32 %v2001_v37, %v1897_v60  ;;  %v6102_v43 = vadd.f32 %v2808_v58, %v2807_v38  ;;  %v6104_v57 = vadd.f32 %v2789_v56, %v2786_v24 }
 0x5a8   : > { %2114 = vst [vmem:[#allocation4 + $0x50] sm:$0xff] %v6096_v62  ;;  %v2107_v53 = vmul.f32 %v6038_v47, %v2061_v31  ;;  %v2063_v13 = vadd.f32 %v2062_v6, %v1897_v60  ;;  %v2003_v22 = vpop.f32.mrf.mxu0  ;;  %2249 = vrot.lane.b32.xlu1 %v6046_v26, %s8959_s20  ;;  %vm9053_vm6 = vcmask 728064  }
 0x5a9   : > { %v2064_v41 = vpop.f32.mrf.mxu1  ;;  %v3192_v9 = vld [vmem:[#allocation4 + $0x18] sm:$0xff]  ;;  %2113 = vst [vmem:[#allocation4 + $0x48] sm:$0xff] %v2105_v14  ;;  %v2108_v61 = vmul.f32 %v6029_v20, %v2002_v27  ;;  %v2004_v12 = vadd.f32 %v2003_v22, %v1897_v60  ;;  %v6214_v20 = vpop.permute.xlu1 %4908 }
 0x5aa   : > { %2115 = vst.msk [vmem:[#allocation4 + $0x58] sm:$0xff] %vm9194_vm7, %v2107_v53  ;;  %v6113_v4 = vmul.f32 %v6032_v25, %v2063_v13  ;;  %v2065_v18 = vadd.f32 %v2064_v41, %v1897_v60  ;;  %3202 = vrot.lane.b32.xlu0 %v3192_v9, %s8973_s21  ;;  %9203 = vst [vmem:[#allocation12_spill] sm:$0xff] %v6214_v20  ;;  %v6222_v25 = vpop.permute.xlu0 %4906  ;;  %vm9068_vm7 = vcmask 334848  }
 0x5ab   : > { %2116 = vst [vmem:[#allocation4 + $0x60] sm:$0xff] %v2108_v61  ;;  %v2109_v21 = vmul.f32 %v6035_v40, %v2004_v12  ;;  %9205 = vst [vmem:[#allocation13_spill] sm:$0xff] %v6222_v25 }
 0x5ac   : > { %2118 = vst [vmem:[#allocation4 + $0x70] sm:$0xff] %v6113_v4  ;;  %v2111_v24 = vmul.f32 %v6038_v47, %v2065_v18  ;;  %2303 = vrot.lane.b32.xlu1 %v6046_v26, %s8961_s29 }
 0x5ad   : > { %2117 = vst [vmem:[#allocation4 + $0x68] sm:$0xff] %v2109_v21 }
 0x5ae   : > { %2119 = vst.msk [vmem:[#allocation4 + $0x78] sm:$0xff] %vm9185_vm4, %v2111_v24  ;;  %3262 = vrot.lane.b32.xlu0 %v3192_v9, %s8975_s30  ;;  %v6230_v47 = vpop.permute.xlu0 %4904  ;;  %vm9056_vm4 = vcmask 326656  }
 0x5af   : > { %9207 = vst [vmem:[#allocation14_spill] sm:$0xff] %v6230_v47 }
 0x5b0   : > { %2357 = vrot.lane.b32.xlu1 %v6046_v26, %s8963_s28 }
 0x5b2   : > { %3322 = vrot.lane.b32.xlu0 %v3192_v9, %s8977_s0 }
 0x5b4   : > { %2411 = vrot.lane.b32.xlu1 %v6046_v26, %s8965_s19 }
 0x5b6   : > { %3381 = vrot.lane.b32.xlu0 %v3192_v9, %s8951_s18  ;;  %s8993_s18 = smov 18  }
 0x5b8   : > { %2465 = vrot.lane.b32.xlu1 %v6046_v26, %s8967_s25 }
 0x5ba   : > { %3440 = vrot.lane.b32.xlu0 %v3192_v9, %s8953_s17  ;;  %s8971_s17 = smov 2  }
 0x5bc   : > { %2519 = vrot.lane.b32.xlu1 %v6046_v26, %s8969_s27 }
 0x5be   : > { %2148 = vrot.lane.b32.xlu0 %v6071_v33, %s8955_s26  ;;  %s8989_s26 = smov 1  }
 0x5c0   : > { %2573 = vrot.lane.b32.xlu1 %v6046_v26, %s8991_s22 }
 0x5c2   : > { %2201 = vrot.lane.b32.xlu0 %v6071_v33, %s8957_s15  ;;  %s8987_s15 = smov 127  }
 0x5c4   : > { %2627 = vrot.lane.b32.xlu1 %v6046_v26, %s8993_s18 }
 0x5c6   : > { %2255 = vrot.lane.b32.xlu0 %v6071_v33, %s8959_s20  ;;  %s8985_s20 = smov 126  }
 0x5c8   : > { %2681 = vrot.lane.b32.xlu1 %v6046_v26, %s8971_s17 }
 0x5ca   : > { %2309 = vrot.lane.b32.xlu0 %v6071_v33, %s8961_s29  ;;  %s8979_s29 = smov 110  }
 0x5cc   : > { %2735 = vrot.lane.b32.xlu1 %v6046_v26, %s8989_s26 }
 0x5ce   : > { %2363 = vrot.lane.b32.xlu0 %v6071_v33, %s8963_s28  ;;  %s8981_s28 = smov 109  }
 0x5d0   : > { %2820 = vrot.lane.b32.xlu1 %v6046_v26, %s8987_s15 }
 0x5d2   : > { %2417 = vrot.lane.b32.xlu0 %v6071_v33, %s8965_s19  ;;  %s8983_s19 = smov 108  }
 0x5d4   : > { %2874 = vrot.lane.b32.xlu1 %v6046_v26, %s8985_s20 }
 0x5d6   : > { %2471 = vrot.lane.b32.xlu0 %v6071_v33, %s8967_s25  ;;  %s9195_s25 = smov 107  }
 0x5d8   : > { %2928 = vrot.lane.b32.xlu1 %v6046_v26, %s8979_s29 }
 0x5da   : > { %2525 = vrot.lane.b32.xlu0 %v6071_v33, %s8969_s27  ;;  %s9196_s27 = smov 106  }
 0x5dc   : > { %2982 = vrot.lane.b32.xlu1 %v6046_v26, %s8981_s28 }
 0x5de   : > { %2579 = vrot.lane.b32.xlu0 %v6071_v33, %s8991_s22 }
 0x5e0   : > { %3036 = vrot.lane.b32.xlu1 %v6046_v26, %s8983_s19 }
 0x5e2   : > { %2633 = vrot.lane.b32.xlu0 %v6071_v33, %s8993_s18 }
 0x5e4   : > { %3090 = vrot.lane.b32.xlu1 %v6046_v26, %s9195_s25 }
 0x5e6   : > { %2687 = vrot.lane.b32.xlu0 %v6071_v33, %s8971_s17  ;;  %s9197_s17 = smov 87  }
 0x5e8   : > { %3143 = vrot.lane.b32.xlu1 %v6046_v26, %s9196_s27 }
 0x5ea   : > { %2741 = vrot.lane.b32.xlu0 %v6071_v33, %s8989_s26  ;;  %s9209_s26 = smov 20  }
 0x5ec   : > { %3200 = vrot.lane.b32.xlu1 %v6046_v26, %s8973_s21  ;;  %s9198_s21 = smov 86  }
 0x5ee   : > { %2826 = vrot.lane.b32.xlu0 %v6071_v33, %s8987_s15  ;;  %s9208_s15 = smov 21  }
 0x5f0   : > { %3260 = vrot.lane.b32.xlu1 %v6046_v26, %s8975_s30  ;;  %s9199_s30 = smov 42  }
 0x5f2   : > { %2880 = vrot.lane.b32.xlu0 %v6071_v33, %s8985_s20  ;;  %s9206_s20 = smov 22  }
 0x5f4   : > { %3320 = vrot.lane.b32.xlu1 %v6046_v26, %s8977_s0  ;;  %s9200_s0 = smov 41  }
 0x5f6   : > { %2934 = vrot.lane.b32.xlu0 %v6071_v33, %s8979_s29  ;;  %s9201_s29 = smov 40  }
 0x5f8   : > { %3379 = vrot.lane.b32.xlu1 %v6046_v26, %s9197_s17 }
 0x5fa   : > { %2988 = vrot.lane.b32.xlu0 %v6071_v33, %s8981_s28  ;;  %s9202_s28 = smov 39  }
 0x5fc   : > { %3438 = vrot.lane.b32.xlu1 %v6046_v26, %s9198_s21 }
 0x5fe   : > { %3042 = vrot.lane.b32.xlu0 %v6071_v33, %s8983_s19  ;;  %s9204_s19 = smov 38  }
 0x600   : > { %2138 = vrot.lane.b32.xlu1 %v6041_v59, %s9199_s30 }
 0x602   : > { %3096 = vrot.lane.b32.xlu0 %v6071_v33, %s9195_s25 }
 0x604   : > { %2191 = vrot.lane.b32.xlu1 %v6041_v59, %s9200_s0 }
 0x606   : > { %3149 = vrot.lane.b32.xlu0 %v6071_v33, %s9196_s27 }
 0x608   : > { %2245 = vrot.lane.b32.xlu1 %v6041_v59, %s9201_s29 }
 0x60a   : > { %2140 = vrot.lane.b32.xlu0 %v6053_v63, %s9199_s30 }
 0x60c   : > { %2299 = vrot.lane.b32.xlu1 %v6041_v59, %s9202_s28 }
 0x60e   : > { %2193 = vrot.lane.b32.xlu0 %v6053_v63, %s9200_s0 }
 0x610   : > { %2353 = vrot.lane.b32.xlu1 %v6041_v59, %s9204_s19 }
 0x612   : > { %2247 = vrot.lane.b32.xlu0 %v6053_v63, %s9201_s29  ;;  %v6224_v40 = vpop.permute.xlu1 %2142 }
 0x614   : > { %2407 = vrot.lane.b32.xlu1 %v6041_v59, %s9206_s20 }
 0x616   : > { %2301 = vrot.lane.b32.xlu0 %v6053_v63, %s9202_s28  ;;  %v6232_v26 = vpop.permute.xlu1 %2195 }
 0x618   : > { %2461 = vrot.lane.b32.xlu1 %v6041_v59, %s9208_s15 }
 0x61a   : > { %2355 = vrot.lane.b32.xlu0 %v6053_v63, %s9204_s19  ;;  %v6238_v28 = vpop.permute.xlu1 %2249 }
 0x61c   : > { %v6240_v29 = vpop.permute.xlu0 %3202  ;;  %2515 = vrot.lane.b32.xlu1 %v6041_v59, %s9209_s26 }
 0x61e   : > { %2409 = vrot.lane.b32.xlu0 %v6053_v63, %s9206_s20  ;;  %v6246_v34 = vpop.permute.xlu1 %2303 }
 0x620   : > { %v6248_v35 = vpop.permute.xlu0 %3262  ;;  %2569 = vrot.lane.b32.xlu1 %v6041_v59, %s8991_s22 }
 0x622   : > { %2463 = vrot.lane.b32.xlu0 %v6053_v63, %s9208_s15  ;;  %v6254_v38 = vpop.permute.xlu1 %2357 }
 0x624   : > { %v6256_v45 = vpop.permute.xlu0 %3322  ;;  %2623 = vrot.lane.b32.xlu1 %v6041_v59, %s8993_s18 }
 0x626   : > { %2517 = vrot.lane.b32.xlu0 %v6053_v63, %s9209_s26  ;;  %v6262_v50 = vpop.permute.xlu1 %2411 }
 0x627   : > { %9210 = vst [vmem:[#allocation15_spill] sm:$0xff] %v6262_v50 }
 0x628   : > { %v6264_v51 = vpop.permute.xlu0 %3381  ;;  %2677 = vrot.lane.b32.xlu1 %v6041_v59, %s9211_s1 }
 0x62a   : > { %2571 = vrot.lane.b32.xlu0 %v6053_v63, %s8991_s22  ;;  %v6270_v54 = vpop.permute.xlu1 %2465  ;;  %s9219_s22 = smov 126  }
 0x62b   : > { %9212 = vst [vmem:[#allocation16_spill] sm:$0xff] %v6270_v54 }
 0x62c   : > { %v6272_v56 = vpop.permute.xlu0 %3440  ;;  %2731 = vrot.lane.b32.xlu1 %v6041_v59, %s9213_s2 }
 0x62e   : > { %2625 = vrot.lane.b32.xlu0 %v6053_v63, %s8993_s18  ;;  %v6278_v60 = vpop.permute.xlu1 %2519  ;;  %s9222_s18 = smov 110  }
 0x62f   : > { %9214 = vst [vmem:[#allocation17_spill] sm:$0xff] %v6278_v60 }
 0x630   : > { %v6280_v31 = vpop.permute.xlu0 %2148  ;;  %2816 = vrot.lane.b32.xlu1 %v6041_v59, %s9216_s3 }
 0x631   : > { %9215 = vst [vmem:[#allocation18_spill] sm:$0xff] %v6280_v31 }
 0x632   : > { %2679 = vrot.lane.b32.xlu0 %v6053_v63, %s9211_s1  ;;  %v6286_v37 = vpop.permute.xlu1 %2573 }
 0x633   : > { %9217 = vst [vmem:[#allocation19_spill] sm:$0xff] %v6286_v37 }
 0x634   : > { %v6288_v58 = vpop.permute.xlu0 %2201  ;;  %2870 = vrot.lane.b32.xlu1 %v6041_v59, %s9219_s22 }
 0x635   : > { %9218 = vst [vmem:[#allocation20_spill] sm:$0xff] %v6288_v58 }
 0x636   : > { %2733 = vrot.lane.b32.xlu0 %v6053_v63, %s9213_s2  ;;  %v6294_v6 = vpop.permute.xlu1 %2627 }
 0x637   : > { %9220 = vst [vmem:[#allocation21_spill] sm:$0xff] %v6294_v6 }
 0x638   : > { %v6296_v14 = vpop.permute.xlu0 %2255  ;;  %2924 = vrot.lane.b32.xlu1 %v6041_v59, %s9222_s18 }
 0x639   : > { %9221 = vst [vmem:[#allocation22_spill] sm:$0xff] %v6296_v14 }
 0x63a   : > { %2818 = vrot.lane.b32.xlu0 %v6053_v63, %s9216_s3  ;;  %v6302_v27 = vpop.permute.xlu1 %2681 }
 0x63b   : > { %9223 = vst [vmem:[#allocation23_spill] sm:$0xff] %v6302_v27 }
 0x63c   : > { %v6304_v53 = vpop.permute.xlu0 %2309  ;;  %2978 = vrot.lane.b32.xlu1 %v6041_v59, %s9225_s4 }
 0x63d   : > { %9224 = vst [vmem:[#allocation24_spill] sm:$0xff] %v6304_v53 }
 0x63e   : > { %2872 = vrot.lane.b32.xlu0 %v6053_v63, %s9219_s22  ;;  %v6310_v13 = vpop.permute.xlu1 %2735 }
 0x63f   : > { %9226 = vst [vmem:[#allocation25_spill] sm:$0xff] %v6310_v13 }
 0x640   : > { %v6312_v22 = vpop.permute.xlu0 %2363  ;;  %3032 = vrot.lane.b32.xlu1 %v6041_v59, %s9228_s5 }
 0x641   : > { %9227 = vst [vmem:[#allocation26_spill] sm:$0xff] %v6312_v22 }
 0x642   : > { %2926 = vrot.lane.b32.xlu0 %v6053_v63, %s9222_s18  ;;  %v6318_v41 = vpop.permute.xlu1 %2820 }
 0x643   : > { %9229 = vst [vmem:[#allocation27_spill] sm:$0xff] %v6318_v41  ;;  %v2841_v39 = vmul.f32 %v6318_v41, %v6048_v48 }
 0x644   : > { %v6320_v9 = vpop.permute.xlu0 %2417  ;;  %3086 = vrot.lane.b32.xlu1 %v6041_v59, %s9195_s25 }
 0x645   : > { %9230 = vst [vmem:[#allocation28_spill] sm:$0xff] %v6320_v9 }
 0x646   : > { %2980 = vrot.lane.b32.xlu0 %v6053_v63, %s9225_s4  ;;  %v6326_v61 = vpop.permute.xlu1 %2874 }
 0x647   : > { %9231 = vst [vmem:[#allocation29_spill] sm:$0xff] %v6326_v61 }
 0x648   : > { %v6328_v12 = vpop.permute.xlu0 %2471  ;;  %3139 = vrot.lane.b32.xlu1 %v6041_v59, %s9196_s27 }
 0x649   : > { %9232 = vst [vmem:[#allocation30_spill] sm:$0xff] %v6328_v12 }
 0x64a   : > { %3034 = vrot.lane.b32.xlu0 %v6053_v63, %s9228_s5  ;;  %v6334_v18 = vpop.permute.xlu1 %2928 }
 0x64b   : > { %9233 = vst [vmem:[#allocation31_spill] sm:$0xff] %v6334_v18 }
 0x64c   : > { %v6336_v21 = vpop.permute.xlu0 %2525  ;;  %3196 = vrot.lane.b32.xlu1 %v6041_v59, %s9235_s6 }
 0x64d   : > { %9234 = vst [vmem:[#allocation32_spill] sm:$0xff] %v6336_v21 }
 0x64e   : > { %3088 = vrot.lane.b32.xlu0 %v6053_v63, %s9195_s25  ;;  %v6342_v24 = vpop.permute.xlu1 %2982 }
 0x64f   : > { %9236 = vst [vmem:[#allocation33_spill] sm:$0xff] %v6342_v24 }
 0x650   : > { %v6344_v0 = vpop.permute.xlu0 %2579  ;;  %3256 = vrot.lane.b32.xlu1 %v6041_v59, %s9238_s7 }
 0x651   : > { %9237 = vst [vmem:[#allocation34_spill] sm:$0xff] %v6344_v0  ;;  %v2895_v0 = vmul.f32 %v6326_v61, %v6048_v48 }
 0x652   : > { %3141 = vrot.lane.b32.xlu0 %v6053_v63, %s9196_s27  ;;  %v6350_v47 = vpop.permute.xlu1 %3036 }
 0x653   : > { %9239 = vst [vmem:[#allocation35_spill] sm:$0xff] %v6350_v47  ;;  %v3057_v31 = vmul.f32 %v6350_v47, %v6048_v48 }
 0x654   : > { %v6352_v25 = vpop.permute.xlu0 %2633  ;;  %3316 = vrot.lane.b32.xlu1 %v6041_v59, %s9241_s8 }
 0x655   : > { %9240 = vst [vmem:[#allocation36_spill] sm:$0xff] %v6352_v25 }
 0x656   : > { %3198 = vrot.lane.b32.xlu0 %v6053_v63, %s9235_s6  ;;  %v6358_v20 = vpop.permute.xlu1 %3090 }
 0x657   : > { %9242 = vst [vmem:[#allocation37_spill] sm:$0xff] %v6358_v20  ;;  %v3110_v47 = vmul.f32 %v6358_v20, %v6048_v48 }
 0x658   : > { %v6360_v15 = vpop.permute.xlu0 %2687  ;;  %3375 = vrot.lane.b32.xlu1 %v6041_v59, %s9197_s17 }
 0x659   : > { %9243 = vst [vmem:[#allocation38_spill] sm:$0xff] %v6360_v15  ;;  %v3130_v20 = vsel %vm554_vm2, %v3110_v47, 0.0 }
 0x65a   : > { %3258 = vrot.lane.b32.xlu0 %v6053_v63, %s9238_s7  ;;  %v6366_v16 = vpop.permute.xlu1 %3143 }
 0x65b   : > { %9244 = vst [vmem:[#allocation39_spill] sm:$0xff] %v6366_v16 }
 0x65c   : > { %v6368_v8 = vpop.permute.xlu0 %2741  ;;  %3434 = vrot.lane.b32.xlu1 %v6041_v59, %s9198_s21 }
 0x65d   : > { %9245 = vst [vmem:[#allocation40_spill] sm:$0xff] %v6368_v8  ;;  %v2861_v8 = vsel %vm554_vm2, %v2841_v39, 0.0  ;;  %v2915_v39 = vsel %vm554_vm2, %v2895_v0, 0.0 }
 0x65e   : > { %3318 = vrot.lane.b32.xlu0 %v6053_v63, %s9241_s8  ;;  %v6374_v49 = vpop.permute.xlu1 %3200 }
 0x65f   : > { %9246 = vst [vmem:[#allocation41_spill] sm:$0xff] %v6374_v49 }
 0x660   : > { %v6378_v15 = vpop.permute.xlu0 %2826  ;;  %3208 = vrot.lane.b32.xlu1 %v6071_v33, %s9235_s6 }
 0x661   : > { %9247 = vst [vmem:[#allocation42_spill] sm:$0xff] %v6378_v15  ;;  %v2844_v25 = vmul.f32 %v6378_v15, %v6062_v3 }
 0x662   : > { %3377 = vrot.lane.b32.xlu0 %v6053_v63, %s9197_s17  ;;  %v6386_v59 = vpop.permute.xlu1 %3260 }
 0x663   : > { %v2862_v21 = vsel %vm554_vm2, %v2844_v25, 0.0  ;;  %v2949_v25 = vmul.f32 %v6334_v18, %v6048_v48 }
 0x664   : > { %v6392_v12 = vadd.f32 %v2862_v21, %v2861_v8  ;;  %v6394_v9 = vpop.permute.xlu0 %2880  ;;  %3268 = vrot.lane.b32.xlu1 %v6071_v33, %s9238_s7 }
 0x665   : > { %9248 = vst [vmem:[#allocation43_spill] sm:$0xff] %v6394_v9  ;;  %v2898_v15 = vmul.f32 %v6394_v9, %v6062_v3  ;;  %v2969_v0 = vsel %vm554_vm2, %v2949_v25, 0.0 }
 0x666   : > { %3436 = vrot.lane.b32.xlu0 %v6053_v63, %s9198_s21  ;;  %v6402_v22 = vpop.permute.xlu1 %3320  ;;  %v3193_v63 = vld [vmem:[#allocation4 + $0x38] sm:$0xff] }
 0x667   : > { %v2916_v8 = vsel %vm554_vm2, %v2898_v15, 0.0  ;;  %v3003_v15 = vmul.f32 %v6342_v24, %v6048_v48 }
 0x668   : > { %v6408_v21 = vadd.f32 %v2916_v8, %v2915_v39  ;;  %v6410_v53 = vpop.permute.xlu0 %2934  ;;  %3328 = vrot.lane.b32.xlu1 %v6071_v33, %s9241_s8 }
 0x669   : > { %9249 = vst [vmem:[#allocation44_spill] sm:$0xff] %v6410_v53  ;;  %v2952_v9 = vmul.f32 %v6410_v53, %v6062_v3  ;;  %v3023_v25 = vsel %vm554_vm2, %v3003_v15, 0.0  ;;  %v3077_v15 = vsel %vm554_vm2, %v3057_v31, 0.0 }
 0x66a   : > { %3210 = vrot.lane.b32.xlu0 %v3193_v63, %s9235_s6  ;;  %v6417_v14 = vpop.permute.xlu1 %3379 }
 0x66b   : > { %v2970_v39 = vsel %vm554_vm2, %v2952_v9, 0.0 }
 0x66c   : > { %v6423_v8 = vadd.f32 %v2970_v39, %v2969_v0  ;;  %v6425_v58 = vpop.permute.xlu0 %2988  ;;  %3387 = vrot.lane.b32.xlu1 %v6071_v33, %s9197_s17 }
 0x66d   : > { %9250 = vst [vmem:[#allocation45_spill] sm:$0xff] %v6425_v58  ;;  %v3006_v53 = vmul.f32 %v6425_v58, %v6062_v3 }
 0x66e   : > { %3270 = vrot.lane.b32.xlu0 %v3193_v63, %s9238_s7  ;;  %v6432_v2 = vpop.permute.xlu1 %3438 }
 0x66f   : > { %9251 = vst [vmem:[#allocation46_spill] sm:$0xff] %v6432_v2  ;;  %v3024_v9 = vsel %vm554_vm2, %v3006_v53, 0.0 }
 0x670   : > { %v3025_v0 = vadd.f32 %v3024_v9, %v3023_v25  ;;  %v6438_v39 = vpop.permute.xlu0 %3042  ;;  %3446 = vrot.lane.b32.xlu1 %v6071_v33, %s9198_s21 }
 0x671   : > { %9252 = vst [vmem:[#allocation47_spill] sm:$0xff] %v6438_v39  ;;  %v3060_v58 = vmul.f32 %v6438_v39, %v6062_v3 }
 0x672   : > { %v3026_v24 = vrot.slane %v3025_v0, 4  ;;  %3330 = vrot.lane.b32.xlu0 %v3193_v63, %s9241_s8  ;;  %v6445_v18 = vpop.permute.xlu1 %2138 }
 0x673   : > { %v3078_v53 = vsel %vm554_vm2, %v3060_v58, 0.0  ;;  %v3163_v58 = vmul.f32 %v6366_v16, %v6048_v48 }
 0x674   : > { %v3027_v25 = vadd.f32 %v3026_v24, %v3025_v0  ;;  %v3079_v9 = vadd.f32 %v3078_v53, %v3077_v15  ;;  %v6451_v61 = vpop.permute.xlu0 %3096  ;;  %3204 = vrot.lane.b32.xlu1 %v6065_v7, %s9235_s6 }
 0x675   : > { %9253 = vst [vmem:[#allocation48_spill] sm:$0xff] %v6451_v61  ;;  %v3113_v33 = vmul.f32 %v6451_v61, %v6062_v3  ;;  %v3183_v16 = vsel %vm554_vm2, %v3163_v58, 0.0 }
 0x676   : > { %v3028_v39 = vrot.slane %v3027_v25, 2  ;;  %v3080_v41 = vrot.slane %v3079_v9, 4  ;;  %3389 = vrot.lane.b32.xlu0 %v3193_v63, %s9197_s17  ;;  %v6458_v31 = vpop.permute.xlu1 %2191 }
 0x677   : > { %v3131_v24 = vsel %vm554_vm2, %v3113_v33, 0.0 }
 0x678   : > { %v3029_v0 = vadd.f32 %v3028_v39, %v3027_v25  ;;  %v3081_v15 = vadd.f32 %v3080_v41, %v3079_v9  ;;  %v3132_v53 = vadd.f32 %v3131_v24, %v3130_v20  ;;  %v6464_v13 = vpop.permute.xlu0 %3149  ;;  %3264 = vrot.lane.b32.xlu1 %v6065_v7, %s9238_s7 }
 0x679   : > { %9254 = vst [vmem:[#allocation49_spill] sm:$0xff] %v6464_v13  ;;  %v3166_v61 = vmul.f32 %v6464_v13, %v6062_v3 }
 0x67a   : > { %v3082_v27 = vrot.slane %v3081_v15, 2  ;;  %v3133_v6 = vrot.slane %v3132_v53, 4  ;;  %3448 = vrot.lane.b32.xlu0 %v3193_v63, %s9198_s21  ;;  %v6471_v47 = vpop.permute.xlu1 %2245  ;;  %v3030_v41 = vrot.slane %v3029_v0, 1 }
 0x67b   : > { %v3184_v39 = vsel %vm554_vm2, %v3166_v61, 0.0 }
 0x67c   : > { %v3083_v20 = vadd.f32 %v3082_v27, %v3081_v15  ;;  %v3134_v25 = vadd.f32 %v3133_v6, %v3132_v53  ;;  %v3185_v9 = vadd.f32 %v3184_v39, %v3183_v16  ;;  %v6475_v33 = vpop.permute.xlu0 %2140  ;;  %3324 = vrot.lane.b32.xlu1 %v6065_v7, %s9241_s8  ;;  %v3031_v58 = vadd.f32 %v3030_v41, %v3029_v0 }
 0x67e   : > { %v3084_v24 = vrot.slane %v3083_v20, 1  ;;  %v3135_v13 = vrot.slane %v3134_v25, 2  ;;  %v3186_v37 = vrot.slane %v3185_v9, 4  ;;  %2144 = vrot.lane.b32.xlu0 %v6065_v7, %s9199_s30  ;;  %v6481_v63 = vpop.permute.xlu1 %2299 }
 0x680   : > { %v3085_v61 = vadd.f32 %v3084_v24, %v3083_v20  ;;  %v3136_v60 = vadd.f32 %v3135_v13, %v3134_v25  ;;  %v3187_v27 = vadd.f32 %v3186_v37, %v3185_v9  ;;  %v6483_v6 = vpop.permute.xlu0 %2193  ;;  %3383 = vrot.lane.b32.xlu1 %v6065_v7, %s9197_s17 }
 0x682   : > { %v3543_v16 = vsel %vm3493_vm8, %v3031_v58, %v3085_v61  ;;  %v3137_v15 = vrot.slane %v3136_v60, 1  ;;  %v3188_v53 = vrot.slane %v3187_v27, 2  ;;  %2197 = vrot.lane.b32.xlu0 %v6065_v7, %s9200_s0  ;;  %v6490_v39 = vpop.permute.xlu1 %2353 }
 0x684   : > { %v3138_v54 = vadd.f32 %v3137_v15, %v3136_v60  ;;  %v3189_v0 = vadd.f32 %v3188_v53, %v3187_v27  ;;  %v6492_v41 = vpop.permute.xlu0 %2247  ;;  %3442 = vrot.lane.b32.xlu1 %v6065_v7, %s9198_s21 }
 0x686   : > { %v3546_v37 = vsel %vm3497_vm11, %v3543_v16, %v3138_v54  ;;  %v3190_v13 = vrot.slane %v3189_v0, 1  ;;  %2251 = vrot.lane.b32.xlu0 %v6065_v7, %s9201_s29  ;;  %v6499_v20 = vpop.permute.xlu1 %2407 }
 0x688   : > { %v3191_v25 = vadd.f32 %v3190_v13, %v3189_v0  ;;  %v6501_v9 = vpop.permute.xlu0 %2301  ;;  %3715 = vrot.lane.b32.xlu1 %v6096_v62, %s9199_s30 }
 0x68a   : > { %v6506_v60 = vsel %vm3501_vm14, %v3546_v37, %v3191_v25  ;;  %2305 = vrot.lane.b32.xlu0 %v6065_v7, %s9202_s28  ;;  %v6510_v54 = vpop.permute.xlu1 %2461 }
 0x68b   : > { %9255 = vst [vmem:[#allocation50_spill] sm:$0xff] %v6510_v54 }
 0x68c   : > { %v6512_v24 = vpop.permute.xlu0 %2355  ;;  %3761 = vrot.lane.b32.xlu1 %v6096_v62, %s9200_s0 }
 0x68e   : > { %2359 = vrot.lane.b32.xlu0 %v6065_v7, %s9204_s19  ;;  %v6518_v58 = vpop.permute.xlu1 %2515 }
 0x68f   : > { %9256 = vst [vmem:[#allocation51_spill] sm:$0xff] %v6518_v58  ;;  %v2972_v58 = vrot.slane %v6423_v8, 4 }
 0x690   : > { %v6520_v61 = vpop.permute.xlu0 %2409  ;;  %3807 = vrot.lane.b32.xlu1 %v6096_v62, %s9201_s29 }
 0x691   : > { %9257 = vst [vmem:[#allocation52_spill] sm:$0xff] %v6520_v61 }
 0x692   : > { %2413 = vrot.lane.b32.xlu0 %v6065_v7, %s9206_s20  ;;  %v6526_v27 = vpop.permute.xlu1 %2569 }
 0x693   : > { %9258 = vst [vmem:[#allocation53_spill] sm:$0xff] %v6526_v27 }
 0x694   : > { %v6528_v16 = vpop.permute.xlu0 %2463  ;;  %3853 = vrot.lane.b32.xlu1 %v6096_v62, %s9202_s28 }
 0x695   : > { %9259 = vst [vmem:[#allocation54_spill] sm:$0xff] %v6528_v16 }
 0x696   : > { %2467 = vrot.lane.b32.xlu0 %v6065_v7, %s9208_s15  ;;  %v6534_v15 = vpop.permute.xlu1 %2623 }
 0x697   : > { %9260 = vst [vmem:[#allocation55_spill] sm:$0xff] %v6534_v15 }
 0x698   : > { %v6536_v53 = vpop.permute.xlu0 %2517  ;;  %3899 = vrot.lane.b32.xlu1 %v6096_v62, %s9204_s19 }
 0x699   : > { %9261 = vst [vmem:[#allocation56_spill] sm:$0xff] %v6536_v53  ;;  %v1768_v53 = vadd.f32 %v6018_v36, %v6020_v52 }
 0x69a   : > { %2521 = vrot.lane.b32.xlu0 %v6065_v7, %s9209_s26  ;;  %v6542_v0 = vpop.permute.xlu1 %2677 }
 0x69b   : > { %9262 = vst [vmem:[#allocation57_spill] sm:$0xff] %v6542_v0 }
 0x69c   : > { %v6544_v37 = vpop.permute.xlu0 %2571  ;;  %3945 = vrot.lane.b32.xlu1 %v6096_v62, %s9206_s20 }
 0x69d   : > { %9263 = vst [vmem:[#allocation58_spill] sm:$0xff] %v6544_v37 }
 0x69e   : > { %2575 = vrot.lane.b32.xlu0 %v6065_v7, %s9264_s9  ;;  %v6550_v13 = vpop.permute.xlu1 %2731 }
 0x69f   : > { %9265 = vst [vmem:[#allocation59_spill] sm:$0xff] %v6550_v13 }
 0x6a0   : > { %v6552_v25 = vpop.permute.xlu0 %2625  ;;  %3991 = vrot.lane.b32.xlu1 %v6096_v62, %s9208_s15 }
 0x6a1   : > { %9266 = vst [vmem:[#allocation60_spill] sm:$0xff] %v6552_v25 }
 0x6a2   : > { %2629 = vrot.lane.b32.xlu0 %v6065_v7, %s9267_s10  ;;  %v6558_v15 = vpop.permute.xlu1 %2816 }
 0x6a3   : > { %9268 = vst [vmem:[#allocation61_spill] sm:$0xff] %v6558_v15  ;;  %v1807_v15 = vadd.f32 %v6016_v11, %v6020_v52 }
 0x6a4   : > { %v6560_v0 = vpop.permute.xlu0 %2679  ;;  %4037 = vrot.lane.b32.xlu1 %v6096_v62, %s9209_s26 }
 0x6a5   : > { %9269 = vst [vmem:[#allocation62_spill] sm:$0xff] %v6560_v0 }
 0x6a6   : > { %2683 = vrot.lane.b32.xlu0 %v6065_v7, %s9211_s1  ;;  %v6566_v37 = vpop.permute.xlu1 %2870 }
 0x6a7   : > { %9270 = vst [vmem:[#allocation63_spill] sm:$0xff] %v6566_v37  ;;  %v1766_v37 = vadd.f32 %v6014_v30, %v6020_v52  ;;  %v5153_v30 = vmul.f32 -1.442695, %v1768_v53 }
 0x6a8   : > { %v6568_v13 = vpop.permute.xlu0 %2733  ;;  %4083 = vrot.lane.b32.xlu1 %v6096_v62, %s9264_s9 }
 0x6a9   : > { %9271 = vst [vmem:[#allocation64_spill] sm:$0xff] %v6568_v13  ;;  %v5152_v11 = vmul.f32 -1.442695, %v1766_v37 }
 0x6aa   : > { %2737 = vrot.lane.b32.xlu0 %v6065_v7, %s9213_s2  ;;  %v6574_v25 = vpop.permute.xlu1 %2924 }
 0x6ab   : > { %9272 = vst [vmem:[#allocation65_spill] sm:$0xff] %v6574_v25  ;;  %v5154_v25 = vmul.f32 -1.442695, %v1807_v15 }
 0x6ac   : > { %v6578_v0 = vpop.permute.xlu0 %2818  ;;  %4129 = vrot.lane.b32.xlu1 %v6096_v62, %s9267_s10 }
 0x6ad   : > { %9273 = vst [vmem:[#allocation66_spill] sm:$0xff] %v6578_v0  ;;  %5327 = vpow2.f32 %v5154_v25 }
 0x6ae   : > { %2822 = vrot.lane.b32.xlu0 %v6065_v7, %s9216_s3  ;;  %v6586_v13 = vpop.permute.xlu1 %2978  ;;  %5329 = vpow2.f32 %v5152_v11 }
 0x6af   : > { %9274 = vst [vmem:[#allocation67_spill] sm:$0xff] %v6586_v13  ;;  %5331 = vpow2.f32 %v5153_v30 }
 0x6b0   : > { %v6590_v16 = vpop.permute.xlu0 %2872  ;;  %4175 = vrot.lane.b32.xlu1 %v6096_v62, %s9211_s1 }
 0x6b1   : > { %9275 = vst [vmem:[#allocation68_spill] sm:$0xff] %v6590_v16 }
 0x6b2   : > { %2876 = vrot.lane.b32.xlu0 %v6065_v7, %s9219_s22  ;;  %v6596_v0 = vpop.permute.xlu1 %3032 }
 0x6b3   : > { %9276 = vst [vmem:[#allocation69_spill] sm:$0xff] %v6596_v0 }
 0x6b4   : > { %v6598_v27 = vpop.permute.xlu0 %2926  ;;  %4221 = vrot.lane.b32.xlu1 %v6096_v62, %s9213_s2 }
 0x6b5   : > { %9277 = vst [vmem:[#allocation70_spill] sm:$0xff] %v6598_v27 }
 0x6b6   : > { %2930 = vrot.lane.b32.xlu0 %v6065_v7, %s9222_s18  ;;  %v6604_v36 = vpop.permute.xlu1 %3086 }
 0x6b7   : > { %9278 = vst [vmem:[#allocation71_spill] sm:$0xff] %v6604_v36 }
 0x6b8   : > { %v6606_v52 = vpop.permute.xlu0 %2980  ;;  %2146 = vrot.lane.b32.xlu1 %v6077_v17, %s9199_s30 }
 0x6b9   : > { %9279 = vst [vmem:[#allocation72_spill] sm:$0xff] %v6606_v52 }
 0x6ba   : > { %2984 = vrot.lane.b32.xlu0 %v6065_v7, %s9225_s4  ;;  %v6612_v15 = vpop.permute.xlu1 %3139  ;;  %v5328_v25 = vpop.eup %5327 }
 0x6bb   : > { %9280 = vst [vmem:[#allocation73_spill] sm:$0xff] %v6612_v15  ;;  %v5330_v30 = vpop.eup %5329  ;;  %v1823_v36 = vadd.f32 1.0, %v5328_v25 }
 0x6bc   : > { %v6614_v53 = vpop.permute.xlu0 %3034  ;;  %2199 = vrot.lane.b32.xlu1 %v6077_v17, %s9200_s0  ;;  %v5332_v15 = vpop.eup %5331 }
 0x6bd   : > { %9281 = vst [vmem:[#allocation74_spill] sm:$0xff] %v6614_v53  ;;  %v1822_v53 = vadd.f32 1.0, %v5332_v15  ;;  %5333 = vrcp.f32 %v1823_v36  ;;  %v2794_v36 = vrot.slane %v6098_v44, 4  ;;  %v2810_v15 = vrot.slane %v6102_v43, 4 }
 0x6be   : > { %3038 = vrot.lane.b32.xlu0 %v6065_v7, %s9228_s5  ;;  %v6620_v62 = vpop.permute.xlu1 %3196 }
 0x6bf   : > { %9282 = vst [vmem:[#allocation75_spill] sm:$0xff] %v6620_v62  ;;  %v1821_v62 = vadd.f32 1.0, %v5330_v30 }
 0x6c0   : > { %v6622_v37 = vpop.permute.xlu0 %3088  ;;  %2253 = vrot.lane.b32.xlu1 %v6077_v17, %s9201_s29 }
 0x6c1   : > { %9283 = vst [vmem:[#allocation76_spill] sm:$0xff] %v6622_v37  ;;  %5335 = vrcp.f32 %v1821_v62 }
 0x6c2   : > { %3092 = vrot.lane.b32.xlu0 %v6065_v7, %s9195_s25  ;;  %v6628_v11 = vpop.permute.xlu1 %3256  ;;  %5337 = vrcp.f32 %v1822_v53  ;;  %v2801_v53 = vrot.slane %v6104_v57, 4 }
 0x6c3   : > { %9284 = vst [vmem:[#allocation77_spill] sm:$0xff] %v6628_v11 }
 0x6c4   : > { %v6630_v0 = vpop.permute.xlu0 %3141  ;;  %2307 = vrot.lane.b32.xlu1 %v6077_v17, %s9202_s28 }
 0x6c5   : > { %9285 = vst [vmem:[#allocation78_spill] sm:$0xff] %v6630_v0  ;;  %v2864_v0 = vrot.slane %v6392_v12, 4 }
 0x6c6   : > { %3145 = vrot.lane.b32.xlu0 %v6065_v7, %s9196_s27  ;;  %v6636_v37 = vpop.permute.xlu1 %3316 }
 0x6c7   : > { %9286 = vst [vmem:[#allocation79_spill] sm:$0xff] %v6636_v37  ;;  %v2795_v37 = vadd.f32 %v2794_v36, %v6098_v44  ;;  %v2865_v16 = vadd.f32 %v2864_v0, %v6392_v12  ;;  %v3275_v12 = vsel %vm9053_vm6, %v6386_v59, %v6248_v35 }
 0x6c8   : > { %v6638_v13 = vpop.permute.xlu0 %3198  ;;  %2361 = vrot.lane.b32.xlu1 %v6077_v17, %s9204_s19 }
 0x6c9   : > { %9287 = vst [vmem:[#allocation80_spill] sm:$0xff] %v6638_v13  ;;  %v2796_v52 = vrot.slane %v2795_v37, 2 }
 0x6ca   : > { %3206 = vrot.lane.b32.xlu0 %v6077_v17, %s9235_s6  ;;  %v6644_v25 = vpop.permute.xlu1 %3375 }
 0x6cb   : > { %9288 = vst [vmem:[#allocation81_spill] sm:$0xff] %v6644_v25 }
 0x6cc   : > { %v6646_v30 = vpop.permute.xlu0 %3258  ;;  %2415 = vrot.lane.b32.xlu1 %v6077_v17, %s9206_s20 }
 0x6cd   : > { %9289 = vst [vmem:[#allocation82_spill] sm:$0xff] %v6646_v30  ;;  %v2802_v30 = vadd.f32 %v2801_v53, %v6104_v57  ;;  %v3215_v57 = vsel %vm9085_vm15, %v6374_v49, %v6240_v29 }
 0x6ce   : > { %3266 = vrot.lane.b32.xlu0 %v6077_v17, %s9238_s7  ;;  %v6652_v7 = vpop.permute.xlu1 %3434  ;;  %v3227_v29 = vmul.f32 %v3215_v57, %v6048_v48 }
 0x6cf   : > { %9290 = vst [vmem:[#allocation83_spill] sm:$0xff] %v6652_v7  ;;  %v2811_v7 = vadd.f32 %v2810_v15, %v6102_v43  ;;  %v2918_v15 = vrot.slane %v6408_v21, 4  ;;  %v2803_v53 = vrot.slane %v2802_v30, 2 }
 0x6d0   : > { %v6656_v62 = vpop.permute.xlu0 %3318  ;;  %2469 = vrot.lane.b32.xlu1 %v6077_v17, %s9208_s15 }
 0x6d1   : > { %9291 = vst [vmem:[#allocation84_spill] sm:$0xff] %v6656_v62  ;;  %v5334_v62 = vpop.eup %5333  ;;  %v2812_v36 = vrot.slane %v2811_v7, 2  ;;  %v2919_v54 = vadd.f32 %v2918_v15, %v6408_v21 }
 0x6d2   : > { %3326 = vrot.lane.b32.xlu0 %v6077_v17, %s9241_s8  ;;  %v6663_v25 = vpop.permute.xlu1 %3208  ;;  %v5336_v44 = vpop.eup %5335  ;;  %v1832_v27 = vmul.f32 %v5334_v62, %v5968_v46 }
 0x6d3   : > { %v5338_v43 = vpop.eup %5337  ;;  %v1830_v46 = vmul.f32 %v5336_v44, %v5962_v32  ;;  %v2813_v50 = vadd.f32 %v2812_v36, %v2811_v7  ;;  %v3287_v44 = vmul.f32 %v3275_v12, %v6048_v48 }
 0x6d4   : > { %v6667_v11 = vpop.permute.xlu0 %3377  ;;  %2523 = vrot.lane.b32.xlu1 %v6077_v17, %s9209_s26  ;;  %v1831_v62 = vmul.f32 %v5338_v43, %v5964_v42  ;;  %v1835_v49 = vmul.f32 %v1832_v27, %v5840_v10  ;;  %v2866_v42 = vrot.slane %v2865_v16, 2  ;;  %v3247_v43 = vsel %vm554_vm2, %v3227_v29, 0.0 }
 0x6d5   : > { %9292 = vst [vmem:[#allocation85_spill] sm:$0xff] %v6667_v11  ;;  %v6711_v10 = vmul.f32 %v1830_v46, %v5834_v5  ;;  %v2814_v36 = vrot.slane %v2813_v50, 1  ;;  %v3393_v5 = vsel %vm9051_vm10, %v6417_v14, %v6264_v51  ;;  %v3307_v12 = vsel %vm554_vm2, %v3287_v44, 0.0 }
 0x6d6   : > { %3385 = vrot.lane.b32.xlu0 %v6077_v17, %s9197_s17  ;;  %v6675_v13 = vpop.permute.xlu1 %3268  ;;  %v6714_v27 = vmul.f32 %v1831_v62, %v5847_v23 }
 0x6d8   : > { %v6678_v11 = vpop.permute.xlu0 %3436  ;;  %2577 = vrot.lane.b32.xlu1 %v6077_v17, %s9264_s9 }
 0x6d9   : > { %9293 = vst [vmem:[#allocation86_spill] sm:$0xff] %v6678_v11  ;;  %v2797_v11 = vadd.f32 %v2796_v52, %v2795_v37  ;;  %v2804_v52 = vadd.f32 %v2803_v53, %v2802_v30  ;;  %v2973_v37 = vadd.f32 %v2972_v58, %v6423_v8  ;;  %v2920_v30 = vrot.slane %v2919_v54, 2 }
 0x6da   : > { %3444 = vrot.lane.b32.xlu0 %v6077_v17, %s9198_s21  ;;  %v6690_v61 = vpop.permute.xlu1 %3328  ;;  %v3334_v8 = vsel %vm9052_vm1, %v6402_v22, %v6256_v45  ;;  %v2867_v53 = vadd.f32 %v2866_v42, %v2865_v16  ;;  %v3405_v16 = vmul.f32 %v3393_v5, %v6048_v48  ;;  %v3452_v42 = vsel %vm9054_vm9, %v6432_v2, %v6272_v56 }
 0x6db   : > { %v2798_v35 = vrot.slane %v2797_v11, 1  ;;  %v2805_v57 = vrot.slane %v2804_v52, 1  ;;  %v2974_v46 = vrot.slane %v2973_v37, 2  ;;  %v3346_v51 = vmul.f32 %v3334_v8, %v6048_v48 }
 0x6dc   : > { %v3211_v0 = vpop.permute.xlu0 %3210  ;;  %2631 = vrot.lane.b32.xlu1 %v6077_v17, %s9267_s10 }
 0x6dd   : > { %v3218_v32 = vsel %vm9085_vm15, %v6663_v25, %v3211_v0  ;;  %v6733_v29 = vadd.f32 %v2798_v35, %v2797_v11  ;;  %v3366_v8 = vsel %vm554_vm2, %v3346_v51, 0.0 }
 0x6de   : > { %v3230_v21 = vmul.f32 %v3218_v32, %v6062_v3  ;;  %1843 = vrot.lane.b32.xlu0 %v1835_v49, %s9199_s30  ;;  %v6707_v7 = vpop.permute.xlu1 %3387  ;;  %v6737_v32 = vadd.f32 %v2814_v36, %v2813_v50  ;;  %v6748_v50 = vadd.f32 %v2805_v57, %v2804_v52  ;;  %v2975_v36 = vadd.f32 %v2974_v46, %v2973_v37 }
 0x6df   : > { %9294 = vst [vmem:[#allocation87_spill] sm:$0xff] %v6707_v7  ;;  %v3425_v52 = vsel %vm554_vm2, %v3405_v16, 0.0  ;;  %v2160_v37 = vmul.f32 %v6445_v18, %v6043_v1 }
 0x6e0   : > { %v3248_v49 = vsel %vm554_vm2, %v3230_v21, 0.0  ;;  %v3271_v58 = vpop.permute.xlu0 %3270  ;;  %2685 = vrot.lane.b32.xlu1 %v6077_v17, %s9211_s1  ;;  %9296 = vst [vmem:[#allocation89_spill] sm:$0xff] %v6737_v32  ;;  %v2921_v21 = vadd.f32 %v2920_v30, %v2919_v54  ;;  %9297 = vst [vmem:[#allocation90_spill] sm:$0xff] %v6748_v50  ;;  %v2868_v54 = vrot.slane %v2867_v53, 1 }
 0x6e1   : > { %v3249_v23 = vadd.f32 %v3248_v49, %v3247_v43  ;;  %v3278_v15 = vsel %vm9053_vm6, %v6675_v13, %v3271_v58  ;;  %v3464_v58 = vmul.f32 %v3452_v42, %v6048_v48  ;;  %vm9059_vm6 = vcmask 318464  }
 0x6e2   : > { %v3290_v62 = vmul.f32 %v3278_v15, %v6062_v3  ;;  %3721 = vrot.lane.b32.xlu0 %v6113_v4, %s9199_s30  ;;  %v6731_v45 = vpop.permute.xlu1 %3446  ;;  %v2922_v15 = vrot.slane %v2921_v21, 1  ;;  %v6765_v42 = vadd.f32 %v2868_v54, %v2867_v53  ;;  %v2166_v53 = vsel %vm551_vm3, %v2160_v37, 0.0 }
 0x6e3   : > { %9295 = vst [vmem:[#allocation88_spill] sm:$0xff] %v6731_v45  ;;  %v3250_v0 = vrot.slane %v3249_v23, 4  ;;  %v2214_v54 = vmul.f32 %v6458_v31, %v6043_v1 }
 0x6e4   : > { %v3308_v43 = vsel %vm554_vm2, %v3290_v62, 0.0  ;;  %v3331_v49 = vpop.permute.xlu0 %3330  ;;  %2739 = vrot.lane.b32.xlu1 %v6077_v17, %s9213_s2  ;;  %9298 = vst [vmem:[#allocation91_spill] sm:$0xff] %v6765_v42 }
 0x6e5   : > { %v3251_v11 = vadd.f32 %v3250_v0, %v3249_v23  ;;  %v3309_v35 = vadd.f32 %v3308_v43, %v3307_v12  ;;  %v3337_v44 = vsel %vm9052_vm1, %v6690_v61, %v3331_v49  ;;  %v2976_v43 = vrot.slane %v2975_v36, 1 }
 0x6e6   : > { %v3349_v30 = vmul.f32 %v3337_v44, %v6062_v3  ;;  %3767 = vrot.lane.b32.xlu0 %v6113_v4, %s9200_s0  ;;  %v6753_v56 = vpop.permute.xlu1 %3204  ;;  %v3484_v44 = vsel %vm554_vm2, %v3464_v58, 0.0  ;;  %vm9301_vm1 = vcmask 343040  }
 0x6e7   : > { %v3252_v5 = vrot.slane %v3251_v11, 2  ;;  %v3310_v23 = vrot.slane %v3309_v35, 4  ;;  %v6781_v42 = vadd.f32 %v2976_v43, %v2975_v36  ;;  %v2205_v43 = vsel %vm9068_vm7, %v6483_v6, %v6232_v26 }
 0x6e8   : > { %v3367_v57 = vsel %vm554_vm2, %v3349_v30, 0.0  ;;  %v3390_v46 = vpop.permute.xlu0 %3389  ;;  %2824 = vrot.lane.b32.xlu1 %v6077_v17, %s9216_s3 }
 0x6e9   : > { %v3253_v62 = vadd.f32 %v3252_v5, %v3251_v11  ;;  %v3311_v12 = vadd.f32 %v3310_v23, %v3309_v35  ;;  %v3368_v0 = vadd.f32 %v3367_v57, %v3366_v8  ;;  %v3396_v51 = vsel %vm9051_vm10, %v6707_v7, %v3390_v46  ;;  %9300 = vst [vmem:[#allocation93_spill] sm:$0xff] %v6781_v42 }
 0x6ea   : > { %v3408_v16 = vmul.f32 %v3396_v51, %v6062_v3  ;;  %3813 = vrot.lane.b32.xlu0 %v6113_v4, %s9201_s29  ;;  %v6770_v49 = vpop.permute.xlu1 %3264  ;;  %v6773_v8 = vadd.f32 %v2922_v15, %v2921_v21  ;;  %vm3512_vm10 = vcmask 1045504   ;;  %v2151_v21 = vsel %vm9301_vm1, %v6475_v33, %v6224_v40 }
 0x6eb   : > { %v3254_v11 = vrot.slane %v3253_v62, 1  ;;  %v3312_v35 = vrot.slane %v3311_v12, 2  ;;  %v3369_v30 = vrot.slane %v3368_v0, 4  ;;  %v2268_v15 = vmul.f32 %v6471_v47, %v6043_v1 }
 0x6ec   : > { %9299 = vst [vmem:[#allocation92_spill] sm:$0xff] %v6773_v8  ;;  %v3426_v5 = vsel %vm554_vm2, %v3408_v16, 0.0  ;;  %v3449_v23 = vpop.permute.xlu0 %3448  ;;  %2878 = vrot.lane.b32.xlu1 %v6077_v17, %s9219_s22  ;;  %v2150_v40 = vsel %vm9301_vm1, %v6445_v18, %v6475_v33  ;;  %vm9063_vm1 = vcmask 179200   ;;  %v9308_v8 = vld [vmem:[#allocation15_spill] sm:$0xff] }
 0x6ed   : > { %v3255_v57 = vadd.f32 %v3254_v11, %v3253_v62  ;;  %v3313_v46 = vadd.f32 %v3312_v35, %v3311_v12  ;;  %v3370_v58 = vadd.f32 %v3369_v30, %v3368_v0  ;;  %v3427_v51 = vadd.f32 %v3426_v5, %v3425_v52 }
 0x6ee   : > { %v3455_v37 = vsel %vm9054_vm9, %v6731_v45, %v3449_v23  ;;  %3859 = vrot.lane.b32.xlu0 %v6113_v4, %s9202_s28  ;;  %v6792_v17 = vpop.permute.xlu1 %3324  ;;  %v2220_v0 = vsel %vm551_vm3, %v2214_v54, 0.0  ;;  %vm9057_vm9 = vcmask 310272   ;;  %v2162_v54 = vmul.f32 %v2151_v21, %v6048_v48 }
 0x6ef   : > { %v3552_v36 = vsel %vm9072_vm0, %v6506_v60, %v3255_v57  ;;  %v3314_v52 = vrot.slane %v3313_v46, 1  ;;  %v3371_v62 = vrot.slane %v3370_v58, 2  ;;  %v3428_v12 = vrot.slane %v3427_v51, 4  ;;  %v6806_v60 = vld [vmem:[#allocation4 + $0x28] sm:$0xff] }
 0x6f0   : > { %v3467_v16 = vmul.f32 %v3455_v37, %v6062_v3  ;;  %v6804_v11 = vpop.permute.xlu0 %2144  ;;  %2932 = vrot.lane.b32.xlu1 %v6806_v60, %s9222_s18  ;;  %v2274_v26 = vsel %vm551_vm3, %v2268_v15, 0.0  ;;  %v2322_v5 = vmul.f32 %v6481_v63, %v6043_v1  ;;  %v6825_v21 = vmul.f32 %v2150_v40, %v6050_v55 }
 0x6f1   : > { %v3315_v35 = vadd.f32 %v3314_v52, %v3313_v46  ;;  %v3372_v30 = vadd.f32 %v3371_v62, %v3370_v58  ;;  %v3429_v18 = vadd.f32 %v3428_v12, %v3427_v51  ;;  %v2163_v33 = vmul.f32 %v6804_v11, %v6056_v19 }
 0x6f2   : > { %v3485_v23 = vsel %vm554_vm2, %v3467_v16, 0.0  ;;  %3905 = vrot.lane.b32.xlu0 %v6113_v4, %s9204_s19  ;;  %v6819_v57 = vpop.permute.xlu1 %3383  ;;  %v2204_v15 = vsel %vm9068_vm7, %v6458_v31, %v6483_v6  ;;  %v2216_v52 = vmul.f32 %v2205_v43, %v6048_v48  ;;  %v6840_v16 = vsel %vm554_vm2, %v2162_v54, 0.0 }
 0x6f3   : > { %9302 = vst [vmem:[#allocation94_spill] sm:$0xff] %v6819_v57  ;;  %v3555_v46 = vsel %vm9071_vm5, %v3552_v36, %v3315_v35  ;;  %v3373_v58 = vrot.slane %v3372_v30, 1  ;;  %v3430_v51 = vrot.slane %v3429_v18, 2  ;;  %v6822_v37 = vadd.f32 %v3485_v23, %v3484_v44  ;;  %v6849_v35 = vld [vmem:[#allocation4 + $0x70] sm:$0xff] }
 0x6f4   : > { %v2167_v4 = vsel %vm551_vm3, %v2163_v33, 0.0  ;;  %v6832_v62 = vpop.permute.xlu0 %2197  ;;  %2986 = vrot.lane.b32.xlu1 %v6806_v60, %s9225_s4  ;;  %v2259_v44 = vsel %vm9056_vm4, %v6492_v41, %v6238_v28  ;;  %v6843_v31 = vsel %vm551_vm3, %v2322_v5, 0.0  ;;  %v2376_v6 = vmul.f32 %v6490_v39, %v6043_v1 }
 0x6f5   : > { %v3374_v36 = vadd.f32 %v3373_v58, %v3372_v30  ;;  %v3431_v12 = vadd.f32 %v3430_v51, %v3429_v18  ;;  %v2168_v40 = vadd.f32 %v2167_v4, %v2166_v53  ;;  %v2217_v43 = vmul.f32 %v6832_v62, %v6056_v19 }
 0x6f6   : > { %3951 = vrot.lane.b32.xlu0 %v6849_v35, %s9206_s20  ;;  %v6853_v28 = vpop.permute.xlu1 %3442  ;;  %v2258_v53 = vsel %vm9056_vm4, %v6471_v47, %v6492_v41  ;;  %v6860_v54 = vmul.f32 %v2204_v15, %v6050_v55  ;;  %v6863_v5 = vsel %vm554_vm2, %v2216_v52, 0.0  ;;  %v2270_v23 = vmul.f32 %v2259_v44, %v6048_v48 }
 0x6f7   : > { %9303 = vst [vmem:[#allocation95_spill] sm:$0xff] %v6853_v28  ;;  %v3558_v30 = vsel %vm3512_vm10, %v3555_v46, %v3374_v36  ;;  %v3432_v18 = vrot.slane %v3431_v12, 1  ;;  %v2169_v33 = vrot.slane %v2168_v40, 4  ;;  %v2221_v58 = vsel %vm551_vm3, %v2217_v43, 0.0 }
 0x6f8   : > { %v6867_v51 = vpop.permute.xlu0 %2251  ;;  %3040 = vrot.lane.b32.xlu1 %v6806_v60, %s9228_s5  ;;  %v2313_v47 = vsel %vm9059_vm6, %v6501_v9, %v6246_v34  ;;  %v2222_v15 = vadd.f32 %v2221_v58, %v2220_v0  ;;  %v6875_v4 = vmul.f32 %v2258_v53, %v6050_v55  ;;  %v2382_v52 = vsel %vm551_vm3, %v2376_v6, 0.0 }
 0x6f9   : > { %v3433_v41 = vadd.f32 %v3432_v18, %v3431_v12  ;;  %v2170_v46 = vadd.f32 %v2169_v33, %v2168_v40  ;;  %v2430_v44 = vmul.f32 %v6499_v20, %v6043_v1  ;;  %v2271_v36 = vmul.f32 %v6867_v51, %v6056_v19 }
 0x6fa   : > { %3997 = vrot.lane.b32.xlu0 %v6849_v35, %s9208_s15  ;;  %v6884_v43 = vpop.permute.xlu1 %3715  ;;  %v2367_v34 = vsel %vm9057_vm9, %v6512_v24, %v6254_v38  ;;  %vm9066_vm4 = vcmask 171008   ;;  %v2223_v40 = vrot.slane %v2222_v15, 4  ;;  %v6893_v6 = vsel %vm554_vm2, %v2270_v23, 0.0  ;;  %v9306_v38 = vld [vmem:[#allocation50_spill] sm:$0xff] }
 0x6fb   : > { %9304 = vst [vmem:[#allocation96_spill] sm:$0xff] %v6884_v43  ;;  %v6890_v0 = vsel %vm3516_vm12, %v3558_v30, %v3433_v41  ;;  %v2171_v12 = vrot.slane %v2170_v46, 2  ;;  %v2312_v53 = vsel %vm9059_vm6, %v6481_v63, %v6501_v9  ;;  %v2324_v18 = vmul.f32 %v2313_v47, %v6048_v48 }
 0x6fc   : > { %9305 = vst [vmem:[#allocation97_spill] sm:$0xff] %v6890_v0  ;;  %v2275_v33 = vsel %vm551_vm3, %v2271_v36, 0.0  ;;  %v6900_v58 = vpop.permute.xlu0 %2305  ;;  %3094 = vrot.lane.b32.xlu1 %v6806_v60, %s9195_s25  ;;  %v2484_v30 = vmul.f32 %v9306_v38, %v6043_v1  ;;  %v2224_v43 = vadd.f32 %v2223_v40, %v2222_v15  ;;  %v2366_v42 = vsel %vm9057_vm9, %v6490_v39, %v6512_v24  ;;  %v9310_v15 = vld [vmem:[#allocation51_spill] sm:$0xff] }
 0x6fd   : > { %v2172_v41 = vadd.f32 %v2171_v12, %v2170_v46  ;;  %v2276_v23 = vadd.f32 %v2275_v33, %v2274_v26  ;;  %v2378_v63 = vmul.f32 %v2367_v34, %v6048_v48  ;;  %v2436_v9 = vsel %vm551_vm3, %v2430_v44, 0.0  ;;  %v9309_v46 = vld [vmem:[#allocation52_spill] sm:$0xff] }
 0x6fe   : > { %v2325_v47 = vmul.f32 %v6900_v58, %v6056_v19  ;;  %4043 = vrot.lane.b32.xlu0 %v6849_v35, %s9209_s26  ;;  %v6915_v36 = vpop.permute.xlu1 %3761  ;;  %v2421_v26 = vsel %vm9063_vm1, %v9309_v46, %v9308_v8  ;;  %v2538_v12 = vmul.f32 %v9310_v15, %v6043_v1  ;;  %vm9065_vm9 = vcmask 162816  }
 0x6ff   : > { %9307 = vst [vmem:[#allocation50_spill] sm:$0xff] %v6915_v36  ;;  %v2225_v39 = vrot.slane %v2224_v43, 2  ;;  %v2277_v24 = vrot.slane %v2276_v23, 4  ;;  %v6923_v44 = vmul.f32 %v2312_v53, %v6050_v55  ;;  %v6926_v34 = vsel %vm554_vm2, %v2324_v18, 0.0 }
 0x700   : > { %v2173_v40 = vrot.slane %v2172_v41, 1  ;;  %v2329_v33 = vsel %vm551_vm3, %v2325_v47, 0.0  ;;  %v6929_v36 = vpop.permute.xlu0 %2359  ;;  %3147 = vrot.lane.b32.xlu1 %v6806_v60, %s9196_s27  ;;  %v6934_v8 = vmul.f32 %v2366_v42, %v6050_v55  ;;  %v2490_v32 = vsel %vm551_vm3, %v2484_v30, 0.0 }
 0x701   : > { %v2226_v50 = vadd.f32 %v2225_v39, %v2224_v43  ;;  %v2278_v45 = vadd.f32 %v2277_v24, %v2276_v23  ;;  %v6938_v53 = vsel %vm554_vm2, %v2378_v63, 0.0  ;;  %v2432_v18 = vmul.f32 %v2421_v26, %v6048_v48  ;;  %v9312_v63 = vld [vmem:[#allocation53_spill] sm:$0xff] }
 0x702   : > { %v2330_v28 = vadd.f32 %v2329_v33, %v6843_v31  ;;  %v2379_v47 = vmul.f32 %v6929_v36, %v6056_v19  ;;  %4089 = vrot.lane.b32.xlu0 %v6849_v35, %s9264_s9  ;;  %v6946_v60 = vpop.permute.xlu1 %3807  ;;  %v2420_v42 = vsel %vm9063_vm1, %v6499_v20, %v9309_v46  ;;  %v6952_v43 = vsel %vm551_vm3, %v2538_v12, 0.0 }
 0x703   : > { %9311 = vst [vmem:[#allocation15_spill] sm:$0xff] %v6946_v60  ;;  %v2227_v30 = vrot.slane %v2226_v50, 1  ;;  %v2279_v23 = vrot.slane %v2278_v45, 2  ;;  %v2592_v31 = vmul.f32 %v9312_v63, %v6043_v1  ;;  %vm9069_vm6 = vcmask 154624   ;;  %v6959_v60 = vld [vmem:[#allocation4 + $0x40] sm:$0xff] }
 0x704   : > { %v2174_v26 = vadd.f32 %v2173_v40, %v2172_v41  ;;  %v2331_v39 = vrot.slane %v2330_v28, 4  ;;  %v2383_v24 = vsel %vm551_vm3, %v2379_v47, 0.0  ;;  %v6957_v33 = vpop.permute.xlu0 %2413  ;;  %3711 = vrot.lane.b32.xlu1 %v6959_v60, %s9199_s30  ;;  %v6966_v7 = vmul.f32 %v2420_v42, %v6050_v55  ;;  %v9315_v40 = vld [vmem:[#allocation16_spill] sm:$0xff]  ;;  %v9316_v47 = vld [vmem:[#allocation54_spill] sm:$0xff] }
 0x705   : > { %v2228_v20 = vadd.f32 %v2227_v30, %v2226_v50  ;;  %v2280_v46 = vadd.f32 %v2279_v23, %v2278_v45  ;;  %v2384_v12 = vadd.f32 %v2383_v24, %v2382_v52  ;;  %v2433_v0 = vmul.f32 %v6957_v33, %v6056_v19 }
 0x706   : > { %9313 = vst [vmem:[#allocation52_spill] sm:$0xff] %v6966_v7  ;;  %v6969_v41 = vsel %vm554_vm2, %v2432_v18, 0.0  ;;  %v2475_v57 = vsel %vm9066_vm4, %v9316_v47, %v9315_v40  ;;  %v2332_v2 = vadd.f32 %v2331_v39, %v2330_v28  ;;  %4135 = vrot.lane.b32.xlu0 %v6849_v35, %s9267_s10  ;;  %v6976_v50 = vpop.permute.xlu1 %3853  ;;  %v2474_v18 = vsel %vm9066_vm4, %v9306_v38, %v9316_v47  ;;  %v9320_v38 = vld [vmem:[#allocation56_spill] sm:$0xff]  ;;  %v9321_v47 = vld [vmem:[#allocation55_spill] sm:$0xff] }
 0x707   : > { %9314 = vst [vmem:[#allocation51_spill] sm:$0xff] %v6969_v41  ;;  %9317 = vst [vmem:[#allocation53_spill] sm:$0xff] %v6976_v50  ;;  %v3494_v45 = vsel %vm3493_vm8, %v2174_v26, %v2228_v20  ;;  %v2281_v52 = vrot.slane %v2280_v46, 1  ;;  %v2385_v30 = vrot.slane %v2384_v12, 4  ;;  %v2437_v42 = vsel %vm551_vm3, %v2433_v0, 0.0  ;;  %v9319_v50 = vld [vmem:[#allocation17_spill] sm:$0xff] }
 0x708   : > { %v6984_v23 = vsel %vm551_vm3, %v2592_v31, 0.0  ;;  %vm9074_vm1 = vcmask 146432   ;;  %v2333_v28 = vrot.slane %v2332_v2, 2  ;;  %v2438_v39 = vadd.f32 %v2437_v42, %v2436_v9  ;;  %v6986_v24 = vpop.permute.xlu0 %2467  ;;  %3757 = vrot.lane.b32.xlu1 %v6959_v60, %s9200_s0 }
 0x709   : > { %9318 = vst [vmem:[#allocation16_spill] sm:$0xff] %v6986_v24  ;;  %v2486_v26 = vmul.f32 %v2475_v57, %v6048_v48  ;;  %v2282_v20 = vadd.f32 %v2281_v52, %v2280_v46  ;;  %v2386_v40 = vadd.f32 %v2385_v30, %v2384_v12  ;;  %v2487_v0 = vmul.f32 %v6986_v24, %v6056_v19 }
 0x70a   : > { %v2529_v31 = vsel %vm9065_vm9, %v9320_v38, %v9319_v50  ;;  %v2646_v41 = vmul.f32 %v9321_v47, %v6043_v1  ;;  %v2334_v9 = vadd.f32 %v2333_v28, %v2332_v2  ;;  %v2439_v42 = vrot.slane %v2438_v39, 4  ;;  %4181 = vrot.lane.b32.xlu0 %v6849_v35, %s9211_s1  ;;  %v7000_v7 = vpop.permute.xlu1 %3899 }
 0x70b   : > { %9322 = vst [vmem:[#allocation54_spill] sm:$0xff] %v7000_v7  ;;  %v7003_v57 = vmul.f32 %v2474_v18, %v6050_v55  ;;  %v3498_v46 = vsel %vm3497_vm11, %v3494_v45, %v2282_v20  ;;  %v2387_v12 = vrot.slane %v2386_v40, 2  ;;  %v2491_v52 = vsel %vm551_vm3, %v2487_v0, 0.0 }
 0x70c   : > { %v2528_v50 = vsel %vm9065_vm9, %v9310_v15, %v9320_v38  ;;  %v2335_v30 = vrot.slane %v2334_v9, 1  ;;  %v2440_v2 = vadd.f32 %v2439_v42, %v2438_v39  ;;  %v2492_v28 = vadd.f32 %v2491_v52, %v2490_v32  ;;  %v7010_v24 = vpop.permute.xlu0 %2521  ;;  %3803 = vrot.lane.b32.xlu1 %v6959_v60, %s9201_s29 }
 0x70d   : > { %9323 = vst [vmem:[#allocation17_spill] sm:$0xff] %v7003_v57  ;;  %9324 = vst [vmem:[#allocation56_spill] sm:$0xff] %v7010_v24  ;;  %v7015_v18 = vsel %vm554_vm2, %v2486_v26, 0.0  ;;  %v2540_v45 = vmul.f32 %v2529_v31, %v6048_v48  ;;  %v2388_v20 = vadd.f32 %v2387_v12, %v2386_v40  ;;  %v2541_v0 = vmul.f32 %v7010_v24, %v6056_v19  ;;  %v9328_v31 = vld [vmem:[#allocation19_spill] sm:$0xff]  ;;  %v9329_v40 = vld [vmem:[#allocation58_spill] sm:$0xff] }
 0x70e   : > { %9325 = vst [vmem:[#allocation55_spill] sm:$0xff] %v7015_v18  ;;  %v2652_v7 = vsel %vm551_vm3, %v2646_v41, 0.0  ;;  %vm2689_vm9 = vcmask 15360   ;;  %vm2743_vm4 = vcmask 7168   ;;  %v2336_v15 = vadd.f32 %v2335_v30, %v2334_v9  ;;  %4227 = vrot.lane.b32.xlu0 %v6849_v35, %s9213_s2  ;;  %v7023_v38 = vpop.permute.xlu1 %3945 }
 0x70f   : > { %v2441_v32 = vrot.slane %v2440_v2, 2  ;;  %v2493_v39 = vrot.slane %v2492_v28, 4  ;;  %9326 = vst [vmem:[#allocation98_spill] sm:$0xff] %v7023_v38  ;;  %v7026_v26 = vmul.f32 %v2528_v50, %v6050_v55  ;;  %v2583_v42 = vsel %vm9069_vm6, %v9329_v40, %v9328_v31  ;;  %v9332_v38 = vld [vmem:[#allocation57_spill] sm:$0xff] }
 0x710   : > { %v2389_v12 = vrot.slane %v2388_v20, 1  ;;  %v2545_v41 = vsel %vm551_vm3, %v2541_v0, 0.0  ;;  %v3502_v52 = vsel %vm3501_vm14, %v3498_v46, %v2336_v15  ;;  %v7034_v18 = vpop.permute.xlu0 %2575  ;;  %3849 = vrot.lane.b32.xlu1 %v6959_v60, %s9202_s28  ;;  %v7039_v50 = vsel %vm554_vm2, %v2540_v45, 0.0 }
 0x711   : > { %9327 = vst [vmem:[#allocation99_spill] sm:$0xff] %v7026_v26  ;;  %v2442_v9 = vadd.f32 %v2441_v32, %v2440_v2  ;;  %v2494_v30 = vadd.f32 %v2493_v39, %v2492_v28  ;;  %v2546_v24 = vadd.f32 %v2545_v41, %v6952_v43  ;;  %9330 = vst [vmem:[#allocation19_spill] sm:$0xff] %v7034_v18  ;;  %v9334_v32 = vld [vmem:[#allocation21_spill] sm:$0xff]  ;;  %v9335_v39 = vld [vmem:[#allocation60_spill] sm:$0xff]  ;;  %vm2828_vm7 = vcmask 1039360  }
 0x712   : > { %9331 = vst [vmem:[#allocation58_spill] sm:$0xff] %v7039_v50  ;;  %v2700_v31 = vmul.f32 %v9332_v38, %v6043_v1  ;;  %v2390_v26 = vadd.f32 %v2389_v12, %v2388_v20  ;;  %v2595_v0 = vmul.f32 %v7034_v18, %v6056_v19  ;;  %v2582_v46 = vsel %vm9069_vm6, %v9312_v63, %v9329_v40  ;;  %v7050_v15 = vpop.permute.xlu1 %3991 }
 0x713   : > { %v2443_v43 = vrot.slane %v2442_v9, 1  ;;  %v2495_v2 = vrot.slane %v2494_v30, 2  ;;  %v2547_v28 = vrot.slane %v2546_v24, 4  ;;  %1839 = vrot.lane.b32.xlu0 %v6711_v10, %s9199_s30  ;;  %9333 = vst [vmem:[#allocation57_spill] sm:$0xff] %v7050_v15  ;;  %v2594_v45 = vmul.f32 %v2583_v42, %v6048_v48 }
 0x714   : > { %v2637_v20 = vsel %vm9074_vm1, %v9335_v39, %v9334_v32  ;;  %v3505_v12 = vsel %vm9072_vm0, %v3502_v52, %v2390_v26  ;;  %v2599_v41 = vsel %vm551_vm3, %v2595_v0, 0.0  ;;  %vm9087_vm6 = vcmask 1031168   ;;  %v7059_v10 = vpop.permute.xlu0 %2629  ;;  %3895 = vrot.lane.b32.xlu1 %v6959_v60, %s9204_s19  ;;  %v9338_v26 = vld [vmem:[#allocation59_spill] sm:$0xff] }
 0x715   : > { %v2444_v63 = vadd.f32 %v2443_v43, %v2442_v9  ;;  %v2496_v40 = vadd.f32 %v2495_v2, %v2494_v30  ;;  %v2548_v50 = vadd.f32 %v2547_v28, %v2546_v24  ;;  %v2600_v18 = vadd.f32 %v2599_v41, %v6984_v23  ;;  %9336 = vst [vmem:[#allocation21_spill] sm:$0xff] %v7059_v10  ;;  %v7072_v43 = vld [vmem:[#allocation4 + $0x48] sm:$0xff] }
 0x716   : > { %v7064_v42 = vmul.f32 %v2582_v46, %v6050_v55  ;;  %v2706_v32 = vsel %vm551_vm3, %v2700_v31, 0.0  ;;  %v2754_v52 = vmul.f32 %v9338_v26, %v6043_v1  ;;  %v2649_v9 = vmul.f32 %v7059_v10, %v6056_v19  ;;  %v7076_v46 = vpop.permute.xlu1 %4037 }
 0x717   : > { %v3509_v24 = vsel %vm9071_vm5, %v3505_v12, %v2444_v63  ;;  %v2497_v30 = vrot.slane %v2496_v40, 1  ;;  %v2549_v23 = vrot.slane %v2548_v50, 2  ;;  %v2601_v0 = vrot.slane %v2600_v18, 4  ;;  %3713 = vrot.lane.b32.xlu0 %v7072_v43, %s9199_s30  ;;  %9339 = vst [vmem:[#allocation59_spill] sm:$0xff] %v7076_v46  ;;  %v9343_v46 = vld [vmem:[#allocation62_spill] sm:$0xff] }
 0x718   : > { %9337 = vst [vmem:[#allocation60_spill] sm:$0xff] %v7064_v42  ;;  %v7079_v31 = vsel %vm554_vm2, %v2594_v45, 0.0  ;;  %v2636_v2 = vsel %vm9074_vm1, %v9321_v47, %v9335_v39  ;;  %v2648_v28 = vmul.f32 %v2637_v20, %v6048_v48  ;;  %vm9081_vm5 = vcmask 900096   ;;  %v7086_v42 = vpop.permute.xlu0 %2683  ;;  %3941 = vrot.lane.b32.xlu1 %v6959_v60, %s9206_s20  ;;  %v9342_v45 = vld [vmem:[#allocation23_spill] sm:$0xff]  ;;  %v9344_v39 = vld [vmem:[#allocation25_spill] sm:$0xff]  ;;  %v9345_v20 = vld [vmem:[#allocation64_spill] sm:$0xff] }
 0x719   : > { %9340 = vst [vmem:[#allocation100_spill] sm:$0xff] %v7079_v31  ;;  %v2653_v12 = vsel %vm551_vm3, %v2649_v9, 0.0  ;;  %vm9080_vm0 = vcmask 891904   ;;  %v2498_v41 = vadd.f32 %v2497_v30, %v2496_v40  ;;  %v2550_v63 = vadd.f32 %v2549_v23, %v2548_v50  ;;  %9341 = vst [vmem:[#allocation101_spill] sm:$0xff] %v7086_v42 }
 0x71a   : > { %v2602_v15 = vadd.f32 %v2601_v0, %v2600_v18  ;;  %v2654_v10 = vadd.f32 %v2653_v12, %v2652_v7  ;;  %v2691_v31 = vsel %vm2689_vm9, %v9343_v46, %v9342_v45  ;;  %v2760_v47 = vsel %vm551_vm3, %v2754_v52, 0.0  ;;  %v7102_v23 = vpop.permute.xlu1 %4083 }
 0x71b   : > { %v2745_v9 = vsel %vm2743_vm4, %v9345_v20, %v9344_v39  ;;  %v2703_v50 = vmul.f32 %v7086_v42, %v6056_v19  ;;  %vm9078_vm1 = vcmask 883712   ;;  %v3513_v7 = vsel %vm3512_vm10, %v3509_v24, %v2498_v41  ;;  %3759 = vrot.lane.b32.xlu0 %v7072_v43, %s9200_s0  ;;  %9346 = vst [vmem:[#allocation23_spill] sm:$0xff] %v7102_v23 }
 0x71c   : > { %v2551_v18 = vrot.slane %v2550_v63, 1  ;;  %v2603_v40 = vrot.slane %v2602_v15, 2  ;;  %v2655_v30 = vrot.slane %v2654_v10, 4  ;;  %v7105_v52 = vmul.f32 %v2636_v2, %v6050_v55  ;;  %v7114_v57 = vpop.permute.xlu0 %2737  ;;  %3987 = vrot.lane.b32.xlu1 %v6959_v60, %s9208_s15 }
 0x71d   : > { %v7108_v0 = vsel %vm554_vm2, %v2648_v28, 0.0  ;;  %v2690_v12 = vsel %vm2689_vm9, %v9332_v38, %v9343_v46  ;;  %v2707_v24 = vsel %vm551_vm3, %v2703_v50, 0.0  ;;  %9347 = vst [vmem:[#allocation62_spill] sm:$0xff] %v7114_v57  ;;  %v2702_v2 = vmul.f32 %v2691_v31, %v6048_v48  ;;  %v9348_v46 = vld [vmem:[#allocation66_spill] sm:$0xff] }
 0x71e   : > { %v2552_v41 = vadd.f32 %v2551_v18, %v2550_v63  ;;  %v2604_v45 = vadd.f32 %v2603_v40, %v2602_v15  ;;  %v2656_v39 = vadd.f32 %v2655_v30, %v2654_v10  ;;  %v2708_v42 = vadd.f32 %v2707_v24, %v2706_v32  ;;  %v9349_v15 = vld [vmem:[#allocation61_spill] sm:$0xff]  ;;  %v7133_v31 = vpop.permute.xlu1 %4129  ;;  %v9355_v18 = vld [vmem:[#allocation63_spill] sm:$0xff] }
 0x71f   : > { %v2744_v28 = vsel %vm2743_vm4, %v9338_v26, %v9345_v20  ;;  %v2756_v23 = vmul.f32 %v2745_v9, %v6048_v48  ;;  %v2757_v38 = vmul.f32 %v7114_v57, %v6056_v19  ;;  %v2829_v10 = vsel %vm2828_vm7, %v9349_v15, %v9348_v46  ;;  %3805 = vrot.lane.b32.xlu0 %v7072_v43, %s9201_s29  ;;  %v9353_v48 = vld [vmem:[#allocation27_spill] sm:$0xff]  ;;  %v9354_v9 = vld [vmem:[#allocation68_spill] sm:$0xff] }
 0x720   : > { %v7129_v32 = vsel %vm3516_vm12, %v3513_v7, %v2552_v41  ;;  %v2657_v63 = vrot.slane %v2656_v39, 2  ;;  %v2709_v50 = vrot.slane %v2708_v42, 4  ;;  %9351 = vst [vmem:[#allocation64_spill] sm:$0xff] %v7133_v31  ;;  %v7136_v26 = vmul.f32 %v2690_v12, %v6050_v55  ;;  %4033 = vrot.lane.b32.xlu1 %v6959_v60, %s9209_s26  ;;  %v9364_v31 = vld [vmem:[#allocation72_spill] sm:$0xff] }
 0x721   : > { %9350 = vst [vmem:[#allocation25_spill] sm:$0xff] %v7129_v32  ;;  %v2830_v20 = vsel %vm2828_vm7, %v9348_v46, %v9353_v48  ;;  %v2883_v40 = vsel %vm9087_vm6, %v9355_v18, %v9354_v9  ;;  %v2761_v7 = vsel %vm551_vm3, %v2757_v38, 0.0  ;;  %v2605_v30 = vrot.slane %v2604_v45, 1  ;;  %v7145_v32 = vpop.permute.xlu0 %2822  ;;  %v9360_v18 = vld [vmem:[#allocation70_spill] sm:$0xff] }
 0x722   : > { %9352 = vst [vmem:[#allocation66_spill] sm:$0xff] %v7136_v26  ;;  %v2658_v24 = vadd.f32 %v2657_v63, %v2656_v39  ;;  %v2710_v41 = vadd.f32 %v2709_v50, %v2708_v42  ;;  %v2762_v15 = vadd.f32 %v2761_v7, %v2760_v47  ;;  %9356 = vst [vmem:[#allocation61_spill] sm:$0xff] %v7145_v32  ;;  %v7150_v12 = vsel %vm554_vm2, %v2702_v2, 0.0  ;;  %v9361_v39 = vld [vmem:[#allocation65_spill] sm:$0xff]  ;;  %v7164_v2 = vpop.permute.xlu1 %4175 }
 0x723   : > { %9357 = vst [vmem:[#allocation27_spill] sm:$0xff] %v7150_v12  ;;  %v7153_v46 = vmul.f32 %v2744_v28, %v6050_v55  ;;  %v7156_v48 = vsel %vm554_vm2, %v2756_v23, 0.0  ;;  %v2839_v38 = vmul.f32 %v2829_v10, %v6043_v1  ;;  %v2937_v42 = vsel %vm9081_vm5, %v9361_v39, %v9360_v18  ;;  %3851 = vrot.lane.b32.xlu0 %v7072_v43, %s9202_s28  ;;  %v9363_v7 = vld [vmem:[#allocation29_spill] sm:$0xff] }
 0x724   : > { %9359 = vst [vmem:[#allocation63_spill] sm:$0xff] %v7156_v48  ;;  %v2659_v47 = vrot.slane %v2658_v24, 1  ;;  %v2711_v63 = vrot.slane %v2710_v41, 2  ;;  %v2763_v50 = vrot.slane %v2762_v15, 4  ;;  %9362 = vst [vmem:[#allocation70_spill] sm:$0xff] %v7164_v2  ;;  %v7167_v28 = vmul.f32 %v2830_v20, %v6050_v55  ;;  %v9365_v48 = vld [vmem:[#allocation67_spill] sm:$0xff]  ;;  %4079 = vrot.lane.b32.xlu1 %v6959_v60, %s9264_s9 }
 0x725   : > { %9358 = vst [vmem:[#allocation68_spill] sm:$0xff] %v7153_v46  ;;  %v2884_v23 = vsel %vm9087_vm6, %v9354_v9, %v9363_v7  ;;  %v2893_v10 = vmul.f32 %v2883_v40, %v6043_v1  ;;  %v2991_v39 = vsel %vm9080_vm0, %v9365_v48, %v9364_v31  ;;  %v2606_v46 = vadd.f32 %v2605_v30, %v2604_v45  ;;  %v7176_v26 = vpop.permute.xlu0 %2876  ;;  %v9367_v20 = vld [vmem:[#allocation31_spill] sm:$0xff]  ;;  %v9368_v40 = vld [vmem:[#allocation33_spill] sm:$0xff]  ;;  %v9369_v48 = vld [vmem:[#allocation74_spill] sm:$0xff] }
 0x726   : > { %v2660_v32 = vadd.f32 %v2659_v47, %v2658_v24  ;;  %v2712_v12 = vadd.f32 %v2711_v63, %v2710_v41  ;;  %v2764_v57 = vadd.f32 %v2763_v50, %v2762_v15  ;;  %9366 = vst [vmem:[#allocation65_spill] sm:$0xff] %v7176_v26  ;;  %v2938_v2 = vsel %vm9081_vm5, %v9360_v18, %v9367_v20  ;;  %v9370_v45 = vld [vmem:[#allocation69_spill] sm:$0xff]  ;;  %v9371_v24 = vld [vmem:[#allocation76_spill] sm:$0xff]  ;;  %v9372_v41 = vld [vmem:[#allocation71_spill] sm:$0xff]  ;;  %v7196_v18 = vpop.permute.xlu1 %4221 }
 0x727   : > { %v2947_v9 = vmul.f32 %v2937_v42, %v6043_v1  ;;  %v2992_v7 = vsel %vm9080_vm0, %v9364_v31, %v9368_v40  ;;  %v3045_v30 = vsel %vm9078_vm1, %v9370_v45, %v9369_v48  ;;  %v3098_v15 = vsel %vm9079_vm13, %v9372_v41, %v9371_v24  ;;  %3897 = vrot.lane.b32.xlu0 %v7072_v43, %s9204_s19  ;;  %v9374_v45 = vld [vmem:[#allocation35_spill] sm:$0xff] }
 0x728   : > { %v3520_v47 = vsel %vm3493_vm8, %v2606_v46, %v2660_v32  ;;  %v2713_v63 = vrot.slane %v2712_v12, 1  ;;  %v2765_v50 = vrot.slane %v2764_v57, 2  ;;  %9373 = vst [vmem:[#allocation29_spill] sm:$0xff] %v7196_v18  ;;  %v7199_v42 = vsel %vm551_vm3, %v2839_v38, 0.0  ;;  %4125 = vrot.lane.b32.xlu1 %v6959_v60, %s9267_s10 }
 0x729   : > { %v7202_v31 = vmul.f32 %v2884_v23, %v6050_v55  ;;  %v7205_v20 = vsel %vm551_vm3, %v2893_v10, 0.0  ;;  %v3001_v40 = vmul.f32 %v2991_v39, %v6043_v1  ;;  %v3046_v32 = vsel %vm9078_vm1, %v9369_v48, %v9374_v45  ;;  %v7212_v18 = vpop.permute.xlu0 %2930  ;;  %v9379_v48 = vld [vmem:[#allocation37_spill] sm:$0xff]  ;;  %v9385_v45 = vld [vmem:[#allocation18_spill] sm:$0xff] }
 0x72a   : > { %v3055_v46 = vmul.f32 %v3045_v30, %v6043_v1  ;;  %v2714_v41 = vadd.f32 %v2713_v63, %v2712_v12  ;;  %v2766_v26 = vadd.f32 %v2765_v50, %v2764_v57  ;;  %9375 = vst [vmem:[#allocation72_spill] sm:$0xff] %v7212_v18  ;;  %v7217_v38 = vmul.f32 %v2938_v2, %v6050_v55  ;;  %v9380_v12 = vld [vmem:[#allocation80_spill] sm:$0xff]  ;;  %v9381_v30 = vld [vmem:[#allocation75_spill] sm:$0xff] }
 0x72b   : > { %v7220_v23 = vsel %vm551_vm3, %v2947_v9, 0.0  ;;  %v7223_v10 = vmul.f32 %v2992_v7, %v6050_v55  ;;  %v3108_v39 = vmul.f32 %v3098_v15, %v6043_v1  ;;  %v3099_v57 = vsel %vm9079_vm13, %v9371_v24, %v9379_v48  ;;  %3943 = vrot.lane.b32.xlu0 %v7072_v43, %s9206_s20  ;;  %v2147_v9 = vpop.permute.xlu1 %2146  ;;  %v5373_v18 = vld [vmem:[#allocation4 + $0x50] sm:$0xff] }
 0x72c   : > { %9376 = vst [vmem:[#allocation67_spill] sm:$0xff] %v7217_v38  ;;  %9377 = vst [vmem:[#allocation31_spill] sm:$0xff] %v7220_v23  ;;  %v3213_v63 = vsel %vm9085_vm15, %v9381_v30, %v9380_v12  ;;  %v3523_v50 = vsel %vm3497_vm11, %v3520_v47, %v2714_v41  ;;  %v2767_v2 = vrot.slane %v2766_v26, 1  ;;  %v7236_v7 = vsel %vm551_vm3, %v3001_v40, 0.0  ;;  %4171 = vrot.lane.b32.xlu1 %v6959_v60, %s9211_s1 }
 0x72d   : > { %9378 = vst [vmem:[#allocation33_spill] sm:$0xff] %v7223_v10  ;;  %9382 = vst [vmem:[#allocation74_spill] sm:$0xff] %v7236_v7  ;;  %v7239_v15 = vmul.f32 %v3046_v32, %v6050_v55  ;;  %vm9384_vm1 = vcmask 343040   ;;  %v7246_v30 = vsel %vm551_vm3, %v3055_v46, 0.0  ;;  %v7248_v41 = vpop.permute.xlu0 %2984  ;;  %v9389_v10 = vld [vmem:[#allocation11_spill] sm:$0xff]  ;;  %v7255_v32 = vmul.f32 %v3099_v57, %v6050_v55 }
 0x72e   : > { %v2152_v24 = vsel %vm9384_vm1, %v6804_v11, %v2147_v9  ;;  %vm9386_vm13 = vmmov %vm9384_vm1  ;;  %9387 = vst [vmem:[#allocation76_spill] sm:$0xff] %v7246_v30  ;;  %v2768_v47 = vadd.f32 %v2767_v2, %v2766_v26  ;;  %v7258_v11 = vsel %vm551_vm3, %v3108_v39, 0.0  ;;  %v3225_v26 = vmul.f32 %v3213_v63, %v6043_v1  ;;  %v9395_v2 = vld [vmem:[#allocation41_spill] sm:$0xff] }
 0x72f   : > { %9383 = vst [vmem:[#allocation69_spill] sm:$0xff] %v7239_v15  ;;  %v2153_v48 = vsel %vm9386_vm13, %v2147_v9, %v9385_v45  ;;  %9388 = vst [vmem:[#allocation71_spill] sm:$0xff] %v7248_v41  ;;  %v2164_v38 = vmul.f32 %v2152_v24, %v9389_v10  ;;  %v9392_v9 = vld [vmem:[#allocation78_spill] sm:$0xff]  ;;  %v9393_v45 = vld [vmem:[#allocation73_spill] sm:$0xff]  ;;  %vm9394_vm13 = vcmask 867328   ;;  %v3214_v24 = vsel %vm9085_vm15, %v9380_v12, %v9395_v2  ;;  %3989 = vrot.lane.b32.xlu0 %v7072_v43, %s9208_s15 }
 0x730   : > { %v2165_v40 = vmul.f32 %v2153_v48, %v6062_v3  ;;  %9390 = vst [vmem:[#allocation35_spill] sm:$0xff] %v7255_v32  ;;  %9391 = vst [vmem:[#allocation37_spill] sm:$0xff] %v7258_v11  ;;  %v3151_v46 = vsel %vm9394_vm13, %v9393_v45, %v9392_v9  ;;  %v3526_v48 = vsel %vm3501_vm14, %v3523_v50, %v2768_v47  ;;  %v2200_v11 = vpop.permute.xlu1 %2199  ;;  %vm9396_vm1 = vcmask 1043456   ;;  %v9399_v12 = vld [vmem:[#allocation20_spill] sm:$0xff]  ;;  %v9401_v47 = vld [vmem:[#allocation39_spill] sm:$0xff]  ;;  %4217 = vrot.lane.b32.xlu1 %v6959_v60, %s9213_s2 }
 0x731   : > { %v2175_v57 = vadd.f32 %v2164_v38, %v6825_v21  ;;  %v7274_v32 = vsel %vm9396_vm1, %v3526_v48, %v6733_v29  ;;  %vm9398_vm13 = vcmask 334848   ;;  %vm9402_vm5 = vcmask 867328   ;;  %v7286_v21 = vpop.permute.xlu0 %3038  ;;  %v9404_v48 = vld [vmem:[#allocation82_spill] sm:$0xff] }
 0x732   : > { %v2183_v39 = vsel %vm554_vm2, %v2165_v40, 0.0  ;;  %9397 = vst [vmem:[#allocation80_spill] sm:$0xff] %v7274_v32  ;;  %v2206_v45 = vsel %vm9398_vm13, %v6832_v62, %v2200_v11  ;;  %vm9400_vm0 = vmmov %vm9398_vm13  ;;  %v7284_v2 = vsel %vm9402_vm5, %v9392_v9, %v9401_v47  ;;  %v7293_v62 = vmul.f32 %v3151_v46, %v6043_v1  ;;  %v9408_v15 = vld [vmem:[#allocation22_spill] sm:$0xff] }
 0x733   : > { %v2184_v63 = vadd.f32 %v2183_v39, %v6840_v16  ;;  %v2207_v50 = vsel %vm9400_vm0, %v2200_v11, %v9399_v12  ;;  %9403 = vst [vmem:[#allocation75_spill] sm:$0xff] %v7286_v21  ;;  %v2176_v38 = vrot.slane %v2175_v57, 4  ;;  %v2218_v40 = vmul.f32 %v2206_v45, %v9389_v10  ;;  %v9405_v39 = vld [vmem:[#allocation77_spill] sm:$0xff]  ;;  %4035 = vrot.lane.b32.xlu0 %v7072_v43, %s9209_s26 }
 0x734   : > { %v2219_v29 = vmul.f32 %v2207_v50, %v6062_v3  ;;  %v7296_v16 = vmul.f32 %v3214_v24, %v6050_v55  ;;  %v7299_v11 = vsel %vm551_vm3, %v3225_v26, 0.0  ;;  %vm9406_vm5 = vcmask 728064   ;;  %v2254_v47 = vpop.permute.xlu1 %2253  ;;  %4287 = vrot.lane.b32.xlu1 %v6959_v60, %s9216_s3 }
 0x735   : > { %v2185_v9 = vrot.slane %v2184_v63, 4  ;;  %v3273_v12 = vsel %vm9406_vm5, %v9405_v39, %v9404_v48  ;;  %v2177_v45 = vadd.f32 %v2176_v38, %v2175_v57  ;;  %v2229_v50 = vadd.f32 %v2218_v40, %v6860_v54  ;;  %v7313_v39 = vpop.permute.xlu0 %3092  ;;  %vm9411_vm13 = vmmov %vm9406_vm5 }
 0x736   : > { %v2237_v46 = vsel %vm554_vm2, %v2219_v29, 0.0  ;;  %vm9407_vm0 = vcmask 326656   ;;  %9410 = vst [vmem:[#allocation18_spill] sm:$0xff] %v7313_v39  ;;  %vm9412_vm5 = vcmask 318464  }
 0x737   : > { %v2186_v30 = vadd.f32 %v2185_v9, %v2184_v63  ;;  %v2238_v24 = vadd.f32 %v2237_v46, %v6863_v5  ;;  %v2260_v26 = vsel %vm9407_vm0, %v6867_v51, %v2254_v47  ;;  %vm9409_vm1 = vmmov %vm9407_vm0  ;;  %v2178_v21 = vrot.slane %v2177_v45, 2  ;;  %4081 = vrot.lane.b32.xlu0 %v7072_v43, %s9264_s9 }
 0x738   : > { %v2261_v7 = vsel %vm9409_vm1, %v2254_v47, %v9408_v15  ;;  %v2230_v41 = vrot.slane %v2229_v50, 4  ;;  %v2272_v57 = vmul.f32 %v2260_v26, %v9389_v10  ;;  %v7322_v5 = vsel %vm9411_vm13, %v9404_v48, %v6386_v59  ;;  %v2308_v9 = vpop.permute.xlu1 %2307  ;;  %vm9415_vm0 = vmmov %vm9412_vm5  ;;  %1841 = vrot.lane.b32.xlu1 %v6714_v27, %s9199_s30 }
 0x739   : > { %v2273_v54 = vmul.f32 %v2261_v7, %v6062_v3  ;;  %v7325_v51 = vmul.f32 %v3273_v12, %v6043_v1  ;;  %v2187_v15 = vrot.slane %v2186_v30, 2  ;;  %v2239_v63 = vrot.slane %v2238_v24, 4  ;;  %v7334_v39 = vpop.permute.xlu0 %3145  ;;  %vm9416_vm1 = vmmov %vm9411_vm13 }
 0x73a   : > { %v2179_v38 = vadd.f32 %v2178_v21, %v2177_v45  ;;  %v2231_v40 = vadd.f32 %v2230_v41, %v2229_v50  ;;  %v2283_v7 = vadd.f32 %v2272_v57, %v6875_v4  ;;  %v2314_v48 = vsel %vm9412_vm5, %v6900_v58, %v2308_v9  ;;  %9413 = vst [vmem:[#allocation11_spill] sm:$0xff] %v7334_v39  ;;  %v9414_v45 = vld [vmem:[#allocation24_spill] sm:$0xff]  ;;  %vm9420_vm5 = vmmov %vm9416_vm1 }
 0x73b   : > { %v2291_v29 = vsel %vm554_vm2, %v2273_v54, 0.0  ;;  %v2188_v46 = vadd.f32 %v2187_v15, %v2186_v30  ;;  %v2240_v47 = vadd.f32 %v2239_v63, %v2238_v24  ;;  %v2315_v41 = vsel %vm9415_vm0, %v2308_v9, %v9414_v45  ;;  %4127 = vrot.lane.b32.xlu0 %v7072_v43, %s9267_s10 }
 0x73c   : > { %v2292_v59 = vadd.f32 %v2291_v29, %v6893_v6  ;;  %v2180_v12 = vrot.slane %v2179_v38, 1  ;;  %v2232_v26 = vrot.slane %v2231_v40, 2  ;;  %v2284_v21 = vrot.slane %v2283_v7, 4  ;;  %v2362_v15 = vpop.permute.xlu1 %2361  ;;  %4291 = vrot.lane.b32.xlu1 %v5373_v18, %s9216_s3 }
 0x73d   : > { %v2189_v4 = vrot.slane %v2188_v46, 1  ;;  %v2241_v50 = vrot.slane %v2240_v47, 2  ;;  %v2326_v24 = vmul.f32 %v2314_v48, %v9389_v10  ;;  %v3487_v6 = vrot.slane %v6822_v37, 4  ;;  %v3207_v32 = vpop.permute.xlu0 %3206 }
 0x73e   : > { %v2293_v30 = vrot.slane %v2292_v59, 4  ;;  %v2233_v57 = vadd.f32 %v2232_v26, %v2231_v40  ;;  %v2285_v58 = vadd.f32 %v2284_v21, %v2283_v7  ;;  %v2327_v54 = vmul.f32 %v2315_v41, %v6062_v3 }
 0x73f   : > { %v2181_v63 = vadd.f32 %v2180_v12, %v2179_v38  ;;  %v2242_v29 = vadd.f32 %v2241_v50, %v2240_v47  ;;  %v2337_v27 = vadd.f32 %v2326_v24, %v6923_v44  ;;  %v2190_v45 = vadd.f32 %v2189_v4, %v2188_v46  ;;  %4173 = vrot.lane.b32.xlu0 %v7072_v43, %s9211_s1 }
 0x740   : > { %v2294_v9 = vadd.f32 %v2293_v30, %v2292_v59  ;;  %v2234_v39 = vrot.slane %v2233_v57, 1  ;;  %v2286_v23 = vrot.slane %v2285_v58, 2  ;;  %v2345_v48 = vsel %vm554_vm2, %v2327_v54, 0.0  ;;  %v7356_v12 = vpop.permute.xlu1 %2415  ;;  %4333 = vrot.lane.b32.xlu1 %v6959_v60, %s9219_s22  ;;  %v9417_v60 = vld [vmem:[#allocation84_spill] sm:$0xff] }
 0x741   : > { %v2243_v40 = vrot.slane %v2242_v29, 1  ;;  %v3216_v7 = vsel %vm9085_vm15, %v6753_v56, %v3207_v32  ;;  %v3217_v38 = vsel %vm9085_vm15, %v3207_v32, %v6663_v25  ;;  %v2338_v41 = vrot.slane %v2337_v27, 4  ;;  %v3267_v32 = vpop.permute.xlu0 %3266 }
 0x742   : > { %v2295_v26 = vrot.slane %v2294_v9, 2  ;;  %v2235_v47 = vadd.f32 %v2234_v39, %v2233_v57  ;;  %v2287_v59 = vadd.f32 %v2286_v23, %v2285_v58  ;;  %v3228_v44 = vmul.f32 %v3216_v7, %v6056_v19  ;;  %v7386_v7 = vld [vmem:[#allocation4 + $0x68] sm:$0xff] }
 0x743   : > { %v3229_v46 = vmul.f32 %v3217_v38, %v9389_v10  ;;  %v2244_v18 = vadd.f32 %v2243_v40, %v2242_v29  ;;  %v2346_v4 = vadd.f32 %v2345_v48, %v6926_v34  ;;  %v2339_v57 = vadd.f32 %v2338_v41, %v2337_v27  ;;  %4219 = vrot.lane.b32.xlu0 %v7072_v43, %s9213_s2  ;;  %v9418_v29 = vld [vmem:[#allocation79_spill] sm:$0xff] }
 0x744   : > { %v2296_v21 = vadd.f32 %v2295_v26, %v2294_v9  ;;  %v3495_v56 = vsel %vm3493_vm8, %v2181_v63, %v2235_v47  ;;  %v2288_v50 = vrot.slane %v2287_v59, 1  ;;  %v3232_v25 = vsel %vm551_vm3, %v3228_v44, 0.0  ;;  %v7376_v63 = vpop.permute.xlu1 %2469  ;;  %3719 = vrot.lane.b32.xlu1 %v7386_v7, %s9199_s30 }
 0x745   : > { %v7362_v23 = vadd.f32 %v3229_v46, %v7296_v16  ;;  %v3496_v39 = vsel %vm3493_vm8, %v2190_v45, %v2244_v18  ;;  %v7368_v24 = vadd.f32 %v3232_v25, %v7299_v11  ;;  %v3286_v34 = vmul.f32 %v7322_v5, %v6050_v55  ;;  %v3327_v26 = vpop.permute.xlu0 %3326  ;;  %v9422_v46 = vld [vmem:[#allocation26_spill] sm:$0xff] }
 0x746   : > { %v2297_v30 = vrot.slane %v2296_v21, 1  ;;  %v2289_v58 = vadd.f32 %v2288_v50, %v2287_v59  ;;  %v2347_v54 = vrot.slane %v2346_v4, 4  ;;  %v3276_v16 = vsel %vm9416_vm1, %v6770_v49, %v3267_v32 }
 0x747   : > { %vm9419_vm13 = vcmask 719872   ;;  %v2340_v45 = vrot.slane %v2339_v57, 2  ;;  %v3277_v27 = vsel %vm9420_vm5, %v3267_v32, %v6675_v13  ;;  %v3488_v5 = vadd.f32 %v3487_v6, %v6822_v37  ;;  %4289 = vrot.lane.b32.xlu0 %v7072_v43, %s9216_s3 }
 0x748   : > { %v3332_v9 = vsel %vm9419_vm13, %v9418_v29, %v9417_v60  ;;  %v2298_v11 = vadd.f32 %v2297_v30, %v2296_v21  ;;  %v3499_v48 = vsel %vm3497_vm11, %v3495_v56, %v2289_v58  ;;  %v2348_v40 = vadd.f32 %v2347_v54, %v2346_v4  ;;  %v7401_v21 = vpop.permute.xlu1 %2523  ;;  %3765 = vrot.lane.b32.xlu1 %v7386_v7, %s9200_s0  ;;  %v9424_v30 = vld [vmem:[#allocation85_spill] sm:$0xff] }
 0x749   : > { %v3288_v49 = vmul.f32 %v3276_v16, %v6056_v19  ;;  %v2341_v47 = vadd.f32 %v2340_v45, %v2339_v57  ;;  %v3289_v59 = vmul.f32 %v3277_v27, %v9389_v10  ;;  %vm9421_vm0 = vcmask 310272   ;;  %v7413_v32 = vpop.permute.xlu0 %3385  ;;  %v9425_v57 = vld [vmem:[#allocation81_spill] sm:$0xff] }
 0x74a   : > { %v3500_v38 = vsel %vm3497_vm11, %v3496_v39, %v2298_v11  ;;  %v2368_v13 = vsel %vm9421_vm0, %v6929_v36, %v2362_v15  ;;  %v3291_v37 = vsel %vm551_vm3, %v7325_v51, 0.0  ;;  %v2349_v6 = vrot.slane %v2348_v40, 2  ;;  %vm9423_vm1 = vmmov %vm9421_vm0 }
 0x74b   : > { %v3292_v44 = vsel %vm551_vm3, %v3288_v49, 0.0  ;;  %v2369_v18 = vsel %vm9423_vm1, %v2362_v15, %v9422_v46  ;;  %v3344_v41 = vmul.f32 %v3332_v9, %v6043_v1  ;;  %v2342_v4 = vrot.slane %v2341_v47, 1  ;;  %4297 = vrot.lane.b32.xlu0 %v6849_v35, %s9216_s3 }
 0x74c   : > { %v7404_v56 = vadd.f32 %v3292_v44, %v3291_v37  ;;  %v7406_v36 = vadd.f32 %v3289_v59, %v3286_v34  ;;  %v3333_v51 = vsel %vm9419_vm13, %v9417_v60, %v6402_v22  ;;  %v2350_v50 = vadd.f32 %v2349_v6, %v2348_v40  ;;  %3811 = vrot.lane.b32.xlu1 %v7386_v7, %s9201_s29  ;;  %v9429_v59 = vld [vmem:[#allocation83_spill] sm:$0xff] }
 0x74d   : > { %v2380_v25 = vmul.f32 %v2368_v13, %v9389_v10  ;;  %v2381_v15 = vmul.f32 %v2369_v18, %v6062_v3  ;;  %v7419_v39 = vmul.f32 %v7284_v2, %v6050_v55  ;;  %vm9426_vm5 = vcmask 711680   ;;  %v7431_v2 = vpop.permute.xlu1 %2577  ;;  %v7444_v35 = vpop.permute.xlu0 %3444 }
 0x74e   : > { %v3391_v34 = vsel %vm9426_vm5, %v9425_v57, %v9424_v30  ;;  %v3489_v58 = vrot.slane %v3488_v5, 2  ;;  %v2343_v22 = vadd.f32 %v2342_v4, %v2341_v47  ;;  %vm9427_vm0 = vmmov %vm9426_vm5  ;;  %v2351_v16 = vrot.slane %v2350_v50, 1  ;;  %v9428_v47 = vld [vmem:[#allocation86_spill] sm:$0xff] }
 0x74f   : > { %v3392_v54 = vsel %vm9427_vm0, %v9424_v30, %v6417_v14  ;;  %v2391_v60 = vadd.f32 %v2380_v25, %v6934_v8  ;;  %v2399_v29 = vsel %vm554_vm2, %v2381_v15, 0.0  ;;  %v7435_v9 = vsel %vm551_vm3, %v7293_v62, 0.0  ;;  %vm9431_vm5 = vmmov %vm9419_vm13  ;;  %4335 = vrot.lane.b32.xlu0 %v7072_v43, %s9219_s22 }
 0x750   : > { %v3345_v11 = vmul.f32 %v3333_v51, %v6050_v55  ;;  %v3350_v45 = vsel %vm551_vm3, %v3344_v41, 0.0  ;;  %v7440_v14 = vsel %vm3501_vm14, %v3499_v48, %v2343_v22  ;;  %v3403_v8 = vmul.f32 %v3391_v34, %v6043_v1  ;;  %v9432_v41 = vld [vmem:[#allocation46_spill] sm:$0xff]  ;;  %3857 = vrot.lane.b32.xlu1 %v7386_v7, %s9202_s28 }
 0x751   : > { %v2352_v27 = vadd.f32 %v2351_v16, %v2350_v50  ;;  %v2392_v40 = vrot.slane %v2391_v60, 4  ;;  %v2400_v49 = vadd.f32 %v2399_v29, %v6938_v53  ;;  %v7449_v62 = vmul.f32 %v3392_v54, %v6050_v55  ;;  %v7463_v18 = vpop.permute.xlu1 %2631  ;;  %v7477_v25 = vpop.permute.xlu0 %1843 }
 0x752   : > { %vm9430_vm1 = vcmask 703488   ;;  %v3490_v48 = vadd.f32 %v3489_v58, %v3488_v5  ;;  %v3335_v37 = vsel %vm9419_vm13, %v6792_v17, %v3327_v26  ;;  %v3336_v46 = vsel %vm9431_vm5, %v3327_v26, %v6690_v61  ;;  %v9435_v26 = vld [vmem:[#allocation28_spill] sm:$0xff] }
 0x753   : > { %v3450_v13 = vsel %vm9430_vm1, %v9429_v59, %v9428_v47  ;;  %v7457_v6 = vsel %vm3501_vm14, %v3500_v38, %v2352_v27  ;;  %v2393_v53 = vadd.f32 %v2392_v40, %v2391_v60  ;;  %v2401_v44 = vrot.slane %v2400_v49, 4  ;;  %vm9433_vm0 = vmmov %vm9430_vm1 }
 0x754   : > { %v3451_v5 = vsel %vm9433_vm0, %v9428_v47, %v9432_v41  ;;  %v3241_v4 = vrot.slane %v7362_v23, 4  ;;  %v3347_v17 = vmul.f32 %v3335_v37, %v6056_v19  ;;  %v3348_v38 = vmul.f32 %v3336_v46, %v9389_v10  ;;  %3903 = vrot.lane.b32.xlu1 %v7386_v7, %s9204_s19 }
 0x755   : > { %v2394_v51 = vrot.slane %v2393_v53, 2  ;;  %v2402_v50 = vadd.f32 %v2401_v44, %v2400_v49  ;;  %vm9434_vm1 = vcmask 179200   ;;  %v3409_v15 = vsel %vm551_vm3, %v3403_v8, 0.0  ;;  %v7492_v16 = vpop.permute.xlu1 %2685  ;;  %v9437_v49 = vld [vmem:[#allocation52_spill] sm:$0xff]  ;;  %v7502_v59 = vpop.permute.xlu0 %3721 }
 0x756   : > { %v2422_v61 = vsel %vm9434_vm1, %v6957_v33, %v7356_v12  ;;  %vm9436_vm13 = vmmov %vm9434_vm1  ;;  %vm3590_vm5 = vcmask 827392   ;;  %v3491_v30 = vrot.slane %v3490_v48, 1  ;;  %v3351_v57 = vsel %vm551_vm3, %v3347_v17, 0.0  ;;  %v9442_v17 = vld [vmem:[#allocation51_spill] sm:$0xff] }
 0x757   : > { %v2423_v43 = vsel %vm9436_vm13, %v7356_v12, %v9435_v26  ;;  %v7483_v34 = vadd.f32 %v3348_v38, %v3345_v11  ;;  %v2395_v58 = vadd.f32 %v2394_v51, %v2393_v53  ;;  %v2403_v22 = vrot.slane %v2402_v50, 2  ;;  %v7488_v12 = vld [vmem:[#allocation4 + $0x60] sm:$0xff]  ;;  %v9440_v53 = vld [vmem:[#allocation87_spill] sm:$0xff] }
 0x758   : > { %v7485_v33 = vadd.f32 %v3351_v57, %v3350_v45  ;;  %v2434_v54 = vmul.f32 %v2422_v61, %v9389_v10  ;;  %3717 = vrot.lane.b32.xlu0 %v7488_v12, %s9199_s30  ;;  %v3462_v60 = vmul.f32 %v3450_v13, %v6043_v1  ;;  %v7496_v29 = vmul.f32 %v3451_v5, %v6050_v55  ;;  %v9438_v55 = vld [vmem:[#allocation94_spill] sm:$0xff] }
 0x759   : > { %v3234_v11 = vrot.slane %v7368_v24, 4  ;;  %v2435_v8 = vmul.f32 %v2423_v43, %v6062_v3  ;;  %v3242_v45 = vadd.f32 %v3241_v4, %v7362_v23  ;;  %v2396_v27 = vrot.slane %v2395_v58, 1  ;;  %3949 = vrot.lane.b32.xlu1 %v7386_v7, %s9206_s20 }
 0x75a   : > { %v2404_v40 = vadd.f32 %v2403_v22, %v2402_v50  ;;  %v2445_v47 = vadd.f32 %v2434_v54, %v9437_v49  ;;  %v7506_v37 = vadd.f32 %v3491_v30, %v3490_v48  ;;  %vm9439_vm0 = vcmask 711680   ;;  %v7518_v48 = vpop.permute.xlu1 %2739  ;;  %v7528_v30 = vpop.permute.xlu0 %3767  ;;  %v9445_v49 = vld [vmem:[#allocation97_spill] sm:$0xff] }
 0x75b   : > { %v2453_v1 = vsel %vm554_vm2, %v2435_v8, 0.0  ;;  %v3394_v13 = vsel %vm9439_vm0, %v9438_v55, %v7413_v32  ;;  %vm9441_vm1 = vmmov %vm9439_vm0  ;;  %v3294_v44 = vrot.slane %v7404_v56, 4  ;;  %v2397_v46 = vadd.f32 %v2396_v27, %v2395_v58 }
 0x75c   : > { %v3395_v23 = vsel %vm9441_vm1, %v7413_v32, %v9440_v53  ;;  %v2405_v41 = vrot.slane %v2404_v40, 1  ;;  %v2446_v5 = vrot.slane %v2445_v47, 4  ;;  %3763 = vrot.lane.b32.xlu0 %v7488_v12, %s9200_s0  ;;  %v7521_v4 = vadd.f32 %v3234_v11, %v7368_v24 }
 0x75d   : > { %v2454_v38 = vadd.f32 %v2453_v1, %v9442_v17  ;;  %v3406_v51 = vmul.f32 %v3394_v13, %v6056_v19  ;;  %v3407_v50 = vmul.f32 %v3395_v23, %v9389_v10  ;;  %v3243_v32 = vrot.slane %v3242_v45, 2  ;;  %v9448_v13 = vld [vmem:[#allocation30_spill] sm:$0xff]  ;;  %3995 = vrot.lane.b32.xlu1 %v7386_v7, %s9208_s15 }
 0x75e   : > { %v2406_v61 = vadd.f32 %v2405_v41, %v2404_v40  ;;  %vm9443_vm13 = vcmask 1043456   ;;  %v2447_v43 = vadd.f32 %v2446_v5, %v2445_v47  ;;  %v3301_v24 = vrot.slane %v7406_v36, 4  ;;  %v7544_v27 = vpop.permute.xlu1 %2824  ;;  %v7562_v53 = vpop.permute.xlu0 %3813  ;;  %v9471_v17 = vld [vmem:[#allocation58_spill] sm:$0xff] }
 0x75f   : > { %v3506_v26 = vsel %vm9443_vm13, %v7440_v14, %v2397_v46  ;;  %v2455_v57 = vrot.slane %v2454_v38, 4  ;;  %v3410_v58 = vsel %vm551_vm3, %v3406_v51, 0.0  ;;  %v3418_v22 = vadd.f32 %v3407_v50, %v7449_v62  ;;  %vm9444_vm0 = vmmov %vm9443_vm13  ;;  %9450 = vst [vmem:[#allocation78_spill] sm:$0xff] %v7562_v53 }
 0x760   : > { %v7536_v54 = vadd.f32 %v3294_v44, %v7404_v56  ;;  %v3507_v11 = vsel %vm9444_vm0, %v7457_v6, %v2406_v61  ;;  %v2448_v14 = vrot.slane %v2447_v43, 2  ;;  %v7540_v8 = vadd.f32 %v3410_v58, %v3409_v15  ;;  %3809 = vrot.lane.b32.xlu0 %v7488_v12, %s9201_s29  ;;  %v9446_v56 = vld [vmem:[#allocation16_spill] sm:$0xff] }
 0x761   : > { %v3468_v40 = vsel %vm551_vm3, %v3462_v60, 0.0  ;;  %v7549_v47 = vsel %vm554_vm2, %v9445_v49, -inf  ;;  %v2456_v62 = vadd.f32 %v2455_v57, %v2454_v38  ;;  %vm9447_vm1 = vcmask 171008   ;;  %4041 = vrot.lane.b32.xlu1 %v7386_v7, %s9209_s26 }
 0x762   : > { %v2476_v1 = vsel %vm9447_vm1, %v9446_v56, %v7376_v63  ;;  %v7556_v6 = vsel %vm3590_vm5, %v7506_v37, -inf  ;;  %v3360_v15 = vrot.slane %v7483_v34, 4  ;;  %v2449_v55 = vadd.f32 %v2448_v14, %v2447_v43  ;;  %vm9449_vm13 = vmmov %vm9447_vm1  ;;  %v7577_v51 = vpop.permute.xlu1 %2878  ;;  %v9454_v14 = vld [vmem:[#allocation88_spill] sm:$0xff] }
 0x763   : > { %v2477_v60 = vsel %vm9449_vm13, %v7376_v63, %v9448_v13  ;;  %v7568_v44 = vadd.f32 %v3301_v24, %v7406_v36  ;;  %v2457_v46 = vrot.slane %v2456_v62, 2  ;;  %v2488_v41 = vmul.f32 %v2476_v1, %v9389_v10  ;;  %v9451_v36 = vld [vmem:[#allocation17_spill] sm:$0xff]  ;;  %v9452_v24 = vld [vmem:[#allocation95_spill] sm:$0xff]  ;;  %v7591_v1 = vpop.permute.xlu0 %3859 }
 0x764   : > { %v7571_v5 = vadd.f32 %v3243_v32, %v3242_v45  ;;  %v2450_v38 = vrot.slane %v2449_v55, 1  ;;  %v2489_v63 = vmul.f32 %v2477_v60, %v6062_v3  ;;  %3855 = vrot.lane.b32.xlu0 %v7488_v12, %s9202_s28  ;;  %v3353_v50 = vrot.slane %v7485_v33, 4  ;;  %9456 = vst [vmem:[#allocation73_spill] sm:$0xff] %v7591_v1 }
 0x765   : > { %v2458_v61 = vadd.f32 %v2457_v46, %v2456_v62  ;;  %v2499_v43 = vadd.f32 %v2488_v41, %v9451_v36  ;;  %vm9453_vm0 = vcmask 703488   ;;  %v7585_v32 = vadd.f32 %v3360_v15, %v7483_v34  ;;  %v9457_v46 = vld [vmem:[#allocation55_spill] sm:$0xff]  ;;  %4087 = vrot.lane.b32.xlu1 %v7386_v7, %s9264_s9 }
 0x766   : > { %v3453_v45 = vsel %vm9453_vm0, %v9452_v24, %v7444_v35  ;;  %v2451_v57 = vadd.f32 %v2450_v38, %v2449_v55  ;;  %v2507_v58 = vsel %vm554_vm2, %v2489_v63, 0.0  ;;  %vm9455_vm1 = vmmov %vm9453_vm0  ;;  %vm9458_vm13 = vcmask 1044480  }
 0x767   : > { %v3454_v56 = vsel %vm9455_vm1, %v7444_v35, %v9454_v14  ;;  %v2459_v13 = vrot.slane %v2458_v61, 1  ;;  %v2500_v60 = vrot.slane %v2499_v43, 4  ;;  %v2508_v41 = vadd.f32 %v2507_v58, %v9457_v46  ;;  %v7602_v35 = vpop.permute.xlu1 %2932  ;;  %v7613_v46 = vpop.permute.xlu0 %3905  ;;  %vm9462_vm1 = vmmov %vm9458_vm13 }
 0x768   : > { %v3510_v34 = vsel %vm9458_vm13, %v3506_v26, %v2451_v57  ;;  %v3419_v15 = vrot.slane %v3418_v22, 4  ;;  %v3465_v55 = vmul.f32 %v3453_v45, %v6056_v19  ;;  %v3466_v38 = vmul.f32 %v3454_v56, %v9389_v10  ;;  %3901 = vrot.lane.b32.xlu0 %v7488_v12, %s9204_s19  ;;  %v9459_v45 = vld [vmem:[#allocation56_spill] sm:$0xff]  ;;  %9461 = vst [vmem:[#allocation41_spill] sm:$0xff] %v7613_v46 }
 0x769   : > { %v7605_v63 = vadd.f32 %v3353_v50, %v7485_v33  ;;  %v2460_v36 = vadd.f32 %v2459_v13, %v2458_v61  ;;  %v2501_v24 = vadd.f32 %v2500_v60, %v2499_v43  ;;  %v2509_v14 = vrot.slane %v2508_v41, 4  ;;  %4133 = vrot.lane.b32.xlu1 %v7386_v7, %s9267_s10 }
 0x76a   : > { %v3469_v26 = vsel %vm551_vm3, %v3465_v55, 0.0  ;;  %v3477_v57 = vadd.f32 %v3466_v38, %v7496_v29  ;;  %vm9460_vm0 = vcmask 162816   ;;  %v7619_v13 = vadd.f32 %v3419_v15, %v3418_v22  ;;  %v9463_v29 = vld [vmem:[#allocation32_spill] sm:$0xff] }
 0x76b   : > { %v2530_v56 = vsel %vm9460_vm0, %v9459_v45, %v7401_v21  ;;  %v3511_v33 = vsel %vm9462_vm1, %v3507_v11, %v2460_v36  ;;  %v2502_v61 = vrot.slane %v2501_v24, 2  ;;  %v2510_v43 = vadd.f32 %v2509_v14, %v2508_v41  ;;  %vm9464_vm13 = vmmov %vm9460_vm0  ;;  %v7626_v45 = vpop.permute.xlu1 %2986  ;;  %v9467_v14 = vld [vmem:[#allocation34_spill] sm:$0xff] }
 0x76c   : > { %v3470_v60 = vadd.f32 %v3469_v26, %v3468_v40  ;;  %v3478_v55 = vrot.slane %v3477_v57, 4  ;;  %v2531_v38 = vsel %vm9464_vm13, %v7401_v21, %v9463_v29  ;;  %3947 = vrot.lane.b32.xlu0 %v7488_v12, %s9206_s20  ;;  %v2542_v11 = vmul.f32 %v2530_v56, %v9389_v10  ;;  %v9465_v40 = vld [vmem:[#allocation19_spill] sm:$0xff]  ;;  %v7636_v26 = vpop.permute.xlu0 %3951 }
 0x76d   : > { %v2503_v58 = vadd.f32 %v2502_v61, %v2501_v24  ;;  %v2511_v62 = vrot.slane %v2510_v43, 2  ;;  %v2543_v36 = vmul.f32 %v2531_v38, %v6062_v3  ;;  %vm9466_vm0 = vcmask 154624   ;;  %9469 = vst [vmem:[#allocation20_spill] sm:$0xff] %v7636_v26  ;;  %v9470_v56 = vld [vmem:[#allocation99_spill] sm:$0xff]  ;;  %4179 = vrot.lane.b32.xlu1 %v7386_v7, %s9211_s1 }
 0x76e   : > { %v3471_v41 = vrot.slane %v3470_v60, 4  ;;  %v3479_v22 = vadd.f32 %v3478_v55, %v3477_v57  ;;  %v2584_v15 = vsel %vm9466_vm0, %v9465_v40, %v7431_v2  ;;  %vm9468_vm1 = vmmov %vm9466_vm0  ;;  %vm3566_vm13 = vcmask 1040720  }
 0x76f   : > { %v2585_v21 = vsel %vm9468_vm1, %v7431_v2, %v9467_v14  ;;  %v2504_v24 = vrot.slane %v2503_v58, 1  ;;  %v2512_v61 = vadd.f32 %v2511_v62, %v2510_v43  ;;  %v2553_v29 = vadd.f32 %v2542_v11, %v9470_v56  ;;  %v7646_v2 = vpop.permute.xlu1 %3040 }
 0x770   : > { %v2561_v57 = vsel %vm554_vm2, %v2543_v36, 0.0  ;;  %v3472_v55 = vadd.f32 %v3471_v41, %v3470_v60  ;;  %v3480_v38 = vrot.slane %v3479_v22, 2  ;;  %v2596_v23 = vmul.f32 %v2584_v15, %v9389_v10  ;;  %3993 = vrot.lane.b32.xlu0 %v7488_v12, %s9208_s15  ;;  %v9472_v36 = vld [vmem:[#allocation60_spill] sm:$0xff]  ;;  %v7650_v41 = vpop.permute.xlu0 %3997 }
 0x771   : > { %v2562_v40 = vadd.f32 %v2561_v57, %v9471_v17  ;;  %v2505_v14 = vadd.f32 %v2504_v24, %v2503_v58  ;;  %v2513_v50 = vrot.slane %v2512_v61, 1  ;;  %v2554_v26 = vrot.slane %v2553_v29, 4  ;;  %9473 = vst [vmem:[#allocation39_spill] sm:$0xff] %v7650_v41  ;;  %4225 = vrot.lane.b32.xlu1 %v7386_v7, %s9213_s2 }
 0x772   : > { %v2597_v62 = vmul.f32 %v2585_v21, %v6062_v3  ;;  %v3473_v43 = vrot.slane %v3472_v55, 2  ;;  %v3481_v11 = vadd.f32 %v3480_v38, %v3479_v22  ;;  %v2607_v60 = vadd.f32 %v2596_v23, %v9472_v36  ;;  %v9474_v36 = vld [vmem:[#allocation100_spill] sm:$0xff] }
 0x773   : > { %v2563_v56 = vrot.slane %v2562_v40, 4  ;;  %v2514_v17 = vadd.f32 %v2513_v50, %v2512_v61  ;;  %v3514_v15 = vsel %vm3512_vm10, %v3510_v34, %v2505_v14  ;;  %v2555_v57 = vadd.f32 %v2554_v26, %v2553_v29  ;;  %v7658_v22 = vpop.permute.xlu1 %3094  ;;  %v9475_v50 = vld [vmem:[#allocation21_spill] sm:$0xff] }
 0x774   : > { %v2615_v58 = vsel %vm554_vm2, %v2597_v62, 0.0  ;;  %v3474_v24 = vadd.f32 %v3473_v43, %v3472_v55  ;;  %v3482_v46 = vrot.slane %v3481_v11, 1  ;;  %v2608_v21 = vrot.slane %v2607_v60, 4  ;;  %4039 = vrot.lane.b32.xlu0 %v7488_v12, %s9209_s26 }
 0x775   : > { %v2564_v1 = vadd.f32 %v2563_v56, %v2562_v40  ;;  %v3515_v23 = vsel %vm3512_vm10, %v3511_v33, %v2514_v17  ;;  %v2556_v38 = vrot.slane %v2555_v57, 2  ;;  %v2616_v41 = vadd.f32 %v2615_v58, %v9474_v36  ;;  %v7667_v40 = vpop.permute.xlu0 %4043  ;;  %v9478_v33 = vld [vmem:[#allocation36_spill] sm:$0xff]  ;;  %4295 = vrot.lane.b32.xlu1 %v7386_v7, %s9216_s3 }
 0x776   : > { %vm9476_vm0 = vcmask 146432   ;;  %v3475_v26 = vrot.slane %v3474_v24, 1  ;;  %v7665_v61 = vadd.f32 %v3482_v46, %v3481_v11  ;;  %v2609_v55 = vadd.f32 %v2608_v21, %v2607_v60  ;;  %9477 = vst [vmem:[#allocation82_spill] sm:$0xff] %v7667_v40  ;;  %v9482_v40 = vld [vmem:[#allocation38_spill] sm:$0xff] }
 0x777   : > { %v2638_v34 = vsel %vm9476_vm0, %v9475_v50, %v7463_v18  ;;  %v2565_v29 = vrot.slane %v2564_v1, 2  ;;  %v2557_v14 = vadd.f32 %v2556_v38, %v2555_v57  ;;  %v2617_v62 = vrot.slane %v2616_v41, 4  ;;  %vm9479_vm1 = vmmov %vm9476_vm0  ;;  %v7683_v58 = vpop.permute.xlu1 %3147 }
 0x778   : > { %v2639_v43 = vsel %vm9479_vm1, %v7463_v18, %v9478_v33  ;;  %v2650_v56 = vmul.f32 %v2638_v34, %v9389_v10  ;;  %v7675_v17 = vadd.f32 %v3475_v26, %v3474_v24  ;;  %v7679_v46 = vsel %vm3493_vm8, %v7665_v61, -inf  ;;  %4085 = vrot.lane.b32.xlu0 %v7488_v12, %s9264_s9  ;;  %s5201_s9 = smul.u32 48, %s9842_s24 }
 0x779   : > { %v2566_v11 = vadd.f32 %v2565_v29, %v2564_v1  ;;  %v2610_v60 = vrot.slane %v2609_v55, 2  ;;  %v2558_v57 = vrot.slane %v2557_v14, 1  ;;  %v2618_v21 = vadd.f32 %v2617_v62, %v2616_v41  ;;  %v9480_v1 = vld [vmem:[#allocation101_spill] sm:$0xff]  ;;  %v7694_v26 = vpop.permute.xlu0 %4089 }
 0x77a   : > { %v2651_v38 = vmul.f32 %v2639_v43, %v6062_v3  ;;  %v2661_v18 = vadd.f32 %v2650_v56, %v7105_v52  ;;  %v7689_v24 = vsel %vm3566_vm13, %v7675_v17, -inf  ;;  %v2692_v34 = vsel %vm2689_vm9, %v9480_v1, %v7492_v16  ;;  %9481 = vst [vmem:[#allocation77_spill] sm:$0xff] %v7694_v26 }
 0x77b   : > { %v2567_v36 = vrot.slane %v2566_v11, 1  ;;  %v2611_v50 = vadd.f32 %v2610_v60, %v2609_v55  ;;  %v2559_v41 = vadd.f32 %v2558_v57, %v2557_v14  ;;  %v2619_v29 = vrot.slane %v2618_v21, 2  ;;  %v7705_v60 = vpop.permute.xlu1 %3711 }
 0x77c   : > { %v2662_v62 = vrot.slane %v2661_v18, 4  ;;  %v2669_v52 = vsel %vm554_vm2, %v2651_v38, 0.0  ;;  %v2693_v55 = vsel %vm2689_vm9, %v7492_v16, %v9482_v40  ;;  %4131 = vrot.lane.b32.xlu0 %v7488_v12, %s9267_s10  ;;  %9483 = vst [vmem:[#allocation22_spill] sm:$0xff] %v7705_v60  ;;  %v2704_v38 = vmul.f32 %v2692_v34, %v9389_v10  ;;  %v9488_v60 = vld [vmem:[#allocation27_spill] sm:$0xff] }
 0x77d   : > { %v2568_v33 = vadd.f32 %v2567_v36, %v2566_v11  ;;  %v2612_v43 = vrot.slane %v2611_v50, 1  ;;  %v2670_v56 = vadd.f32 %v2669_v52, %v7108_v0  ;;  %v7708_v7 = vsel %vm3516_vm12, %v3514_v15, %v2559_v41  ;;  %v7715_v16 = vpop.permute.xlu0 %4135  ;;  %v9485_v41 = vld [vmem:[#allocation66_spill] sm:$0xff] }
 0x77e   : > { %v2620_v14 = vadd.f32 %v2619_v29, %v2618_v21  ;;  %v2663_v57 = vadd.f32 %v2662_v62, %v2661_v18  ;;  %v2705_v1 = vmul.f32 %v2693_v55, %v6062_v3  ;;  %9484 = vst [vmem:[#allocation24_spill] sm:$0xff] %v7715_v16  ;;  %v2715_v21 = vadd.f32 %v2704_v38, %v9485_v41  ;;  %v9489_v16 = vld [vmem:[#allocation40_spill] sm:$0xff] }
 0x77f   : > { %v7712_v11 = vsel %vm3516_vm12, %v3515_v23, %v2568_v33  ;;  %v2613_v0 = vadd.f32 %v2612_v43, %v2611_v50  ;;  %v2671_v36 = vrot.slane %v2670_v56, 4  ;;  %v9486_v50 = vld [vmem:[#allocation62_spill] sm:$0xff]  ;;  %v7730_v62 = vpop.permute.xlu1 %3757  ;;  %vm9501_vm0 = vcmask 900096  }
 0x780   : > { %v7719_v40 = vsel %vm554_vm2, %v7712_v11, -inf  ;;  %v2621_v52 = vrot.slane %v2620_v14, 1  ;;  %v2664_v15 = vrot.slane %v2663_v57, 2  ;;  %v2723_v23 = vsel %vm554_vm2, %v2705_v1, 0.0  ;;  %4177 = vrot.lane.b32.xlu0 %v7488_v12, %s9211_s1  ;;  %9487 = vst [vmem:[#allocation84_spill] sm:$0xff] %v7730_v62  ;;  %v9490_v1 = vld [vmem:[#allocation61_spill] sm:$0xff]  ;;  %vm9504_vm1 = vmmov %vm9501_vm0 }
 0x781   : > { %v2672_v34 = vadd.f32 %v2671_v36, %v2670_v56  ;;  %v2746_v29 = vsel %vm2743_vm4, %v9486_v50, %v7518_v48  ;;  %v2716_v55 = vrot.slane %v2715_v21, 4  ;;  %v2724_v38 = vadd.f32 %v2723_v23, %v9488_v60  ;;  %v7740_v18 = vpop.permute.xlu0 %4181  ;;  %v9492_v60 = vld [vmem:[#allocation68_spill] sm:$0xff]  ;;  %v9493_v23 = vld [vmem:[#allocation42_spill] sm:$0xff] }
 0x782   : > { %v2622_v33 = vadd.f32 %v2621_v52, %v2620_v14  ;;  %v2665_v43 = vadd.f32 %v2664_v15, %v2663_v57  ;;  %v2747_v56 = vsel %vm2743_vm4, %v7518_v48, %v9489_v16  ;;  %v2758_v36 = vmul.f32 %v2746_v29, %v9389_v10  ;;  %9491 = vst [vmem:[#allocation79_spill] sm:$0xff] %v7740_v18 }
 0x783   : > { %v2673_v41 = vrot.slane %v2672_v34, 2  ;;  %v2831_v50 = vsel %vm2828_vm7, %v9490_v1, %v7544_v27  ;;  %v2717_v62 = vadd.f32 %v2716_v55, %v2715_v21  ;;  %v2725_v14 = vrot.slane %v2724_v38, 4  ;;  %v7750_v29 = vpop.permute.xlu1 %3803 }
 0x784   : > { %v2666_v26 = vrot.slane %v2665_v43, 1  ;;  %v2759_v57 = vmul.f32 %v2747_v56, %v6062_v3  ;;  %v2769_v15 = vadd.f32 %v2758_v36, %v9492_v60  ;;  %v2832_v48 = vsel %vm2828_vm7, %v7544_v27, %v9493_v23  ;;  %4223 = vrot.lane.b32.xlu0 %v7488_v12, %s9213_s2  ;;  %9494 = vst [vmem:[#allocation26_spill] sm:$0xff] %v7750_v29 }
 0x785   : > { %v2674_v52 = vadd.f32 %v2673_v41, %v2672_v34  ;;  %v2842_v16 = vmul.f32 %v2831_v50, %v6056_v19  ;;  %v2718_v18 = vrot.slane %v2717_v62, 2  ;;  %v2726_v21 = vadd.f32 %v2725_v14, %v2724_v38  ;;  %v9495_v41 = vld [vmem:[#allocation63_spill] sm:$0xff]  ;;  %v7755_v60 = vpop.permute.xlu0 %4227 }
 0x786   : > { %v2667_v1 = vadd.f32 %v2666_v26, %v2665_v43  ;;  %v2777_v55 = vsel %vm554_vm2, %v2759_v57, 0.0  ;;  %v2770_v34 = vrot.slane %v2769_v15, 4  ;;  %v2843_v36 = vmul.f32 %v2832_v48, %v9389_v10 }
 0x787   : > { %v2675_v3 = vrot.slane %v2674_v52, 1  ;;  %v2778_v56 = vadd.f32 %v2777_v55, %v9495_v41  ;;  %v2719_v50 = vadd.f32 %v2718_v18, %v2717_v62  ;;  %v2727_v23 = vrot.slane %v2726_v21, 2  ;;  %v7762_v14 = vpop.permute.xlu1 %3849 }
 0x788   : > { %v3521_v27 = vsel %vm3493_vm8, %v2613_v0, %v2667_v1  ;;  %v2846_v53 = vsel %vm551_vm3, %v2842_v16, 0.0  ;;  %v2771_v26 = vadd.f32 %v2770_v34, %v2769_v15  ;;  %4293 = vrot.lane.b32.xlu0 %v7488_v12, %s9216_s3  ;;  %9496 = vst [vmem:[#allocation85_spill] sm:$0xff] %v7762_v14  ;;  %v2854_v55 = vadd.f32 %v2843_v36, %v7167_v28  ;;  %v9497_v0 = vld [vmem:[#allocation65_spill] sm:$0xff]  ;;  %v9541_v14 = vld [vmem:[#allocation48_spill] sm:$0xff] }
 0x789   : > { %v2676_v29 = vadd.f32 %v2675_v3, %v2674_v52  ;;  %v2779_v43 = vrot.slane %v2778_v56, 4  ;;  %v2847_v38 = vadd.f32 %v2846_v53, %v7199_v42  ;;  %v2720_v57 = vrot.slane %v2719_v50, 1  ;;  %v7769_v1 = vpop.permute.xlu0 %1839  ;;  %v9498_v3 = vld [vmem:[#allocation43_spill] sm:$0xff] }
 0x78a   : > { %v2728_v48 = vadd.f32 %v2727_v23, %v2726_v21  ;;  %v2885_v18 = vsel %vm9087_vm6, %v9497_v0, %v7577_v51  ;;  %v2772_v52 = vrot.slane %v2771_v26, 2  ;;  %v2855_v12 = vrot.slane %v2854_v55, 4  ;;  %1850 = vst.msk [vmem:[#allocation2 + $0x60] sm:$0xff] %vm551_vm3, %v7769_v1 }
 0x78b   : > { %v3522_v62 = vsel %vm3493_vm8, %v2622_v33, %v2676_v29  ;;  %v2780_v15 = vadd.f32 %v2779_v43, %v2778_v56  ;;  %v2848_v16 = vrot.slane %v2847_v38, 4  ;;  %v2721_v42 = vadd.f32 %v2720_v57, %v2719_v50  ;;  %v7777_v29 = vpop.permute.xlu1 %3895 }
 0x78c   : > { %v2729_v53 = vrot.slane %v2728_v48, 1  ;;  %v2886_v21 = vsel %vm9087_vm6, %v7577_v51, %v9498_v3  ;;  %v2773_v28 = vadd.f32 %v2772_v52, %v2771_v26  ;;  %v2896_v33 = vmul.f32 %v2885_v18, %v6056_v19  ;;  %9499 = vst [vmem:[#allocation81_spill] sm:$0xff] %v7777_v29 }
 0x78d   : > { %v2781_v34 = vrot.slane %v2780_v15, 2  ;;  %v2849_v41 = vadd.f32 %v2848_v16, %v2847_v38  ;;  %v3524_v36 = vsel %vm3497_vm11, %v3521_v27, %v2721_v42  ;;  %v2856_v50 = vadd.f32 %v2855_v12, %v2854_v55  ;;  %v7782_v3 = vpop.permute.xlu0 %3713  ;;  %v9500_v55 = vld [vmem:[#allocation72_spill] sm:$0xff] }
 0x78e   : > { %v2730_v56 = vadd.f32 %v2729_v53, %v2728_v48  ;;  %v2897_v23 = vmul.f32 %v2886_v21, %v9389_v10  ;;  %v2774_v43 = vrot.slane %v2773_v28, 1  ;;  %v2900_v51 = vsel %vm551_vm3, %v2896_v33, 0.0 }
 0x78f   : > { %v2782_v57 = vadd.f32 %v2781_v34, %v2780_v15  ;;  %v2850_v0 = vrot.slane %v2849_v41, 2  ;;  %v2857_v38 = vrot.slane %v2856_v50, 2  ;;  %v2901_v18 = vadd.f32 %v2900_v51, %v7205_v20  ;;  %v7790_v15 = vpop.permute.xlu1 %3941  ;;  %v9503_v34 = vld [vmem:[#allocation44_spill] sm:$0xff] }
 0x790   : > { %v3525_v26 = vsel %vm3497_vm11, %v3522_v62, %v2730_v56  ;;  %v2908_v52 = vadd.f32 %v2897_v23, %v7202_v31  ;;  %v2775_v48 = vadd.f32 %v2774_v43, %v2773_v28  ;;  %v2939_v42 = vsel %vm9501_vm0, %v9500_v55, %v7602_v35  ;;  %9502 = vst [vmem:[#allocation86_spill] sm:$0xff] %v7790_v15  ;;  %v9505_v56 = vld [vmem:[#allocation90_spill] sm:$0xff]  ;;  %v9510_v15 = vld [vmem:[#allocation91_spill] sm:$0xff] }
 0x791   : > { %v2783_v16 = vrot.slane %v2782_v57, 1  ;;  %v2851_v27 = vadd.f32 %v2850_v0, %v2849_v41  ;;  %v2858_v53 = vadd.f32 %v2857_v38, %v2856_v50  ;;  %v2902_v12 = vrot.slane %v2901_v18, 4  ;;  %v7797_v41 = vpop.permute.xlu0 %3759 }
 0x792   : > { %v2909_v21 = vrot.slane %v2908_v52, 4  ;;  %v2940_v62 = vsel %vm9504_vm1, %v7602_v35, %v9503_v34  ;;  %v3527_v20 = vsel %vm3501_vm14, %v3524_v36, %v2775_v48  ;;  %v2950_v28 = vmul.f32 %v2939_v42, %v6056_v19  ;;  %v9508_v36 = vld [vmem:[#allocation89_spill] sm:$0xff] }
 0x793   : > { %v2784_v33 = vadd.f32 %v2783_v16, %v2782_v57  ;;  %v2852_v31 = vrot.slane %v2851_v27, 1  ;;  %vm9506_vm15 = vcmask 1043456   ;;  %v2859_v43 = vrot.slane %v2858_v53, 1  ;;  %v7804_v57 = vpop.permute.xlu1 %3987 }
 0x794   : > { %v3530_v23 = vsel %vm9506_vm15, %v3527_v20, %v9505_v56  ;;  %v2903_v0 = vadd.f32 %v2902_v12, %v2901_v18  ;;  %v2910_v50 = vadd.f32 %v2909_v21, %v2908_v52  ;;  %v2951_v55 = vmul.f32 %v2940_v62, %v9389_v10  ;;  %9507 = vst [vmem:[#allocation83_spill] sm:$0xff] %v7804_v57  ;;  %vm9509_vm0 = vmmov %vm9506_vm15  ;;  %v9512_v18 = vld [vmem:[#allocation80_spill] sm:$0xff]  ;;  %v9515_v12 = vld [vmem:[#allocation67_spill] sm:$0xff] }
 0x795   : > { %v3528_v51 = vsel %vm3501_vm14, %v3525_v26, %v2784_v33  ;;  %v2853_v38 = vadd.f32 %v2852_v31, %v2851_v27  ;;  %v2954_v35 = vsel %vm551_vm3, %v2950_v28, 0.0  ;;  %v2860_v16 = vadd.f32 %v2859_v43, %v2858_v53  ;;  %v9514_v26 = vld [vmem:[#allocation31_spill] sm:$0xff]  ;;  %v7814_v62 = vpop.permute.xlu0 %3805  ;;  %v9517_v33 = vld [vmem:[#allocation92_spill] sm:$0xff]  ;;  %v9519_v43 = vld [vmem:[#allocation93_spill] sm:$0xff] }
 0x796   : > { %v3531_v48 = vsel %vm9509_vm0, %v3528_v51, %v9508_v36  ;;  %v2904_v42 = vrot.slane %v2903_v0, 2  ;;  %v2911_v34 = vrot.slane %v2910_v50, 2  ;;  %vm9511_vm15 = vcmask 1044480   ;;  %9516 = vst [vmem:[#allocation46_spill] sm:$0xff] %v7814_v62 }
 0x797   : > { %v3534_v20 = vsel %vm9511_vm15, %v3531_v48, %v9510_v15  ;;  %vm9513_vm1 = vmmov %vm9511_vm15  ;;  %v2955_v27 = vadd.f32 %v2954_v35, %v9514_v26  ;;  %v2962_v21 = vadd.f32 %v2951_v55, %v9515_v12  ;;  %vm9521_vm0 = vcmask 891904   ;;  %v7826_v55 = vpop.permute.xlu1 %4033 }
 0x798   : > { %v3532_v52 = vsel %vm9513_vm1, %v9512_v18, %v2853_v38  ;;  %v3537_v31 = vsel %vm3512_vm10, %v3534_v20, %v9517_v33  ;;  %vm9518_vm6 = vmmov %vm9513_vm1  ;;  %v2905_v53 = vadd.f32 %v2904_v42, %v2903_v0  ;;  %v2912_v56 = vadd.f32 %v2911_v34, %v2910_v50  ;;  %v9520_v38 = vld [vmem:[#allocation71_spill] sm:$0xff]  ;;  %9522 = vst [vmem:[#allocation28_spill] sm:$0xff] %v7826_v55 }
 0x799   : > { %v3533_v28 = vsel %vm9518_vm6, %v3530_v23, %v2860_v16  ;;  %v7821_v51 = vsel %vm3516_vm12, %v3537_v31, %v9519_v43  ;;  %v2956_v15 = vrot.slane %v2955_v27, 4  ;;  %v2963_v36 = vrot.slane %v2962_v21, 4  ;;  %v9523_v23 = vld [vmem:[#allocation45_spill] sm:$0xff]  ;;  %vm9524_vm6 = vmmov %vm9521_vm0  ;;  %v7835_v26 = vpop.permute.xlu0 %3851  ;;  %v9526_v43 = vld [vmem:[#allocation75_spill] sm:$0xff] }
 0x79a   : > { %v2993_v35 = vsel %vm9521_vm0, %v9520_v38, %v7626_v45  ;;  %v3587_v48 = vsel %vm554_vm2, %v7821_v51, -inf  ;;  %v2906_v20 = vrot.slane %v2905_v53, 1  ;;  %v2913_v18 = vrot.slane %v2912_v56, 1  ;;  %9525 = vst [vmem:[#allocation52_spill] sm:$0xff] %v7835_v26 }
 0x79b   : > { %v2994_v0 = vsel %vm9524_vm6, %v7626_v45, %v9523_v23  ;;  %v3592_v50 = vmax.f32 %v3587_v48, %v7556_v6  ;;  %v2957_v16 = vadd.f32 %v2956_v15, %v2955_v27  ;;  %v2964_v42 = vadd.f32 %v2963_v36, %v2962_v21  ;;  %v7845_v21 = vpop.permute.xlu1 %4079 }
 0x79c   : > { %v3004_v34 = vmul.f32 %v2993_v35, %v6056_v19  ;;  %v2907_v12 = vadd.f32 %v2906_v20, %v2905_v53  ;;  %v2914_v33 = vadd.f32 %v2913_v18, %v2912_v56  ;;  %v3005_v31 = vmul.f32 %v2994_v0, %v9389_v10  ;;  %9529 = vst [vmem:[#allocation94_spill] sm:$0xff] %v7845_v21  ;;  %v9530_v56 = vld [vmem:[#allocation74_spill] sm:$0xff]  ;;  %v9531_v35 = vld [vmem:[#allocation33_spill] sm:$0xff]  ;;  %v9539_v21 = vld [vmem:[#allocation76_spill] sm:$0xff] }
 0x79d   : > { %vm9527_vm15 = vcmask 883712   ;;  %v9528_v55 = vmax.f32 %v7719_v40, %v7549_v47  ;;  %v2958_v23 = vrot.slane %v2957_v16, 2  ;;  %v2965_v6 = vrot.slane %v2964_v42, 2  ;;  %v7854_v40 = vpop.permute.xlu0 %3897 }
 0x79e   : > { %v3047_v38 = vsel %vm9527_vm15, %v9526_v43, %v7646_v2  ;;  %v3008_v27 = vsel %vm551_vm3, %v3004_v34, 0.0  ;;  %v3535_v15 = vsel %vm3512_vm10, %v3532_v52, %v2907_v12  ;;  %v3536_v53 = vsel %vm3512_vm10, %v3533_v28, %v2914_v33  ;;  %v9532_v43 = vld [vmem:[#allocation47_spill] sm:$0xff]  ;;  %vm9533_vm1 = vmmov %vm9527_vm15  ;;  %9534 = vst [vmem:[#allocation87_spill] sm:$0xff] %v7854_v40 }
 0x79f   : > { %v3593_v45 = vmax.f32 %v9528_v55, %v3592_v50  ;;  %v3009_v36 = vadd.f32 %v3008_v27, %v9530_v56  ;;  %v3016_v48 = vadd.f32 %v3005_v31, %v9531_v35  ;;  %v2959_v18 = vadd.f32 %v2958_v23, %v2957_v16  ;;  %v9535_v31 = vld [vmem:[#allocation18_spill] sm:$0xff]  ;;  %v9538_v27 = vld [vmem:[#allocation69_spill] sm:$0xff] }
 0x7a0   : > { %v2966_v0 = vadd.f32 %v2965_v6, %v2964_v42  ;;  %v3048_v47 = vsel %vm9533_vm1, %v7646_v2, %v9532_v43  ;;  %v3058_v34 = vmul.f32 %v3047_v38, %v6056_v19  ;;  %vm9536_vm0 = vcmask 875520   ;;  %v7861_v42 = vpop.permute.xlu1 %4125 }
 0x7a1   : > { %v3594_v20 = vrot.slane %v3593_v45, 4  ;;  %v3010_v55 = vrot.slane %v3009_v36, 4  ;;  %v3017_v50 = vrot.slane %v3016_v48, 4  ;;  %v3059_v52 = vmul.f32 %v3048_v47, %v9389_v10  ;;  %9537 = vst [vmem:[#allocation51_spill] sm:$0xff] %v7861_v42  ;;  %vm9542_vm6 = vmmov %vm9536_vm0 }
 0x7a2   : > { %v2960_v12 = vrot.slane %v2959_v18, 1  ;;  %v2967_v33 = vrot.slane %v2966_v0, 1  ;;  %v3100_v16 = vsel %vm9536_vm0, %v9535_v31, %v7658_v22  ;;  %v3062_v2 = vsel %vm551_vm3, %v3058_v34, 0.0 }
 0x7a3   : > { %v3595_v28 = vmax.f32 %v3593_v45, %v3594_v20  ;;  %v3011_v23 = vadd.f32 %v3010_v55, %v3009_v36  ;;  %v3018_v6 = vadd.f32 %v3017_v50, %v3016_v48  ;;  %v3070_v56 = vadd.f32 %v3059_v52, %v9538_v27  ;;  %v7866_v45 = vpop.permute.xlu0 %3943 }
 0x7a4   : > { %v2961_v43 = vadd.f32 %v2960_v12, %v2959_v18  ;;  %v2968_v38 = vadd.f32 %v2967_v33, %v2966_v0  ;;  %v3063_v47 = vadd.f32 %v3062_v2, %v9539_v21  ;;  %9540 = vst [vmem:[#allocation97_spill] sm:$0xff] %v7866_v45  ;;  %v3101_v31 = vsel %vm9542_vm6, %v7658_v22, %v9541_v14  ;;  %v7877_v0 = vpop.permute.xlu1 %4171 }
 0x7a5   : > { %v3596_v35 = vrot.slane %v3595_v28, 2  ;;  %v3012_v20 = vrot.slane %v3011_v23, 2  ;;  %v3019_v57 = vrot.slane %v3018_v6, 2  ;;  %v3071_v29 = vrot.slane %v3070_v56, 4  ;;  %9543 = vst [vmem:[#allocation16_spill] sm:$0xff] %v7877_v0  ;;  %v9550_v0 = vld [vmem:[#allocation37_spill] sm:$0xff] }
 0x7a6   : > { %v7872_v48 = vsel %vm3516_vm12, %v3535_v15, %v2961_v43  ;;  %v7875_v55 = vsel %vm3516_vm12, %v3536_v53, %v2968_v38  ;;  %v3064_v18 = vrot.slane %v3063_v47, 4  ;;  %v3111_v2 = vmul.f32 %v3100_v16, %v6056_v19 }
 0x7a7   : > { %v3597_v36 = vmax.f32 %v3595_v28, %v3596_v35  ;;  %v7881_v21 = vsel %vm551_vm3, %v7872_v48, -inf  ;;  %v3013_v34 = vadd.f32 %v3012_v20, %v3011_v23  ;;  %v3020_v52 = vadd.f32 %v3019_v57, %v3018_v6  ;;  %v7887_v53 = vpop.permute.xlu0 %3989  ;;  %v9545_v23 = vld [vmem:[#allocation11_spill] sm:$0xff] }
 0x7a8   : > { %v3065_v15 = vadd.f32 %v3064_v18, %v3063_v47  ;;  %v3072_v28 = vadd.f32 %v3071_v29, %v3070_v56  ;;  %9544 = vst [vmem:[#allocation30_spill] sm:$0xff] %v7887_v53  ;;  %v3112_v27 = vmul.f32 %v3101_v31, %v9389_v10  ;;  %vm9546_vm15 = vcmask 867328   ;;  %v7894_v6 = vpop.permute.xlu1 %4217  ;;  %v9548_v56 = vld [vmem:[#allocation35_spill] sm:$0xff] }
 0x7a9   : > { %v3598_v22 = vrot.slane %v3597_v36, 1  ;;  %v3014_v12 = vrot.slane %v3013_v34, 1  ;;  %v3021_v33 = vrot.slane %v3020_v52, 1  ;;  %v3153_v57 = vsel %vm9546_vm15, %v9545_v23, %v7683_v58  ;;  %9547 = vst [vmem:[#allocation17_spill] sm:$0xff] %v7894_v6  ;;  %vm9552_vm1 = vmmov %vm9546_vm15 }
 0x7aa   : > { %v3066_v43 = vrot.slane %v3065_v15, 2  ;;  %v3073_v38 = vrot.slane %v3072_v28, 2  ;;  %v3115_v29 = vsel %vm551_vm3, %v3111_v2, 0.0  ;;  %v3123_v18 = vadd.f32 %v3112_v27, %v9548_v56  ;;  %v9551_v2 = vld [vmem:[#allocation49_spill] sm:$0xff] }
 0x7ab   : > { %v3599_v35 = vmax.f32 %v3597_v36, %v3598_v22  ;;  %v3015_v20 = vadd.f32 %v3014_v12, %v3013_v34  ;;  %v3022_v47 = vadd.f32 %v3021_v33, %v3020_v52  ;;  %v7902_v22 = vpop.permute.xlu0 %4035  ;;  %v3116_v6 = vadd.f32 %v3115_v29, %v9550_v0 }
 0x7ac   : > { %9549 = vst [vmem:[#allocation95_spill] sm:$0xff] %v7902_v22  ;;  %v3067_v50 = vadd.f32 %v3066_v43, %v3065_v15  ;;  %v3074_v23 = vadd.f32 %v3073_v38, %v3072_v28  ;;  %v3124_v34 = vrot.slane %v3123_v18, 4  ;;  %v7908_v27 = vpop.permute.xlu1 %4287  ;;  %v3164_v15 = vmul.f32 %v3153_v57, %v6056_v19 }
 0x7ad   : > { %v3602_v14 = vsub.f32 %v7712_v11, %v3599_v35  ;;  %v3605_v16 = vsub.f32 %v7821_v51, %v3599_v35  ;;  %v3608_v31 = vsub.f32 %v9445_v49, %v3599_v35  ;;  %v3611_v36 = vsub.f32 %v7506_v37, %v3599_v35  ;;  %9553 = vst [vmem:[#allocation88_spill] sm:$0xff] %v7908_v27  ;;  %v9621_v27 = vld [vmem:[#allocation10_spill] sm:$0xff] }
 0x7ae   : > { %v3154_v11 = vsel %vm9552_vm1, %v7683_v58, %v9551_v2  ;;  %v3068_v49 = vrot.slane %v3067_v50, 1  ;;  %v3075_v56 = vrot.slane %v3074_v23, 1  ;;  %v3117_v37 = vrot.slane %v3116_v6, 4 }
 0x7af   : > { %v3616_v52 = vmul.f32 1.442695, %v3602_v14  ;;  %v3622_v12 = vmul.f32 1.442695, %v3605_v16  ;;  %v3628_v33 = vmul.f32 1.442695, %v3608_v31  ;;  %v3125_v35 = vadd.f32 %v3124_v34, %v3123_v18  ;;  %v7912_v28 = vpop.permute.xlu0 %4081 }
 0x7b0   : > { %v3634_v51 = vmul.f32 1.442695, %v3611_v36  ;;  %v3165_v0 = vmul.f32 %v3154_v11, %v9389_v10  ;;  %9554 = vst [vmem:[#allocation55_spill] sm:$0xff] %v7912_v28  ;;  %v3069_v14 = vadd.f32 %v3068_v49, %v3067_v50  ;;  %v3076_v43 = vadd.f32 %v3075_v56, %v3074_v23  ;;  %v7916_v31 = vpop.permute.xlu1 %1841  ;;  %v4872_v34 = vld [vmem:[#allocation2 + $0x60] sm:$0xff] }
 0x7b1   : > { %5339 = vpow2.f32 %v3616_v52  ;;  %v3118_v38 = vadd.f32 %v3117_v37, %v3116_v6  ;;  %v3126_v58 = vrot.slane %v3125_v35, 2  ;;  %v3168_v29 = vsel %vm551_vm3, %v3164_v15, 0.0  ;;  %v4869_v56 = vld [vmem:[#allocation2 + $0x40] sm:$0xff] }
 0x7b2   : > { %5341 = vpow2.f32 %v3622_v12  ;;  %v3176_v16 = vadd.f32 %v3165_v0, %v7419_v39  ;;  %v3541_v18 = vsel %vm3493_vm8, %v3015_v20, %v3069_v14  ;;  %v3542_v19 = vsel %vm3493_vm8, %v3022_v47, %v3076_v43 }
 0x7b3   : > { %5343 = vpow2.f32 %v3628_v33  ;;  %v3119_v10 = vrot.slane %v3118_v38, 2  ;;  %v9555_v57 = vrot.slane %v7540_v8, 4  ;;  %v3127_v36 = vadd.f32 %v3126_v58, %v3125_v35  ;;  %v7924_v52 = vpop.permute.xlu0 %4127 }
 0x7b4   : > { %5345 = vpow2.f32 %v3634_v51  ;;  %v3169_v6 = vadd.f32 %v3168_v29, %v7435_v9  ;;  %v3177_v23 = vrot.slane %v3176_v16, 4  ;;  %9556 = vst [vmem:[#allocation56_spill] sm:$0xff] %v7924_v52  ;;  %v9557_v39 = vrot.slane %v7521_v4, 2  ;;  %v7936_v37 = vpop.permute.xlu1 %4291 }
 0x7b5   : > { %v3413_v50 = vadd.f32 %v9555_v57, %v7540_v8  ;;  %v9558_v20 = vrot.slane %v7536_v54, 2  ;;  %v3421_v33 = vrot.slane %v7619_v13, 2  ;;  %v3120_v2 = vadd.f32 %v3119_v10, %v3118_v38 }
 0x7b6   : > { %v3237_v12 = vadd.f32 %v9557_v39, %v7521_v4  ;;  %v9559_v8 = vrot.slane %v7568_v44, 2  ;;  %v3128_v9 = vrot.slane %v3127_v36, 1  ;;  %v3170_v51 = vrot.slane %v3169_v6, 4 }
 0x7b7   : > { %v3297_v47 = vadd.f32 %v9558_v20, %v7536_v54  ;;  %v3178_v49 = vadd.f32 %v3177_v23, %v3176_v16  ;;  %v3355_v35 = vrot.slane %v7605_v63, 2  ;;  %v9560_v4 = vrot.slane %v7585_v32, 2  ;;  %v7942_v29 = vpop.permute.xlu0 %4173 }
 0x7b8   : > { %v3304_v11 = vadd.f32 %v9559_v8, %v7568_v44  ;;  %v3121_v54 = vrot.slane %v3120_v2, 1  ;;  %v4878_v0 = vpack.c.bf16 %v4872_v34, %v4869_v56  ;;  %v3414_v14 = vrot.slane %v3413_v50, 2  ;;  %9561 = vst [vmem:[#allocation32_spill] sm:$0xff] %v7942_v29  ;;  %v7948_v34 = vpop.permute.xlu1 %4333 }
 0x7b9   : > { %v3363_v15 = vadd.f32 %v9560_v4, %v7585_v32  ;;  %v3129_v43 = vadd.f32 %v3128_v9, %v3127_v36  ;;  %v3171_v38 = vadd.f32 %v3170_v51, %v3169_v6  ;;  %v3179_v58 = vrot.slane %v3178_v49, 2  ;;  %9562 = vst [vmem:[#allocation19_spill] sm:$0xff] %v7948_v34 }
 0x7ba   : > { %v3238_v44 = vrot.slane %v3237_v12, 1  ;;  %v3245_v16 = vrot.slane %v7571_v5, 1  ;;  %v3422_v10 = vadd.f32 %v3421_v33, %v7619_v13  ;;  %v3122_v57 = vadd.f32 %v3121_v54, %v3120_v2  ;;  %4910 = vrot.lane.b32.xlu1 %v4878_v0, %s9198_s21 }
 0x7bb   : > { %v3298_v23 = vrot.slane %v3297_v47, 1  ;;  %v3545_v39 = vsel %vm3497_vm11, %v3542_v19, %v3129_v43  ;;  %v3172_v32 = vrot.slane %v3171_v38, 2  ;;  %v3180_v20 = vadd.f32 %v3179_v58, %v3178_v49  ;;  %v7952_v13 = vpop.permute.xlu0 %4219 }
 0x7bc   : > { %v3305_v36 = vrot.slane %v3304_v11, 1  ;;  %v3356_v6 = vadd.f32 %v3355_v35, %v7605_v63  ;;  %v3364_v8 = vrot.slane %v3363_v15, 1  ;;  %v3544_v9 = vsel %vm3497_vm11, %v3541_v18, %v3122_v57  ;;  %9563 = vst [vmem:[#allocation34_spill] sm:$0xff] %v7952_v13  ;;  %v7961_v18 = vpop.permute.xlu1 %3719 }
 0x7bd   : > { %v3415_v51 = vadd.f32 %v3414_v14, %v3413_v50  ;;  %v3173_v56 = vadd.f32 %v3172_v32, %v3171_v38  ;;  %v3181_v4 = vrot.slane %v3180_v20, 1  ;;  %v3239_v2 = vadd.f32 %v3238_v44, %v3237_v12  ;;  %9564 = vst [vmem:[#allocation99_spill] sm:$0xff] %v7961_v18 }
 0x7be   : > { %v7954_v33 = vpop.eup %5339  ;;  %v3246_v19 = vadd.f32 %v3245_v16, %v7571_v5  ;;  %v3423_v54 = vrot.slane %v3422_v10, 1  ;;  %v3299_v0 = vadd.f32 %v3298_v23, %v3297_v47  ;;  %v3306_v14 = vadd.f32 %v3305_v36, %v3304_v11 }
 0x7bf   : > { %v7957_v49 = vpop.eup %5341  ;;  %v3659_v63 = vsel %vm554_vm2, %v7954_v33, 0.0  ;;  %v3174_v35 = vrot.slane %v3173_v56, 1  ;;  %v3182_v43 = vadd.f32 %v3181_v4, %v3180_v20  ;;  %v3357_v38 = vrot.slane %v3356_v6, 1  ;;  %v7970_v23 = vpop.permute.xlu0 %4289 }
 0x7c0   : > { %v7963_v50 = vpop.eup %5343  ;;  %v3365_v58 = vadd.f32 %v3364_v8, %v3363_v15  ;;  %v3660_v12 = vsel %vm554_vm2, %v7957_v49, 0.0  ;;  %v3416_v44 = vrot.slane %v3415_v51, 1  ;;  %9565 = vst [vmem:[#allocation58_spill] sm:$0xff] %v7970_v23  ;;  %v3424_v32 = vadd.f32 %v3423_v54, %v3422_v10 }
 0x7c1   : > { %v7967_v5 = vpop.eup %5345  ;;  %v3661_v16 = vadd.f32 %v3660_v12, %v3659_v63  ;;  %v3175_v47 = vadd.f32 %v3174_v35, %v3173_v56  ;;  %v3548_v57 = vsel %vm3501_vm14, %v3545_v39, %v3182_v43  ;;  %v3662_v20 = vsel %vm554_vm2, %v7963_v50, 0.0  ;;  %v7983_v56 = vpop.permute.xlu1 %3765 }
 0x7c2   : > { %vm9566_vm11 = vcmask 1043456   ;;  %vm9567_vm0 = vcmask 343040   ;;  %vm9568_vm6 = vcmask 1044480   ;;  %9570 = vst [vmem:[#allocation60_spill] sm:$0xff] %v7983_v56  ;;  %v3358_v10 = vadd.f32 %v3357_v38, %v3356_v6 }
 0x7c3   : > { %v3551_v11 = vsel %vm9566_vm11, %v3548_v57, %v3246_v19  ;;  %v1845_v15 = vsel %vm9567_vm0, %v7769_v1, %v7916_v31  ;;  %v3663_v36 = vadd.f32 %v3662_v20, %v3661_v16  ;;  %v3547_v8 = vsel %vm3501_vm14, %v3544_v9, %v3175_v47  ;;  %vm9569_vm15 = vmmov %vm9567_vm0 }
 0x7c4   : > { %v3554_v4 = vsel %vm9568_vm6, %v3551_v11, %v3306_v14  ;;  %v1846_v39 = vsel %vm9569_vm15, %v7916_v31, %v7477_v25  ;;  %v3664_v54 = vsel %vm3590_vm5, %v7967_v5, 0.0  ;;  %vm9571_vm1 = vmmov %vm9566_vm11  ;;  %v3417_v1 = vadd.f32 %v3416_v44, %v3415_v51  ;;  %v7992_v14 = vpop.permute.xlu0 %4297  ;;  %v4870_v25 = vld [vmem:[#allocation2 + $0x48] sm:$0xff]  ;;  %v9574_v51 = vld [vmem:[#allocation25_spill] sm:$0xff] }
 0x7c5   : > { %v3550_v19 = vsel %vm9571_vm1, %v3547_v8, %v3239_v2  ;;  %v3557_v63 = vsel %vm3512_vm10, %v3554_v4, %v3365_v58  ;;  %1852 = vst.msk [vmem:[#allocation2 + $0x70] sm:$0xff] %vm554_vm2, %v1846_v39  ;;  %v3665_v9 = vadd.f32 %v3664_v54, %v3663_v36  ;;  %vm9572_vm14 = vmmov %vm9568_vm6  ;;  %v4879_v38 = vpack.c.bf16 %v1845_v15, %v4870_v25  ;;  %v7999_v58 = vpop.permute.xlu1 %3811  ;;  %v4871_v4 = vld [vmem:[#allocation2 + $0x50] sm:$0xff] }
 0x7c6   : > { %v3553_v35 = vsel %vm9572_vm14, %v3550_v19, %v3299_v0  ;;  %v3560_v43 = vsel %vm3516_vm12, %v3557_v63, %v3424_v32  ;;  %9573 = vst [vmem:[#allocation100_spill] sm:$0xff] %v7999_v58  ;;  %v3562_v44 = vsel %vm551_vm3, %v9574_v51, -inf  ;;  %v9575_v16 = vmax.f32 %v7875_v55, %v7679_v46  ;;  %v8016_v46 = vld [vmem:[#allocation4 + $0x50] sm:$0xff]  ;;  %vm9587_vm2 = vmmov %vm9567_vm0 }
 0x7c7   : > { %v3556_v31 = vsel %vm3512_vm10, %v3553_v35, %v3358_v10  ;;  %v3576_v6 = vmax.f32 %v7708_v7, %v3560_v43  ;;  %v3666_v12 = vrot.slane %v3665_v9, 4  ;;  %4912 = vrot.lane.b32.xlu1 %v4879_v38, %s9198_s21  ;;  %v9577_v36 = vmax.f32 %v7881_v21, %v7689_v24 }
 0x7c8   : > { %v7997_v2 = vsel %vm3516_vm12, %v3556_v31, %v3417_v1  ;;  %v8009_v20 = vpop.permute.xlu0 %4335  ;;  %vm9589_vm10 = vcmask 334848   ;;  %vm9594_vm12 = vcmask 326656   ;;  %vm9597_vm5 = vcmask 318464  }
 0x7c9   : > { %v3564_v0 = vsel %vm551_vm3, %v7997_v2, -inf  ;;  %v3579_v47 = vmax.f32 %v3576_v6, %v9575_v16  ;;  %v3667_v57 = vadd.f32 %v3666_v12, %v3665_v9  ;;  %9576 = vst [vmem:[#allocation21_spill] sm:$0xff] %v8009_v20  ;;  %v8014_v10 = vpop.permute.xlu1 %3857  ;;  %v8025_v6 = vld [vmem:[#allocation4 + $0x68] sm:$0xff]  ;;  %v8031_v16 = vld [vmem:[#allocation4 + $0x60] sm:$0xff]  ;;  %vm9600_vm11 = vcmask 310272   ;;  %v9620_v20 = vld [vmem:[#allocation29_spill] sm:$0xff] }
 0x7ca   : > { %v3565_v32 = vmax.f32 %v3562_v44, %v3564_v0  ;;  %9578 = vst [vmem:[#allocation36_spill] sm:$0xff] %v8014_v10  ;;  %vm9603_vm0 = vcmask 179200   ;;  %vm9605_vm6 = vcmask 171008   ;;  %vm9607_vm15 = vcmask 162816  }
 0x7cb   : > { %v3580_v11 = vrot.slane %v3579_v47, 4  ;;  %v3668_v15 = vrot.slane %v3667_v57, 2  ;;  %4337 = vrot.lane.b32.xlu1 %v8016_v46, %s9219_s22  ;;  %vm9612_vm1 = vcmask 154624   ;;  %vm9614_vm14 = vcmask 146432  }
 0x7cc   : > { %v3569_v8 = vmax.f32 %v3565_v32, %v9577_v36  ;;  %v4874_v39 = vld [vmem:[#allocation2 + $0x70] sm:$0xff]  ;;  %v8020_v9 = vpop.permute.xlu0 %3717 }
 0x7cd   : > { %v3581_v54 = vmax.f32 %v3579_v47, %v3580_v11  ;;  %v4880_v19 = vpack.c.bf16 %v4874_v39, %v4871_v4  ;;  %v3669_v63 = vadd.f32 %v3668_v15, %v3667_v57  ;;  %9579 = vst [vmem:[#allocation101_spill] sm:$0xff] %v8020_v9  ;;  %v8023_v25 = vpop.permute.xlu1 %3903  ;;  %v8037_v11 = vld [vmem:[#allocation4 + $0x40] sm:$0xff]  ;;  %v9619_v9 = vld [vmem:[#allocation8_spill] sm:$0xff] }
 0x7ce   : > { %v3570_v1 = vrot.slane %v3569_v8, 4  ;;  %9580 = vst [vmem:[#allocation38_spill] sm:$0xff] %v8023_v25 }
 0x7cf   : > { %v3582_v35 = vrot.slane %v3581_v54, 2  ;;  %4914 = vrot.lane.b32.xlu0 %v4880_v19, %s9198_s21  ;;  %v3670_v24 = vrot.slane %v3669_v63, 1  ;;  %4341 = vrot.lane.b32.xlu1 %v8025_v6, %s9219_s22  ;;  %v8046_v19 = vld [vmem:[#allocation4 + $0x70] sm:$0xff] }
 0x7d0   : > { %v3571_v21 = vmax.f32 %v3569_v8, %v3570_v1  ;;  %v8029_v44 = vpop.permute.xlu0 %3763 }
 0x7d1   : > { %v3583_v31 = vmax.f32 %v3581_v54, %v3582_v35  ;;  %v3671_v38 = vadd.f32 %v3670_v24, %v3669_v63  ;;  %9581 = vst [vmem:[#allocation66_spill] sm:$0xff] %v8029_v44  ;;  %v8035_v57 = vpop.permute.xlu1 %3949 }
 0x7d2   : > { %v3572_v12 = vrot.slane %v3571_v21, 2  ;;  %9582 = vst [vmem:[#allocation62_spill] sm:$0xff] %v8035_v57 }
 0x7d3   : > { %v3584_v0 = vrot.slane %v3583_v31, 1  ;;  %4339 = vrot.lane.b32.xlu0 %v8031_v16, %s9219_s22  ;;  %5347 = vrcp.f32 %v3671_v38  ;;  %4379 = vrot.lane.b32.xlu1 %v8037_v11, %s9222_s18  ;;  %v8060_v38 = vld [vmem:[#allocation4 + $0x48] sm:$0xff] }
 0x7d4   : > { %v3573_v47 = vmax.f32 %v3571_v21, %v3572_v12  ;;  %v8041_v36 = vpop.permute.xlu0 %3809 }
 0x7d5   : > { %v3585_v32 = vmax.f32 %v3583_v31, %v3584_v0  ;;  %9583 = vst [vmem:[#allocation27_spill] sm:$0xff] %v8041_v36  ;;  %v8050_v1 = vpop.permute.xlu1 %3995  ;;  %v9613_v36 = vld [vmem:[#allocation64_spill] sm:$0xff] }
 0x7d6   : > { %v3574_v15 = vrot.slane %v3573_v47, 1  ;;  %9584 = vst [vmem:[#allocation40_spill] sm:$0xff] %v8050_v1  ;;  %v8129_v44 = vsel %vm9614_vm14, %v7924_v52, %v9613_v36  ;;  %v8147_v36 = vsel %vm2743_vm4, %v7952_v13, %v9620_v20  ;;  %v9622_v13 = vld [vmem:[#allocation78_spill] sm:$0xff] }
 0x7d7   : > { %v3601_v8 = vsub.f32 %v7708_v7, %v3585_v32  ;;  %v3604_v4 = vsub.f32 %v7875_v55, %v3585_v32  ;;  %v3607_v39 = vsub.f32 %v3560_v43, %v3585_v32  ;;  %v3610_v54 = vsub.f32 %v7665_v61, %v3585_v32  ;;  %4343 = vrot.lane.b32.xlu0 %v8046_v19, %s9219_s22 }
 0x7d8   : > { %v3575_v63 = vmax.f32 %v3573_v47, %v3574_v15  ;;  %4383 = vrot.lane.b32.xlu1 %v8016_v46, %s9222_s18  ;;  %v8058_v31 = vpop.permute.xlu0 %3855  ;;  %v9588_v15 = vld [vmem:[#allocation50_spill] sm:$0xff]  ;;  %v3818_v42 = vsel %vm9594_vm12, %v7999_v58, %v9622_v13  ;;  %v9627_v58 = vld [vmem:[#allocation20_spill] sm:$0xff] }
 0x7d9   : > { %v3614_v35 = vmul.f32 1.442695, %v3601_v8  ;;  %v3620_v24 = vmul.f32 1.442695, %v3604_v4  ;;  %v3626_v21 = vmul.f32 1.442695, %v3607_v39  ;;  %v8064_v32 = vpop.permute.xlu1 %4041  ;;  %v3770_v8 = vsel %vm9589_vm10, %v7797_v41, %v9588_v15 }
 0x7da   : > { %v3600_v7 = vsub.f32 %v9574_v51, %v3575_v63  ;;  %v3603_v55 = vsub.f32 %v7872_v48, %v3575_v63  ;;  %v3606_v61 = vsub.f32 %v7997_v2, %v3575_v63  ;;  %v3609_v43 = vsub.f32 %v7675_v17, %v3575_v63  ;;  %9585 = vst [vmem:[#allocation61_spill] sm:$0xff] %v8058_v31  ;;  %v9586_v51 = vld [vmem:[#allocation96_spill] sm:$0xff]  ;;  %v9590_v4 = vld [vmem:[#allocation6_spill] sm:$0xff] }
 0x7db   : > { %5349 = vpow2.f32 %v3614_v35  ;;  %4381 = vrot.lane.b32.xlu0 %v8060_v38, %s9222_s18  ;;  %v3724_v17 = vsel %vm9587_vm2, %v7782_v3, %v9586_v51  ;;  %v3632_v2 = vmul.f32 1.442695, %v3610_v54  ;;  %v8075_v39 = vsub.s32 4, %v9590_v4  ;;  %v9593_v35 = vld [vmem:[#allocation15_spill] sm:$0xff]  ;;  %v9602_v51 = vld [vmem:[#allocation98_spill] sm:$0xff] }
 0x7dc   : > { %v3612_v12 = vmul.f32 1.442695, %v3600_v7  ;;  %v3618_v0 = vmul.f32 1.442695, %v3603_v55  ;;  %5351 = vpow2.f32 %v3620_v24  ;;  %v3624_v47 = vmul.f32 1.442695, %v3606_v61  ;;  %4387 = vrot.lane.b32.xlu1 %v8025_v6, %s9222_s18  ;;  %v8077_v63 = vpop.permute.xlu0 %3901 }
 0x7dd   : > { %5353 = vpow2.f32 %v3626_v21  ;;  %v3630_v48 = vmul.f32 1.442695, %v3609_v43  ;;  %9591 = vst [vmem:[#allocation68_spill] sm:$0xff] %v8075_v39  ;;  %9592 = vst [vmem:[#allocation42_spill] sm:$0xff] %v8077_v63  ;;  %v3816_v24 = vsel %vm9594_vm12, %v7814_v62, %v9593_v35  ;;  %v8083_v21 = vsub.s32 5, %v9590_v4  ;;  %v9596_v7 = vld [vmem:[#allocation53_spill] sm:$0xff] }
 0x7de   : > { %5355 = vpow2.f32 %v3612_v12  ;;  %v3862_v54 = vsel %vm9597_vm5, %v7835_v26, %v9596_v7  ;;  %v8091_v55 = vsub.s32 6, %v9590_v4  ;;  %v9599_v61 = vld [vmem:[#allocation54_spill] sm:$0xff]  ;;  %v8097_v12 = vsub.s32 7, %v9590_v4  ;;  %v9604_v35 = vld [vmem:[#allocation57_spill] sm:$0xff]  ;;  %v9606_v7 = vld [vmem:[#allocation59_spill] sm:$0xff] }
 0x7df   : > { %5357 = vpow2.f32 %v3618_v0  ;;  %9595 = vst [vmem:[#allocation63_spill] sm:$0xff] %v8083_v21  ;;  %4385 = vrot.lane.b32.xlu0 %v8031_v16, %s9222_s18  ;;  %v3908_v43 = vsel %vm9600_vm11, %v7854_v40, %v9599_v61  ;;  %v3954_v15 = vsel %vm9603_vm0, %v7866_v45, %v9602_v51  ;;  %v4046_v63 = vsel %vm9607_vm15, %v7902_v22, %v9606_v7  ;;  %v8110_v61 = vpop.permute.xlu1 %4087  ;;  %v9630_v22 = vld [vmem:[#allocation82_spill] sm:$0xff] }
 0x7e0   : > { %5359 = vpow2.f32 %v3624_v47  ;;  %9598 = vst [vmem:[#allocation65_spill] sm:$0xff] %v8091_v55  ;;  %9601 = vst [vmem:[#allocation43_spill] sm:$0xff] %v8097_v12  ;;  %v5348_v0 = vpop.eup %5347  ;;  %v4000_v47 = vsel %vm9605_vm6, %v7887_v53, %v9604_v35  ;;  %4425 = vrot.lane.b32.xlu1 %v8037_v11, %s9225_s4  ;;  %v8116_v51 = vpop.permute.xlu0 %3947  ;;  %v9611_v35 = vld [vmem:[#allocation23_spill] sm:$0xff]  ;;  %v4048_v53 = vsel %vm9607_vm15, %v8064_v32, %v9630_v22 }
 0x7e1   : > { %5361 = vpow2.f32 %v3630_v48  ;;  %v3677_v48 = vmul.f32 %v5348_v0, %v7954_v33  ;;  %v8114_v4 = vmul.f32 %v5348_v0, %v7957_v49  ;;  %9609 = vst [vmem:[#allocation44_spill] sm:$0xff] %v8116_v51  ;;  %v8119_v31 = vmul.f32 %v5348_v0, %v7963_v50  ;;  %v9617_v50 = vld [vmem:[#allocation7_spill] sm:$0xff] }
 0x7e2   : > { %5363 = vpow2.f32 %v3632_v2  ;;  %v8124_v7 = vsel %vm9612_vm1, %v7912_v28, %v9611_v35  ;;  %v9615_v2 = vld [vmem:[#allocation70_spill] sm:$0xff]  ;;  %v8139_v49 = vmul.f32 %v5348_v0, %v7967_v5  ;;  %v9618_v35 = vld [vmem:[#allocation9_spill] sm:$0xff]  ;;  %v3726_v5 = vsel %vm9587_vm2, %v7961_v18, %v7502_v59 }
 0x7e3   : > { %9608 = vst [vmem:[#allocation72_spill] sm:$0xff] %v8114_v4  ;;  %9610 = vst [vmem:[#allocation90_spill] sm:$0xff] %v8119_v31  ;;  %v8134_v33 = vsel %vm2689_vm9, %v7942_v29, %v9615_v2  ;;  %4389 = vrot.lane.b32.xlu0 %v8046_v19, %s9222_s18  ;;  %v3704_v31 = vrot.slane %v3677_v48, %v9617_v50  ;;  %v3756_v51 = vrot.slane %v3677_v48, %v9618_v35  ;;  %v9624_v18 = vld [vmem:[#allocation73_spill] sm:$0xff]  ;;  %s522_s18 = scalar_lea.vmem %s8944_s16, %s5201_s9 }
 0x7e4   : > { %9616 = vst [vmem:[#allocation89_spill] sm:$0xff] %v8139_v49  ;;  %v3802_v34 = vrot.slane %v3677_v48, %v9619_v9  ;;  %v3848_v2 = vrot.slane %v3677_v48, %v9621_v27  ;;  %v3894_v23 = vrot.slane %v3677_v48, %v8075_v39  ;;  %v3772_v0 = vsel %vm9589_vm10, %v7983_v56, %v7528_v30  ;;  %v8163_v52 = vpop.permute.xlu0 %3993  ;;  %v9625_v56 = vld [vmem:[#allocation41_spill] sm:$0xff] }
 0x7e5   : > { %4429 = vrot.lane.b32.xlu1 %v8016_v46, %s9225_s4  ;;  %v3735_v49 = vmul.f32 %v3724_v17, %v3704_v31  ;;  %v3781_v29 = vmul.f32 %v3770_v8, %v3756_v51  ;;  %v3940_v20 = vrot.slane %v3677_v48, %v8083_v21  ;;  %9623 = vst [vmem:[#allocation91_spill] sm:$0xff] %v8163_v52  ;;  %v8177_v8 = vpop.permute.xlu1 %4133 }
 0x7e6   : > { %v8166_v28 = vrot.slane %v3677_v48, %v8091_v55  ;;  %v4032_v59 = vrot.slane %v3677_v48, %v8097_v12  ;;  %v3864_v30 = vsel %vm9597_vm5, %v8014_v10, %v9624_v18  ;;  %v3910_v17 = vsel %vm9600_vm11, %v8023_v25, %v9625_v56  ;;  %v9628_v12 = vld [vmem:[#allocation39_spill] sm:$0xff] }
 0x7e7   : > { %4427 = vrot.lane.b32.xlu0 %v8060_v38, %s9225_s4  ;;  %v3787_v52 = vadd.f32 %v3781_v29, %v3735_v49  ;;  %v3827_v55 = vmul.f32 %v3816_v24, %v3802_v34  ;;  %v3956_v48 = vsel %vm9603_vm0, %v8035_v57, %v9627_v58  ;;  %v8187_v18 = vsel %vm9605_vm6, %v8050_v1, %v9628_v12  ;;  %v9631_v29 = vld [vmem:[#allocation77_spill] sm:$0xff] }
 0x7e8   : > { %v8179_v13 = vpop.eup %5349  ;;  %v3873_v56 = vmul.f32 %v3862_v54, %v3848_v2  ;;  %v3919_v25 = vmul.f32 %v3908_v43, %v3894_v23  ;;  %v4094_v58 = vsel %vm9612_vm1, %v8110_v61, %v9631_v29  ;;  %v3965_v1 = vmul.f32 %v3954_v15, %v3940_v20  ;;  %v8205_v43 = vpop.permute.xlu0 %4039 }
 0x7e9   : > { %9626 = vst [vmem:[#allocation80_spill] sm:$0xff] %v8179_v13  ;;  %v8189_v10 = vpop.eup %5351  ;;  %4433 = vrot.lane.b32.xlu1 %v8025_v6, %s9225_s4  ;;  %v3833_v49 = vadd.f32 %v3827_v55, %v3787_v52  ;;  %v4078_v54 = vrot.slane %v8114_v4, %v9617_v50  ;;  %9633 = vst [vmem:[#allocation92_spill] sm:$0xff] %v8205_v43  ;;  %v4011_v57 = vmul.f32 %v4000_v47, %v8166_v28  ;;  %v4180_v26 = vpop.permute.xlu1 %4179 }
 0x7ea   : > { %9629 = vst [vmem:[#allocation31_spill] sm:$0xff] %v8189_v10  ;;  %v8199_v24 = vpop.eup %5353  ;;  %v3649_v12 = vadd.f32 %v8189_v10, %v8179_v13  ;;  %v4057_v45 = vmul.f32 %v4046_v63, %v4032_v59  ;;  %v4124_v29 = vrot.slane %v8114_v4, %v9618_v35  ;;  %v8214_v40 = vrot.slane %v8114_v4, %v9619_v9 }
 0x7eb   : > { %9632 = vst [vmem:[#allocation67_spill] sm:$0xff] %v8199_v24  ;;  %v8207_v22 = vpop.eup %5355  ;;  %4431 = vrot.lane.b32.xlu0 %v8031_v16, %s9225_s4  ;;  %v3879_v50 = vadd.f32 %v3873_v56, %v3833_v49  ;;  %v8225_v63 = vrot.slane %v8114_v4, %v9621_v27  ;;  %v3738_v35 = vmul.f32 %v3726_v5, %v3704_v31 }
 0x7ec   : > { %9634 = vst [vmem:[#allocation93_spill] sm:$0xff] %v8207_v22  ;;  %v8218_v52 = vpop.eup %5357  ;;  %v3636_v55 = vsel %vm551_vm3, %v8207_v22, 0.0  ;;  %v3650_v15 = vadd.f32 %v8199_v24, %v3649_v12  ;;  %v3784_v10 = vmul.f32 %v3772_v0, %v3756_v51  ;;  %v3830_v13 = vmul.f32 %v3818_v42, %v3802_v34  ;;  %v8236_v24 = vpop.permute.xlu0 %4085 }
 0x7ed   : > { %v8227_v47 = vpop.eup %5359  ;;  %v3637_v9 = vsel %vm551_vm3, %v8218_v52, 0.0  ;;  %4471 = vrot.lane.b32.xlu1 %v8037_v11, %s9228_s5  ;;  %v3925_v56 = vadd.f32 %v3919_v25, %v3879_v50  ;;  %v4103_v49 = vmul.f32 %v8124_v7, %v4078_v54  ;;  %v3876_v27 = vmul.f32 %v3864_v30, %v3848_v2  ;;  %9636 = vst [vmem:[#allocation45_spill] sm:$0xff] %v8236_v24 }
 0x7ee   : > { %v8233_v22 = vpop.eup %5361  ;;  %v3638_v12 = vadd.f32 %v3637_v9, %v3636_v55  ;;  %v3639_v31 = vsel %vm551_vm3, %v8227_v47, 0.0  ;;  %v3790_v34 = vadd.f32 %v3784_v10, %v3738_v35  ;;  %v3922_v51 = vmul.f32 %v3910_v17, %v3894_v23  ;;  %vm9637_vm3 = vmmov %vm9607_vm15  ;;  %v9639_v10 = vld [vmem:[#allocation24_spill] sm:$0xff]  ;;  %v4226_v17 = vpop.permute.xlu1 %4225 }
 0x7ef   : > { %9635 = vst [vmem:[#allocation71_spill] sm:$0xff] %v8233_v22  ;;  %v8238_v62 = vpop.eup %5363  ;;  %v3641_v42 = vsel %vm3566_vm13, %v8233_v22, 0.0  ;;  %4435 = vrot.lane.b32.xlu0 %v8046_v19, %s9225_s4  ;;  %v3971_v7 = vadd.f32 %v3965_v1, %v3925_v56  ;;  %v4060_v50 = vmul.f32 %v4048_v53, %v4032_v59  ;;  %v3968_v0 = vmul.f32 %v3956_v48, %v3940_v20  ;;  %vm9640_vm13 = vmmov %vm9614_vm14  ;;  %v9644_v48 = vld [vmem:[#allocation79_spill] sm:$0xff] }
 0x7f0   : > { %v3640_v9 = vadd.f32 %v3639_v31, %v3638_v12  ;;  %v3651_v25 = vsel %vm3493_vm8, %v8238_v62, 0.0  ;;  %v3836_v5 = vadd.f32 %v3830_v13, %v3790_v34  ;;  %v4106_v30 = vmul.f32 %v4094_v58, %v4078_v54  ;;  %v8258_v1 = vpop.permute.xlu0 %4131  ;;  %vm9642_vm8 = vmmov %vm9612_vm1 }
 0x7f1   : > { %v3652_v2 = vadd.f32 %v3651_v25, %v3650_v15  ;;  %4475 = vrot.lane.b32.xlu1 %v8016_v46, %s9228_s5  ;;  %v4017_v22 = vadd.f32 %v4011_v57, %v3971_v7  ;;  %v8253_v23 = vsel %vm9637_vm3, %v8205_v43, %v8064_v32  ;;  %v4140_v35 = vsel %vm9640_vm13, %v8177_v8, %v9639_v10  ;;  %vm9645_vm14 = vmmov %vm9640_vm13 }
 0x7f2   : > { %v3642_v55 = vadd.f32 %v3641_v42, %v3640_v9  ;;  %9638 = vst [vmem:[#allocation75_spill] sm:$0xff] %v8253_v23  ;;  %9641 = vst [vmem:[#allocation74_spill] sm:$0xff] %v8258_v1  ;;  %v3882_v59 = vadd.f32 %v3876_v27, %v3836_v5  ;;  %v4152_v20 = vmul.f32 %v4140_v35, %v4124_v29 }
 0x7f3   : > { %v3653_v53 = vrot.slane %v3652_v2, 4  ;;  %4473 = vrot.lane.b32.xlu0 %v8060_v38, %s9228_s5  ;;  %v8265_v57 = vsel %vm9642_vm8, %v8236_v24, %v8110_v61  ;;  %v4063_v13 = vadd.f32 %v4057_v45, %v4017_v22  ;;  %v4186_v58 = vsel %vm2689_vm9, %v4180_v26, %v9644_v48  ;;  %vm9667_vm15 = vmmov %vm9637_vm3 }
 0x7f4   : > { %9643 = vst [vmem:[#allocation33_spill] sm:$0xff] %v8265_v57  ;;  %v3643_v32 = vrot.slane %v3642_v55, 4  ;;  %v8272_v54 = vsel %vm9645_vm14, %v8258_v1, %v8177_v8  ;;  %v3928_v15 = vadd.f32 %v3922_v51, %v3882_v59  ;;  %v4014_v12 = vmul.f32 %v8187_v18, %v8166_v28  ;;  %v8282_v42 = vpop.permute.xlu0 %4177  ;;  %vm9672_vm3 = vmmov %vm9640_vm13  ;;  %v9710_v57 = vld [vmem:[#allocation80_spill] sm:$0xff] }
 0x7f5   : > { %9646 = vst [vmem:[#allocation47_spill] sm:$0xff] %v8272_v54  ;;  %v3654_v27 = vadd.f32 %v3653_v53, %v3652_v2  ;;  %v4198_v56 = vmul.f32 %v4186_v58, %v8214_v40  ;;  %4479 = vrot.lane.b32.xlu1 %v8025_v6, %s9228_s5  ;;  %v4109_v45 = vadd.f32 %v4103_v49, %v4063_v13  ;;  %9647 = vst [vmem:[#allocation18_spill] sm:$0xff] %v8282_v42 }
 0x7f6   : > { %v3644_v61 = vadd.f32 %v3643_v32, %v3642_v55  ;;  %v4149_v22 = vmul.f32 %v8129_v44, %v4124_v29  ;;  %v4232_v31 = vsel %vm2743_vm4, %v4226_v17, %v7755_v60  ;;  %v3974_v34 = vadd.f32 %v3968_v0, %v3928_v15  ;;  %vm9685_vm13 = vmmov %vm9587_vm2 }
 0x7f7   : > { %v3655_v8 = vrot.slane %v3654_v27, 2  ;;  %4477 = vrot.lane.b32.xlu0 %v8031_v16, %s9228_s5  ;;  %v4244_v28 = vmul.f32 %v4232_v31, %v8225_v63  ;;  %v8289_v18 = vsel %vm2689_vm9, %v8282_v42, %v4180_v26  ;;  %v4195_v44 = vmul.f32 %v8134_v33, %v8214_v40  ;;  %vm9691_vm8 = vmmov %vm9594_vm12 }
 0x7f8   : > { %9648 = vst [vmem:[#allocation69_spill] sm:$0xff] %v8289_v18  ;;  %v3645_v51 = vrot.slane %v3644_v61, 2  ;;  %v4155_v49 = vadd.f32 %v4149_v22, %v4109_v45  ;;  %v4262_v60 = vrot.slane %v8114_v4, %v8075_v39  ;;  %v4020_v9 = vadd.f32 %v4014_v12, %v3974_v34  ;;  %v8301_v5 = vpop.permute.xlu0 %4223  ;;  %v9653_v12 = vld [vmem:[#allocation84_spill] sm:$0xff]  ;;  %v9655_v45 = vld [vmem:[#allocation26_spill] sm:$0xff]  ;;  %v9658_v34 = vld [vmem:[#allocation85_spill] sm:$0xff] }
 0x7f9   : > { %v3656_v29 = vadd.f32 %v3655_v8, %v3654_v27  ;;  %4517 = vrot.lane.b32.xlu1 %v8037_v11, %s9195_s25  ;;  %v4241_v2 = vmul.f32 %v8147_v36, %v8225_v63  ;;  %v4286_v26 = vrot.slane %v8114_v4, %v8083_v21  ;;  %9649 = vst [vmem:[#allocation76_spill] sm:$0xff] %v8301_v5  ;;  %v9657_v8 = vld [vmem:[#allocation52_spill] sm:$0xff]  ;;  %vm9695_vm14 = vmmov %vm9597_vm5  ;;  %v9698_v4 = vld [vmem:[#allocation42_spill] sm:$0xff] }
 0x7fa   : > { %v3646_v25 = vadd.f32 %v3645_v51, %v3644_v61  ;;  %v4201_v7 = vadd.f32 %v4195_v44, %v4155_v49  ;;  %v4066_v40 = vadd.f32 %v4060_v50, %v4020_v9  ;;  %v8307_v33 = vsel %vm2743_vm4, %v8301_v5, %v4226_v17  ;;  %v9654_v61 = vld [vmem:[#allocation46_spill] sm:$0xff]  ;;  %v9659_v51 = vld [vmem:[#allocation87_spill] sm:$0xff]  ;;  %v9702_v5 = vld [vmem:[#allocation44_spill] sm:$0xff] }
 0x7fb   : > { %v3657_v0 = vrot.slane %v3656_v29, 1  ;;  %4481 = vrot.lane.b32.xlu0 %v8046_v19, %s9228_s5  ;;  %9650 = vst [vmem:[#allocation48_spill] sm:$0xff] %v8307_v33  ;;  %v4265_v35 = vmul.f32 %v8016_v46, %v4262_v60  ;;  %v4311_v50 = vmul.f32 %v7936_v37, %v4286_v26  ;;  %v4314_v58 = vmul.f32 %v7992_v14, %v4286_v26  ;;  %v9662_v44 = vld [vmem:[#allocation86_spill] sm:$0xff]  ;;  %v9664_v9 = vld [vmem:[#allocation83_spill] sm:$0xff] }
 0x7fc   : > { %v3647_v55 = vrot.slane %v3646_v25, 1  ;;  %v4247_v10 = vadd.f32 %v4241_v2, %v4201_v7  ;;  %v4112_v36 = vadd.f32 %v4106_v30, %v4066_v40  ;;  %v4268_v30 = vmul.f32 %v8046_v19, %v4262_v60  ;;  %v9665_v7 = vld [vmem:[#allocation95_spill] sm:$0xff]  ;;  %v9666_v2 = vld [vmem:[#allocation28_spill] sm:$0xff]  ;;  %v9669_v40 = vld [vmem:[#allocation94_spill] sm:$0xff]  ;;  %v4294_v54 = vpop.permute.xlu0 %4293 }
 0x7fd   : > { %v3658_v53 = vadd.f32 %v3657_v0, %v3656_v29  ;;  %4521 = vrot.lane.b32.xlu1 %v8016_v46, %s9195_s25  ;;  %v3815_v22 = vsel %vm9594_vm12, %v9655_v45, %v9654_v61  ;;  %v9663_v29 = vld [vmem:[#allocation30_spill] sm:$0xff]  ;;  %v8361_v26 = vsel %vm9667_vm15, %v9666_v2, %v9665_v7  ;;  %v9668_v0 = vld [vmem:[#allocation55_spill] sm:$0xff]  ;;  %v9684_v7 = vld [vmem:[#allocation101_spill] sm:$0xff] }
 0x7fe   : > { %v3648_v63 = vadd.f32 %v3647_v55, %v3646_v25  ;;  %v4271_v59 = vadd.f32 %v4265_v35, %v4247_v10  ;;  %v4158_v32 = vadd.f32 %v4152_v20, %v4112_v36  ;;  %v9652_v20 = vld [vmem:[#allocation22_spill] sm:$0xff]  ;;  %v8356_v25 = vsel %vm9605_vm6, %v9664_v9, %v9663_v29  ;;  %v9670_v10 = vld [vmem:[#allocation56_spill] sm:$0xff]  ;;  %v9671_v35 = vld [vmem:[#allocation51_spill] sm:$0xff] }
 0x7ff   : > { %5365 = vrcp.f32 %v3658_v53  ;;  %4519 = vrot.lane.b32.xlu0 %v8060_v38, %s9195_s25  ;;  %v3723_v15 = vsel %vm9587_vm2, %v9652_v20, %v7782_v3  ;;  %v9660_v3 = vld [vmem:[#allocation81_spill] sm:$0xff]  ;;  %v8366_v55 = vsel %vm9612_vm1, %v9669_v40, %v9668_v0  ;;  %v8371_v53 = vsel %vm9672_vm3, %v9671_v35, %v9670_v10  ;;  %v9673_v36 = vld [vmem:[#allocation32_spill] sm:$0xff]  ;;  %v9683_v29 = vld [vmem:[#allocation99_spill] sm:$0xff] }
 0x800   : > { %5367 = vrcp.f32 %v3648_v63  ;;  %v8315_v17 = vadd.f32 %v4311_v50, %v4271_v59  ;;  %v4204_v13 = vadd.f32 %v4198_v56, %v4158_v32  ;;  %v3769_v56 = vsel %vm9589_vm10, %v9653_v12, %v7797_v41  ;;  %v9661_v41 = vld [vmem:[#allocation97_spill] sm:$0xff]  ;;  %v9674_v63 = vld [vmem:[#allocation16_spill] sm:$0xff]  ;;  %v4296_v50 = vpop.permute.xlu1 %4295  ;;  %v9675_v32 = vld [vmem:[#allocation34_spill] sm:$0xff] }
 0x801   : > { %4525 = vrot.lane.b32.xlu1 %v8025_v6, %s9195_s25  ;;  %v8346_v49 = vsel %vm9600_vm11, %v9660_v3, %v9659_v51  ;;  %v8351_v60 = vsel %vm9603_vm0, %v9662_v44, %v9661_v41  ;;  %v8376_v59 = vsel %vm2689_vm9, %v9674_v63, %v9673_v36  ;;  %v9680_v51 = vld [vmem:[#allocation19_spill] sm:$0xff]  ;;  %vm9681_vm9 = vcmask 1031168   ;;  %v9686_v10 = vld [vmem:[#allocation60_spill] sm:$0xff]  ;;  %v9687_v36 = vld [vmem:[#allocation66_spill] sm:$0xff] }
 0x802   : > { %9651 = vst [vmem:[#allocation11_spill] sm:$0xff] %v8315_v17  ;;  %v4250_v48 = vadd.f32 %v4244_v28, %v4204_v13  ;;  %v8341_v28 = vsel %vm9597_vm5, %v9658_v34, %v9657_v8  ;;  %v9676_v13 = vld [vmem:[#allocation17_spill] sm:$0xff]  ;;  %v8403_v0 = vsel %vm9685_vm13, %v9684_v7, %v9683_v29  ;;  %vm9699_vm2 = vmmov %vm9600_vm11  ;;  %v9706_v18 = vld [vmem:[#allocation91_spill] sm:$0xff]  ;;  %vm9759_vm5 = vcmask 703488  }
 0x803   : > { %4523 = vrot.lane.b32.xlu0 %v8031_v16, %s9195_s25  ;;  %v9679_v8 = vld [vmem:[#allocation21_spill] sm:$0xff]  ;;  %vm9707_vm12 = vmmov %vm9605_vm6  ;;  %vm4927_vm6 = vcmask 261120  }
 0x804   : > { %v4274_v27 = vadd.f32 %v4268_v30, %v4250_v48  ;;  %v8383_v30 = vsel %vm2743_vm4, %v9676_v13, %v9675_v32  ;;  %v9677_v48 = vld [vmem:[#allocation58_spill] sm:$0xff]  ;;  %v8398_v41 = vsel %vm9681_vm9, %v9680_v51, %v9679_v8  ;;  %vm9688_vm4 = vmmov %vm9589_vm10  ;;  %v9694_v17 = vld [vmem:[#allocation61_spill] sm:$0xff] }
 0x805   : > { %4563 = vrot.lane.b32.xlu1 %v8037_v11, %s9196_s27  ;;  %v8393_v61 = vsel %vm2828_vm7, %v9677_v48, %v7936_v37  ;;  %9682 = vst [vmem:[#allocation37_spill] sm:$0xff] %v8398_v41  ;;  %v8408_v32 = vsel %vm9688_vm4, %v9687_v36, %v9686_v10  ;;  %v9697_v8 = vld [vmem:[#allocation38_spill] sm:$0xff]  ;;  %vm9703_vm10 = vmmov %vm9603_vm0 }
 0x806   : > { %v8336_v31 = vadd.f32 %v4314_v58, %v4274_v27  ;;  %v9678_v58 = vld [vmem:[#allocation88_spill] sm:$0xff]  ;;  %v8425_v33 = vsel %vm9699_vm2, %v9698_v4, %v9697_v8  ;;  %v9701_v10 = vld [vmem:[#allocation62_spill] sm:$0xff]  ;;  %v9711_v8 = vld [vmem:[#allocation31_spill] sm:$0xff] }
 0x807   : > { %4527 = vrot.lane.b32.xlu0 %v8046_v19, %s9195_s25  ;;  %v8388_v27 = vsel %vm2828_vm7, %v9678_v58, %v9677_v48  ;;  %v9689_v58 = vld [vmem:[#allocation100_spill] sm:$0xff]  ;;  %9700 = vst [vmem:[#allocation96_spill] sm:$0xff] %v8425_v33  ;;  %v8430_v41 = vsel %vm9703_vm10, %v9702_v5, %v9701_v10  ;;  %v9712_v10 = vld [vmem:[#allocation67_spill] sm:$0xff]  ;;  %v9721_v33 = vld [vmem:[#allocation9_spill] sm:$0xff] }
 0x808   : > { %9656 = vst [vmem:[#allocation35_spill] sm:$0xff] %v8336_v31  ;;  %v9690_v31 = vld [vmem:[#allocation27_spill] sm:$0xff]  ;;  %v9693_v48 = vld [vmem:[#allocation36_spill] sm:$0xff]  ;;  %9704 = vst [vmem:[#allocation50_spill] sm:$0xff] %v8430_v41 }
 0x809   : > { %4567 = vrot.lane.b32.xlu1 %v8016_v46, %s9196_s27  ;;  %v8413_v37 = vsel %vm9691_vm8, %v9690_v31, %v9689_v58  ;;  %v8418_v51 = vsel %vm9695_vm14, %v9694_v17, %v9693_v48  ;;  %v9705_v58 = vld [vmem:[#allocation40_spill] sm:$0xff]  ;;  %v8439_v48 = vsel %vm2828_vm7, %v4296_v50, %v7992_v14  ;;  %v9720_v41 = vld [vmem:[#allocation7_spill] sm:$0xff]  ;;  %vm9761_vm11 = vmmov %vm9759_vm5  ;;  %vm9781_vm14 = vcmask 891904  }
 0x80a   : > { %9692 = vst [vmem:[#allocation49_spill] sm:$0xff] %v8413_v37  ;;  %9696 = vst [vmem:[#allocation25_spill] sm:$0xff] %v8418_v51  ;;  %v8435_v42 = vsel %vm9707_vm12, %v9706_v18, %v9705_v58 }
 0x80b   : > { %4565 = vrot.lane.b32.xlu0 %v8060_v38, %s9196_s27  ;;  %9708 = vst [vmem:[#allocation6_spill] sm:$0xff] %v8435_v42  ;;  %9709 = vst [vmem:[#allocation15_spill] sm:$0xff] %v8439_v48  ;;  %v9715_v42 = vld [vmem:[#allocation93_spill] sm:$0xff] }
 0x80c   : > { %v5366_v29 = vpop.eup %5365  ;;  %vm9765_vm0 = vmmov %vm9759_vm5 }
 0x80d   : > { %v5368_v1 = vpop.eup %5367  ;;  %v3676_v24 = vmul.f32 %v5366_v29, %v9710_v57  ;;  %v8443_v23 = vmul.f32 %v5366_v29, %v9711_v8  ;;  %4571 = vrot.lane.b32.xlu1 %v8025_v6, %s9196_s27  ;;  %v8448_v43 = vmul.f32 %v5366_v29, %v9712_v10  ;;  %v8451_v58 = vmul.f32 %v5366_v29, %v8238_v62  ;;  %v9718_v57 = vld [vmem:[#allocation71_spill] sm:$0xff]  ;;  %v9725_v29 = vld [vmem:[#allocation10_spill] sm:$0xff]  ;;  %vm9768_vm1 = vmmov %vm9765_vm0 }
 0x80e   : > { %v3675_v18 = vmul.f32 %v5368_v1, %v9715_v42  ;;  %v8455_v14 = vmul.f32 %v5368_v1, %v8218_v52  ;;  %v8458_v48 = vmul.f32 %v5368_v1, %v8227_v47  ;;  %v8461_v8 = vmul.f32 %v5368_v1, %v9718_v57  ;;  %vm9782_vm2 = vmmov %vm9781_vm14 }
 0x80f   : > { %9713 = vst [vmem:[#allocation53_spill] sm:$0xff] %v8448_v43  ;;  %9714 = vst [vmem:[#allocation54_spill] sm:$0xff] %v8451_v58  ;;  %v8464_v5 = vrot.slane %v3676_v24, %v9720_v41  ;;  %v8467_v10 = vrot.slane %v3676_v24, %v9721_v33  ;;  %v9722_v43 = vld [vmem:[#allocation8_spill] sm:$0xff]  ;;  %v8473_v42 = vsel %vm2828_vm7, %v4294_v54, %v4296_v50  ;;  %4569 = vrot.lane.b32.xlu0 %v8031_v16, %s9196_s27 }
 0x810   : > { %9716 = vst [vmem:[#allocation98_spill] sm:$0xff] %v8455_v14  ;;  %9717 = vst [vmem:[#allocation57_spill] sm:$0xff] %v8458_v48  ;;  %v8470_v62 = vrot.slane %v3676_v24, %v9722_v43  ;;  %v8478_v52 = vrot.slane %v3675_v18, %v9720_v41  ;;  %v8481_v47 = vrot.slane %v3675_v18, %v9721_v33 }
 0x811   : > { %9719 = vst [vmem:[#allocation59_spill] sm:$0xff] %v8461_v8  ;;  %9724 = vst [vmem:[#allocation64_spill] sm:$0xff] %v8473_v42  ;;  %v8484_v1 = vrot.slane %v3675_v18, %v9722_v43  ;;  %v8487_v57 = vrot.slane %v3675_v18, %v9725_v29  ;;  %v3734_v58 = vmul.f32 %v3723_v15, %v8464_v5  ;;  %4613 = vrot.lane.b32.xlu1 %v8037_v11, %s9235_s6 }
 0x812   : > { %9723 = vst [vmem:[#allocation23_spill] sm:$0xff] %v8470_v62  ;;  %v3780_v54 = vmul.f32 %v3769_v56, %v8467_v10  ;;  %v8492_v50 = vrot.slane %v3675_v18, %v8075_v39  ;;  %v8495_v8 = vrot.slane %v3676_v24, %v9725_v29  ;;  %v3733_v48 = vmul.f32 %v9652_v20, %v8478_v52  ;;  %vm9758_vm7 = vmmov %vm9681_vm9 }
 0x813   : > { %v3779_v42 = vmul.f32 %v9653_v12, %v8481_v47  ;;  %v3825_v15 = vmul.f32 %v9655_v45, %v8484_v1  ;;  %v3826_v56 = vmul.f32 %v3815_v22, %v8470_v62  ;;  %v3871_v4 = vmul.f32 %v9658_v34, %v8487_v57  ;;  %4573 = vrot.lane.b32.xlu0 %v8046_v19, %s9196_s27  ;;  %v9728_v12 = vld [vmem:[#allocation65_spill] sm:$0xff]  ;;  %v9729_v22 = vld [vmem:[#allocation43_spill] sm:$0xff]  ;;  %vm9766_vm15 = vmmov %vm9758_vm7 }
 0x814   : > { %9726 = vst [vmem:[#allocation70_spill] sm:$0xff] %v8492_v50  ;;  %9727 = vst [vmem:[#allocation29_spill] sm:$0xff] %v8495_v8  ;;  %v3786_v51 = vadd.f32 %v3780_v54, %v3734_v58  ;;  %v3917_v17 = vmul.f32 %v9660_v3, %v8492_v50  ;;  %v8511_v37 = vrot.slane %v3675_v18, %v8083_v21  ;;  %vm9773_vm9 = vcmask 900096  }
 0x815   : > { %v3785_v20 = vadd.f32 %v3779_v42, %v3733_v48  ;;  %v8516_v31 = vrot.slane %v3675_v18, %v9728_v12  ;;  %v8519_v45 = vrot.slane %v3676_v24, %v8075_v39  ;;  %v8522_v62 = vrot.slane %v3675_v18, %v9729_v22  ;;  %4617 = vrot.lane.b32.xlu1 %v8016_v46, %s9235_s6  ;;  %vm9769_vm3 = vmmov %vm9758_vm7 }
 0x816   : > { %v3832_v34 = vadd.f32 %v3826_v56, %v3786_v51  ;;  %v3872_v3 = vmul.f32 %v8341_v28, %v8495_v8  ;;  %v8527_v58 = vrot.slane %v3676_v24, %v8083_v21  ;;  %v8531_v54 = vrot.slane %v8455_v14, %v9720_v41  ;;  %vm9774_vm13 = vmmov %vm9773_vm9 }
 0x817   : > { %v3831_v48 = vadd.f32 %v3825_v15, %v3785_v20  ;;  %v3963_v42 = vmul.f32 %v9662_v44, %v8511_v37  ;;  %v4009_v18 = vmul.f32 %v9664_v9, %v8516_v31  ;;  %v3918_v28 = vmul.f32 %v8346_v49, %v8519_v45  ;;  %4615 = vrot.lane.b32.xlu0 %v8060_v38, %s9235_s6  ;;  %vm9775_vm4 = vmmov %vm9773_vm9 }
 0x818   : > { %v3878_v51 = vadd.f32 %v3872_v3, %v3832_v34  ;;  %v4055_v56 = vmul.f32 %v9666_v2, %v8522_v62  ;;  %v3964_v50 = vmul.f32 %v8351_v60, %v8527_v58  ;;  %v8546_v8 = vrot.slane %v3676_v24, %v9728_v12  ;;  %vm9776_vm8 = vmmov %vm9775_vm4 }
 0x819   : > { %v3877_v44 = vadd.f32 %v3871_v4, %v3831_v48  ;;  %v8552_v9 = vrot.slane %v8455_v14, %v9721_v33  ;;  %v8555_v49 = vrot.slane %v3676_v24, %v9729_v22  ;;  %v8559_v2 = vrot.slane %v8455_v14, %v9722_v43  ;;  %4621 = vrot.lane.b32.xlu1 %v8031_v16, %s9235_s6  ;;  %v8579_v48 = vld [vmem:[#allocation4 + $0x58] sm:$0xff]  ;;  %vm9783_vm10 = vmmov %vm9782_vm2 }
 0x81a   : > { %v3924_v15 = vadd.f32 %v3918_v28, %v3878_v51  ;;  %v4101_v60 = vmul.f32 %v9669_v40, %v8531_v54  ;;  %v8565_v20 = vrot.slane %v8443_v23, %v9720_v41  ;;  %v8569_v4 = vrot.slane %v8455_v14, %v9725_v29  ;;  %vm9784_vm12 = vmmov %vm9782_vm2 }
 0x81b   : > { %v3923_v24 = vadd.f32 %v3917_v17, %v3877_v44  ;;  %v4010_v34 = vmul.f32 %v8356_v25, %v8546_v8  ;;  %v4147_v3 = vmul.f32 %v9671_v35, %v8552_v9  ;;  %v4056_v40 = vmul.f32 %v8361_v26, %v8555_v49  ;;  %4619 = vrot.lane.b32.xlu0 %v8579_v48, %s9235_s6 }
 0x81c   : > { %v3970_v28 = vadd.f32 %v3964_v50, %v3924_v15  ;;  %v4193_v51 = vmul.f32 %v9674_v63, %v8559_v2  ;;  %v4102_v41 = vmul.f32 %v8366_v55, %v8565_v20  ;;  %v8587_v17 = vrot.slane %v8455_v14, %v8075_v39 }
 0x81d   : > { %v3969_v25 = vadd.f32 %v3963_v42, %v3923_v24  ;;  %v8593_v26 = vrot.slane %v8443_v23, %v9721_v33  ;;  %v8597_v35 = vrot.slane %v8443_v23, %v9722_v43  ;;  %v8601_v63 = vrot.slane %v8443_v23, %v9725_v29  ;;  %4625 = vrot.lane.b32.xlu1 %v8046_v19, %s9235_s6 }
 0x81e   : > { %v4016_v55 = vadd.f32 %v4010_v34, %v3970_v28  ;;  %v4239_v50 = vmul.f32 %v9676_v13, %v8569_v4  ;;  %v8607_v44 = vrot.slane %v8443_v23, %v8075_v39  ;;  %v8611_v42 = vrot.slane %v8455_v14, %v8083_v21 }
 0x81f   : > { %v4015_v15 = vadd.f32 %v4009_v18, %v3969_v25  ;;  %v4263_v24 = vmul.f32 %v8037_v11, %v8587_v17  ;;  %v4148_v34 = vmul.f32 %v8371_v53, %v8593_v26  ;;  %v4194_v13 = vmul.f32 %v8376_v59, %v8597_v35  ;;  %4623 = vrot.lane.b32.xlu0 %v8025_v6, %s9235_s6 }
 0x820   : > { %v4062_v28 = vadd.f32 %v4056_v40, %v4016_v55  ;;  %v4240_v39 = vmul.f32 %v8383_v30, %v8601_v63  ;;  %v4264_v29 = vmul.f32 %v8060_v38, %v8607_v44  ;;  %v4282_v43 = vrot.slane %v8443_v23, %v8083_v21 }
 0x821   : > { %v4061_v18 = vadd.f32 %v4055_v56, %v4015_v15  ;;  %v4309_v53 = vmul.f32 %v8388_v27, %v8611_v42  ;;  %v3736_v59 = vmul.f32 %v9684_v7, %v8478_v52  ;;  %v3737_v40 = vmul.f32 %v8403_v0, %v8464_v5  ;;  %4665 = vrot.lane.b32.xlu1 %v8037_v11, %s9238_s7  ;;  %v9730_v52 = vld [vmem:[#allocation27_spill] sm:$0xff]  ;;  %v9732_v0 = vld [vmem:[#allocation49_spill] sm:$0xff] }
 0x822   : > { %v4108_v30 = vadd.f32 %v4102_v41, %v4062_v28  ;;  %v8637_v25 = vrot.slane %v8455_v14, %v9728_v12  ;;  %v3782_v55 = vmul.f32 %v9687_v36, %v8481_v47  ;;  %v3783_v56 = vmul.f32 %v8408_v32, %v8467_v10  ;;  %v9731_v41 = vld [vmem:[#allocation23_spill] sm:$0xff]  ;;  %v8650_v28 = vld [vmem:[#allocation4 + $0x78] sm:$0xff]  ;;  %v9736_v14 = vld [vmem:[#allocation70_spill] sm:$0xff] }
 0x823   : > { %v4107_v27 = vadd.f32 %v4101_v60, %v4061_v18  ;;  %v4310_v7 = vmul.f32 %v8393_v61, %v4282_v43  ;;  %v3828_v5 = vmul.f32 %v9730_v52, %v8484_v1  ;;  %v3829_v15 = vmul.f32 %v9732_v0, %v9731_v41  ;;  %v9733_v47 = vld [vmem:[#allocation61_spill] sm:$0xff]  ;;  %4627 = vrot.lane.b32.xlu0 %v8650_v28, %s9235_s6  ;;  %v9737_v1 = vld [vmem:[#allocation42_spill] sm:$0xff]  ;;  %v9738_v41 = vld [vmem:[#allocation96_spill] sm:$0xff] }
 0x824   : > { %v4154_v21 = vadd.f32 %v4148_v34, %v4108_v30  ;;  %v3788_v33 = vadd.f32 %v3782_v55, %v3736_v59  ;;  %v3789_v36 = vadd.f32 %v3783_v56, %v3737_v40  ;;  %v3874_v32 = vmul.f32 %v9733_v47, %v8487_v57  ;;  %v9734_v60 = vld [vmem:[#allocation29_spill] sm:$0xff]  ;;  %v9739_v40 = vld [vmem:[#allocation44_spill] sm:$0xff]  ;;  %v9741_v56 = vld [vmem:[#allocation91_spill] sm:$0xff] }
 0x825   : > { %v4153_v10 = vadd.f32 %v4147_v3, %v4107_v27  ;;  %v9735_v61 = vld [vmem:[#allocation25_spill] sm:$0xff]  ;;  %v3920_v52 = vmul.f32 %v9737_v1, %v9736_v14  ;;  %v3921_v0 = vmul.f32 %v9738_v41, %v8519_v45  ;;  %v3966_v30 = vmul.f32 %v9739_v40, %v8511_v37  ;;  %4669 = vrot.lane.b32.xlu1 %v8016_v46, %s9238_s7  ;;  %v9740_v3 = vld [vmem:[#allocation50_spill] sm:$0xff]  ;;  %v9751_v41 = vld [vmem:[#allocation15_spill] sm:$0xff] }
 0x826   : > { %v3875_v18 = vmul.f32 %v9735_v61, %v9734_v60  ;;  %v4200_v22 = vadd.f32 %v4194_v13, %v4154_v21  ;;  %v3834_v34 = vadd.f32 %v3828_v5, %v3788_v33  ;;  %v3835_v59 = vadd.f32 %v3829_v15, %v3789_v36  ;;  %v9742_v14 = vld [vmem:[#allocation6_spill] sm:$0xff]  ;;  %v9743_v13 = vld [vmem:[#allocation92_spill] sm:$0xff] }
 0x827   : > { %v4199_v57 = vadd.f32 %v4193_v51, %v4153_v10  ;;  %v3967_v55 = vmul.f32 %v9740_v3, %v8527_v58  ;;  %v4012_v27 = vmul.f32 %v9741_v56, %v8516_v31  ;;  %v4013_v47 = vmul.f32 %v9742_v14, %v8546_v8  ;;  %4667 = vrot.lane.b32.xlu0 %v8060_v38, %s9238_s7  ;;  %v9744_v51 = vld [vmem:[#allocation75_spill] sm:$0xff]  ;;  %v9745_v58 = vld [vmem:[#allocation45_spill] sm:$0xff] }
 0x828   : > { %v4246_v45 = vadd.f32 %v4240_v39, %v4200_v22  ;;  %v3880_v21 = vadd.f32 %v3874_v32, %v3834_v34  ;;  %v3881_v33 = vadd.f32 %v3875_v18, %v3835_v59  ;;  %v4058_v5 = vmul.f32 %v9743_v13, %v8522_v62  ;;  %v9746_v31 = vld [vmem:[#allocation33_spill] sm:$0xff]  ;;  %v9747_v32 = vld [vmem:[#allocation74_spill] sm:$0xff] }
 0x829   : > { %v4245_v37 = vadd.f32 %v4239_v50, %v4199_v57  ;;  %v4059_v15 = vmul.f32 %v9744_v51, %v8555_v49  ;;  %v4104_v36 = vmul.f32 %v9745_v58, %v8531_v54  ;;  %v4105_v10 = vmul.f32 %v9746_v31, %v8565_v20  ;;  %4673 = vrot.lane.b32.xlu1 %v8031_v16, %s9238_s7  ;;  %v9748_v50 = vld [vmem:[#allocation47_spill] sm:$0xff]  ;;  %v9749_v49 = vld [vmem:[#allocation18_spill] sm:$0xff]  ;;  %v9750_v54 = vld [vmem:[#allocation69_spill] sm:$0xff] }
 0x82a   : > { %v4270_v8 = vadd.f32 %v4264_v29, %v4246_v45  ;;  %v3926_v39 = vadd.f32 %v3920_v52, %v3880_v21  ;;  %v3927_v22 = vadd.f32 %v3921_v0, %v3881_v33  ;;  %v4150_v60 = vmul.f32 %v9747_v32, %v8552_v9  ;;  %v9757_v31 = vld [vmem:[#allocation21_spill] sm:$0xff] }
 0x82b   : > { %v4269_v62 = vadd.f32 %v4263_v24, %v4245_v37  ;;  %v4151_v61 = vmul.f32 %v9748_v50, %v8593_v26  ;;  %v4196_v18 = vmul.f32 %v9749_v49, %v8559_v2  ;;  %v4197_v1 = vmul.f32 %v9750_v54, %v8597_v35  ;;  %4671 = vrot.lane.b32.xlu0 %v8579_v48, %s9238_s7  ;;  %v9752_v24 = vld [vmem:[#allocation37_spill] sm:$0xff]  ;;  %v9753_v26 = vld [vmem:[#allocation76_spill] sm:$0xff] }
 0x82c   : > { %v4316_v20 = vadd.f32 %v4310_v7, %v4270_v8  ;;  %v3972_v29 = vadd.f32 %v3966_v30, %v3926_v39  ;;  %v3973_v52 = vadd.f32 %v3967_v55, %v3927_v22  ;;  %v4313_v0 = vmul.f32 %v9751_v41, %v4282_v43  ;;  %v9754_v2 = vld [vmem:[#allocation48_spill] sm:$0xff]  ;;  %v4911_v33 = vpop.permute.xlu1 %4910  ;;  %v5302_v41 = vld [vmem:[%s8939_s11] sm:$0xff]  }
 0x82d   : > { %v4315_v9 = vadd.f32 %v4309_v53, %v4269_v62  ;;  %v4355_v34 = vmul.f32 %v9752_v24, %v8637_v25  ;;  %v4242_v59 = vmul.f32 %v9753_v26, %v8569_v4  ;;  %v4243_v40 = vmul.f32 %v9754_v2, %v8601_v63  ;;  %v9755_v7 = vld [vmem:[#allocation64_spill] sm:$0xff]  ;;  %4677 = vrot.lane.b32.xlu1 %v8046_v19, %s9238_s7 }
 0x82e   : > { %v4018_v57 = vadd.f32 %v4012_v27, %v3972_v29  ;;  %v4019_v35 = vadd.f32 %v4013_v47, %v3973_v52  ;;  %v4312_v30 = vmul.f32 %v9755_v7, %v8611_v42  ;;  %v4266_v45 = vmul.f32 %v8031_v16, %v8587_v17  ;;  %v9756_v17 = vld [vmem:[#allocation72_spill] sm:$0xff] }
 0x82f   : > { %v8705_v43 = vadd.f32 %v4355_v34, %v4315_v9  ;;  %4675 = vrot.lane.b32.xlu0 %v8025_v6, %s9238_s7  ;;  %v4267_v21 = vmul.f32 %v8025_v6, %v8607_v44  ;;  %v4332_v44 = vrot.slane %v9756_v17, %v9728_v12  ;;  %v4328_v58 = vrot.slane %v8443_v23, %v9728_v12  ;;  %v9763_v54 = vld [vmem:[#allocation12_spill] sm:$0xff] }
 0x830   : > { %v4064_v53 = vadd.f32 %v4058_v5, %v4018_v57  ;;  %v4065_v3 = vadd.f32 %v4059_v15, %v4019_v35  ;;  %v9770_v57 = vld [vmem:[#allocation43_spill] sm:$0xff] }
 0x831   : > { %4717 = vrot.lane.b32.xlu1 %v8037_v11, %s9241_s8  ;;  %v4378_v35 = vrot.slane %v9756_v17, %v9770_v57 }
 0x832   : > { %v4110_v55 = vadd.f32 %v4104_v36, %v4064_v53  ;;  %v4111_v4 = vadd.f32 %v4105_v10, %v4065_v3 }
 0x833   : > { %4679 = vrot.lane.b32.xlu0 %v8650_v28, %s9238_s7  ;;  %s8890_s7 = sld [smem:[#allocation5]] }
 0x834   : > { %v4156_v63 = vadd.f32 %v4150_v60, %v4110_v55  ;;  %v4157_v56 = vadd.f32 %v4151_v61, %v4111_v4  ;;  %v9760_v60 = vld [vmem:[#allocation11_spill] sm:$0xff] }
 0x835   : > { %4721 = vrot.lane.b32.xlu1 %v8016_v46, %s9241_s8 }
 0x836   : > { %v4202_v42 = vadd.f32 %v4196_v18, %v4156_v63  ;;  %v4203_v27 = vadd.f32 %v4197_v1, %v4157_v56  ;;  %v9762_v18 = vmov 0.0   ;;  %v9764_v1 = vld [vmem:[#allocation13_spill] sm:$0xff]  ;;  %v9772_v63 = vld [vmem:[#allocation98_spill] sm:$0xff] }
 0x837   : > { %4719 = vrot.lane.b32.xlu0 %v8060_v38, %s9241_s8  ;;  %v4918_v29 = vsel %vm9765_vm0, %v9764_v1, %v9763_v54  ;;  %v4370_v56 = vrot.slane %v9772_v63, %v9770_v57 }
 0x838   : > { %v4248_v14 = vadd.f32 %v4242_v59, %v4202_v42  ;;  %v4249_v47 = vadd.f32 %v4243_v40, %v4203_v27  ;;  %v4374_v42 = vrot.slane %v8443_v23, %v9770_v57 }
 0x839   : > { %4725 = vrot.lane.b32.xlu1 %v8031_v16, %s9241_s8  ;;  %v4913_v51 = vpop.permute.xlu1 %4912 }
 0x83a   : > { %v4272_v13 = vadd.f32 %v4266_v45, %v4248_v14  ;;  %v4273_v5 = vadd.f32 %v4267_v21, %v4249_v47  ;;  %v4919_v50 = vsel %vm9761_vm11, %v4911_v33, %v4913_v51 }
 0x83b   : > { %4723 = vrot.lane.b32.xlu0 %v8579_v48, %s9241_s8 }
 0x83c   : > { %v4318_v37 = vadd.f32 %v4312_v30, %v4272_v13  ;;  %v4319_v15 = vadd.f32 %v4313_v0, %v4273_v5  ;;  %v9767_v0 = vld [vmem:[#allocation14_spill] sm:$0xff]  ;;  %v9771_v30 = vld [vmem:[#allocation35_spill] sm:$0xff] }
 0x83d   : > { %4729 = vrot.lane.b32.xlu1 %v8046_v19, %s9241_s8  ;;  %v4338_v36 = vpop.permute.xlu1 %4337  ;;  %v4917_v9 = vsel %vm9768_vm1, %v9767_v0, %v9764_v1  ;;  %v5382_v0 = vld [vmem:[#allocation4 + $0x68] sm:$0xff] }
 0x83e   : > { %v4346_v10 = vsel %vm9758_vm7, %v9757_v31, %v4338_v36  ;;  %v4357_v8 = vmul.f32 %v4338_v36, %v4332_v44  ;;  %v9778_v36 = vld [vmem:[#allocation90_spill] sm:$0xff]  ;;  %vm9786_vm7 = vcmask 883712  }
 0x83f   : > { %4727 = vrot.lane.b32.xlu0 %v8025_v6, %s9241_s8  ;;  %v4356_v22 = vmul.f32 %v4346_v10, %v4328_v58 }
 0x840   : > { %v4363_v62 = vadd.f32 %v4357_v8, %v9760_v60  ;;  %v9779_v60 = vld [vmem:[#allocation57_spill] sm:$0xff] }
 0x841   : > { %v4915_v39 = vpop.permute.xlu0 %4914  ;;  %4769 = vrot.lane.b32.xlu1 %v8037_v11, %s9197_s17  ;;  %v4362_v61 = vadd.f32 %v4356_v22, %v4316_v20  ;;  %v4342_v49 = vpop.permute.xlu1 %4341 }
 0x842   : > { %5194 = vmatpush3.bf16.msra.mxu1 %v4915_v39  ;;  %v4920_v32 = vsel %vm9759_vm5, %v4913_v51, %v4915_v39  ;;  %vm9787_vm5 = vmmov %vm9786_vm7 }
 0x843   : > { %4731 = vrot.lane.b32.xlu0 %v8650_v28, %s9241_s8  ;;  %4943 = vmatprep.subr.bf16.mxu0 %v4920_v32  ;;  %vm9788_vm11 = vmmov %vm9787_vm5  ;;  %s5023_s8 = ssub.f32 1.0, %s8890_s7 }
 0x844   : > { %4944 = vmatpush1.bf16.msra.mxu0 %v4919_v50  ;;  %5195 = vmatprep.subr.bf16.mxu1 %v9762_v18  ;;  %vm9789_vm0 = vmmov %vm9787_vm5 }
 0x845   : > { %v4340_v52 = vpop.permute.xlu0 %4339  ;;  %4945 = vmatprep.subr.bf16.mxu0 %v4918_v29  ;;  %4773 = vrot.lane.b32.xlu1 %v8016_v46, %s9197_s17  ;;  %v4380_v34 = vpop.permute.xlu1 %4379 }
 0x846   : > { %5196 = vmatpush3.bf16.msra.mxu1 %v9763_v54  ;;  %v4347_v20 = vsel %vm9766_vm15, %v4340_v52, %v4342_v49 }
 0x847   : > { %4771 = vrot.lane.b32.xlu0 %v8060_v38, %s9197_s17  ;;  %v4358_v24 = vmul.f32 %v4347_v20, %v8637_v25 }
 0x848   : > { %4946 = vmatpush1.bf16.msra.mxu0 %v4917_v9 }
 0x849   : > { %5198 = vmatmul.mubr.msk.bf16.vlgmr.msra.gmra.mxu1 %vm4927_vm6, %v5302_v41  ;;  %v4344_v26 = vpop.permute.xlu0 %4343  ;;  %v4364_v59 = vadd.f32 %v4358_v24, %v4318_v37  ;;  %4777 = vrot.lane.b32.xlu1 %v8031_v16, %s9197_s17 }
 0x84a   : > { %v4360_v2 = vmul.f32 %v4344_v26, %v4332_v44  ;;  %v4348_v40 = vsel %vm9769_vm3, %v4342_v49, %v4344_v26  ;;  %v4384_v25 = vpop.permute.xlu1 %4383 }
 0x84b   : > { %v4359_v7 = vmul.f32 %v4348_v40, %v4328_v58  ;;  %4775 = vrot.lane.b32.xlu0 %v8579_v48, %s9197_s17  ;;  %5169 = vmatmul.mubr.msk.bf16.vlgmr.msra.gmra.mxu0 %vm4927_vm6, %v5302_v41  ;;  %v4403_v3 = vmul.f32 %v4384_v25, %v4378_v35  ;;  %v9777_v58 = vld [vmem:[#allocation7_spill] sm:$0xff]  ;;  %vm9791_vm6 = vcmask 875520  }
 0x84c   : > { %v4366_v53 = vadd.f32 %v4360_v2, %v9771_v30  ;;  %v4424_v31 = vrot.slane %v9778_v36, %v9777_v58  ;;  %v9785_v2 = vld [vmem:[#allocation9_spill] sm:$0xff]  ;;  %vm9792_vm15 = vmmov %vm9791_vm6 }
 0x84d   : > { %v4365_v55 = vadd.f32 %v4359_v7, %v4319_v15  ;;  %v4382_v4 = vpop.permute.xlu0 %4381  ;;  %4781 = vrot.lane.b32.xlu1 %v8046_v19, %s9197_s17  ;;  %v4409_v47 = vadd.f32 %v4403_v3, %v4363_v62  ;;  %v4416_v62 = vrot.slane %v9779_v60, %v9777_v58  ;;  %vm9793_vm1 = vmmov %vm9791_vm6 }
 0x84e   : > { %v4391_v27 = vsel %vm9773_vm9, %v4380_v34, %v4382_v4  ;;  %v4392_v14 = vsel %vm9774_vm13, %v4382_v4, %v4384_v25  ;;  %v4388_v33 = vpop.permute.xlu1 %4387  ;;  %v4882_v25 = vld [vmem:[%s8940_s12 + $0x8] sm:$0xff]  ;;  %vm9794_vm3 = vmmov %vm9793_vm1  ;;  %vm9796_vm9 = vcmask 867328  }
 0x84f   : > { %v4401_v45 = vmul.f32 %v4391_v27, %v4370_v56  ;;  %4779 = vrot.lane.b32.xlu0 %v8025_v6, %s9197_s17  ;;  %v4402_v21 = vmul.f32 %v4392_v14, %v4374_v42  ;;  %vm9797_vm13 = vmmov %vm9796_vm9 }
 0x851   : > { %v4407_v13 = vadd.f32 %v4401_v45, %v8705_v43  ;;  %v4386_v5 = vpop.permute.xlu0 %4385  ;;  %v4408_v37 = vadd.f32 %v4402_v21, %v4362_v61  ;;  %4821 = vrot.lane.b32.xlu1 %v8037_v11, %s9198_s21 }
 0x852   : > { %v4393_v23 = vsel %vm9775_vm4, %v4386_v5, %v4388_v33  ;;  %v4426_v15 = vpop.permute.xlu1 %4425  ;;  %vm9798_vm4 = vmmov %vm9796_vm9 }
 0x853   : > { %4783 = vrot.lane.b32.xlu0 %v8650_v28, %s9197_s17  ;;  %v4404_v51 = vmul.f32 %v4393_v23, %v4370_v56 }
 0x855   : > { %v4390_v17 = vpop.permute.xlu0 %4389  ;;  %v4410_v44 = vadd.f32 %v4404_v51, %v4364_v59  ;;  %4825 = vrot.lane.b32.xlu1 %v8016_v46, %s9198_s21  ;;  %v9780_v46 = vld [vmem:[#allocation53_spill] sm:$0xff] }
 0x856   : > { %v4406_v6 = vmul.f32 %v4390_v17, %v4378_v35  ;;  %v4394_v43 = vsel %vm9776_vm8, %v4388_v33, %v4390_v17  ;;  %v4420_v50 = vrot.slane %v9780_v46, %v9777_v58  ;;  %v4466_v4 = vrot.slane %v9780_v46, %v9785_v2  ;;  %v9790_v17 = vld [vmem:[#allocation8_spill] sm:$0xff]  ;;  %vm9799_vm8 = vmmov %vm9798_vm4 }
 0x857   : > { %v4405_v10 = vmul.f32 %v4394_v43, %v4374_v42  ;;  %4823 = vrot.lane.b32.xlu0 %v8060_v38, %s9198_s21  ;;  %v4430_v11 = vpop.permute.xlu1 %4429 }
 0x858   : > { %v4412_v8 = vadd.f32 %v4406_v6, %v4366_v53  ;;  %v4449_v39 = vmul.f32 %v4430_v11, %v4424_v31 }
 0x859   : > { %v4411_v22 = vadd.f32 %v4405_v10, %v4365_v55  ;;  %v4428_v32 = vpop.permute.xlu0 %4427  ;;  %4829 = vrot.lane.b32.xlu1 %v8031_v16, %s9198_s21  ;;  %v4881_v16 = vld [vmem:[%s8940_s12] sm:$0xff]  ;;  %v4462_v55 = vrot.slane %v9779_v60, %v9785_v2 }
 0x85a   : > { %v4437_v61 = vsel %vm9781_vm14, %v4426_v15, %v4428_v32  ;;  %v4438_v49 = vsel %vm9782_vm2, %v4428_v32, %v4430_v11  ;;  %v4455_v18 = vadd.f32 %v4449_v39, %v4409_v47  ;;  %v4508_v39 = vrot.slane %v9779_v60, %v9790_v17 }
 0x85b   : > { %v4447_v38 = vmul.f32 %v4437_v61, %v4416_v62  ;;  %4827 = vrot.lane.b32.xlu0 %v8579_v48, %s9198_s21  ;;  %v4448_v54 = vmul.f32 %v4438_v49, %v4420_v50  ;;  %v4434_v1 = vpop.permute.xlu1 %4433  ;;  %vm9801_vm14 = vcmask 736256  }
 0x85c   : > { %vm9802_vm2 = vmmov %vm9801_vm14 }
 0x85d   : > { %v4453_v29 = vadd.f32 %v4447_v38, %v4407_v13  ;;  %v4432_v52 = vpop.permute.xlu0 %4431  ;;  %v4454_v41 = vadd.f32 %v4448_v54, %v4408_v37  ;;  %4833 = vrot.lane.b32.xlu1 %v8046_v19, %s9198_s21  ;;  %v4470_v19 = vrot.slane %v9778_v36, %v9785_v2 }
 0x85e   : > { %v4439_v20 = vsel %vm9783_vm10, %v4432_v52, %v4434_v1  ;;  %vm9803_vm10 = vmmov %vm9802_vm2 }
 0x85f   : > { %4831 = vrot.lane.b32.xlu0 %v5382_v0, %s9198_s21  ;;  %v4450_v9 = vmul.f32 %v4439_v20, %v4416_v62  ;;  %v4472_v24 = vpop.permute.xlu1 %4471 }
 0x861   : > { %v4436_v48 = vpop.permute.xlu0 %4435  ;;  %v4456_v34 = vadd.f32 %v4450_v9, %v4410_v44  ;;  %4885 = vperm.xlu1 %5287, %v4881_v16   ;;  %v4516_v44 = vrot.slane %v9778_v36, %v9790_v17 }
 0x862   : > { %v4452_v26 = vmul.f32 %v4436_v48, %v4424_v31  ;;  %v4440_v59 = vsel %vm9784_vm12, %v4434_v1, %v4436_v48  ;;  %vm9804_vm12 = vmmov %vm9802_vm2 }
 0x863   : > { %v4451_v40 = vmul.f32 %v4440_v59, %v4420_v50  ;;  %4835 = vrot.lane.b32.xlu0 %v8650_v28, %s9198_s21  ;;  %v4476_v35 = vpop.permute.xlu1 %4475 }
 0x864   : > { %v4458_v7 = vadd.f32 %v4452_v26, %v4412_v8  ;;  %v4495_v30 = vmul.f32 %v4476_v35, %v4470_v19 }
 0x865   : > { %v4457_v53 = vadd.f32 %v4451_v40, %v4411_v22  ;;  %v4474_v3 = vpop.permute.xlu0 %4473  ;;  %v4512_v22 = vrot.slane %v9780_v46, %v9790_v17 }
 0x866   : > { %v4483_v63 = vsel %vm9786_vm7, %v4472_v24, %v4474_v3  ;;  %v4484_v56 = vsel %vm9787_vm5, %v4474_v3, %v4476_v35  ;;  %v4501_v28 = vadd.f32 %v4495_v30, %v4455_v18  ;;  %v9795_v24 = vld [vmem:[#allocation10_spill] sm:$0xff]  ;;  %vm9805_vm7 = vmmov %vm9802_vm2 }
 0x867   : > { %v4493_v42 = vmul.f32 %v4483_v63, %v4462_v55  ;;  %4890 = vperm.xlu0 %5288, %v4882_v25   ;;  %v4494_v27 = vmul.f32 %v4484_v56, %v4466_v4  ;;  %v4480_v14 = vpop.permute.xlu1 %4479  ;;  %v4562_v48 = vrot.slane %v9778_v36, %v9795_v24  ;;  %v4554_v35 = vrot.slane %v9779_v60, %v9795_v24  ;;  %vm9806_vm5 = vmmov %vm9802_vm2 }
 0x869   : > { %v4499_v47 = vadd.f32 %v4493_v42, %v4453_v29  ;;  %v4478_v45 = vpop.permute.xlu0 %4477  ;;  %v4500_v21 = vadd.f32 %v4494_v27, %v4454_v41 }
 0x86a   : > { %v4485_v33 = vsel %vm9788_vm11, %v4478_v45, %v4480_v14  ;;  %vm9808_vm11 = vcmask 728064  }
 0x86b   : > { %v4496_v13 = vmul.f32 %v4485_v33, %v4462_v55  ;;  %v4518_v5 = vpop.permute.xlu1 %4517 }
 0x86d   : > { %v4482_v37 = vpop.permute.xlu0 %4481  ;;  %v4502_v23 = vadd.f32 %v4496_v13, %v4456_v34 }
 0x86e   : > { %v4498_v51 = vmul.f32 %v4482_v37, %v4470_v19  ;;  %v4486_v15 = vsel %vm9789_vm0, %v4480_v14, %v4482_v37  ;;  %vm9809_vm0 = vmmov %vm9808_vm11 }
 0x86f   : > { %v4497_v6 = vmul.f32 %v4486_v15, %v4466_v4  ;;  %v4522_v43 = vpop.permute.xlu1 %4521  ;;  %v9800_v15 = vld [vmem:[#allocation68_spill] sm:$0xff] }
 0x870   : > { %v4504_v31 = vadd.f32 %v4498_v51, %v4458_v7  ;;  %v4541_v10 = vmul.f32 %v4522_v43, %v4516_v44  ;;  %v4558_v7 = vrot.slane %v9780_v46, %v9795_v24  ;;  %v4602_v17 = vrot.slane %v9779_v60, %v9800_v15 }
 0x871   : > { %v4503_v11 = vadd.f32 %v4497_v6, %v4457_v53  ;;  %v4520_v8 = vpop.permute.xlu0 %4519 }
 0x872   : > { %v4529_v32 = vsel %vm9791_vm6, %v4518_v5, %v4520_v8  ;;  %v4530_v62 = vsel %vm9792_vm15, %v4520_v8, %v4522_v43  ;;  %v4547_v50 = vadd.f32 %v4541_v10, %v4501_v28  ;;  %vm9810_vm6 = vmmov %vm9809_vm0 }
 0x873   : > { %v4539_v61 = vmul.f32 %v4529_v32, %v4508_v39  ;;  %v4540_v49 = vmul.f32 %v4530_v62, %v4512_v22  ;;  %v4526_v18 = vpop.permute.xlu1 %4525  ;;  %vm9811_vm15 = vmmov %vm9809_vm0 }
 0x875   : > { %v4545_v38 = vadd.f32 %v4539_v61, %v4499_v47  ;;  %v4524_v54 = vpop.permute.xlu0 %4523  ;;  %v4546_v1 = vadd.f32 %v4540_v49, %v4500_v21 }
 0x876   : > { %v4531_v29 = vsel %vm9793_vm1, %v4524_v54, %v4526_v18  ;;  %vm9812_vm1 = vmmov %vm9809_vm0 }
 0x877   : > { %v4542_v52 = vmul.f32 %v4531_v29, %v4508_v39  ;;  %v4564_v41 = vpop.permute.xlu1 %4563 }
 0x879   : > { %v4528_v20 = vpop.permute.xlu0 %4527  ;;  %v4548_v16 = vadd.f32 %v4542_v52, %v4502_v23 }
 0x87a   : > { %v4544_v0 = vmul.f32 %v4528_v20, %v4516_v44  ;;  %v4532_v9 = vsel %vm9794_vm3, %v4526_v18, %v4528_v20  ;;  %v4606_v44 = vrot.slane %v9780_v46, %v9800_v15  ;;  %vm9813_vm3 = vmmov %vm9809_vm0 }
 0x87b   : > { %v4543_v34 = vmul.f32 %v4532_v9, %v4512_v22  ;;  %v4568_v26 = vpop.permute.xlu1 %4567  ;;  %v4610_v22 = vrot.slane %v9778_v36, %v9800_v15 }
 0x87c   : > { %v4550_v59 = vadd.f32 %v4544_v0, %v4504_v31  ;;  %v4587_v2 = vmul.f32 %v4568_v26, %v4562_v48 }
 0x87d   : > { %v4549_v19 = vadd.f32 %v4543_v34, %v4503_v11  ;;  %v4566_v40 = vpop.permute.xlu0 %4565 }
 0x87e   : > { %v4575_v25 = vsel %vm9796_vm9, %v4564_v41, %v4566_v40  ;;  %v4576_v30 = vsel %vm9797_vm13, %v4566_v40, %v4568_v26  ;;  %v4593_v53 = vadd.f32 %v4587_v2, %v4547_v50  ;;  %v9807_v26 = vld [vmem:[#allocation63_spill] sm:$0xff]  ;;  %vm9814_vm9 = vcmask 719872  }
 0x87f   : > { %v4585_v3 = vmul.f32 %v4575_v25, %v4554_v35  ;;  %v4586_v55 = vmul.f32 %v4576_v30, %v4558_v7  ;;  %v4572_v4 = vpop.permute.xlu1 %4571  ;;  %v4660_v2 = vrot.slane %v9780_v46, %v9807_v26  ;;  %vm9815_vm13 = vmmov %vm9814_vm9 }
 0x881   : > { %v4591_v63 = vadd.f32 %v4585_v3, %v4545_v38  ;;  %v4570_v56 = vpop.permute.xlu0 %4569  ;;  %v4592_v28 = vadd.f32 %v4586_v55, %v4546_v1  ;;  %v4664_v3 = vrot.slane %v9778_v36, %v9807_v26 }
 0x882   : > { %v4577_v42 = vsel %vm9798_vm4, %v4570_v56, %v4572_v4  ;;  %vm9816_vm4 = vmmov %vm9814_vm9 }
 0x883   : > { %v4588_v27 = vmul.f32 %v4577_v42, %v4554_v35  ;;  %v4614_v14 = vpop.permute.xlu1 %4613 }
 0x885   : > { %v4574_v47 = vpop.permute.xlu0 %4573  ;;  %v4594_v45 = vadd.f32 %v4588_v27, %v4548_v16 }
 0x886   : > { %v4590_v21 = vmul.f32 %v4574_v47, %v4562_v48  ;;  %v4578_v33 = vsel %vm9799_vm8, %v4572_v4, %v4574_v47  ;;  %vm9817_vm8 = vmmov %vm9816_vm4 }
 0x887   : > { %v4589_v13 = vmul.f32 %v4578_v33, %v4558_v7  ;;  %v4618_v5 = vpop.permute.xlu1 %4617 }
 0x888   : > { %v4596_v37 = vadd.f32 %v4590_v21, %v4550_v59  ;;  %v4656_v59 = vrot.slane %v9779_v60, %v9807_v26  ;;  %v4760_v26 = vrot.slane %v9779_v60, %v9770_v57 }
 0x889   : > { %v4595_v23 = vadd.f32 %v4589_v13, %v4549_v19  ;;  %v4616_v51 = vpop.permute.xlu0 %4615 }
 0x88a   : > { %v4629_v6 = vsel %vm9801_vm14, %v4614_v14, %v4616_v51  ;;  %v4630_v43 = vsel %vm9802_vm2, %v4616_v51, %v4618_v5  ;;  %vm9818_vm14 = vmmov %vm9816_vm4 }
 0x88b   : > { %v4641_v31 = vmul.f32 %v4629_v6, %v4602_v17  ;;  %v4642_v10 = vmul.f32 %v4630_v43, %v4606_v44  ;;  %v4622_v11 = vpop.permute.xlu1 %4621  ;;  %v4712_v6 = vrot.slane %v9780_v46, %v9728_v12  ;;  %vm9819_vm2 = vmmov %vm9816_vm4 }
 0x88d   : > { %v4647_v8 = vadd.f32 %v4641_v31, %v4591_v63  ;;  %v4620_v39 = vpop.permute.xlu0 %4619  ;;  %v4648_v32 = vadd.f32 %v4642_v10, %v4592_v28 }
 0x88e   : > { %v4631_v62 = vsel %vm9803_vm10, %v4618_v5, %v4620_v39  ;;  %vm9820_vm10 = vcmask 711680  }
 0x88f   : > { %v4643_v50 = vmul.f32 %v4631_v62, %v4610_v22  ;;  %v4626_v61 = vpop.permute.xlu1 %4625 }
 0x891   : > { %v4649_v49 = vadd.f32 %v4643_v50, %v4593_v53  ;;  %v4624_v18 = vpop.permute.xlu0 %4623 }
 0x892   : > { %v4632_v38 = vsel %vm9804_vm12, %v4622_v11, %v4624_v18  ;;  %v4633_v54 = vsel %vm9805_vm7, %v4624_v18, %v4626_v61  ;;  %vm9821_vm12 = vmmov %vm9820_vm10 }
 0x893   : > { %v4644_v1 = vmul.f32 %v4632_v38, %v4602_v17  ;;  %v4645_v29 = vmul.f32 %v4633_v54, %v4606_v44  ;;  %v4666_v52 = vpop.permute.xlu1 %4665  ;;  %v4708_v44 = vrot.slane %v9779_v60, %v9728_v12  ;;  %vm9822_vm7 = vmmov %vm9820_vm10 }
 0x895   : > { %v4650_v41 = vadd.f32 %v4644_v1, %v4594_v45  ;;  %v4628_v20 = vpop.permute.xlu0 %4627  ;;  %v4651_v16 = vadd.f32 %v4645_v29, %v4595_v23 }
 0x896   : > { %v4634_v0 = vsel %vm9806_vm5, %v4626_v61, %v4628_v20  ;;  %vm9823_vm5 = vmmov %vm9822_vm7 }
 0x897   : > { %v4646_v9 = vmul.f32 %v4634_v0, %v4610_v22  ;;  %v4670_v24 = vpop.permute.xlu1 %4669 }
 0x899   : > { %v4652_v48 = vadd.f32 %v4646_v9, %v4596_v37  ;;  %v4668_v34 = vpop.permute.xlu0 %4667 }
 0x89a   : > { %v4681_v19 = vsel %vm9808_vm11, %v4666_v52, %v4668_v34  ;;  %v4682_v40 = vsel %vm9809_vm0, %v4668_v34, %v4670_v24  ;;  %vm9824_vm11 = vmmov %vm9823_vm5 }
 0x89b   : > { %v4693_v35 = vmul.f32 %v4681_v19, %v4656_v59  ;;  %v4694_v7 = vmul.f32 %v4682_v40, %v4660_v2  ;;  %v4674_v25 = vpop.permute.xlu1 %4673  ;;  %vm9825_vm0 = vmmov %vm9823_vm5 }
 0x89d   : > { %v4699_v30 = vadd.f32 %v4693_v35, %v4647_v8  ;;  %v4672_v53 = vpop.permute.xlu0 %4671  ;;  %v4700_v55 = vadd.f32 %v4694_v7, %v4648_v32  ;;  %v4716_v32 = vrot.slane %v9778_v36, %v9728_v12 }
 0x89e   : > { %v4683_v4 = vsel %vm9810_vm6, %v4670_v24, %v4672_v53  ;;  %v4768_v53 = vrot.slane %v9778_v36, %v9770_v57  ;;  %vm9828_vm6 = vcmask 703488  }
 0x89f   : > { %v4695_v63 = vmul.f32 %v4683_v4, %v4664_v3  ;;  %v4678_v56 = vpop.permute.xlu1 %4677 }
 0x8a1   : > { %v4701_v28 = vadd.f32 %v4695_v63, %v4649_v49  ;;  %v4676_v42 = vpop.permute.xlu0 %4675 }
 0x8a2   : > { %v4684_v27 = vsel %vm9811_vm15, %v4674_v25, %v4676_v42  ;;  %v4685_v14 = vsel %vm9812_vm1, %v4676_v42, %v4678_v56  ;;  %vm9829_vm15 = vmmov %vm9828_vm6 }
 0x8a3   : > { %v4696_v47 = vmul.f32 %v4684_v27, %v4656_v59  ;;  %v4697_v45 = vmul.f32 %v4685_v14, %v4660_v2  ;;  %v4718_v21 = vpop.permute.xlu1 %4717  ;;  %v4764_v59 = vrot.slane %v9780_v46, %v9770_v57  ;;  %vm9831_vm1 = vmmov %vm9828_vm6 }
 0x8a5   : > { %v4702_v33 = vadd.f32 %v4696_v47, %v4650_v41  ;;  %v4680_v13 = vpop.permute.xlu0 %4679  ;;  %v4703_v5 = vadd.f32 %v4697_v45, %v4651_v16 }
 0x8a6   : > { %v4686_v37 = vsel %vm9813_vm3, %v4678_v56, %v4680_v13  ;;  %vm9832_vm3 = vmmov %vm9831_vm1 }
 0x8a7   : > { %v4698_v23 = vmul.f32 %v4686_v37, %v4664_v3  ;;  %v4722_v51 = vpop.permute.xlu1 %4721  ;;  %v9826_v37 = vld [vmem:[#allocation59_spill] sm:$0xff] }
 0x8a9   : > { %v4704_v15 = vadd.f32 %v4698_v23, %v4652_v48  ;;  %v4720_v17 = vpop.permute.xlu0 %4719  ;;  %v4812_v23 = vrot.slane %v9826_v37, %v9777_v58 }
 0x8aa   : > { %v4733_v43 = vsel %vm9814_vm9, %v4718_v21, %v4720_v17  ;;  %v4734_v31 = vsel %vm9815_vm13, %v4720_v17, %v4722_v51  ;;  %vm9833_vm9 = vmmov %vm9831_vm1 }
 0x8ab   : > { %v4745_v10 = vmul.f32 %v4733_v43, %v4708_v44  ;;  %v4746_v11 = vmul.f32 %v4734_v31, %v4712_v6  ;;  %v4726_v8 = vpop.permute.xlu1 %4725  ;;  %vm9834_vm13 = vmmov %vm9831_vm1 }
 0x8ad   : > { %v4751_v39 = vadd.f32 %v4745_v10, %v4699_v30  ;;  %v4724_v22 = vpop.permute.xlu0 %4723  ;;  %v4752_v62 = vadd.f32 %v4746_v11, %v4700_v55  ;;  %v5024_v10 = vstv %s5023_s8 }
 0x8ae   : > { %v4735_v50 = vsel %vm9816_vm4, %v4722_v51, %v4724_v22  ;;  %v9827_v51 = vld [vmem:[#allocation54_spill] sm:$0xff]  ;;  %vm9835_vm4 = vmmov %vm9831_vm1 }
 0x8af   : > { %v4747_v61 = vmul.f32 %v4735_v50, %v4716_v32  ;;  %v4730_v49 = vpop.permute.xlu1 %4729 }
 0x8b1   : > { %v4753_v18 = vadd.f32 %v4747_v61, %v4701_v28  ;;  %v4728_v38 = vpop.permute.xlu0 %4727 }
 0x8b2   : > { %v4736_v54 = vsel %vm9817_vm8, %v4726_v8, %v4728_v38  ;;  %v4737_v1 = vsel %vm9818_vm14, %v4728_v38, %v4730_v49  ;;  %vm9836_vm8 = vmmov %vm9831_vm1  ;;  %vm9837_vm14 = vcmask 490496  }
 0x8b3   : > { %v4748_v29 = vmul.f32 %v4736_v54, %v4708_v44  ;;  %v4749_v52 = vmul.f32 %v4737_v1, %v4712_v6  ;;  %v4770_v41 = vpop.permute.xlu1 %4769 }
 0x8b5   : > { %v4754_v20 = vadd.f32 %v4748_v29, %v4702_v33  ;;  %v4732_v16 = vpop.permute.xlu0 %4731  ;;  %v4755_v0 = vadd.f32 %v4749_v52, %v4703_v5 }
 0x8b6   : > { %v4738_v9 = vsel %vm9819_vm2, %v4730_v49, %v4732_v16  ;;  %vm9838_vm2 = vmmov %vm9831_vm1 }
 0x8b7   : > { %v4750_v12 = vmul.f32 %v4738_v9, %v4716_v32  ;;  %v4774_v24 = vpop.permute.xlu1 %4773 }
 0x8b9   : > { %v4756_v48 = vadd.f32 %v4750_v12, %v4704_v15  ;;  %v4772_v34 = vpop.permute.xlu0 %4771  ;;  %v4816_v15 = vrot.slane %v9827_v51, %v9777_v58 }
 0x8ba   : > { %v4785_v2 = vsel %vm9820_vm10, %v4770_v41, %v4772_v34  ;;  %v4786_v19 = vsel %vm9821_vm12, %v4772_v34, %v4774_v24  ;;  %vm9839_vm10 = vmmov %vm9831_vm1 }
 0x8bb   : > { %v4797_v40 = vmul.f32 %v4785_v2, %v4760_v26  ;;  %v4798_v35 = vmul.f32 %v4786_v19, %v4764_v59  ;;  %v4778_v7 = vpop.permute.xlu1 %4777  ;;  %vm9840_vm12 = vmmov %vm9837_vm14 }
 0x8bd   : > { %v4803_v25 = vadd.f32 %v4797_v40, %v4751_v39  ;;  %v4776_v30 = vpop.permute.xlu0 %4775  ;;  %v4804_v3 = vadd.f32 %v4798_v35, %v4752_v62  ;;  %v9830_v39 = vld [vmem:[#allocation89_spill] sm:$0xff] }
 0x8be   : > { %v4787_v55 = vsel %vm9822_vm7, %v4774_v24, %v4776_v30  ;;  %v4820_v22 = vrot.slane %v9830_v39, %v9777_v58 }
 0x8bf   : > { %v4799_v4 = vmul.f32 %v4787_v55, %v4768_v53  ;;  %v4782_v60 = vpop.permute.xlu1 %4781  ;;  %v5016_v55 = vstv %s8890_s7 }
 0x8c1   : > { %v4805_v46 = vadd.f32 %v4799_v4, %v4753_v18  ;;  %v4780_v63 = vpop.permute.xlu0 %4779 }
 0x8c2   : > { %v4788_v56 = vsel %vm9823_vm5, %v4778_v7, %v4780_v63  ;;  %v4789_v28 = vsel %vm9824_vm11, %v4780_v63, %v4782_v60 }
 0x8c3   : > { %v4800_v42 = vmul.f32 %v4788_v56, %v4760_v26  ;;  %v4801_v27 = vmul.f32 %v4789_v28, %v4764_v59  ;;  %v4822_v14 = vpop.permute.xlu1 %4821 }
 0x8c5   : > { %v4806_v47 = vadd.f32 %v4800_v42, %v4754_v20  ;;  %v4784_v45 = vpop.permute.xlu0 %4783  ;;  %v4807_v57 = vadd.f32 %v4801_v27, %v4755_v0 }
 0x8c6   : > { %v4790_v36 = vsel %vm9825_vm0, %v4782_v60, %v4784_v45 }
 0x8c7   : > { %v4802_v21 = vmul.f32 %v4790_v36, %v4768_v53  ;;  %v4826_v33 = vpop.permute.xlu1 %4825 }
 0x8c9   : > { %v4808_v13 = vadd.f32 %v4802_v21, %v4756_v48  ;;  %v4824_v5 = vpop.permute.xlu0 %4823 }
 0x8ca   : > { %v4837_v17 = vsel %vm9828_vm6, %v4822_v14, %v4824_v5  ;;  %v4838_v44 = vsel %vm9829_vm15, %v4824_v5, %v4826_v33 }
 0x8cb   : > { %v4849_v6 = vmul.f32 %v4837_v17, %v4812_v23  ;;  %v4850_v43 = vmul.f32 %v4838_v44, %v4816_v15  ;;  %v4830_v31 = vpop.permute.xlu1 %4829 }
 0x8cd   : > { %v4855_v11 = vadd.f32 %v4849_v6, %v4803_v25  ;;  %v4828_v8 = vpop.permute.xlu0 %4827  ;;  %v4856_v32 = vadd.f32 %v4850_v43, %v4804_v3 }
 0x8ce   : > { %v4839_v62 = vsel %vm9831_vm1, %v4826_v33, %v4828_v8 }
 0x8cf   : > { %v5025_v50 = vmul.f32 %v5024_v10, %v4855_v11  ;;  %v4851_v61 = vmul.f32 %v4839_v62, %v4820_v22  ;;  %v5026_v49 = vmul.f32 %v5024_v10, %v4856_v32  ;;  %v4834_v54 = vpop.permute.xlu1 %4833 }
 0x8d1   : > { %v4857_v18 = vadd.f32 %v4851_v61, %v4805_v46  ;;  %v4832_v38 = vpop.permute.xlu0 %4831  ;;  %5037 = vrot.lane.b32.xlu1 %v5025_v50, %s9198_s21  ;;  %5039 = vrot.lane.b32.xlu0 %v5026_v49, %s9198_s21 }
 0x8d2   : > { %v4840_v1 = vsel %vm9832_vm3, %v4830_v31, %v4832_v38  ;;  %v4841_v29 = vsel %vm9833_vm9, %v4832_v38, %v4834_v54 }
 0x8d3   : > { %v5027_v52 = vmul.f32 %v5024_v10, %v4857_v18  ;;  %v4852_v41 = vmul.f32 %v4840_v1, %v4812_v23  ;;  %v4853_v58 = vmul.f32 %v4841_v29, %v4816_v15 }
 0x8d5   : > { %v4858_v20 = vadd.f32 %v4852_v41, %v4806_v47  ;;  %v4836_v16 = vpop.permute.xlu0 %4835  ;;  %5041 = vrot.lane.b32.xlu1 %v5027_v52, %s9198_s21  ;;  %v4859_v0 = vadd.f32 %v4853_v58, %v4807_v57 }
 0x8d6   : > { %v4842_v9 = vsel %vm9834_vm13, %v4834_v54, %v4836_v16 }
 0x8d7   : > { %v5028_v12 = vmul.f32 %v5024_v10, %v4858_v20  ;;  %v4854_v24 = vmul.f32 %v4842_v9, %v4820_v22  ;;  %v5029_v48 = vmul.f32 %v5024_v10, %v4859_v0 }
 0x8d9   : > { %v4860_v34 = vadd.f32 %v4854_v24, %v4808_v13  ;;  %5043 = vrot.lane.b32.xlu0 %v5028_v12, %s9198_s21  ;;  %5045 = vrot.lane.b32.xlu1 %v5029_v48, %s9198_s21 }
 0x8db   : > { %v5030_v26 = vmul.f32 %v5024_v10, %v4860_v34 }
 0x8dc   : > { %v4886_v7 = vpop.permute.xlu1 %4885 }
 0x8dd   : > { %5047 = vrot.lane.b32.xlu0 %v5030_v26, %s9198_s21 }
 0x8e2   : > { %v4891_v25 = vpop.permute.xlu0 %4890 }
 0x909   : > { %v5008_v59 = vpop.f32.mrf.mxu1 }
 0x90a   : > { %v5009_v3 = vadd.f32 %v5008_v59, %v4886_v7 }
 0x90b   : > { %v5199_v2 = vpop.f32.mrf.mxu1  ;;  %v4965_v35 = vpop.f32.mrf.mxu0 }
 0x90c   : > { %v4966_v30 = vadd.f32 %v4965_v35, %v4886_v7  ;;  %v5019_v27 = vmul.f32 %v5016_v55, %v5009_v3 }
 0x90d   : > { %v5011_v19 = vpop.f32.mrf.mxu1  ;;  %v4967_v53 = vpop.f32.mrf.mxu0 }
 0x90e   : > { %v5017_v4 = vmul.f32 %v5016_v55, %v4966_v30  ;;  %v4968_v60 = vadd.f32 %v4967_v53, %v4886_v7  ;;  %v5012_v13 = vadd.f32 %v5011_v19, %v4891_v25 }
 0x90f   : > { %v5200_v40 = vpop.f32.mrf.mxu1  ;;  %v4969_v56 = vpop.f32.mrf.mxu0 }
 0x910   : > { %v5018_v14 = vmul.f32 %v5016_v55, %v4968_v60  ;;  %v4970_v47 = vadd.f32 %v4969_v56, %v4891_v25  ;;  %v5022_v44 = vmul.f32 %v5016_v55, %v5012_v13 }
 0x911   : > { %v4971_v57 = vpop.f32.mrf.mxu0 }
 0x912   : > { %v5020_v5 = vmul.f32 %v5016_v55, %v4970_v47  ;;  %v4972_v37 = vadd.f32 %v4971_v57, %v4891_v25 }
 0x914   : > { %v5021_v6 = vmul.f32 %v5016_v55, %v4972_v37 }
 0x943   : > { %v5038_v46 = vpop.permute.xlu1 %5037  ;;  %v5040_v63 = vpop.permute.xlu0 %5039 }
 0x944   : > { %v5049_v28 = vsel %vm9835_vm4, %v5038_v46, %v5040_v63 }
 0x945   : > { %v5059_v42 = vadd.f32 %v5049_v28, %v5017_v4 }
 0x947   : > { %5065 = vst [vmem:[%s522_s18] sm:$0xff] %v5059_v42  ;;  %v5042_v45 = vpop.permute.xlu1 %5041 }
 0x948   : > { %v5050_v36 = vsel %vm9836_vm8, %v5040_v63, %v5042_v45  ;;  %v5061_v21 = vadd.f32 %v5042_v45, %v5019_v27 }
 0x949   : > { %v5060_v33 = vadd.f32 %v5050_v36, %v5018_v14 }
 0x94a   : > { %5067 = vst.msk [vmem:[%s522_s18 + $0x10] sm:$0xff] %vm9837_vm14, %v5061_v21 }
 0x94b   : > { %5066 = vst [vmem:[%s522_s18 + $0x8] sm:$0xff] %v5060_v33  ;;  %v5044_v23 = vpop.permute.xlu0 %5043  ;;  %v5046_v51 = vpop.permute.xlu1 %5045 }
 0x94c   : > { %v5051_v15 = vsel %vm9838_vm2, %v5044_v23, %v5046_v51 }
 0x94d   : > { %v5062_v17 = vadd.f32 %v5051_v15, %v5020_v5 }
 0x94f   : > { %v5048_v43 = vpop.permute.xlu0 %5047  ;;  %5068 = vst [vmem:[%s522_s18 + $0x18] sm:$0xff] %v5062_v17 }
 0x950   : > { %v5064_v31 = vadd.f32 %v5048_v43, %v5022_v44  ;;  %v5052_v10 = vsel %vm9839_vm10, %v5046_v51, %v5048_v43 }
 0x951   : > { %v5063_v11 = vadd.f32 %v5052_v10, %v5021_v6 }
 0x952   : > { %5070 = vst.msk [vmem:[%s522_s18 + $0x28] sm:$0xff] %vm9840_vm12, %v5064_v31 }
 0x953   : > { %5069 = vst [vmem:[%s522_s18 + $0x20] sm:$0xff] %v5063_v11 }
 0x954 PF: > { %s27_s23 = sadd.s32 1, %s5389_s23  }
 0x955   : > { %p24_p4 = scmp.ge.s32.totalorder %s27_s23, 4  }
 0x957   :  { %26 = sbr.rel (!%p24_p4) target bundleno = 13 (0xd), region = 114 }

</bundles_post_ra>
